<compile_context>
chip_gen: v6e
topology: v6e:2x2x1
jax: 0.10.0
libtpu: 0.0.40
codegen_flags: <defaults>
</compile_context>

<pallas_src>
import jax
import jax.numpy as jnp
from jax.experimental import pallas as pl
from jax.experimental.pallas import tpu as pltpu

SEQ_LEN = 11     # forced by reshape(-1, 11 * n_hidden) in the PyTorch forward
LANE = 128
SUBLANE = 8


def _round_up(x, m):
    return (x + m - 1) // m * m


def _permute_ifgo_to_ifog(w_t):
    """Permute the 4H gate axis from PyTorch order [i|f|g|o] to [i|f|o|g]."""
    h4 = w_t.shape[-1]
    h = h4 // 4
    return jnp.concatenate(
        [w_t[..., : 2 * h], w_t[..., 3 * h:], w_t[..., 2 * h:3 * h]], axis=-1)


# ----------------------------- fused forward kernel ---------------------------
def make_fused_kernel(n_layer, seq_len, b_pad, n_hidden, v_pad):
    """Single-invocation kernel: wavefront-pipelined LSTM layers + streamed FC."""
    T, Bp, H, Vp = seq_len, b_pad, n_hidden, v_pad

    def kernel(*refs):
        # -------- unpack refs (inputs..., outputs..., scratch...) --------
        x_ref = refs[0]                                    # (T*Bp, F) time-major rows
        idx = 1
        lstm_w = []
        for _ in range(n_layer):
            lstm_w.append((refs[idx], refs[idx + 1], refs[idx + 2]))
            idx += 3
        wfc_hbm, bfc_ref = refs[idx], refs[idx + 1]        # (T, H, Vp) bf16 HBM, (1, Vp) f32
        out_ref, hn_ref, cn_ref = refs[idx + 2], refs[idx + 3], refs[idx + 4]
        wfc_vmem, dma_sem = refs[idx + 5], refs[idx + 6]   # (T, H, Vp) bf16 VMEM, DMA sems

        # ---- 1. Kick off all FC-weight chunk DMAs; hide them behind the recurrence.
        fc_copies = []
        for t in range(T):
            cp = pltpu.make_async_copy(wfc_hbm.at[t], wfc_vmem.at[t], dma_sem.at[t])
            cp.start()
            fc_copies.append(cp)

        # ---- 2. Layer-0 input projection for all timesteps in one MXU pass (bf16).
        wih0_ref, _, b0_ref = lstm_w[0]
        x_bf = x_ref[...].astype(jnp.bfloat16)             # (T*Bp, F)
        xproj0 = jnp.dot(x_bf, wih0_ref[...],
                         preferred_element_type=jnp.float32) + b0_ref[...]  # (T*Bp, 4H)

        # ---- 3. Logits accumulator starts at the FC bias (lane-dense VMEM RMW).
        out_ref[...] = jnp.broadcast_to(bfc_ref[...], (Bp, Vp))

        h = [jnp.zeros((Bp, H), jnp.float32) for _ in range(n_layer)]
        c = [jnp.zeros((Bp, H), jnp.float32) for _ in range(n_layer)]

        # ---- 4. Wavefront: at wave w, layer l runs its step t = w - l.
        for w in range(T + n_layer - 1):
            # Snapshot of every layer's hidden state at wave start (bf16 for MXU).
            prev_hb = [hh.astype(jnp.bfloat16) for hh in h]
            for l in range(n_layer):
                t = w - l
                if not (0 <= t < T):
                    continue
                wih_ref, whh_ref, b_ref = lstm_w[l]
                if l == 0:
                    pre = xproj0[t * Bp:(t + 1) * Bp, :]            # (Bp, 4H) f32
                else:
                    pre = jnp.dot(prev_hb[l - 1], wih_ref[...],
                                  preferred_element_type=jnp.float32) + b_ref[...]
                g_all = pre + jnp.dot(prev_hb[l], whh_ref[...],
                                      preferred_element_type=jnp.float32)   # (Bp, 4H)
                # Gate order (permuted at init): [i, f, o | g]
                sfo = jax.nn.sigmoid(g_all[:, :3 * H])
                i_g = sfo[:, 0:H]
                f_g = sfo[:, H:2 * H]
                o_g = sfo[:, 2 * H:3 * H]
                g_g = jnp.tanh(g_all[:, 3 * H:])
                c[l] = f_g * c[l] + i_g * g_g
                h[l] = o_g * jnp.tanh(c[l])

                if l == n_layer - 1:
                    # Streamed FC: wait only for this timestep's weight chunk.
                    fc_copies[t].wait()
                    out_ref[...] += jnp.dot(h[l].astype(jnp.bfloat16),
                                            wfc_vmem[t],
                                            preferred_element_type=jnp.float32)

        # ---- 5. Final-step states straight to kernel outputs (no wrapper slices).
        for l in range(n_layer):
            hn_ref[l * Bp:(l + 1) * Bp, :] = h[l]
            cn_ref[l * Bp:(l + 1) * Bp, :] = c[l]

    return kernel


# ------------------------------- model forward --------------------------------
def patient_lstm_forward(params, x_tokens, n_hidden, n_layer):
    B, T = x_tokens.shape
    assert T == SEQ_LEN, "PatientLSTM forward requires seq_len == 11"
    emb_tab = params["embedding"]
    vocab_size, n_feature = emb_tab.shape
    H = n_hidden
    Bp = _round_up(max(B, SUBLANE), SUBLANE)               # sublane-padded batch
    Vp = params["w_fc_t"].shape[1]                         # lane-padded vocab

    # Embedding gather (XLA gather, same jit) -> pad batch -> time-major rows.
    emb = jnp.take(emb_tab, x_tokens, axis=0)              # (B, T, F) f32
    emb = jnp.pad(emb, ((0, Bp - B), (0, 0), (0, 0)))      # zero rows for padding
    x_tb = jnp.transpose(emb, (1, 0, 2)).reshape(T * Bp, n_feature)

    # FC weight stays in HBM; kernel streams (H, Vp) chunks per timestep.
    wfc3 = params["w_fc_t"].reshape(T, H, Vp)

    vmem = lambda: pl.BlockSpec(memory_space=pltpu.MemorySpace.VMEM)
    inputs = [x_tb]
    in_specs = [vmem()]
    for layer in range(n_layer):
        inputs += [params[f"w_ih_t_{layer}"],
                   params[f"w_hh_t_{layer}"],
                   params[f"b_{layer}"]]
        in_specs += [vmem(), vmem(), vmem()]
    inputs += [wfc3, params["b_fc"]]
    in_specs += [pl.BlockSpec(memory_space=pl.ANY), vmem()]

    logits_p, hn_flat, cn_flat = pl.pallas_call(
        make_fused_kernel(n_layer, T, Bp, H, Vp),
        out_shape=(
            jax.ShapeDtypeStruct((Bp, Vp), jnp.float32),
            jax.ShapeDtypeStruct((n_layer * Bp, H), jnp.float32),
            jax.ShapeDtypeStruct((n_layer * Bp, H), jnp.float32),
        ),
        in_specs=in_specs,
        out_specs=(vmem(), vmem(), vmem()),
        scratch_shapes=[pltpu.VMEM((T, H, Vp), jnp.bfloat16),
                        pltpu.SemaphoreType.DMA((T,))],
    )(*inputs)

    out = logits_p[:B, :vocab_size]                        # drop batch / vocab padding
    h_n = hn_flat.reshape(n_layer, Bp, H)[:, :B, :]
    c_n = cn_flat.reshape(n_layer, Bp, H)[:, :B, :]
    # nn.Dropout: eval-mode identity (deterministic forward).
    return out, (h_n, c_n)


# ------------------------------ pure-JAX reference -----------------------------
def reference_forward(params, x_tokens, n_hidden, n_layer):
    emb = jnp.take(params["embedding"], x_tokens, axis=0)  # (B, T, F)
    B, T, _ = emb.shape
    H = n_hidden
    vocab = params["embedding"].shape[0]
    layer_in = emb
    h_ns, c_ns = [], []
    for layer in range(n_layer):
        wih = params[f"w_ih_t_{layer}"].astype(jnp.float32)
        whh = params[f"w_hh_t_{layer}"].astype(jnp.float32)
        bias = params[f"b_{layer}"]
        h = jnp.zeros((B, H), jnp.float32)
        c = jnp.zeros((B, H), jnp.float32)
        outs = []
        for t in range(T):
            g_all = layer_in[:, t, :] @ wih + h @ whh + bias
            # same permuted gate order as the stored params: [i, f, o, g]
            i_g = jax.nn.sigmoid(g_all[:, 0:H])
            f_g = jax.nn.sigmoid(g_all[:, H:2 * H])
            o_g = jax.nn.sigmoid(g_all[:, 2 * H:3 * H])
            g_g = jnp.tanh(g_all[:, 3 * H:4 * H])
            c = f_g * c + i_g * g_g
            h = o_g * jnp.tanh(c)
            outs.append(h)
        layer_in = jnp.stack(outs, axis=1)                 # (B, T, H)
        h_ns.append(h)
        c_ns.append(c)
    fc_in = layer_in.reshape(B, T * H)
    w_fc = params["w_fc_t"].astype(jnp.float32)[:, :vocab]
    b_fc = params["b_fc"][0, :vocab]
    out = fc_in @ w_fc + b_fc
    return out, (jnp.stack(h_ns), jnp.stack(c_ns))


# ------------------------------- param init -----------------------------------
def init_params(key, n_feature, n_hidden, n_layer, vocab_size, padding_val):
    params = {}
    keys = iter(jax.random.split(key, 2 + 4 * n_layer + 2))

    emb = jax.random.normal(next(keys), (vocab_size, n_feature), jnp.float32)
    emb = emb.at[padding_val].set(0.0)                     # padding_idx row is zeros
    params["embedding"] = emb

    k = 1.0 / (n_hidden ** 0.5)
    for layer in range(n_layer):
        d_in = n_feature if layer == 0 else n_hidden
        w_ih = jax.random.uniform(next(keys), (4 * n_hidden, d_in), jnp.float32, -k, k)
        w_hh = jax.random.uniform(next(keys), (4 * n_hidden, n_hidden), jnp.float32, -k, k)
        b_ih = jax.random.uniform(next(keys), (4 * n_hidden,), jnp.float32, -k, k)
        b_hh = jax.random.uniform(next(keys), (4 * n_hidden,), jnp.float32, -k, k)
        # Transpose, permute gates [i,f,g,o]->[i,f,o,g], store bf16 (f32 acc in kernel).
        params[f"w_ih_t_{layer}"] = _permute_ifgo_to_ifog(w_ih.T).astype(jnp.bfloat16)
        params[f"w_hh_t_{layer}"] = _permute_ifgo_to_ifog(w_hh.T).astype(jnp.bfloat16)
        params[f"b_{layer}"] = _permute_ifgo_to_ifog(
            (b_ih + b_hh).reshape(1, 4 * n_hidden))

    kf = 1.0 / ((SEQ_LEN * n_hidden) ** 0.5)
    w_fc = jax.random.uniform(next(keys), (vocab_size, SEQ_LEN * n_hidden),
                              jnp.float32, -kf, kf)
    b_fc = jax.random.uniform(next(keys), (vocab_size,), jnp.float32, -kf, kf)
    vp = _round_up(vocab_size, LANE)                       # 2626 -> 2688 (lane-dense)
    w_fc_t = jnp.zeros((SEQ_LEN * n_hidden, vp), jnp.float32).at[:, :vocab_size].set(w_fc.T)
    params["w_fc_t"] = w_fc_t.astype(jnp.bfloat16)         # bf16 MXU weights, f32 accumulate
    params["b_fc"] = jnp.zeros((1, vp), jnp.float32).at[:, :vocab_size].set(b_fc)
    return params


# ----------------------------------- main --------------------------------------
if __name__ == "__main__":
    B = 2
    T = SEQ_LEN            # 11
    n_feature = 16
    n_hidden = 32
    n_layer = 2
    vocab_size = 2626
    padding_val = 2625

    key = jax.random.PRNGKey(0)
    k_params, k_tokens = jax.random.split(key)
    params = init_params(k_params, n_feature, n_hidden, n_layer, vocab_size, padding_val)
    x_tokens = jax.random.randint(k_tokens, (B, T), 0, vocab_size, jnp.int32)

    fwd = jax.jit(patient_lstm_forward, static_argnums=(2, 3))
    out, (h_n, c_n) = fwd(params, x_tokens, n_hidden, n_layer)
    jax.block_until_ready((out, h_n, c_n))

    assert out.shape == (B, vocab_size)
    assert h_n.shape == (n_layer, B, n_hidden)
    assert c_n.shape == (n_layer, B, n_hidden)
    assert bool(jnp.all(jnp.isfinite(out)))

    # Cross-check against a pure-JAX reference (loose tol: bf16 weights +
    # bf16 activations on the kernel's MXU path vs f32 reference math).
    ref_fwd = jax.jit(reference_forward, static_argnums=(2, 3))
    ref_out, (ref_h, ref_c) = ref_fwd(params, x_tokens, n_hidden, n_layer)
    jax.block_until_ready((ref_out, ref_h, ref_c))
    err_out = float(jnp.max(jnp.abs(out - ref_out)))
    err_h = float(jnp.max(jnp.abs(h_n - ref_h)))
    err_c = float(jnp.max(jnp.abs(c_n - ref_c)))
    assert err_out < 1e-1 and err_h < 1e-1 and err_c < 1e-1, (err_out, err_h, err_c)

    print("KERNEL_OK")
</pallas_src>

<mosaic_0001>
module attributes {stable_mosaic.version = 11 : i64} {
  func.func @kernel(%arg0: memref<88x16xf32, #tpu.memory_space<vmem>>, %arg1: memref<16x128xbf16, #tpu.memory_space<vmem>>, %arg2: memref<32x128xbf16, #tpu.memory_space<vmem>>, %arg3: memref<1x128xf32, #tpu.memory_space<vmem>>, %arg4: memref<32x128xbf16, #tpu.memory_space<vmem>>, %arg5: memref<32x128xbf16, #tpu.memory_space<vmem>>, %arg6: memref<1x128xf32, #tpu.memory_space<vmem>>, %arg7: memref<11x32x2688xbf16, #tpu.memory_space<any>>, %arg8: memref<1x2688xf32, #tpu.memory_space<vmem>>, %arg9: memref<8x2688xf32, #tpu.memory_space<vmem>>, %arg10: memref<16x32xf32, #tpu.memory_space<vmem>>, %arg11: memref<16x32xf32, #tpu.memory_space<vmem>>, %arg12: memref<11x32x2688xbf16, #tpu.memory_space<vmem>>, %arg13: memref<11x!tpu.dma_semaphore, #tpu.memory_space<semaphore_mem>>) attributes {dimension_semantics = [], scalar_prefetch = 0 : i64, scratch_operands = 2 : i64, tpu.core_type = #tpu.core_type<tc>} {
    %c0_i32 = arith.constant 0 : i32
    %c0_i32_0 = arith.constant 0 : i32
    %c0_i32_1 = arith.constant 0 : i32
    %c0_i32_2 = arith.constant 0 : i32
    %c0_i32_3 = arith.constant 0 : i32
    %0 = tpu.memref_slice %arg7[%c0_i32, %c0_i32_2, %c0_i32_3] : memref<11x32x2688xbf16, #tpu.memory_space<any>> -> memref<1x32x2688xbf16, #tpu.memory_space<any>>
    %1 = tpu.memref_squeeze %0 : memref<1x32x2688xbf16, #tpu.memory_space<any>> -> memref<32x2688xbf16, #tpu.memory_space<any>>
    %c0_i32_4 = arith.constant 0 : i32
    %c0_i32_5 = arith.constant 0 : i32
    %2 = tpu.memref_slice %arg12[%c0_i32_0, %c0_i32_4, %c0_i32_5] : memref<11x32x2688xbf16, #tpu.memory_space<vmem>> -> memref<1x32x2688xbf16, #tpu.memory_space<vmem>>
    %3 = tpu.memref_squeeze %2 : memref<1x32x2688xbf16, #tpu.memory_space<vmem>> -> memref<32x2688xbf16, #tpu.memory_space<vmem>>
    %4 = tpu.memref_slice %arg13[%c0_i32_1] : memref<11x!tpu.dma_semaphore, #tpu.memory_space<semaphore_mem>> -> memref<1x!tpu.dma_semaphore, #tpu.memory_space<semaphore_mem>>
    %5 = tpu.memref_squeeze %4 : memref<1x!tpu.dma_semaphore, #tpu.memory_space<semaphore_mem>> -> memref<!tpu.dma_semaphore, #tpu.memory_space<semaphore_mem>>
    tpu.enqueue_dma source(%1 : memref<32x2688xbf16, #tpu.memory_space<any>>) target(%3 : memref<32x2688xbf16, #tpu.memory_space<vmem>>) target_semaphore(%5 : memref<!tpu.dma_semaphore, #tpu.memory_space<semaphore_mem>>)
    %c1_i32 = arith.constant 1 : i32
    %c1_i32_6 = arith.constant 1 : i32
    %c1_i32_7 = arith.constant 1 : i32
    %c0_i32_8 = arith.constant 0 : i32
    %c0_i32_9 = arith.constant 0 : i32
    %6 = tpu.memref_slice %arg7[%c1_i32, %c0_i32_8, %c0_i32_9] : memref<11x32x2688xbf16, #tpu.memory_space<any>> -> memref<1x32x2688xbf16, #tpu.memory_space<any>>
    %7 = tpu.memref_squeeze %6 : memref<1x32x2688xbf16, #tpu.memory_space<any>> -> memref<32x2688xbf16, #tpu.memory_space<any>>
    %c0_i32_10 = arith.constant 0 : i32
    %c0_i32_11 = arith.constant 0 : i32
    %8 = tpu.memref_slice %arg12[%c1_i32_6, %c0_i32_10, %c0_i32_11] : memref<11x32x2688xbf16, #tpu.memory_space<vmem>> -> memref<1x32x2688xbf16, #tpu.memory_space<vmem>>
    %9 = tpu.memref_squeeze %8 : memref<1x32x2688xbf16, #tpu.memory_space<vmem>> -> memref<32x2688xbf16, #tpu.memory_space<vmem>>
    %10 = tpu.memref_slice %arg13[%c1_i32_7] : memref<11x!tpu.dma_semaphore, #tpu.memory_space<semaphore_mem>> -> memref<1x!tpu.dma_semaphore, #tpu.memory_space<semaphore_mem>>
    %11 = tpu.memref_squeeze %10 : memref<1x!tpu.dma_semaphore, #tpu.memory_space<semaphore_mem>> -> memref<!tpu.dma_semaphore, #tpu.memory_space<semaphore_mem>>
    tpu.enqueue_dma source(%7 : memref<32x2688xbf16, #tpu.memory_space<any>>) target(%9 : memref<32x2688xbf16, #tpu.memory_space<vmem>>) target_semaphore(%11 : memref<!tpu.dma_semaphore, #tpu.memory_space<semaphore_mem>>)
    %c2_i32 = arith.constant 2 : i32
    %c2_i32_12 = arith.constant 2 : i32
    %c2_i32_13 = arith.constant 2 : i32
    %c0_i32_14 = arith.constant 0 : i32
    %c0_i32_15 = arith.constant 0 : i32
    %12 = tpu.memref_slice %arg7[%c2_i32, %c0_i32_14, %c0_i32_15] : memref<11x32x2688xbf16, #tpu.memory_space<any>> -> memref<1x32x2688xbf16, #tpu.memory_space<any>>
    %13 = tpu.memref_squeeze %12 : memref<1x32x2688xbf16, #tpu.memory_space<any>> -> memref<32x2688xbf16, #tpu.memory_space<any>>
    %c0_i32_16 = arith.constant 0 : i32
    %c0_i32_17 = arith.constant 0 : i32
    %14 = tpu.memref_slice %arg12[%c2_i32_12, %c0_i32_16, %c0_i32_17] : memref<11x32x2688xbf16, #tpu.memory_space<vmem>> -> memref<1x32x2688xbf16, #tpu.memory_space<vmem>>
    %15 = tpu.memref_squeeze %14 : memref<1x32x2688xbf16, #tpu.memory_space<vmem>> -> memref<32x2688xbf16, #tpu.memory_space<vmem>>
    %16 = tpu.memref_slice %arg13[%c2_i32_13] : memref<11x!tpu.dma_semaphore, #tpu.memory_space<semaphore_mem>> -> memref<1x!tpu.dma_semaphore, #tpu.memory_space<semaphore_mem>>
    %17 = tpu.memref_squeeze %16 : memref<1x!tpu.dma_semaphore, #tpu.memory_space<semaphore_mem>> -> memref<!tpu.dma_semaphore, #tpu.memory_space<semaphore_mem>>
    tpu.enqueue_dma source(%13 : memref<32x2688xbf16, #tpu.memory_space<any>>) target(%15 : memref<32x2688xbf16, #tpu.memory_space<vmem>>) target_semaphore(%17 : memref<!tpu.dma_semaphore, #tpu.memory_space<semaphore_mem>>)
    %c3_i32 = arith.constant 3 : i32
    %c3_i32_18 = arith.constant 3 : i32
    %c3_i32_19 = arith.constant 3 : i32
    %c0_i32_20 = arith.constant 0 : i32
    %c0_i32_21 = arith.constant 0 : i32
    %18 = tpu.memref_slice %arg7[%c3_i32, %c0_i32_20, %c0_i32_21] : memref<11x32x2688xbf16, #tpu.memory_space<any>> -> memref<1x32x2688xbf16, #tpu.memory_space<any>>
    %19 = tpu.memref_squeeze %18 : memref<1x32x2688xbf16, #tpu.memory_space<any>> -> memref<32x2688xbf16, #tpu.memory_space<any>>
    %c0_i32_22 = arith.constant 0 : i32
    %c0_i32_23 = arith.constant 0 : i32
    %20 = tpu.memref_slice %arg12[%c3_i32_18, %c0_i32_22, %c0_i32_23] : memref<11x32x2688xbf16, #tpu.memory_space<vmem>> -> memref<1x32x2688xbf16, #tpu.memory_space<vmem>>
    %21 = tpu.memref_squeeze %20 : memref<1x32x2688xbf16, #tpu.memory_space<vmem>> -> memref<32x2688xbf16, #tpu.memory_space<vmem>>
    %22 = tpu.memref_slice %arg13[%c3_i32_19] : memref<11x!tpu.dma_semaphore, #tpu.memory_space<semaphore_mem>> -> memref<1x!tpu.dma_semaphore, #tpu.memory_space<semaphore_mem>>
    %23 = tpu.memref_squeeze %22 : memref<1x!tpu.dma_semaphore, #tpu.memory_space<semaphore_mem>> -> memref<!tpu.dma_semaphore, #tpu.memory_space<semaphore_mem>>
    tpu.enqueue_dma source(%19 : memref<32x2688xbf16, #tpu.memory_space<any>>) target(%21 : memref<32x2688xbf16, #tpu.memory_space<vmem>>) target_semaphore(%23 : memref<!tpu.dma_semaphore, #tpu.memory_space<semaphore_mem>>)
    %c4_i32 = arith.constant 4 : i32
    %c4_i32_24 = arith.constant 4 : i32
    %c4_i32_25 = arith.constant 4 : i32
    %c0_i32_26 = arith.constant 0 : i32
    %c0_i32_27 = arith.constant 0 : i32
    %24 = tpu.memref_slice %arg7[%c4_i32, %c0_i32_26, %c0_i32_27] : memref<11x32x2688xbf16, #tpu.memory_space<any>> -> memref<1x32x2688xbf16, #tpu.memory_space<any>>
    %25 = tpu.memref_squeeze %24 : memref<1x32x2688xbf16, #tpu.memory_space<any>> -> memref<32x2688xbf16, #tpu.memory_space<any>>
    %c0_i32_28 = arith.constant 0 : i32
    %c0_i32_29 = arith.constant 0 : i32
    %26 = tpu.memref_slice %arg12[%c4_i32_24, %c0_i32_28, %c0_i32_29] : memref<11x32x2688xbf16, #tpu.memory_space<vmem>> -> memref<1x32x2688xbf16, #tpu.memory_space<vmem>>
    %27 = tpu.memref_squeeze %26 : memref<1x32x2688xbf16, #tpu.memory_space<vmem>> -> memref<32x2688xbf16, #tpu.memory_space<vmem>>
    %28 = tpu.memref_slice %arg13[%c4_i32_25] : memref<11x!tpu.dma_semaphore, #tpu.memory_space<semaphore_mem>> -> memref<1x!tpu.dma_semaphore, #tpu.memory_space<semaphore_mem>>
    %29 = tpu.memref_squeeze %28 : memref<1x!tpu.dma_semaphore, #tpu.memory_space<semaphore_mem>> -> memref<!tpu.dma_semaphore, #tpu.memory_space<semaphore_mem>>
    tpu.enqueue_dma source(%25 : memref<32x2688xbf16, #tpu.memory_space<any>>) target(%27 : memref<32x2688xbf16, #tpu.memory_space<vmem>>) target_semaphore(%29 : memref<!tpu.dma_semaphore, #tpu.memory_space<semaphore_mem>>)
    %c5_i32 = arith.constant 5 : i32
    %c5_i32_30 = arith.constant 5 : i32
    %c5_i32_31 = arith.constant 5 : i32
    %c0_i32_32 = arith.constant 0 : i32
    %c0_i32_33 = arith.constant 0 : i32
    %30 = tpu.memref_slice %arg7[%c5_i32, %c0_i32_32, %c0_i32_33] : memref<11x32x2688xbf16, #tpu.memory_space<any>> -> memref<1x32x2688xbf16, #tpu.memory_space<any>>
    %31 = tpu.memref_squeeze %30 : memref<1x32x2688xbf16, #tpu.memory_space<any>> -> memref<32x2688xbf16, #tpu.memory_space<any>>
    %c0_i32_34 = arith.constant 0 : i32
    %c0_i32_35 = arith.constant 0 : i32
    %32 = tpu.memref_slice %arg12[%c5_i32_30, %c0_i32_34, %c0_i32_35] : memref<11x32x2688xbf16, #tpu.memory_space<vmem>> -> memref<1x32x2688xbf16, #tpu.memory_space<vmem>>
    %33 = tpu.memref_squeeze %32 : memref<1x32x2688xbf16, #tpu.memory_space<vmem>> -> memref<32x2688xbf16, #tpu.memory_space<vmem>>
    %34 = tpu.memref_slice %arg13[%c5_i32_31] : memref<11x!tpu.dma_semaphore, #tpu.memory_space<semaphore_mem>> -> memref<1x!tpu.dma_semaphore, #tpu.memory_space<semaphore_mem>>
    %35 = tpu.memref_squeeze %34 : memref<1x!tpu.dma_semaphore, #tpu.memory_space<semaphore_mem>> -> memref<!tpu.dma_semaphore, #tpu.memory_space<semaphore_mem>>
    tpu.enqueue_dma source(%31 : memref<32x2688xbf16, #tpu.memory_space<any>>) target(%33 : memref<32x2688xbf16, #tpu.memory_space<vmem>>) target_semaphore(%35 : memref<!tpu.dma_semaphore, #tpu.memory_space<semaphore_mem>>)
    %c6_i32 = arith.constant 6 : i32
    %c6_i32_36 = arith.constant 6 : i32
    %c6_i32_37 = arith.constant 6 : i32
    %c0_i32_38 = arith.constant 0 : i32
    %c0_i32_39 = arith.constant 0 : i32
    %36 = tpu.memref_slice %arg7[%c6_i32, %c0_i32_38, %c0_i32_39] : memref<11x32x2688xbf16, #tpu.memory_space<any>> -> memref<1x32x2688xbf16, #tpu.memory_space<any>>
    %37 = tpu.memref_squeeze %36 : memref<1x32x2688xbf16, #tpu.memory_space<any>> -> memref<32x2688xbf16, #tpu.memory_space<any>>
    %c0_i32_40 = arith.constant 0 : i32
    %c0_i32_41 = arith.constant 0 : i32
    %38 = tpu.memref_slice %arg12[%c6_i32_36, %c0_i32_40, %c0_i32_41] : memref<11x32x2688xbf16, #tpu.memory_space<vmem>> -> memref<1x32x2688xbf16, #tpu.memory_space<vmem>>
    %39 = tpu.memref_squeeze %38 : memref<1x32x2688xbf16, #tpu.memory_space<vmem>> -> memref<32x2688xbf16, #tpu.memory_space<vmem>>
    %40 = tpu.memref_slice %arg13[%c6_i32_37] : memref<11x!tpu.dma_semaphore, #tpu.memory_space<semaphore_mem>> -> memref<1x!tpu.dma_semaphore, #tpu.memory_space<semaphore_mem>>
    %41 = tpu.memref_squeeze %40 : memref<1x!tpu.dma_semaphore, #tpu.memory_space<semaphore_mem>> -> memref<!tpu.dma_semaphore, #tpu.memory_space<semaphore_mem>>
    tpu.enqueue_dma source(%37 : memref<32x2688xbf16, #tpu.memory_space<any>>) target(%39 : memref<32x2688xbf16, #tpu.memory_space<vmem>>) target_semaphore(%41 : memref<!tpu.dma_semaphore, #tpu.memory_space<semaphore_mem>>)
    %c7_i32 = arith.constant 7 : i32
    %c7_i32_42 = arith.constant 7 : i32
    %c7_i32_43 = arith.constant 7 : i32
    %c0_i32_44 = arith.constant 0 : i32
    %c0_i32_45 = arith.constant 0 : i32
    %42 = tpu.memref_slice %arg7[%c7_i32, %c0_i32_44, %c0_i32_45] : memref<11x32x2688xbf16, #tpu.memory_space<any>> -> memref<1x32x2688xbf16, #tpu.memory_space<any>>
    %43 = tpu.memref_squeeze %42 : memref<1x32x2688xbf16, #tpu.memory_space<any>> -> memref<32x2688xbf16, #tpu.memory_space<any>>
    %c0_i32_46 = arith.constant 0 : i32
    %c0_i32_47 = arith.constant 0 : i32
    %44 = tpu.memref_slice %arg12[%c7_i32_42, %c0_i32_46, %c0_i32_47] : memref<11x32x2688xbf16, #tpu.memory_space<vmem>> -> memref<1x32x2688xbf16, #tpu.memory_space<vmem>>
    %45 = tpu.memref_squeeze %44 : memref<1x32x2688xbf16, #tpu.memory_space<vmem>> -> memref<32x2688xbf16, #tpu.memory_space<vmem>>
    %46 = tpu.memref_slice %arg13[%c7_i32_43] : memref<11x!tpu.dma_semaphore, #tpu.memory_space<semaphore_mem>> -> memref<1x!tpu.dma_semaphore, #tpu.memory_space<semaphore_mem>>
    %47 = tpu.memref_squeeze %46 : memref<1x!tpu.dma_semaphore, #tpu.memory_space<semaphore_mem>> -> memref<!tpu.dma_semaphore, #tpu.memory_space<semaphore_mem>>
    tpu.enqueue_dma source(%43 : memref<32x2688xbf16, #tpu.memory_space<any>>) target(%45 : memref<32x2688xbf16, #tpu.memory_space<vmem>>) target_semaphore(%47 : memref<!tpu.dma_semaphore, #tpu.memory_space<semaphore_mem>>)
    %c8_i32 = arith.constant 8 : i32
    %c8_i32_48 = arith.constant 8 : i32
    %c8_i32_49 = arith.constant 8 : i32
    %c0_i32_50 = arith.constant 0 : i32
    %c0_i32_51 = arith.constant 0 : i32
    %48 = tpu.memref_slice %arg7[%c8_i32, %c0_i32_50, %c0_i32_51] : memref<11x32x2688xbf16, #tpu.memory_space<any>> -> memref<1x32x2688xbf16, #tpu.memory_space<any>>
    %49 = tpu.memref_squeeze %48 : memref<1x32x2688xbf16, #tpu.memory_space<any>> -> memref<32x2688xbf16, #tpu.memory_space<any>>
    %c0_i32_52 = arith.constant 0 : i32
    %c0_i32_53 = arith.constant 0 : i32
    %50 = tpu.memref_slice %arg12[%c8_i32_48, %c0_i32_52, %c0_i32_53] : memref<11x32x2688xbf16, #tpu.memory_space<vmem>> -> memref<1x32x2688xbf16, #tpu.memory_space<vmem>>
    %51 = tpu.memref_squeeze %50 : memref<1x32x2688xbf16, #tpu.memory_space<vmem>> -> memref<32x2688xbf16, #tpu.memory_space<vmem>>
    %52 = tpu.memref_slice %arg13[%c8_i32_49] : memref<11x!tpu.dma_semaphore, #tpu.memory_space<semaphore_mem>> -> memref<1x!tpu.dma_semaphore, #tpu.memory_space<semaphore_mem>>
    %53 = tpu.memref_squeeze %52 : memref<1x!tpu.dma_semaphore, #tpu.memory_space<semaphore_mem>> -> memref<!tpu.dma_semaphore, #tpu.memory_space<semaphore_mem>>
    tpu.enqueue_dma source(%49 : memref<32x2688xbf16, #tpu.memory_space<any>>) target(%51 : memref<32x2688xbf16, #tpu.memory_space<vmem>>) target_semaphore(%53 : memref<!tpu.dma_semaphore, #tpu.memory_space<semaphore_mem>>)
    %c9_i32 = arith.constant 9 : i32
    %c9_i32_54 = arith.constant 9 : i32
    %c9_i32_55 = arith.constant 9 : i32
    %c0_i32_56 = arith.constant 0 : i32
    %c0_i32_57 = arith.constant 0 : i32
    %54 = tpu.memref_slice %arg7[%c9_i32, %c0_i32_56, %c0_i32_57] : memref<11x32x2688xbf16, #tpu.memory_space<any>> -> memref<1x32x2688xbf16, #tpu.memory_space<any>>
    %55 = tpu.memref_squeeze %54 : memref<1x32x2688xbf16, #tpu.memory_space<any>> -> memref<32x2688xbf16, #tpu.memory_space<any>>
    %c0_i32_58 = arith.constant 0 : i32
    %c0_i32_59 = arith.constant 0 : i32
    %56 = tpu.memref_slice %arg12[%c9_i32_54, %c0_i32_58, %c0_i32_59] : memref<11x32x2688xbf16, #tpu.memory_space<vmem>> -> memref<1x32x2688xbf16, #tpu.memory_space<vmem>>
    %57 = tpu.memref_squeeze %56 : memref<1x32x2688xbf16, #tpu.memory_space<vmem>> -> memref<32x2688xbf16, #tpu.memory_space<vmem>>
    %58 = tpu.memref_slice %arg13[%c9_i32_55] : memref<11x!tpu.dma_semaphore, #tpu.memory_space<semaphore_mem>> -> memref<1x!tpu.dma_semaphore, #tpu.memory_space<semaphore_mem>>
    %59 = tpu.memref_squeeze %58 : memref<1x!tpu.dma_semaphore, #tpu.memory_space<semaphore_mem>> -> memref<!tpu.dma_semaphore, #tpu.memory_space<semaphore_mem>>
    tpu.enqueue_dma source(%55 : memref<32x2688xbf16, #tpu.memory_space<any>>) target(%57 : memref<32x2688xbf16, #tpu.memory_space<vmem>>) target_semaphore(%59 : memref<!tpu.dma_semaphore, #tpu.memory_space<semaphore_mem>>)
    %c10_i32 = arith.constant 10 : i32
    %c10_i32_60 = arith.constant 10 : i32
    %c10_i32_61 = arith.constant 10 : i32
    %c0_i32_62 = arith.constant 0 : i32
    %c0_i32_63 = arith.constant 0 : i32
    %60 = tpu.memref_slice %arg7[%c10_i32, %c0_i32_62, %c0_i32_63] : memref<11x32x2688xbf16, #tpu.memory_space<any>> -> memref<1x32x2688xbf16, #tpu.memory_space<any>>
    %61 = tpu.memref_squeeze %60 : memref<1x32x2688xbf16, #tpu.memory_space<any>> -> memref<32x2688xbf16, #tpu.memory_space<any>>
    %c0_i32_64 = arith.constant 0 : i32
    %c0_i32_65 = arith.constant 0 : i32
    %62 = tpu.memref_slice %arg12[%c10_i32_60, %c0_i32_64, %c0_i32_65] : memref<11x32x2688xbf16, #tpu.memory_space<vmem>> -> memref<1x32x2688xbf16, #tpu.memory_space<vmem>>
    %63 = tpu.memref_squeeze %62 : memref<1x32x2688xbf16, #tpu.memory_space<vmem>> -> memref<32x2688xbf16, #tpu.memory_space<vmem>>
    %64 = tpu.memref_slice %arg13[%c10_i32_61] : memref<11x!tpu.dma_semaphore, #tpu.memory_space<semaphore_mem>> -> memref<1x!tpu.dma_semaphore, #tpu.memory_space<semaphore_mem>>
    %65 = tpu.memref_squeeze %64 : memref<1x!tpu.dma_semaphore, #tpu.memory_space<semaphore_mem>> -> memref<!tpu.dma_semaphore, #tpu.memory_space<semaphore_mem>>
    tpu.enqueue_dma source(%61 : memref<32x2688xbf16, #tpu.memory_space<any>>) target(%63 : memref<32x2688xbf16, #tpu.memory_space<vmem>>) target_semaphore(%65 : memref<!tpu.dma_semaphore, #tpu.memory_space<semaphore_mem>>)
    %c0 = arith.constant 0 : index
    %c0_66 = arith.constant 0 : index
    %66 = vector.load %arg0[%c0, %c0_66] : memref<88x16xf32, #tpu.memory_space<vmem>>, vector<88x16xf32>
    %67 = arith.truncf %66 : vector<88x16xf32> to vector<88x16xbf16>
    %c0_67 = arith.constant 0 : index
    %c0_68 = arith.constant 0 : index
    %68 = vector.load %arg1[%c0_67, %c0_68] : memref<16x128xbf16, #tpu.memory_space<vmem>>, vector<16x128xbf16>
    %cst = arith.constant dense<0.000000e+00> : vector<88x128xf32>
    %69 = tpu.matmul %67, %68, %cst {dimension_numbers = #tpu.dot_dimension_numbers<[1], [0], [0], [1], [0, 0, 1, 1], [], []>} : vector<88x16xbf16>, vector<16x128xbf16>, vector<88x128xf32> -> vector<88x128xf32>
    %c0_69 = arith.constant 0 : index
    %c0_70 = arith.constant 0 : index
    %70 = vector.load %arg3[%c0_69, %c0_70] : memref<1x128xf32, #tpu.memory_space<vmem>>, vector<1x128xf32>
    %71 = vector.broadcast %70 : vector<1x128xf32> to vector<88x128xf32>
    %72 = arith.addf %69, %71 : vector<88x128xf32>
    %c0_71 = arith.constant 0 : index
    %c0_72 = arith.constant 0 : index
    %73 = vector.load %arg8[%c0_71, %c0_72] : memref<1x2688xf32, #tpu.memory_space<vmem>>, vector<1x2688xf32>
    %74 = vector.shape_cast %73 : vector<1x2688xf32> to vector<1x2688xf32>
    %75 = vector.broadcast %74 : vector<1x2688xf32> to vector<8x2688xf32>
    %c0_73 = arith.constant 0 : index
    %c0_74 = arith.constant 0 : index
    %76 = vector.load %arg9[%c0_73, %c0_74] : memref<8x2688xf32, #tpu.memory_space<vmem>>, vector<8x2688xf32>
    tpu.vector_store %arg9[%c0_73, %c0_74], %75 {strides = array<i32>} : memref<8x2688xf32, #tpu.memory_space<vmem>>, vector<8x2688xf32>,
    %cst_75 = arith.constant 0.000000e+00 : f32
    %77 = vector.broadcast %cst_75 : f32 to vector<8x32xf32>
    %cst_76 = arith.constant 0.000000e+00 : f32
    %78 = vector.broadcast %cst_76 : f32 to vector<8x32xf32>
    %cst_77 = arith.constant 0.000000e+00 : f32
    %79 = vector.broadcast %cst_77 : f32 to vector<8x32xf32>
    %cst_78 = arith.constant 0.000000e+00 : f32
    %80 = vector.broadcast %cst_78 : f32 to vector<8x32xf32>
    %81 = arith.truncf %77 : vector<8x32xf32> to vector<8x32xbf16>
    %82 = vector.extract_strided_slice %72 {offsets = [0, 0], sizes = [8, 128], strides = [1, 1]} : vector<88x128xf32> to vector<8x128xf32>
    %c0_79 = arith.constant 0 : index
    %c0_80 = arith.constant 0 : index
    %83 = vector.load %arg2[%c0_79, %c0_80] : memref<32x128xbf16, #tpu.memory_space<vmem>>, vector<32x128xbf16>
    %cst_81 = arith.constant dense<0.000000e+00> : vector<8x128xf32>
    %84 = tpu.matmul %81, %83, %cst_81 {dimension_numbers = #tpu.dot_dimension_numbers<[1], [0], [0], [1], [0, 0, 1, 1], [], []>} : vector<8x32xbf16>, vector<32x128xbf16>, vector<8x128xf32> -> vector<8x128xf32>
    %85 = arith.addf %82, %84 : vector<8x128xf32>
    %86 = vector.extract_strided_slice %85 {offsets = [0, 0], sizes = [8, 96], strides = [1, 1]} : vector<8x128xf32> to vector<8x96xf32>
    %87 = arith.negf %86 : vector<8x96xf32>
    %88 = math.exp %87 : vector<8x96xf32>
    %cst_82 = arith.constant 1.000000e+00 : f32
    %89 = vector.broadcast %cst_82 : f32 to vector<8x96xf32>
    %90 = arith.addf %89, %88 : vector<8x96xf32>
    %91 = arith.divf %89, %90 : vector<8x96xf32>
    %92 = vector.extract_strided_slice %91 {offsets = [0, 0], sizes = [8, 32], strides = [1, 1]} : vector<8x96xf32> to vector<8x32xf32>
    %93 = vector.extract_strided_slice %91 {offsets = [0, 32], sizes = [8, 32], strides = [1, 1]} : vector<8x96xf32> to vector<8x32xf32>
    %94 = vector.extract_strided_slice %91 {offsets = [0, 64], sizes = [8, 32], strides = [1, 1]} : vector<8x96xf32> to vector<8x32xf32>
    %95 = vector.extract_strided_slice %85 {offsets = [0, 96], sizes = [8, 32], strides = [1, 1]} : vector<8x128xf32> to vector<8x32xf32>
    %96 = math.tanh %95 : vector<8x32xf32>
    %97 = arith.mulf %93, %79 : vector<8x32xf32>
    %98 = arith.mulf %92, %96 : vector<8x32xf32>
    %99 = arith.addf %97, %98 : vector<8x32xf32>
    %100 = math.tanh %99 : vector<8x32xf32>
    %101 = arith.mulf %94, %100 : vector<8x32xf32>
    %102 = arith.truncf %101 : vector<8x32xf32> to vector<8x32xbf16>
    %103 = arith.truncf %78 : vector<8x32xf32> to vector<8x32xbf16>
    %104 = vector.extract_strided_slice %72 {offsets = [8, 0], sizes = [8, 128], strides = [1, 1]} : vector<88x128xf32> to vector<8x128xf32>
    %c0_83 = arith.constant 0 : index
    %c0_84 = arith.constant 0 : index
    %105 = vector.load %arg2[%c0_83, %c0_84] : memref<32x128xbf16, #tpu.memory_space<vmem>>, vector<32x128xbf16>
    %cst_85 = arith.constant dense<0.000000e+00> : vector<8x128xf32>
    %106 = tpu.matmul %102, %105, %cst_85 {dimension_numbers = #tpu.dot_dimension_numbers<[1], [0], [0], [1], [0, 0, 1, 1], [], []>} : vector<8x32xbf16>, vector<32x128xbf16>, vector<8x128xf32> -> vector<8x128xf32>
    %107 = arith.addf %104, %106 : vector<8x128xf32>
    %108 = vector.extract_strided_slice %107 {offsets = [0, 0], sizes = [8, 96], strides = [1, 1]} : vector<8x128xf32> to vector<8x96xf32>
    %109 = arith.negf %108 : vector<8x96xf32>
    %110 = math.exp %109 : vector<8x96xf32>
    %cst_86 = arith.constant 1.000000e+00 : f32
    %111 = vector.broadcast %cst_86 : f32 to vector<8x96xf32>
    %112 = arith.addf %111, %110 : vector<8x96xf32>
    %113 = arith.divf %111, %112 : vector<8x96xf32>
    %114 = vector.extract_strided_slice %113 {offsets = [0, 0], sizes = [8, 32], strides = [1, 1]} : vector<8x96xf32> to vector<8x32xf32>
    %115 = vector.extract_strided_slice %113 {offsets = [0, 32], sizes = [8, 32], strides = [1, 1]} : vector<8x96xf32> to vector<8x32xf32>
    %116 = vector.extract_strided_slice %113 {offsets = [0, 64], sizes = [8, 32], strides = [1, 1]} : vector<8x96xf32> to vector<8x32xf32>
    %117 = vector.extract_strided_slice %107 {offsets = [0, 96], sizes = [8, 32], strides = [1, 1]} : vector<8x128xf32> to vector<8x32xf32>
    %118 = math.tanh %117 : vector<8x32xf32>
    %119 = arith.mulf %115, %99 : vector<8x32xf32>
    %120 = arith.mulf %114, %118 : vector<8x32xf32>
    %121 = arith.addf %119, %120 : vector<8x32xf32>
    %122 = math.tanh %121 : vector<8x32xf32>
    %123 = arith.mulf %116, %122 : vector<8x32xf32>
    %c0_87 = arith.constant 0 : index
    %c0_88 = arith.constant 0 : index
    %124 = vector.load %arg4[%c0_87, %c0_88] : memref<32x128xbf16, #tpu.memory_space<vmem>>, vector<32x128xbf16>
    %cst_89 = arith.constant dense<0.000000e+00> : vector<8x128xf32>
    %125 = tpu.matmul %102, %124, %cst_89 {dimension_numbers = #tpu.dot_dimension_numbers<[1], [0], [0], [1], [0, 0, 1, 1], [], []>} : vector<8x32xbf16>, vector<32x128xbf16>, vector<8x128xf32> -> vector<8x128xf32>
    %c0_90 = arith.constant 0 : index
    %c0_91 = arith.constant 0 : index
    %126 = vector.load %arg6[%c0_90, %c0_91] : memref<1x128xf32, #tpu.memory_space<vmem>>, vector<1x128xf32>
    %127 = vector.broadcast %126 : vector<1x128xf32> to vector<8x128xf32>
    %128 = arith.addf %125, %127 : vector<8x128xf32>
    %c0_92 = arith.constant 0 : index
    %c0_93 = arith.constant 0 : index
    %129 = vector.load %arg5[%c0_92, %c0_93] : memref<32x128xbf16, #tpu.memory_space<vmem>>, vector<32x128xbf16>
    %cst_94 = arith.constant dense<0.000000e+00> : vector<8x128xf32>
    %130 = tpu.matmul %103, %129, %cst_94 {dimension_numbers = #tpu.dot_dimension_numbers<[1], [0], [0], [1], [0, 0, 1, 1], [], []>} : vector<8x32xbf16>, vector<32x128xbf16>, vector<8x128xf32> -> vector<8x128xf32>
    %131 = arith.addf %128, %130 : vector<8x128xf32>
    %132 = vector.extract_strided_slice %131 {offsets = [0, 0], sizes = [8, 96], strides = [1, 1]} : vector<8x128xf32> to vector<8x96xf32>
    %133 = arith.negf %132 : vector<8x96xf32>
    %134 = math.exp %133 : vector<8x96xf32>
    %cst_95 = arith.constant 1.000000e+00 : f32
    %135 = vector.broadcast %cst_95 : f32 to vector<8x96xf32>
    %136 = arith.addf %135, %134 : vector<8x96xf32>
    %137 = arith.divf %135, %136 : vector<8x96xf32>
    %138 = vector.extract_strided_slice %137 {offsets = [0, 0], sizes = [8, 32], strides = [1, 1]} : vector<8x96xf32> to vector<8x32xf32>
    %139 = vector.extract_strided_slice %137 {offsets = [0, 32], sizes = [8, 32], strides = [1, 1]} : vector<8x96xf32> to vector<8x32xf32>
    %140 = vector.extract_strided_slice %137 {offsets = [0, 64], sizes = [8, 32], strides = [1, 1]} : vector<8x96xf32> to vector<8x32xf32>
    %141 = vector.extract_strided_slice %131 {offsets = [0, 96], sizes = [8, 32], strides = [1, 1]} : vector<8x128xf32> to vector<8x32xf32>
    %142 = math.tanh %141 : vector<8x32xf32>
    %143 = arith.mulf %139, %80 : vector<8x32xf32>
    %144 = arith.mulf %138, %142 : vector<8x32xf32>
    %145 = arith.addf %143, %144 : vector<8x32xf32>
    %146 = math.tanh %145 : vector<8x32xf32>
    %147 = arith.mulf %140, %146 : vector<8x32xf32>
    %c0_i32_96 = arith.constant 0 : i32
    %c0_i32_97 = arith.constant 0 : i32
    %c0_i32_98 = arith.constant 0 : i32
    %c0_i32_99 = arith.constant 0 : i32
    %c0_i32_100 = arith.constant 0 : i32
    %148 = tpu.memref_slice %arg7[%c0_i32_96, %c0_i32_99, %c0_i32_100] : memref<11x32x2688xbf16, #tpu.memory_space<any>> -> memref<1x32x2688xbf16, #tpu.memory_space<any>>
    %149 = tpu.memref_squeeze %148 : memref<1x32x2688xbf16, #tpu.memory_space<any>> -> memref<32x2688xbf16, #tpu.memory_space<any>>
    %c0_i32_101 = arith.constant 0 : i32
    %c0_i32_102 = arith.constant 0 : i32
    %150 = tpu.memref_slice %arg12[%c0_i32_97, %c0_i32_101, %c0_i32_102] : memref<11x32x2688xbf16, #tpu.memory_space<vmem>> -> memref<1x32x2688xbf16, #tpu.memory_space<vmem>>
    %151 = tpu.memref_squeeze %150 : memref<1x32x2688xbf16, #tpu.memory_space<vmem>> -> memref<32x2688xbf16, #tpu.memory_space<vmem>>
    %152 = tpu.memref_slice %arg13[%c0_i32_98] : memref<11x!tpu.dma_semaphore, #tpu.memory_space<semaphore_mem>> -> memref<1x!tpu.dma_semaphore, #tpu.memory_space<semaphore_mem>>
    %153 = tpu.memref_squeeze %152 : memref<1x!tpu.dma_semaphore, #tpu.memory_space<semaphore_mem>> -> memref<!tpu.dma_semaphore, #tpu.memory_space<semaphore_mem>>
    tpu.wait_dma2 semaphore(%153 : memref<!tpu.dma_semaphore, #tpu.memory_space<semaphore_mem>>) src(%149 : memref<32x2688xbf16, #tpu.memory_space<any>>) dst(%151 : memref<32x2688xbf16, #tpu.memory_space<vmem>>)
    %c0_103 = arith.constant 0 : index
    %c0_104 = arith.constant 0 : index
    %154 = vector.load %arg9[%c0_103, %c0_104] : memref<8x2688xf32, #tpu.memory_space<vmem>>, vector<8x2688xf32>
    %155 = arith.truncf %147 : vector<8x32xf32> to vector<8x32xbf16>
    %c0_105 = arith.constant 0 : index
    %c0_106 = arith.constant 0 : index
    %c0_107 = arith.constant 0 : index
    %156 = vector.load %arg12[%c0_105, %c0_106, %c0_107] : memref<11x32x2688xbf16, #tpu.memory_space<vmem>>, vector<1x32x2688xbf16>
    %157 = vector.shape_cast %156 : vector<1x32x2688xbf16> to vector<32x2688xbf16>
    %cst_108 = arith.constant dense<0.000000e+00> : vector<8x2688xf32>
    %158 = tpu.matmul %155, %157, %cst_108 {dimension_numbers = #tpu.dot_dimension_numbers<[1], [0], [0], [1], [0, 0, 1, 1], [], []>} : vector<8x32xbf16>, vector<32x2688xbf16>, vector<8x2688xf32> -> vector<8x2688xf32>
    %159 = arith.addf %154, %158 : vector<8x2688xf32>
    %c0_109 = arith.constant 0 : index
    %c0_110 = arith.constant 0 : index
    %160 = vector.load %arg9[%c0_109, %c0_110] : memref<8x2688xf32, #tpu.memory_space<vmem>>, vector<8x2688xf32>
    tpu.vector_store %arg9[%c0_109, %c0_110], %159 {strides = array<i32>} : memref<8x2688xf32, #tpu.memory_space<vmem>>, vector<8x2688xf32>,
    %161 = arith.truncf %123 : vector<8x32xf32> to vector<8x32xbf16>
    %162 = arith.truncf %147 : vector<8x32xf32> to vector<8x32xbf16>
    %163 = vector.extract_strided_slice %72 {offsets = [16, 0], sizes = [8, 128], strides = [1, 1]} : vector<88x128xf32> to vector<8x128xf32>
    %c0_111 = arith.constant 0 : index
    %c0_112 = arith.constant 0 : index
    %164 = vector.load %arg2[%c0_111, %c0_112] : memref<32x128xbf16, #tpu.memory_space<vmem>>, vector<32x128xbf16>
    %cst_113 = arith.constant dense<0.000000e+00> : vector<8x128xf32>
    %165 = tpu.matmul %161, %164, %cst_113 {dimension_numbers = #tpu.dot_dimension_numbers<[1], [0], [0], [1], [0, 0, 1, 1], [], []>} : vector<8x32xbf16>, vector<32x128xbf16>, vector<8x128xf32> -> vector<8x128xf32>
    %166 = arith.addf %163, %165 : vector<8x128xf32>
    %167 = vector.extract_strided_slice %166 {offsets = [0, 0], sizes = [8, 96], strides = [1, 1]} : vector<8x128xf32> to vector<8x96xf32>
    %168 = arith.negf %167 : vector<8x96xf32>
    %169 = math.exp %168 : vector<8x96xf32>
    %cst_114 = arith.constant 1.000000e+00 : f32
    %170 = vector.broadcast %cst_114 : f32 to vector<8x96xf32>
    %171 = arith.addf %170, %169 : vector<8x96xf32>
    %172 = arith.divf %170, %171 : vector<8x96xf32>
    %173 = vector.extract_strided_slice %172 {offsets = [0, 0], sizes = [8, 32], strides = [1, 1]} : vector<8x96xf32> to vector<8x32xf32>
    %174 = vector.extract_strided_slice %172 {offsets = [0, 32], sizes = [8, 32], strides = [1, 1]} : vector<8x96xf32> to vector<8x32xf32>
    %175 = vector.extract_strided_slice %172 {offsets = [0, 64], sizes = [8, 32], strides = [1, 1]} : vector<8x96xf32> to vector<8x32xf32>
    %176 = vector.extract_strided_slice %166 {offsets = [0, 96], sizes = [8, 32], strides = [1, 1]} : vector<8x128xf32> to vector<8x32xf32>
    %177 = math.tanh %176 : vector<8x32xf32>
    %178 = arith.mulf %174, %121 : vector<8x32xf32>
    %179 = arith.mulf %173, %177 : vector<8x32xf32>
    %180 = arith.addf %178, %179 : vector<8x32xf32>
    %181 = math.tanh %180 : vector<8x32xf32>
    %182 = arith.mulf %175, %181 : vector<8x32xf32>
    %c0_115 = arith.constant 0 : index
    %c0_116 = arith.constant 0 : index
    %183 = vector.load %arg4[%c0_115, %c0_116] : memref<32x128xbf16, #tpu.memory_space<vmem>>, vector<32x128xbf16>
    %cst_117 = arith.constant dense<0.000000e+00> : vector<8x128xf32>
    %184 = tpu.matmul %161, %183, %cst_117 {dimension_numbers = #tpu.dot_dimension_numbers<[1], [0], [0], [1], [0, 0, 1, 1], [], []>} : vector<8x32xbf16>, vector<32x128xbf16>, vector<8x128xf32> -> vector<8x128xf32>
    %c0_118 = arith.constant 0 : index
    %c0_119 = arith.constant 0 : index
    %185 = vector.load %arg6[%c0_118, %c0_119] : memref<1x128xf32, #tpu.memory_space<vmem>>, vector<1x128xf32>
    %186 = vector.broadcast %185 : vector<1x128xf32> to vector<8x128xf32>
    %187 = arith.addf %184, %186 : vector<8x128xf32>
    %c0_120 = arith.constant 0 : index
    %c0_121 = arith.constant 0 : index
    %188 = vector.load %arg5[%c0_120, %c0_121] : memref<32x128xbf16, #tpu.memory_space<vmem>>, vector<32x128xbf16>
    %cst_122 = arith.constant dense<0.000000e+00> : vector<8x128xf32>
    %189 = tpu.matmul %162, %188, %cst_122 {dimension_numbers = #tpu.dot_dimension_numbers<[1], [0], [0], [1], [0, 0, 1, 1], [], []>} : vector<8x32xbf16>, vector<32x128xbf16>, vector<8x128xf32> -> vector<8x128xf32>
    %190 = arith.addf %187, %189 : vector<8x128xf32>
    %191 = vector.extract_strided_slice %190 {offsets = [0, 0], sizes = [8, 96], strides = [1, 1]} : vector<8x128xf32> to vector<8x96xf32>
    %192 = arith.negf %191 : vector<8x96xf32>
    %193 = math.exp %192 : vector<8x96xf32>
    %cst_123 = arith.constant 1.000000e+00 : f32
    %194 = vector.broadcast %cst_123 : f32 to vector<8x96xf32>
    %195 = arith.addf %194, %193 : vector<8x96xf32>
    %196 = arith.divf %194, %195 : vector<8x96xf32>
    %197 = vector.extract_strided_slice %196 {offsets = [0, 0], sizes = [8, 32], strides = [1, 1]} : vector<8x96xf32> to vector<8x32xf32>
    %198 = vector.extract_strided_slice %196 {offsets = [0, 32], sizes = [8, 32], strides = [1, 1]} : vector<8x96xf32> to vector<8x32xf32>
    %199 = vector.extract_strided_slice %196 {offsets = [0, 64], sizes = [8, 32], strides = [1, 1]} : vector<8x96xf32> to vector<8x32xf32>
    %200 = vector.extract_strided_slice %190 {offsets = [0, 96], sizes = [8, 32], strides = [1, 1]} : vector<8x128xf32> to vector<8x32xf32>
    %201 = math.tanh %200 : vector<8x32xf32>
    %202 = arith.mulf %198, %145 : vector<8x32xf32>
    %203 = arith.mulf %197, %201 : vector<8x32xf32>
    %204 = arith.addf %202, %203 : vector<8x32xf32>
    %205 = math.tanh %204 : vector<8x32xf32>
    %206 = arith.mulf %199, %205 : vector<8x32xf32>
    %c1_i32_124 = arith.constant 1 : i32
    %c1_i32_125 = arith.constant 1 : i32
    %c1_i32_126 = arith.constant 1 : i32
    %c0_i32_127 = arith.constant 0 : i32
    %c0_i32_128 = arith.constant 0 : i32
    %207 = tpu.memref_slice %arg7[%c1_i32_124, %c0_i32_127, %c0_i32_128] : memref<11x32x2688xbf16, #tpu.memory_space<any>> -> memref<1x32x2688xbf16, #tpu.memory_space<any>>
    %208 = tpu.memref_squeeze %207 : memref<1x32x2688xbf16, #tpu.memory_space<any>> -> memref<32x2688xbf16, #tpu.memory_space<any>>
    %c0_i32_129 = arith.constant 0 : i32
    %c0_i32_130 = arith.constant 0 : i32
    %209 = tpu.memref_slice %arg12[%c1_i32_125, %c0_i32_129, %c0_i32_130] : memref<11x32x2688xbf16, #tpu.memory_space<vmem>> -> memref<1x32x2688xbf16, #tpu.memory_space<vmem>>
    %210 = tpu.memref_squeeze %209 : memref<1x32x2688xbf16, #tpu.memory_space<vmem>> -> memref<32x2688xbf16, #tpu.memory_space<vmem>>
    %211 = tpu.memref_slice %arg13[%c1_i32_126] : memref<11x!tpu.dma_semaphore, #tpu.memory_space<semaphore_mem>> -> memref<1x!tpu.dma_semaphore, #tpu.memory_space<semaphore_mem>>
    %212 = tpu.memref_squeeze %211 : memref<1x!tpu.dma_semaphore, #tpu.memory_space<semaphore_mem>> -> memref<!tpu.dma_semaphore, #tpu.memory_space<semaphore_mem>>
    tpu.wait_dma2 semaphore(%212 : memref<!tpu.dma_semaphore, #tpu.memory_space<semaphore_mem>>) src(%208 : memref<32x2688xbf16, #tpu.memory_space<any>>) dst(%210 : memref<32x2688xbf16, #tpu.memory_space<vmem>>)
    %c0_131 = arith.constant 0 : index
    %c0_132 = arith.constant 0 : index
    %213 = vector.load %arg9[%c0_131, %c0_132] : memref<8x2688xf32, #tpu.memory_space<vmem>>, vector<8x2688xf32>
    %214 = arith.truncf %206 : vector<8x32xf32> to vector<8x32xbf16>
    %c1 = arith.constant 1 : index
    %c0_133 = arith.constant 0 : index
    %c0_134 = arith.constant 0 : index
    %215 = vector.load %arg12[%c1, %c0_133, %c0_134] : memref<11x32x2688xbf16, #tpu.memory_space<vmem>>, vector<1x32x2688xbf16>
    %216 = vector.shape_cast %215 : vector<1x32x2688xbf16> to vector<32x2688xbf16>
    %cst_135 = arith.constant dense<0.000000e+00> : vector<8x2688xf32>
    %217 = tpu.matmul %214, %216, %cst_135 {dimension_numbers = #tpu.dot_dimension_numbers<[1], [0], [0], [1], [0, 0, 1, 1], [], []>} : vector<8x32xbf16>, vector<32x2688xbf16>, vector<8x2688xf32> -> vector<8x2688xf32>
    %218 = arith.addf %213, %217 : vector<8x2688xf32>
    %c0_136 = arith.constant 0 : index
    %c0_137 = arith.constant 0 : index
    %219 = vector.load %arg9[%c0_136, %c0_137] : memref<8x2688xf32, #tpu.memory_space<vmem>>, vector<8x2688xf32>
    tpu.vector_store %arg9[%c0_136, %c0_137], %218 {strides = array<i32>} : memref<8x2688xf32, #tpu.memory_space<vmem>>, vector<8x2688xf32>,
    %220 = arith.truncf %182 : vector<8x32xf32> to vector<8x32xbf16>
    %221 = arith.truncf %206 : vector<8x32xf32> to vector<8x32xbf16>
    %222 = vector.extract_strided_slice %72 {offsets = [24, 0], sizes = [8, 128], strides = [1, 1]} : vector<88x128xf32> to vector<8x128xf32>
    %c0_138 = arith.constant 0 : index
    %c0_139 = arith.constant 0 : index
    %223 = vector.load %arg2[%c0_138, %c0_139] : memref<32x128xbf16, #tpu.memory_space<vmem>>, vector<32x128xbf16>
    %cst_140 = arith.constant dense<0.000000e+00> : vector<8x128xf32>
    %224 = tpu.matmul %220, %223, %cst_140 {dimension_numbers = #tpu.dot_dimension_numbers<[1], [0], [0], [1], [0, 0, 1, 1], [], []>} : vector<8x32xbf16>, vector<32x128xbf16>, vector<8x128xf32> -> vector<8x128xf32>
    %225 = arith.addf %222, %224 : vector<8x128xf32>
    %226 = vector.extract_strided_slice %225 {offsets = [0, 0], sizes = [8, 96], strides = [1, 1]} : vector<8x128xf32> to vector<8x96xf32>
    %227 = arith.negf %226 : vector<8x96xf32>
    %228 = math.exp %227 : vector<8x96xf32>
    %cst_141 = arith.constant 1.000000e+00 : f32
    %229 = vector.broadcast %cst_141 : f32 to vector<8x96xf32>
    %230 = arith.addf %229, %228 : vector<8x96xf32>
    %231 = arith.divf %229, %230 : vector<8x96xf32>
    %232 = vector.extract_strided_slice %231 {offsets = [0, 0], sizes = [8, 32], strides = [1, 1]} : vector<8x96xf32> to vector<8x32xf32>
    %233 = vector.extract_strided_slice %231 {offsets = [0, 32], sizes = [8, 32], strides = [1, 1]} : vector<8x96xf32> to vector<8x32xf32>
    %234 = vector.extract_strided_slice %231 {offsets = [0, 64], sizes = [8, 32], strides = [1, 1]} : vector<8x96xf32> to vector<8x32xf32>
    %235 = vector.extract_strided_slice %225 {offsets = [0, 96], sizes = [8, 32], strides = [1, 1]} : vector<8x128xf32> to vector<8x32xf32>
    %236 = math.tanh %235 : vector<8x32xf32>
    %237 = arith.mulf %233, %180 : vector<8x32xf32>
    %238 = arith.mulf %232, %236 : vector<8x32xf32>
    %239 = arith.addf %237, %238 : vector<8x32xf32>
    %240 = math.tanh %239 : vector<8x32xf32>
    %241 = arith.mulf %234, %240 : vector<8x32xf32>
    %c0_142 = arith.constant 0 : index
    %c0_143 = arith.constant 0 : index
    %242 = vector.load %arg4[%c0_142, %c0_143] : memref<32x128xbf16, #tpu.memory_space<vmem>>, vector<32x128xbf16>
    %cst_144 = arith.constant dense<0.000000e+00> : vector<8x128xf32>
    %243 = tpu.matmul %220, %242, %cst_144 {dimension_numbers = #tpu.dot_dimension_numbers<[1], [0], [0], [1], [0, 0, 1, 1], [], []>} : vector<8x32xbf16>, vector<32x128xbf16>, vector<8x128xf32> -> vector<8x128xf32>
    %c0_145 = arith.constant 0 : index
    %c0_146 = arith.constant 0 : index
    %244 = vector.load %arg6[%c0_145, %c0_146] : memref<1x128xf32, #tpu.memory_space<vmem>>, vector<1x128xf32>
    %245 = vector.broadcast %244 : vector<1x128xf32> to vector<8x128xf32>
    %246 = arith.addf %243, %245 : vector<8x128xf32>
    %c0_147 = arith.constant 0 : index
    %c0_148 = arith.constant 0 : index
    %247 = vector.load %arg5[%c0_147, %c0_148] : memref<32x128xbf16, #tpu.memory_space<vmem>>, vector<32x128xbf16>
    %cst_149 = arith.constant dense<0.000000e+00> : vector<8x128xf32>
    %248 = tpu.matmul %221, %247, %cst_149 {dimension_numbers = #tpu.dot_dimension_numbers<[1], [0], [0], [1], [0, 0, 1, 1], [], []>} : vector<8x32xbf16>, vector<32x128xbf16>, vector<8x128xf32> -> vector<8x128xf32>
    %249 = arith.addf %246, %248 : vector<8x128xf32>
    %250 = vector.extract_strided_slice %249 {offsets = [0, 0], sizes = [8, 96], strides = [1, 1]} : vector<8x128xf32> to vector<8x96xf32>
    %251 = arith.negf %250 : vector<8x96xf32>
    %252 = math.exp %251 : vector<8x96xf32>
    %cst_150 = arith.constant 1.000000e+00 : f32
    %253 = vector.broadcast %cst_150 : f32 to vector<8x96xf32>
    %254 = arith.addf %253, %252 : vector<8x96xf32>
    %255 = arith.divf %253, %254 : vector<8x96xf32>
    %256 = vector.extract_strided_slice %255 {offsets = [0, 0], sizes = [8, 32], strides = [1, 1]} : vector<8x96xf32> to vector<8x32xf32>
    %257 = vector.extract_strided_slice %255 {offsets = [0, 32], sizes = [8, 32], strides = [1, 1]} : vector<8x96xf32> to vector<8x32xf32>
    %258 = vector.extract_strided_slice %255 {offsets = [0, 64], sizes = [8, 32], strides = [1, 1]} : vector<8x96xf32> to vector<8x32xf32>
    %259 = vector.extract_strided_slice %249 {offsets = [0, 96], sizes = [8, 32], strides = [1, 1]} : vector<8x128xf32> to vector<8x32xf32>
    %260 = math.tanh %259 : vector<8x32xf32>
    %261 = arith.mulf %257, %204 : vector<8x32xf32>
    %262 = arith.mulf %256, %260 : vector<8x32xf32>
    %263 = arith.addf %261, %262 : vector<8x32xf32>
    %264 = math.tanh %263 : vector<8x32xf32>
    %265 = arith.mulf %258, %264 : vector<8x32xf32>
    %c2_i32_151 = arith.constant 2 : i32
    %c2_i32_152 = arith.constant 2 : i32
    %c2_i32_153 = arith.constant 2 : i32
    %c0_i32_154 = arith.constant 0 : i32
    %c0_i32_155 = arith.constant 0 : i32
    %266 = tpu.memref_slice %arg7[%c2_i32_151, %c0_i32_154, %c0_i32_155] : memref<11x32x2688xbf16, #tpu.memory_space<any>> -> memref<1x32x2688xbf16, #tpu.memory_space<any>>
    %267 = tpu.memref_squeeze %266 : memref<1x32x2688xbf16, #tpu.memory_space<any>> -> memref<32x2688xbf16, #tpu.memory_space<any>>
    %c0_i32_156 = arith.constant 0 : i32
    %c0_i32_157 = arith.constant 0 : i32
    %268 = tpu.memref_slice %arg12[%c2_i32_152, %c0_i32_156, %c0_i32_157] : memref<11x32x2688xbf16, #tpu.memory_space<vmem>> -> memref<1x32x2688xbf16, #tpu.memory_space<vmem>>
    %269 = tpu.memref_squeeze %268 : memref<1x32x2688xbf16, #tpu.memory_space<vmem>> -> memref<32x2688xbf16, #tpu.memory_space<vmem>>
    %270 = tpu.memref_slice %arg13[%c2_i32_153] : memref<11x!tpu.dma_semaphore, #tpu.memory_space<semaphore_mem>> -> memref<1x!tpu.dma_semaphore, #tpu.memory_space<semaphore_mem>>
    %271 = tpu.memref_squeeze %270 : memref<1x!tpu.dma_semaphore, #tpu.memory_space<semaphore_mem>> -> memref<!tpu.dma_semaphore, #tpu.memory_space<semaphore_mem>>
    tpu.wait_dma2 semaphore(%271 : memref<!tpu.dma_semaphore, #tpu.memory_space<semaphore_mem>>) src(%267 : memref<32x2688xbf16, #tpu.memory_space<any>>) dst(%269 : memref<32x2688xbf16, #tpu.memory_space<vmem>>)
    %c0_158 = arith.constant 0 : index
    %c0_159 = arith.constant 0 : index
    %272 = vector.load %arg9[%c0_158, %c0_159] : memref<8x2688xf32, #tpu.memory_space<vmem>>, vector<8x2688xf32>
    %273 = arith.truncf %265 : vector<8x32xf32> to vector<8x32xbf16>
    %c2 = arith.constant 2 : index
    %c0_160 = arith.constant 0 : index
    %c0_161 = arith.constant 0 : index
    %274 = vector.load %arg12[%c2, %c0_160, %c0_161] : memref<11x32x2688xbf16, #tpu.memory_space<vmem>>, vector<1x32x2688xbf16>
    %275 = vector.shape_cast %274 : vector<1x32x2688xbf16> to vector<32x2688xbf16>
    %cst_162 = arith.constant dense<0.000000e+00> : vector<8x2688xf32>
    %276 = tpu.matmul %273, %275, %cst_162 {dimension_numbers = #tpu.dot_dimension_numbers<[1], [0], [0], [1], [0, 0, 1, 1], [], []>} : vector<8x32xbf16>, vector<32x2688xbf16>, vector<8x2688xf32> -> vector<8x2688xf32>
    %277 = arith.addf %272, %276 : vector<8x2688xf32>
    %c0_163 = arith.constant 0 : index
    %c0_164 = arith.constant 0 : index
    %278 = vector.load %arg9[%c0_163, %c0_164] : memref<8x2688xf32, #tpu.memory_space<vmem>>, vector<8x2688xf32>
    tpu.vector_store %arg9[%c0_163, %c0_164], %277 {strides = array<i32>} : memref<8x2688xf32, #tpu.memory_space<vmem>>, vector<8x2688xf32>,
    %279 = arith.truncf %241 : vector<8x32xf32> to vector<8x32xbf16>
    %280 = arith.truncf %265 : vector<8x32xf32> to vector<8x32xbf16>
    %281 = vector.extract_strided_slice %72 {offsets = [32, 0], sizes = [8, 128], strides = [1, 1]} : vector<88x128xf32> to vector<8x128xf32>
    %c0_165 = arith.constant 0 : index
    %c0_166 = arith.constant 0 : index
    %282 = vector.load %arg2[%c0_165, %c0_166] : memref<32x128xbf16, #tpu.memory_space<vmem>>, vector<32x128xbf16>
    %cst_167 = arith.constant dense<0.000000e+00> : vector<8x128xf32>
    %283 = tpu.matmul %279, %282, %cst_167 {dimension_numbers = #tpu.dot_dimension_numbers<[1], [0], [0], [1], [0, 0, 1, 1], [], []>} : vector<8x32xbf16>, vector<32x128xbf16>, vector<8x128xf32> -> vector<8x128xf32>
    %284 = arith.addf %281, %283 : vector<8x128xf32>
    %285 = vector.extract_strided_slice %284 {offsets = [0, 0], sizes = [8, 96], strides = [1, 1]} : vector<8x128xf32> to vector<8x96xf32>
    %286 = arith.negf %285 : vector<8x96xf32>
    %287 = math.exp %286 : vector<8x96xf32>
    %cst_168 = arith.constant 1.000000e+00 : f32
    %288 = vector.broadcast %cst_168 : f32 to vector<8x96xf32>
    %289 = arith.addf %288, %287 : vector<8x96xf32>
    %290 = arith.divf %288, %289 : vector<8x96xf32>
    %291 = vector.extract_strided_slice %290 {offsets = [0, 0], sizes = [8, 32], strides = [1, 1]} : vector<8x96xf32> to vector<8x32xf32>
    %292 = vector.extract_strided_slice %290 {offsets = [0, 32], sizes = [8, 32], strides = [1, 1]} : vector<8x96xf32> to vector<8x32xf32>
    %293 = vector.extract_strided_slice %290 {offsets = [0, 64], sizes = [8, 32], strides = [1, 1]} : vector<8x96xf32> to vector<8x32xf32>
    %294 = vector.extract_strided_slice %284 {offsets = [0, 96], sizes = [8, 32], strides = [1, 1]} : vector<8x128xf32> to vector<8x32xf32>
    %295 = math.tanh %294 : vector<8x32xf32>
    %296 = arith.mulf %292, %239 : vector<8x32xf32>
    %297 = arith.mulf %291, %295 : vector<8x32xf32>
    %298 = arith.addf %296, %297 : vector<8x32xf32>
    %299 = math.tanh %298 : vector<8x32xf32>
    %300 = arith.mulf %293, %299 : vector<8x32xf32>
    %c0_169 = arith.constant 0 : index
    %c0_170 = arith.constant 0 : index
    %301 = vector.load %arg4[%c0_169, %c0_170] : memref<32x128xbf16, #tpu.memory_space<vmem>>, vector<32x128xbf16>
    %cst_171 = arith.constant dense<0.000000e+00> : vector<8x128xf32>
    %302 = tpu.matmul %279, %301, %cst_171 {dimension_numbers = #tpu.dot_dimension_numbers<[1], [0], [0], [1], [0, 0, 1, 1], [], []>} : vector<8x32xbf16>, vector<32x128xbf16>, vector<8x128xf32> -> vector<8x128xf32>
    %c0_172 = arith.constant 0 : index
    %c0_173 = arith.constant 0 : index
    %303 = vector.load %arg6[%c0_172, %c0_173] : memref<1x128xf32, #tpu.memory_space<vmem>>, vector<1x128xf32>
    %304 = vector.broadcast %303 : vector<1x128xf32> to vector<8x128xf32>
    %305 = arith.addf %302, %304 : vector<8x128xf32>
    %c0_174 = arith.constant 0 : index
    %c0_175 = arith.constant 0 : index
    %306 = vector.load %arg5[%c0_174, %c0_175] : memref<32x128xbf16, #tpu.memory_space<vmem>>, vector<32x128xbf16>
    %cst_176 = arith.constant dense<0.000000e+00> : vector<8x128xf32>
    %307 = tpu.matmul %280, %306, %cst_176 {dimension_numbers = #tpu.dot_dimension_numbers<[1], [0], [0], [1], [0, 0, 1, 1], [], []>} : vector<8x32xbf16>, vector<32x128xbf16>, vector<8x128xf32> -> vector<8x128xf32>
    %308 = arith.addf %305, %307 : vector<8x128xf32>
    %309 = vector.extract_strided_slice %308 {offsets = [0, 0], sizes = [8, 96], strides = [1, 1]} : vector<8x128xf32> to vector<8x96xf32>
    %310 = arith.negf %309 : vector<8x96xf32>
    %311 = math.exp %310 : vector<8x96xf32>
    %cst_177 = arith.constant 1.000000e+00 : f32
    %312 = vector.broadcast %cst_177 : f32 to vector<8x96xf32>
    %313 = arith.addf %312, %311 : vector<8x96xf32>
    %314 = arith.divf %312, %313 : vector<8x96xf32>
    %315 = vector.extract_strided_slice %314 {offsets = [0, 0], sizes = [8, 32], strides = [1, 1]} : vector<8x96xf32> to vector<8x32xf32>
    %316 = vector.extract_strided_slice %314 {offsets = [0, 32], sizes = [8, 32], strides = [1, 1]} : vector<8x96xf32> to vector<8x32xf32>
    %317 = vector.extract_strided_slice %314 {offsets = [0, 64], sizes = [8, 32], strides = [1, 1]} : vector<8x96xf32> to vector<8x32xf32>
    %318 = vector.extract_strided_slice %308 {offsets = [0, 96], sizes = [8, 32], strides = [1, 1]} : vector<8x128xf32> to vector<8x32xf32>
    %319 = math.tanh %318 : vector<8x32xf32>
    %320 = arith.mulf %316, %263 : vector<8x32xf32>
    %321 = arith.mulf %315, %319 : vector<8x32xf32>
    %322 = arith.addf %320, %321 : vector<8x32xf32>
    %323 = math.tanh %322 : vector<8x32xf32>
    %324 = arith.mulf %317, %323 : vector<8x32xf32>
    %c3_i32_178 = arith.constant 3 : i32
    %c3_i32_179 = arith.constant 3 : i32
    %c3_i32_180 = arith.constant 3 : i32
    %c0_i32_181 = arith.constant 0 : i32
    %c0_i32_182 = arith.constant 0 : i32
    %325 = tpu.memref_slice %arg7[%c3_i32_178, %c0_i32_181, %c0_i32_182] : memref<11x32x2688xbf16, #tpu.memory_space<any>> -> memref<1x32x2688xbf16, #tpu.memory_space<any>>
    %326 = tpu.memref_squeeze %325 : memref<1x32x2688xbf16, #tpu.memory_space<any>> -> memref<32x2688xbf16, #tpu.memory_space<any>>
    %c0_i32_183 = arith.constant 0 : i32
    %c0_i32_184 = arith.constant 0 : i32
    %327 = tpu.memref_slice %arg12[%c3_i32_179, %c0_i32_183, %c0_i32_184] : memref<11x32x2688xbf16, #tpu.memory_space<vmem>> -> memref<1x32x2688xbf16, #tpu.memory_space<vmem>>
    %328 = tpu.memref_squeeze %327 : memref<1x32x2688xbf16, #tpu.memory_space<vmem>> -> memref<32x2688xbf16, #tpu.memory_space<vmem>>
    %329 = tpu.memref_slice %arg13[%c3_i32_180] : memref<11x!tpu.dma_semaphore, #tpu.memory_space<semaphore_mem>> -> memref<1x!tpu.dma_semaphore, #tpu.memory_space<semaphore_mem>>
    %330 = tpu.memref_squeeze %329 : memref<1x!tpu.dma_semaphore, #tpu.memory_space<semaphore_mem>> -> memref<!tpu.dma_semaphore, #tpu.memory_space<semaphore_mem>>
    tpu.wait_dma2 semaphore(%330 : memref<!tpu.dma_semaphore, #tpu.memory_space<semaphore_mem>>) src(%326 : memref<32x2688xbf16, #tpu.memory_space<any>>) dst(%328 : memref<32x2688xbf16, #tpu.memory_space<vmem>>)
    %c0_185 = arith.constant 0 : index
    %c0_186 = arith.constant 0 : index
    %331 = vector.load %arg9[%c0_185, %c0_186] : memref<8x2688xf32, #tpu.memory_space<vmem>>, vector<8x2688xf32>
    %332 = arith.truncf %324 : vector<8x32xf32> to vector<8x32xbf16>
    %c3 = arith.constant 3 : index
    %c0_187 = arith.constant 0 : index
    %c0_188 = arith.constant 0 : index
    %333 = vector.load %arg12[%c3, %c0_187, %c0_188] : memref<11x32x2688xbf16, #tpu.memory_space<vmem>>, vector<1x32x2688xbf16>
    %334 = vector.shape_cast %333 : vector<1x32x2688xbf16> to vector<32x2688xbf16>
    %cst_189 = arith.constant dense<0.000000e+00> : vector<8x2688xf32>
    %335 = tpu.matmul %332, %334, %cst_189 {dimension_numbers = #tpu.dot_dimension_numbers<[1], [0], [0], [1], [0, 0, 1, 1], [], []>} : vector<8x32xbf16>, vector<32x2688xbf16>, vector<8x2688xf32> -> vector<8x2688xf32>
    %336 = arith.addf %331, %335 : vector<8x2688xf32>
    %c0_190 = arith.constant 0 : index
    %c0_191 = arith.constant 0 : index
    %337 = vector.load %arg9[%c0_190, %c0_191] : memref<8x2688xf32, #tpu.memory_space<vmem>>, vector<8x2688xf32>
    tpu.vector_store %arg9[%c0_190, %c0_191], %336 {strides = array<i32>} : memref<8x2688xf32, #tpu.memory_space<vmem>>, vector<8x2688xf32>,
    %338 = arith.truncf %300 : vector<8x32xf32> to vector<8x32xbf16>
    %339 = arith.truncf %324 : vector<8x32xf32> to vector<8x32xbf16>
    %340 = vector.extract_strided_slice %72 {offsets = [40, 0], sizes = [8, 128], strides = [1, 1]} : vector<88x128xf32> to vector<8x128xf32>
    %c0_192 = arith.constant 0 : index
    %c0_193 = arith.constant 0 : index
    %341 = vector.load %arg2[%c0_192, %c0_193] : memref<32x128xbf16, #tpu.memory_space<vmem>>, vector<32x128xbf16>
    %cst_194 = arith.constant dense<0.000000e+00> : vector<8x128xf32>
    %342 = tpu.matmul %338, %341, %cst_194 {dimension_numbers = #tpu.dot_dimension_numbers<[1], [0], [0], [1], [0, 0, 1, 1], [], []>} : vector<8x32xbf16>, vector<32x128xbf16>, vector<8x128xf32> -> vector<8x128xf32>
    %343 = arith.addf %340, %342 : vector<8x128xf32>
    %344 = vector.extract_strided_slice %343 {offsets = [0, 0], sizes = [8, 96], strides = [1, 1]} : vector<8x128xf32> to vector<8x96xf32>
    %345 = arith.negf %344 : vector<8x96xf32>
    %346 = math.exp %345 : vector<8x96xf32>
    %cst_195 = arith.constant 1.000000e+00 : f32
    %347 = vector.broadcast %cst_195 : f32 to vector<8x96xf32>
    %348 = arith.addf %347, %346 : vector<8x96xf32>
    %349 = arith.divf %347, %348 : vector<8x96xf32>
    %350 = vector.extract_strided_slice %349 {offsets = [0, 0], sizes = [8, 32], strides = [1, 1]} : vector<8x96xf32> to vector<8x32xf32>
    %351 = vector.extract_strided_slice %349 {offsets = [0, 32], sizes = [8, 32], strides = [1, 1]} : vector<8x96xf32> to vector<8x32xf32>
    %352 = vector.extract_strided_slice %349 {offsets = [0, 64], sizes = [8, 32], strides = [1, 1]} : vector<8x96xf32> to vector<8x32xf32>
    %353 = vector.extract_strided_slice %343 {offsets = [0, 96], sizes = [8, 32], strides = [1, 1]} : vector<8x128xf32> to vector<8x32xf32>
    %354 = math.tanh %353 : vector<8x32xf32>
    %355 = arith.mulf %351, %298 : vector<8x32xf32>
    %356 = arith.mulf %350, %354 : vector<8x32xf32>
    %357 = arith.addf %355, %356 : vector<8x32xf32>
    %358 = math.tanh %357 : vector<8x32xf32>
    %359 = arith.mulf %352, %358 : vector<8x32xf32>
    %c0_196 = arith.constant 0 : index
    %c0_197 = arith.constant 0 : index
    %360 = vector.load %arg4[%c0_196, %c0_197] : memref<32x128xbf16, #tpu.memory_space<vmem>>, vector<32x128xbf16>
    %cst_198 = arith.constant dense<0.000000e+00> : vector<8x128xf32>
    %361 = tpu.matmul %338, %360, %cst_198 {dimension_numbers = #tpu.dot_dimension_numbers<[1], [0], [0], [1], [0, 0, 1, 1], [], []>} : vector<8x32xbf16>, vector<32x128xbf16>, vector<8x128xf32> -> vector<8x128xf32>
    %c0_199 = arith.constant 0 : index
    %c0_200 = arith.constant 0 : index
    %362 = vector.load %arg6[%c0_199, %c0_200] : memref<1x128xf32, #tpu.memory_space<vmem>>, vector<1x128xf32>
    %363 = vector.broadcast %362 : vector<1x128xf32> to vector<8x128xf32>
    %364 = arith.addf %361, %363 : vector<8x128xf32>
    %c0_201 = arith.constant 0 : index
    %c0_202 = arith.constant 0 : index
    %365 = vector.load %arg5[%c0_201, %c0_202] : memref<32x128xbf16, #tpu.memory_space<vmem>>, vector<32x128xbf16>
    %cst_203 = arith.constant dense<0.000000e+00> : vector<8x128xf32>
    %366 = tpu.matmul %339, %365, %cst_203 {dimension_numbers = #tpu.dot_dimension_numbers<[1], [0], [0], [1], [0, 0, 1, 1], [], []>} : vector<8x32xbf16>, vector<32x128xbf16>, vector<8x128xf32> -> vector<8x128xf32>
    %367 = arith.addf %364, %366 : vector<8x128xf32>
    %368 = vector.extract_strided_slice %367 {offsets = [0, 0], sizes = [8, 96], strides = [1, 1]} : vector<8x128xf32> to vector<8x96xf32>
    %369 = arith.negf %368 : vector<8x96xf32>
    %370 = math.exp %369 : vector<8x96xf32>
    %cst_204 = arith.constant 1.000000e+00 : f32
    %371 = vector.broadcast %cst_204 : f32 to vector<8x96xf32>
    %372 = arith.addf %371, %370 : vector<8x96xf32>
    %373 = arith.divf %371, %372 : vector<8x96xf32>
    %374 = vector.extract_strided_slice %373 {offsets = [0, 0], sizes = [8, 32], strides = [1, 1]} : vector<8x96xf32> to vector<8x32xf32>
    %375 = vector.extract_strided_slice %373 {offsets = [0, 32], sizes = [8, 32], strides = [1, 1]} : vector<8x96xf32> to vector<8x32xf32>
    %376 = vector.extract_strided_slice %373 {offsets = [0, 64], sizes = [8, 32], strides = [1, 1]} : vector<8x96xf32> to vector<8x32xf32>
    %377 = vector.extract_strided_slice %367 {offsets = [0, 96], sizes = [8, 32], strides = [1, 1]} : vector<8x128xf32> to vector<8x32xf32>
    %378 = math.tanh %377 : vector<8x32xf32>
    %379 = arith.mulf %375, %322 : vector<8x32xf32>
    %380 = arith.mulf %374, %378 : vector<8x32xf32>
    %381 = arith.addf %379, %380 : vector<8x32xf32>
    %382 = math.tanh %381 : vector<8x32xf32>
    %383 = arith.mulf %376, %382 : vector<8x32xf32>
    %c4_i32_205 = arith.constant 4 : i32
    %c4_i32_206 = arith.constant 4 : i32
    %c4_i32_207 = arith.constant 4 : i32
    %c0_i32_208 = arith.constant 0 : i32
    %c0_i32_209 = arith.constant 0 : i32
    %384 = tpu.memref_slice %arg7[%c4_i32_205, %c0_i32_208, %c0_i32_209] : memref<11x32x2688xbf16, #tpu.memory_space<any>> -> memref<1x32x2688xbf16, #tpu.memory_space<any>>
    %385 = tpu.memref_squeeze %384 : memref<1x32x2688xbf16, #tpu.memory_space<any>> -> memref<32x2688xbf16, #tpu.memory_space<any>>
    %c0_i32_210 = arith.constant 0 : i32
    %c0_i32_211 = arith.constant 0 : i32
    %386 = tpu.memref_slice %arg12[%c4_i32_206, %c0_i32_210, %c0_i32_211] : memref<11x32x2688xbf16, #tpu.memory_space<vmem>> -> memref<1x32x2688xbf16, #tpu.memory_space<vmem>>
    %387 = tpu.memref_squeeze %386 : memref<1x32x2688xbf16, #tpu.memory_space<vmem>> -> memref<32x2688xbf16, #tpu.memory_space<vmem>>
    %388 = tpu.memref_slice %arg13[%c4_i32_207] : memref<11x!tpu.dma_semaphore, #tpu.memory_space<semaphore_mem>> -> memref<1x!tpu.dma_semaphore, #tpu.memory_space<semaphore_mem>>
    %389 = tpu.memref_squeeze %388 : memref<1x!tpu.dma_semaphore, #tpu.memory_space<semaphore_mem>> -> memref<!tpu.dma_semaphore, #tpu.memory_space<semaphore_mem>>
    tpu.wait_dma2 semaphore(%389 : memref<!tpu.dma_semaphore, #tpu.memory_space<semaphore_mem>>) src(%385 : memref<32x2688xbf16, #tpu.memory_space<any>>) dst(%387 : memref<32x2688xbf16, #tpu.memory_space<vmem>>)
    %c0_212 = arith.constant 0 : index
    %c0_213 = arith.constant 0 : index
    %390 = vector.load %arg9[%c0_212, %c0_213] : memref<8x2688xf32, #tpu.memory_space<vmem>>, vector<8x2688xf32>
    %391 = arith.truncf %383 : vector<8x32xf32> to vector<8x32xbf16>
    %c4 = arith.constant 4 : index
    %c0_214 = arith.constant 0 : index
    %c0_215 = arith.constant 0 : index
    %392 = vector.load %arg12[%c4, %c0_214, %c0_215] : memref<11x32x2688xbf16, #tpu.memory_space<vmem>>, vector<1x32x2688xbf16>
    %393 = vector.shape_cast %392 : vector<1x32x2688xbf16> to vector<32x2688xbf16>
    %cst_216 = arith.constant dense<0.000000e+00> : vector<8x2688xf32>
    %394 = tpu.matmul %391, %393, %cst_216 {dimension_numbers = #tpu.dot_dimension_numbers<[1], [0], [0], [1], [0, 0, 1, 1], [], []>} : vector<8x32xbf16>, vector<32x2688xbf16>, vector<8x2688xf32> -> vector<8x2688xf32>
    %395 = arith.addf %390, %394 : vector<8x2688xf32>
    %c0_217 = arith.constant 0 : index
    %c0_218 = arith.constant 0 : index
    %396 = vector.load %arg9[%c0_217, %c0_218] : memref<8x2688xf32, #tpu.memory_space<vmem>>, vector<8x2688xf32>
    tpu.vector_store %arg9[%c0_217, %c0_218], %395 {strides = array<i32>} : memref<8x2688xf32, #tpu.memory_space<vmem>>, vector<8x2688xf32>,
    %397 = arith.truncf %359 : vector<8x32xf32> to vector<8x32xbf16>
    %398 = arith.truncf %383 : vector<8x32xf32> to vector<8x32xbf16>
    %399 = vector.extract_strided_slice %72 {offsets = [48, 0], sizes = [8, 128], strides = [1, 1]} : vector<88x128xf32> to vector<8x128xf32>
    %c0_219 = arith.constant 0 : index
    %c0_220 = arith.constant 0 : index
    %400 = vector.load %arg2[%c0_219, %c0_220] : memref<32x128xbf16, #tpu.memory_space<vmem>>, vector<32x128xbf16>
    %cst_221 = arith.constant dense<0.000000e+00> : vector<8x128xf32>
    %401 = tpu.matmul %397, %400, %cst_221 {dimension_numbers = #tpu.dot_dimension_numbers<[1], [0], [0], [1], [0, 0, 1, 1], [], []>} : vector<8x32xbf16>, vector<32x128xbf16>, vector<8x128xf32> -> vector<8x128xf32>
    %402 = arith.addf %399, %401 : vector<8x128xf32>
    %403 = vector.extract_strided_slice %402 {offsets = [0, 0], sizes = [8, 96], strides = [1, 1]} : vector<8x128xf32> to vector<8x96xf32>
    %404 = arith.negf %403 : vector<8x96xf32>
    %405 = math.exp %404 : vector<8x96xf32>
    %cst_222 = arith.constant 1.000000e+00 : f32
    %406 = vector.broadcast %cst_222 : f32 to vector<8x96xf32>
    %407 = arith.addf %406, %405 : vector<8x96xf32>
    %408 = arith.divf %406, %407 : vector<8x96xf32>
    %409 = vector.extract_strided_slice %408 {offsets = [0, 0], sizes = [8, 32], strides = [1, 1]} : vector<8x96xf32> to vector<8x32xf32>
    %410 = vector.extract_strided_slice %408 {offsets = [0, 32], sizes = [8, 32], strides = [1, 1]} : vector<8x96xf32> to vector<8x32xf32>
    %411 = vector.extract_strided_slice %408 {offsets = [0, 64], sizes = [8, 32], strides = [1, 1]} : vector<8x96xf32> to vector<8x32xf32>
    %412 = vector.extract_strided_slice %402 {offsets = [0, 96], sizes = [8, 32], strides = [1, 1]} : vector<8x128xf32> to vector<8x32xf32>
    %413 = math.tanh %412 : vector<8x32xf32>
    %414 = arith.mulf %410, %357 : vector<8x32xf32>
    %415 = arith.mulf %409, %413 : vector<8x32xf32>
    %416 = arith.addf %414, %415 : vector<8x32xf32>
    %417 = math.tanh %416 : vector<8x32xf32>
    %418 = arith.mulf %411, %417 : vector<8x32xf32>
    %c0_223 = arith.constant 0 : index
    %c0_224 = arith.constant 0 : index
    %419 = vector.load %arg4[%c0_223, %c0_224] : memref<32x128xbf16, #tpu.memory_space<vmem>>, vector<32x128xbf16>
    %cst_225 = arith.constant dense<0.000000e+00> : vector<8x128xf32>
    %420 = tpu.matmul %397, %419, %cst_225 {dimension_numbers = #tpu.dot_dimension_numbers<[1], [0], [0], [1], [0, 0, 1, 1], [], []>} : vector<8x32xbf16>, vector<32x128xbf16>, vector<8x128xf32> -> vector<8x128xf32>
    %c0_226 = arith.constant 0 : index
    %c0_227 = arith.constant 0 : index
    %421 = vector.load %arg6[%c0_226, %c0_227] : memref<1x128xf32, #tpu.memory_space<vmem>>, vector<1x128xf32>
    %422 = vector.broadcast %421 : vector<1x128xf32> to vector<8x128xf32>
    %423 = arith.addf %420, %422 : vector<8x128xf32>
    %c0_228 = arith.constant 0 : index
    %c0_229 = arith.constant 0 : index
    %424 = vector.load %arg5[%c0_228, %c0_229] : memref<32x128xbf16, #tpu.memory_space<vmem>>, vector<32x128xbf16>
    %cst_230 = arith.constant dense<0.000000e+00> : vector<8x128xf32>
    %425 = tpu.matmul %398, %424, %cst_230 {dimension_numbers = #tpu.dot_dimension_numbers<[1], [0], [0], [1], [0, 0, 1, 1], [], []>} : vector<8x32xbf16>, vector<32x128xbf16>, vector<8x128xf32> -> vector<8x128xf32>
    %426 = arith.addf %423, %425 : vector<8x128xf32>
    %427 = vector.extract_strided_slice %426 {offsets = [0, 0], sizes = [8, 96], strides = [1, 1]} : vector<8x128xf32> to vector<8x96xf32>
    %428 = arith.negf %427 : vector<8x96xf32>
    %429 = math.exp %428 : vector<8x96xf32>
    %cst_231 = arith.constant 1.000000e+00 : f32
    %430 = vector.broadcast %cst_231 : f32 to vector<8x96xf32>
    %431 = arith.addf %430, %429 : vector<8x96xf32>
    %432 = arith.divf %430, %431 : vector<8x96xf32>
    %433 = vector.extract_strided_slice %432 {offsets = [0, 0], sizes = [8, 32], strides = [1, 1]} : vector<8x96xf32> to vector<8x32xf32>
    %434 = vector.extract_strided_slice %432 {offsets = [0, 32], sizes = [8, 32], strides = [1, 1]} : vector<8x96xf32> to vector<8x32xf32>
    %435 = vector.extract_strided_slice %432 {offsets = [0, 64], sizes = [8, 32], strides = [1, 1]} : vector<8x96xf32> to vector<8x32xf32>
    %436 = vector.extract_strided_slice %426 {offsets = [0, 96], sizes = [8, 32], strides = [1, 1]} : vector<8x128xf32> to vector<8x32xf32>
    %437 = math.tanh %436 : vector<8x32xf32>
    %438 = arith.mulf %434, %381 : vector<8x32xf32>
    %439 = arith.mulf %433, %437 : vector<8x32xf32>
    %440 = arith.addf %438, %439 : vector<8x32xf32>
    %441 = math.tanh %440 : vector<8x32xf32>
    %442 = arith.mulf %435, %441 : vector<8x32xf32>
    %c5_i32_232 = arith.constant 5 : i32
    %c5_i32_233 = arith.constant 5 : i32
    %c5_i32_234 = arith.constant 5 : i32
    %c0_i32_235 = arith.constant 0 : i32
    %c0_i32_236 = arith.constant 0 : i32
    %443 = tpu.memref_slice %arg7[%c5_i32_232, %c0_i32_235, %c0_i32_236] : memref<11x32x2688xbf16, #tpu.memory_space<any>> -> memref<1x32x2688xbf16, #tpu.memory_space<any>>
    %444 = tpu.memref_squeeze %443 : memref<1x32x2688xbf16, #tpu.memory_space<any>> -> memref<32x2688xbf16, #tpu.memory_space<any>>
    %c0_i32_237 = arith.constant 0 : i32
    %c0_i32_238 = arith.constant 0 : i32
    %445 = tpu.memref_slice %arg12[%c5_i32_233, %c0_i32_237, %c0_i32_238] : memref<11x32x2688xbf16, #tpu.memory_space<vmem>> -> memref<1x32x2688xbf16, #tpu.memory_space<vmem>>
    %446 = tpu.memref_squeeze %445 : memref<1x32x2688xbf16, #tpu.memory_space<vmem>> -> memref<32x2688xbf16, #tpu.memory_space<vmem>>
    %447 = tpu.memref_slice %arg13[%c5_i32_234] : memref<11x!tpu.dma_semaphore, #tpu.memory_space<semaphore_mem>> -> memref<1x!tpu.dma_semaphore, #tpu.memory_space<semaphore_mem>>
    %448 = tpu.memref_squeeze %447 : memref<1x!tpu.dma_semaphore, #tpu.memory_space<semaphore_mem>> -> memref<!tpu.dma_semaphore, #tpu.memory_space<semaphore_mem>>
    tpu.wait_dma2 semaphore(%448 : memref<!tpu.dma_semaphore, #tpu.memory_space<semaphore_mem>>) src(%444 : memref<32x2688xbf16, #tpu.memory_space<any>>) dst(%446 : memref<32x2688xbf16, #tpu.memory_space<vmem>>)
    %c0_239 = arith.constant 0 : index
    %c0_240 = arith.constant 0 : index
    %449 = vector.load %arg9[%c0_239, %c0_240] : memref<8x2688xf32, #tpu.memory_space<vmem>>, vector<8x2688xf32>
    %450 = arith.truncf %442 : vector<8x32xf32> to vector<8x32xbf16>
    %c5 = arith.constant 5 : index
    %c0_241 = arith.constant 0 : index
    %c0_242 = arith.constant 0 : index
    %451 = vector.load %arg12[%c5, %c0_241, %c0_242] : memref<11x32x2688xbf16, #tpu.memory_space<vmem>>, vector<1x32x2688xbf16>
    %452 = vector.shape_cast %451 : vector<1x32x2688xbf16> to vector<32x2688xbf16>
    %cst_243 = arith.constant dense<0.000000e+00> : vector<8x2688xf32>
    %453 = tpu.matmul %450, %452, %cst_243 {dimension_numbers = #tpu.dot_dimension_numbers<[1], [0], [0], [1], [0, 0, 1, 1], [], []>} : vector<8x32xbf16>, vector<32x2688xbf16>, vector<8x2688xf32> -> vector<8x2688xf32>
    %454 = arith.addf %449, %453 : vector<8x2688xf32>
    %c0_244 = arith.constant 0 : index
    %c0_245 = arith.constant 0 : index
    %455 = vector.load %arg9[%c0_244, %c0_245] : memref<8x2688xf32, #tpu.memory_space<vmem>>, vector<8x2688xf32>
    tpu.vector_store %arg9[%c0_244, %c0_245], %454 {strides = array<i32>} : memref<8x2688xf32, #tpu.memory_space<vmem>>, vector<8x2688xf32>,
    %456 = arith.truncf %418 : vector<8x32xf32> to vector<8x32xbf16>
    %457 = arith.truncf %442 : vector<8x32xf32> to vector<8x32xbf16>
    %458 = vector.extract_strided_slice %72 {offsets = [56, 0], sizes = [8, 128], strides = [1, 1]} : vector<88x128xf32> to vector<8x128xf32>
    %c0_246 = arith.constant 0 : index
    %c0_247 = arith.constant 0 : index
    %459 = vector.load %arg2[%c0_246, %c0_247] : memref<32x128xbf16, #tpu.memory_space<vmem>>, vector<32x128xbf16>
    %cst_248 = arith.constant dense<0.000000e+00> : vector<8x128xf32>
    %460 = tpu.matmul %456, %459, %cst_248 {dimension_numbers = #tpu.dot_dimension_numbers<[1], [0], [0], [1], [0, 0, 1, 1], [], []>} : vector<8x32xbf16>, vector<32x128xbf16>, vector<8x128xf32> -> vector<8x128xf32>
    %461 = arith.addf %458, %460 : vector<8x128xf32>
    %462 = vector.extract_strided_slice %461 {offsets = [0, 0], sizes = [8, 96], strides = [1, 1]} : vector<8x128xf32> to vector<8x96xf32>
    %463 = arith.negf %462 : vector<8x96xf32>
    %464 = math.exp %463 : vector<8x96xf32>
    %cst_249 = arith.constant 1.000000e+00 : f32
    %465 = vector.broadcast %cst_249 : f32 to vector<8x96xf32>
    %466 = arith.addf %465, %464 : vector<8x96xf32>
    %467 = arith.divf %465, %466 : vector<8x96xf32>
    %468 = vector.extract_strided_slice %467 {offsets = [0, 0], sizes = [8, 32], strides = [1, 1]} : vector<8x96xf32> to vector<8x32xf32>
    %469 = vector.extract_strided_slice %467 {offsets = [0, 32], sizes = [8, 32], strides = [1, 1]} : vector<8x96xf32> to vector<8x32xf32>
    %470 = vector.extract_strided_slice %467 {offsets = [0, 64], sizes = [8, 32], strides = [1, 1]} : vector<8x96xf32> to vector<8x32xf32>
    %471 = vector.extract_strided_slice %461 {offsets = [0, 96], sizes = [8, 32], strides = [1, 1]} : vector<8x128xf32> to vector<8x32xf32>
    %472 = math.tanh %471 : vector<8x32xf32>
    %473 = arith.mulf %469, %416 : vector<8x32xf32>
    %474 = arith.mulf %468, %472 : vector<8x32xf32>
    %475 = arith.addf %473, %474 : vector<8x32xf32>
    %476 = math.tanh %475 : vector<8x32xf32>
    %477 = arith.mulf %470, %476 : vector<8x32xf32>
    %c0_250 = arith.constant 0 : index
    %c0_251 = arith.constant 0 : index
    %478 = vector.load %arg4[%c0_250, %c0_251] : memref<32x128xbf16, #tpu.memory_space<vmem>>, vector<32x128xbf16>
    %cst_252 = arith.constant dense<0.000000e+00> : vector<8x128xf32>
    %479 = tpu.matmul %456, %478, %cst_252 {dimension_numbers = #tpu.dot_dimension_numbers<[1], [0], [0], [1], [0, 0, 1, 1], [], []>} : vector<8x32xbf16>, vector<32x128xbf16>, vector<8x128xf32> -> vector<8x128xf32>
    %c0_253 = arith.constant 0 : index
    %c0_254 = arith.constant 0 : index
    %480 = vector.load %arg6[%c0_253, %c0_254] : memref<1x128xf32, #tpu.memory_space<vmem>>, vector<1x128xf32>
    %481 = vector.broadcast %480 : vector<1x128xf32> to vector<8x128xf32>
    %482 = arith.addf %479, %481 : vector<8x128xf32>
    %c0_255 = arith.constant 0 : index
    %c0_256 = arith.constant 0 : index
    %483 = vector.load %arg5[%c0_255, %c0_256] : memref<32x128xbf16, #tpu.memory_space<vmem>>, vector<32x128xbf16>
    %cst_257 = arith.constant dense<0.000000e+00> : vector<8x128xf32>
    %484 = tpu.matmul %457, %483, %cst_257 {dimension_numbers = #tpu.dot_dimension_numbers<[1], [0], [0], [1], [0, 0, 1, 1], [], []>} : vector<8x32xbf16>, vector<32x128xbf16>, vector<8x128xf32> -> vector<8x128xf32>
    %485 = arith.addf %482, %484 : vector<8x128xf32>
    %486 = vector.extract_strided_slice %485 {offsets = [0, 0], sizes = [8, 96], strides = [1, 1]} : vector<8x128xf32> to vector<8x96xf32>
    %487 = arith.negf %486 : vector<8x96xf32>
    %488 = math.exp %487 : vector<8x96xf32>
    %cst_258 = arith.constant 1.000000e+00 : f32
    %489 = vector.broadcast %cst_258 : f32 to vector<8x96xf32>
    %490 = arith.addf %489, %488 : vector<8x96xf32>
    %491 = arith.divf %489, %490 : vector<8x96xf32>
    %492 = vector.extract_strided_slice %491 {offsets = [0, 0], sizes = [8, 32], strides = [1, 1]} : vector<8x96xf32> to vector<8x32xf32>
    %493 = vector.extract_strided_slice %491 {offsets = [0, 32], sizes = [8, 32], strides = [1, 1]} : vector<8x96xf32> to vector<8x32xf32>
    %494 = vector.extract_strided_slice %491 {offsets = [0, 64], sizes = [8, 32], strides = [1, 1]} : vector<8x96xf32> to vector<8x32xf32>
    %495 = vector.extract_strided_slice %485 {offsets = [0, 96], sizes = [8, 32], strides = [1, 1]} : vector<8x128xf32> to vector<8x32xf32>
    %496 = math.tanh %495 : vector<8x32xf32>
    %497 = arith.mulf %493, %440 : vector<8x32xf32>
    %498 = arith.mulf %492, %496 : vector<8x32xf32>
    %499 = arith.addf %497, %498 : vector<8x32xf32>
    %500 = math.tanh %499 : vector<8x32xf32>
    %501 = arith.mulf %494, %500 : vector<8x32xf32>
    %c6_i32_259 = arith.constant 6 : i32
    %c6_i32_260 = arith.constant 6 : i32
    %c6_i32_261 = arith.constant 6 : i32
    %c0_i32_262 = arith.constant 0 : i32
    %c0_i32_263 = arith.constant 0 : i32
    %502 = tpu.memref_slice %arg7[%c6_i32_259, %c0_i32_262, %c0_i32_263] : memref<11x32x2688xbf16, #tpu.memory_space<any>> -> memref<1x32x2688xbf16, #tpu.memory_space<any>>
    %503 = tpu.memref_squeeze %502 : memref<1x32x2688xbf16, #tpu.memory_space<any>> -> memref<32x2688xbf16, #tpu.memory_space<any>>
    %c0_i32_264 = arith.constant 0 : i32
    %c0_i32_265 = arith.constant 0 : i32
    %504 = tpu.memref_slice %arg12[%c6_i32_260, %c0_i32_264, %c0_i32_265] : memref<11x32x2688xbf16, #tpu.memory_space<vmem>> -> memref<1x32x2688xbf16, #tpu.memory_space<vmem>>
    %505 = tpu.memref_squeeze %504 : memref<1x32x2688xbf16, #tpu.memory_space<vmem>> -> memref<32x2688xbf16, #tpu.memory_space<vmem>>
    %506 = tpu.memref_slice %arg13[%c6_i32_261] : memref<11x!tpu.dma_semaphore, #tpu.memory_space<semaphore_mem>> -> memref<1x!tpu.dma_semaphore, #tpu.memory_space<semaphore_mem>>
    %507 = tpu.memref_squeeze %506 : memref<1x!tpu.dma_semaphore, #tpu.memory_space<semaphore_mem>> -> memref<!tpu.dma_semaphore, #tpu.memory_space<semaphore_mem>>
    tpu.wait_dma2 semaphore(%507 : memref<!tpu.dma_semaphore, #tpu.memory_space<semaphore_mem>>) src(%503 : memref<32x2688xbf16, #tpu.memory_space<any>>) dst(%505 : memref<32x2688xbf16, #tpu.memory_space<vmem>>)
    %c0_266 = arith.constant 0 : index
    %c0_267 = arith.constant 0 : index
    %508 = vector.load %arg9[%c0_266, %c0_267] : memref<8x2688xf32, #tpu.memory_space<vmem>>, vector<8x2688xf32>
    %509 = arith.truncf %501 : vector<8x32xf32> to vector<8x32xbf16>
    %c6 = arith.constant 6 : index
    %c0_268 = arith.constant 0 : index
    %c0_269 = arith.constant 0 : index
    %510 = vector.load %arg12[%c6, %c0_268, %c0_269] : memref<11x32x2688xbf16, #tpu.memory_space<vmem>>, vector<1x32x2688xbf16>
    %511 = vector.shape_cast %510 : vector<1x32x2688xbf16> to vector<32x2688xbf16>
    %cst_270 = arith.constant dense<0.000000e+00> : vector<8x2688xf32>
    %512 = tpu.matmul %509, %511, %cst_270 {dimension_numbers = #tpu.dot_dimension_numbers<[1], [0], [0], [1], [0, 0, 1, 1], [], []>} : vector<8x32xbf16>, vector<32x2688xbf16>, vector<8x2688xf32> -> vector<8x2688xf32>
    %513 = arith.addf %508, %512 : vector<8x2688xf32>
    %c0_271 = arith.constant 0 : index
    %c0_272 = arith.constant 0 : index
    %514 = vector.load %arg9[%c0_271, %c0_272] : memref<8x2688xf32, #tpu.memory_space<vmem>>, vector<8x2688xf32>
    tpu.vector_store %arg9[%c0_271, %c0_272], %513 {strides = array<i32>} : memref<8x2688xf32, #tpu.memory_space<vmem>>, vector<8x2688xf32>,
    %515 = arith.truncf %477 : vector<8x32xf32> to vector<8x32xbf16>
    %516 = arith.truncf %501 : vector<8x32xf32> to vector<8x32xbf16>
    %517 = vector.extract_strided_slice %72 {offsets = [64, 0], sizes = [8, 128], strides = [1, 1]} : vector<88x128xf32> to vector<8x128xf32>
    %c0_273 = arith.constant 0 : index
    %c0_274 = arith.constant 0 : index
    %518 = vector.load %arg2[%c0_273, %c0_274] : memref<32x128xbf16, #tpu.memory_space<vmem>>, vector<32x128xbf16>
    %cst_275 = arith.constant dense<0.000000e+00> : vector<8x128xf32>
    %519 = tpu.matmul %515, %518, %cst_275 {dimension_numbers = #tpu.dot_dimension_numbers<[1], [0], [0], [1], [0, 0, 1, 1], [], []>} : vector<8x32xbf16>, vector<32x128xbf16>, vector<8x128xf32> -> vector<8x128xf32>
    %520 = arith.addf %517, %519 : vector<8x128xf32>
    %521 = vector.extract_strided_slice %520 {offsets = [0, 0], sizes = [8, 96], strides = [1, 1]} : vector<8x128xf32> to vector<8x96xf32>
    %522 = arith.negf %521 : vector<8x96xf32>
    %523 = math.exp %522 : vector<8x96xf32>
    %cst_276 = arith.constant 1.000000e+00 : f32
    %524 = vector.broadcast %cst_276 : f32 to vector<8x96xf32>
    %525 = arith.addf %524, %523 : vector<8x96xf32>
    %526 = arith.divf %524, %525 : vector<8x96xf32>
    %527 = vector.extract_strided_slice %526 {offsets = [0, 0], sizes = [8, 32], strides = [1, 1]} : vector<8x96xf32> to vector<8x32xf32>
    %528 = vector.extract_strided_slice %526 {offsets = [0, 32], sizes = [8, 32], strides = [1, 1]} : vector<8x96xf32> to vector<8x32xf32>
    %529 = vector.extract_strided_slice %526 {offsets = [0, 64], sizes = [8, 32], strides = [1, 1]} : vector<8x96xf32> to vector<8x32xf32>
    %530 = vector.extract_strided_slice %520 {offsets = [0, 96], sizes = [8, 32], strides = [1, 1]} : vector<8x128xf32> to vector<8x32xf32>
    %531 = math.tanh %530 : vector<8x32xf32>
    %532 = arith.mulf %528, %475 : vector<8x32xf32>
    %533 = arith.mulf %527, %531 : vector<8x32xf32>
    %534 = arith.addf %532, %533 : vector<8x32xf32>
    %535 = math.tanh %534 : vector<8x32xf32>
    %536 = arith.mulf %529, %535 : vector<8x32xf32>
    %c0_277 = arith.constant 0 : index
    %c0_278 = arith.constant 0 : index
    %537 = vector.load %arg4[%c0_277, %c0_278] : memref<32x128xbf16, #tpu.memory_space<vmem>>, vector<32x128xbf16>
    %cst_279 = arith.constant dense<0.000000e+00> : vector<8x128xf32>
    %538 = tpu.matmul %515, %537, %cst_279 {dimension_numbers = #tpu.dot_dimension_numbers<[1], [0], [0], [1], [0, 0, 1, 1], [], []>} : vector<8x32xbf16>, vector<32x128xbf16>, vector<8x128xf32> -> vector<8x128xf32>
    %c0_280 = arith.constant 0 : index
    %c0_281 = arith.constant 0 : index
    %539 = vector.load %arg6[%c0_280, %c0_281] : memref<1x128xf32, #tpu.memory_space<vmem>>, vector<1x128xf32>
    %540 = vector.broadcast %539 : vector<1x128xf32> to vector<8x128xf32>
    %541 = arith.addf %538, %540 : vector<8x128xf32>
    %c0_282 = arith.constant 0 : index
    %c0_283 = arith.constant 0 : index
    %542 = vector.load %arg5[%c0_282, %c0_283] : memref<32x128xbf16, #tpu.memory_space<vmem>>, vector<32x128xbf16>
    %cst_284 = arith.constant dense<0.000000e+00> : vector<8x128xf32>
    %543 = tpu.matmul %516, %542, %cst_284 {dimension_numbers = #tpu.dot_dimension_numbers<[1], [0], [0], [1], [0, 0, 1, 1], [], []>} : vector<8x32xbf16>, vector<32x128xbf16>, vector<8x128xf32> -> vector<8x128xf32>
    %544 = arith.addf %541, %543 : vector<8x128xf32>
    %545 = vector.extract_strided_slice %544 {offsets = [0, 0], sizes = [8, 96], strides = [1, 1]} : vector<8x128xf32> to vector<8x96xf32>
    %546 = arith.negf %545 : vector<8x96xf32>
    %547 = math.exp %546 : vector<8x96xf32>
    %cst_285 = arith.constant 1.000000e+00 : f32
    %548 = vector.broadcast %cst_285 : f32 to vector<8x96xf32>
    %549 = arith.addf %548, %547 : vector<8x96xf32>
    %550 = arith.divf %548, %549 : vector<8x96xf32>
    %551 = vector.extract_strided_slice %550 {offsets = [0, 0], sizes = [8, 32], strides = [1, 1]} : vector<8x96xf32> to vector<8x32xf32>
    %552 = vector.extract_strided_slice %550 {offsets = [0, 32], sizes = [8, 32], strides = [1, 1]} : vector<8x96xf32> to vector<8x32xf32>
    %553 = vector.extract_strided_slice %550 {offsets = [0, 64], sizes = [8, 32], strides = [1, 1]} : vector<8x96xf32> to vector<8x32xf32>
    %554 = vector.extract_strided_slice %544 {offsets = [0, 96], sizes = [8, 32], strides = [1, 1]} : vector<8x128xf32> to vector<8x32xf32>
    %555 = math.tanh %554 : vector<8x32xf32>
    %556 = arith.mulf %552, %499 : vector<8x32xf32>
    %557 = arith.mulf %551, %555 : vector<8x32xf32>
    %558 = arith.addf %556, %557 : vector<8x32xf32>
    %559 = math.tanh %558 : vector<8x32xf32>
    %560 = arith.mulf %553, %559 : vector<8x32xf32>
    %c7_i32_286 = arith.constant 7 : i32
    %c7_i32_287 = arith.constant 7 : i32
    %c7_i32_288 = arith.constant 7 : i32
    %c0_i32_289 = arith.constant 0 : i32
    %c0_i32_290 = arith.constant 0 : i32
    %561 = tpu.memref_slice %arg7[%c7_i32_286, %c0_i32_289, %c0_i32_290] : memref<11x32x2688xbf16, #tpu.memory_space<any>> -> memref<1x32x2688xbf16, #tpu.memory_space<any>>
    %562 = tpu.memref_squeeze %561 : memref<1x32x2688xbf16, #tpu.memory_space<any>> -> memref<32x2688xbf16, #tpu.memory_space<any>>
    %c0_i32_291 = arith.constant 0 : i32
    %c0_i32_292 = arith.constant 0 : i32
    %563 = tpu.memref_slice %arg12[%c7_i32_287, %c0_i32_291, %c0_i32_292] : memref<11x32x2688xbf16, #tpu.memory_space<vmem>> -> memref<1x32x2688xbf16, #tpu.memory_space<vmem>>
    %564 = tpu.memref_squeeze %563 : memref<1x32x2688xbf16, #tpu.memory_space<vmem>> -> memref<32x2688xbf16, #tpu.memory_space<vmem>>
    %565 = tpu.memref_slice %arg13[%c7_i32_288] : memref<11x!tpu.dma_semaphore, #tpu.memory_space<semaphore_mem>> -> memref<1x!tpu.dma_semaphore, #tpu.memory_space<semaphore_mem>>
    %566 = tpu.memref_squeeze %565 : memref<1x!tpu.dma_semaphore, #tpu.memory_space<semaphore_mem>> -> memref<!tpu.dma_semaphore, #tpu.memory_space<semaphore_mem>>
    tpu.wait_dma2 semaphore(%566 : memref<!tpu.dma_semaphore, #tpu.memory_space<semaphore_mem>>) src(%562 : memref<32x2688xbf16, #tpu.memory_space<any>>) dst(%564 : memref<32x2688xbf16, #tpu.memory_space<vmem>>)
    %c0_293 = arith.constant 0 : index
    %c0_294 = arith.constant 0 : index
    %567 = vector.load %arg9[%c0_293, %c0_294] : memref<8x2688xf32, #tpu.memory_space<vmem>>, vector<8x2688xf32>
    %568 = arith.truncf %560 : vector<8x32xf32> to vector<8x32xbf16>
    %c7 = arith.constant 7 : index
    %c0_295 = arith.constant 0 : index
    %c0_296 = arith.constant 0 : index
    %569 = vector.load %arg12[%c7, %c0_295, %c0_296] : memref<11x32x2688xbf16, #tpu.memory_space<vmem>>, vector<1x32x2688xbf16>
    %570 = vector.shape_cast %569 : vector<1x32x2688xbf16> to vector<32x2688xbf16>
    %cst_297 = arith.constant dense<0.000000e+00> : vector<8x2688xf32>
    %571 = tpu.matmul %568, %570, %cst_297 {dimension_numbers = #tpu.dot_dimension_numbers<[1], [0], [0], [1], [0, 0, 1, 1], [], []>} : vector<8x32xbf16>, vector<32x2688xbf16>, vector<8x2688xf32> -> vector<8x2688xf32>
    %572 = arith.addf %567, %571 : vector<8x2688xf32>
    %c0_298 = arith.constant 0 : index
    %c0_299 = arith.constant 0 : index
    %573 = vector.load %arg9[%c0_298, %c0_299] : memref<8x2688xf32, #tpu.memory_space<vmem>>, vector<8x2688xf32>
    tpu.vector_store %arg9[%c0_298, %c0_299], %572 {strides = array<i32>} : memref<8x2688xf32, #tpu.memory_space<vmem>>, vector<8x2688xf32>,
    %574 = arith.truncf %536 : vector<8x32xf32> to vector<8x32xbf16>
    %575 = arith.truncf %560 : vector<8x32xf32> to vector<8x32xbf16>
    %576 = vector.extract_strided_slice %72 {offsets = [72, 0], sizes = [8, 128], strides = [1, 1]} : vector<88x128xf32> to vector<8x128xf32>
    %c0_300 = arith.constant 0 : index
    %c0_301 = arith.constant 0 : index
    %577 = vector.load %arg2[%c0_300, %c0_301] : memref<32x128xbf16, #tpu.memory_space<vmem>>, vector<32x128xbf16>
    %cst_302 = arith.constant dense<0.000000e+00> : vector<8x128xf32>
    %578 = tpu.matmul %574, %577, %cst_302 {dimension_numbers = #tpu.dot_dimension_numbers<[1], [0], [0], [1], [0, 0, 1, 1], [], []>} : vector<8x32xbf16>, vector<32x128xbf16>, vector<8x128xf32> -> vector<8x128xf32>
    %579 = arith.addf %576, %578 : vector<8x128xf32>
    %580 = vector.extract_strided_slice %579 {offsets = [0, 0], sizes = [8, 96], strides = [1, 1]} : vector<8x128xf32> to vector<8x96xf32>
    %581 = arith.negf %580 : vector<8x96xf32>
    %582 = math.exp %581 : vector<8x96xf32>
    %cst_303 = arith.constant 1.000000e+00 : f32
    %583 = vector.broadcast %cst_303 : f32 to vector<8x96xf32>
    %584 = arith.addf %583, %582 : vector<8x96xf32>
    %585 = arith.divf %583, %584 : vector<8x96xf32>
    %586 = vector.extract_strided_slice %585 {offsets = [0, 0], sizes = [8, 32], strides = [1, 1]} : vector<8x96xf32> to vector<8x32xf32>
    %587 = vector.extract_strided_slice %585 {offsets = [0, 32], sizes = [8, 32], strides = [1, 1]} : vector<8x96xf32> to vector<8x32xf32>
    %588 = vector.extract_strided_slice %585 {offsets = [0, 64], sizes = [8, 32], strides = [1, 1]} : vector<8x96xf32> to vector<8x32xf32>
    %589 = vector.extract_strided_slice %579 {offsets = [0, 96], sizes = [8, 32], strides = [1, 1]} : vector<8x128xf32> to vector<8x32xf32>
    %590 = math.tanh %589 : vector<8x32xf32>
    %591 = arith.mulf %587, %534 : vector<8x32xf32>
    %592 = arith.mulf %586, %590 : vector<8x32xf32>
    %593 = arith.addf %591, %592 : vector<8x32xf32>
    %594 = math.tanh %593 : vector<8x32xf32>
    %595 = arith.mulf %588, %594 : vector<8x32xf32>
    %c0_304 = arith.constant 0 : index
    %c0_305 = arith.constant 0 : index
    %596 = vector.load %arg4[%c0_304, %c0_305] : memref<32x128xbf16, #tpu.memory_space<vmem>>, vector<32x128xbf16>
    %cst_306 = arith.constant dense<0.000000e+00> : vector<8x128xf32>
    %597 = tpu.matmul %574, %596, %cst_306 {dimension_numbers = #tpu.dot_dimension_numbers<[1], [0], [0], [1], [0, 0, 1, 1], [], []>} : vector<8x32xbf16>, vector<32x128xbf16>, vector<8x128xf32> -> vector<8x128xf32>
    %c0_307 = arith.constant 0 : index
    %c0_308 = arith.constant 0 : index
    %598 = vector.load %arg6[%c0_307, %c0_308] : memref<1x128xf32, #tpu.memory_space<vmem>>, vector<1x128xf32>
    %599 = vector.broadcast %598 : vector<1x128xf32> to vector<8x128xf32>
    %600 = arith.addf %597, %599 : vector<8x128xf32>
    %c0_309 = arith.constant 0 : index
    %c0_310 = arith.constant 0 : index
    %601 = vector.load %arg5[%c0_309, %c0_310] : memref<32x128xbf16, #tpu.memory_space<vmem>>, vector<32x128xbf16>
    %cst_311 = arith.constant dense<0.000000e+00> : vector<8x128xf32>
    %602 = tpu.matmul %575, %601, %cst_311 {dimension_numbers = #tpu.dot_dimension_numbers<[1], [0], [0], [1], [0, 0, 1, 1], [], []>} : vector<8x32xbf16>, vector<32x128xbf16>, vector<8x128xf32> -> vector<8x128xf32>
    %603 = arith.addf %600, %602 : vector<8x128xf32>
    %604 = vector.extract_strided_slice %603 {offsets = [0, 0], sizes = [8, 96], strides = [1, 1]} : vector<8x128xf32> to vector<8x96xf32>
    %605 = arith.negf %604 : vector<8x96xf32>
    %606 = math.exp %605 : vector<8x96xf32>
    %cst_312 = arith.constant 1.000000e+00 : f32
    %607 = vector.broadcast %cst_312 : f32 to vector<8x96xf32>
    %608 = arith.addf %607, %606 : vector<8x96xf32>
    %609 = arith.divf %607, %608 : vector<8x96xf32>
    %610 = vector.extract_strided_slice %609 {offsets = [0, 0], sizes = [8, 32], strides = [1, 1]} : vector<8x96xf32> to vector<8x32xf32>
    %611 = vector.extract_strided_slice %609 {offsets = [0, 32], sizes = [8, 32], strides = [1, 1]} : vector<8x96xf32> to vector<8x32xf32>
    %612 = vector.extract_strided_slice %609 {offsets = [0, 64], sizes = [8, 32], strides = [1, 1]} : vector<8x96xf32> to vector<8x32xf32>
    %613 = vector.extract_strided_slice %603 {offsets = [0, 96], sizes = [8, 32], strides = [1, 1]} : vector<8x128xf32> to vector<8x32xf32>
    %614 = math.tanh %613 : vector<8x32xf32>
    %615 = arith.mulf %611, %558 : vector<8x32xf32>
    %616 = arith.mulf %610, %614 : vector<8x32xf32>
    %617 = arith.addf %615, %616 : vector<8x32xf32>
    %618 = math.tanh %617 : vector<8x32xf32>
    %619 = arith.mulf %612, %618 : vector<8x32xf32>
    %c8_i32_313 = arith.constant 8 : i32
    %c8_i32_314 = arith.constant 8 : i32
    %c8_i32_315 = arith.constant 8 : i32
    %c0_i32_316 = arith.constant 0 : i32
    %c0_i32_317 = arith.constant 0 : i32
    %620 = tpu.memref_slice %arg7[%c8_i32_313, %c0_i32_316, %c0_i32_317] : memref<11x32x2688xbf16, #tpu.memory_space<any>> -> memref<1x32x2688xbf16, #tpu.memory_space<any>>
    %621 = tpu.memref_squeeze %620 : memref<1x32x2688xbf16, #tpu.memory_space<any>> -> memref<32x2688xbf16, #tpu.memory_space<any>>
    %c0_i32_318 = arith.constant 0 : i32
    %c0_i32_319 = arith.constant 0 : i32
    %622 = tpu.memref_slice %arg12[%c8_i32_314, %c0_i32_318, %c0_i32_319] : memref<11x32x2688xbf16, #tpu.memory_space<vmem>> -> memref<1x32x2688xbf16, #tpu.memory_space<vmem>>
    %623 = tpu.memref_squeeze %622 : memref<1x32x2688xbf16, #tpu.memory_space<vmem>> -> memref<32x2688xbf16, #tpu.memory_space<vmem>>
    %624 = tpu.memref_slice %arg13[%c8_i32_315] : memref<11x!tpu.dma_semaphore, #tpu.memory_space<semaphore_mem>> -> memref<1x!tpu.dma_semaphore, #tpu.memory_space<semaphore_mem>>
    %625 = tpu.memref_squeeze %624 : memref<1x!tpu.dma_semaphore, #tpu.memory_space<semaphore_mem>> -> memref<!tpu.dma_semaphore, #tpu.memory_space<semaphore_mem>>
    tpu.wait_dma2 semaphore(%625 : memref<!tpu.dma_semaphore, #tpu.memory_space<semaphore_mem>>) src(%621 : memref<32x2688xbf16, #tpu.memory_space<any>>) dst(%623 : memref<32x2688xbf16, #tpu.memory_space<vmem>>)
    %c0_320 = arith.constant 0 : index
    %c0_321 = arith.constant 0 : index
    %626 = vector.load %arg9[%c0_320, %c0_321] : memref<8x2688xf32, #tpu.memory_space<vmem>>, vector<8x2688xf32>
    %627 = arith.truncf %619 : vector<8x32xf32> to vector<8x32xbf16>
    %c8 = arith.constant 8 : index
    %c0_322 = arith.constant 0 : index
    %c0_323 = arith.constant 0 : index
    %628 = vector.load %arg12[%c8, %c0_322, %c0_323] : memref<11x32x2688xbf16, #tpu.memory_space<vmem>>, vector<1x32x2688xbf16>
    %629 = vector.shape_cast %628 : vector<1x32x2688xbf16> to vector<32x2688xbf16>
    %cst_324 = arith.constant dense<0.000000e+00> : vector<8x2688xf32>
    %630 = tpu.matmul %627, %629, %cst_324 {dimension_numbers = #tpu.dot_dimension_numbers<[1], [0], [0], [1], [0, 0, 1, 1], [], []>} : vector<8x32xbf16>, vector<32x2688xbf16>, vector<8x2688xf32> -> vector<8x2688xf32>
    %631 = arith.addf %626, %630 : vector<8x2688xf32>
    %c0_325 = arith.constant 0 : index
    %c0_326 = arith.constant 0 : index
    %632 = vector.load %arg9[%c0_325, %c0_326] : memref<8x2688xf32, #tpu.memory_space<vmem>>, vector<8x2688xf32>
    tpu.vector_store %arg9[%c0_325, %c0_326], %631 {strides = array<i32>} : memref<8x2688xf32, #tpu.memory_space<vmem>>, vector<8x2688xf32>,
    %633 = arith.truncf %595 : vector<8x32xf32> to vector<8x32xbf16>
    %634 = arith.truncf %619 : vector<8x32xf32> to vector<8x32xbf16>
    %635 = vector.extract_strided_slice %72 {offsets = [80, 0], sizes = [8, 128], strides = [1, 1]} : vector<88x128xf32> to vector<8x128xf32>
    %c0_327 = arith.constant 0 : index
    %c0_328 = arith.constant 0 : index
    %636 = vector.load %arg2[%c0_327, %c0_328] : memref<32x128xbf16, #tpu.memory_space<vmem>>, vector<32x128xbf16>
    %cst_329 = arith.constant dense<0.000000e+00> : vector<8x128xf32>
    %637 = tpu.matmul %633, %636, %cst_329 {dimension_numbers = #tpu.dot_dimension_numbers<[1], [0], [0], [1], [0, 0, 1, 1], [], []>} : vector<8x32xbf16>, vector<32x128xbf16>, vector<8x128xf32> -> vector<8x128xf32>
    %638 = arith.addf %635, %637 : vector<8x128xf32>
    %639 = vector.extract_strided_slice %638 {offsets = [0, 0], sizes = [8, 96], strides = [1, 1]} : vector<8x128xf32> to vector<8x96xf32>
    %640 = arith.negf %639 : vector<8x96xf32>
    %641 = math.exp %640 : vector<8x96xf32>
    %cst_330 = arith.constant 1.000000e+00 : f32
    %642 = vector.broadcast %cst_330 : f32 to vector<8x96xf32>
    %643 = arith.addf %642, %641 : vector<8x96xf32>
    %644 = arith.divf %642, %643 : vector<8x96xf32>
    %645 = vector.extract_strided_slice %644 {offsets = [0, 0], sizes = [8, 32], strides = [1, 1]} : vector<8x96xf32> to vector<8x32xf32>
    %646 = vector.extract_strided_slice %644 {offsets = [0, 32], sizes = [8, 32], strides = [1, 1]} : vector<8x96xf32> to vector<8x32xf32>
    %647 = vector.extract_strided_slice %644 {offsets = [0, 64], sizes = [8, 32], strides = [1, 1]} : vector<8x96xf32> to vector<8x32xf32>
    %648 = vector.extract_strided_slice %638 {offsets = [0, 96], sizes = [8, 32], strides = [1, 1]} : vector<8x128xf32> to vector<8x32xf32>
    %649 = math.tanh %648 : vector<8x32xf32>
    %650 = arith.mulf %646, %593 : vector<8x32xf32>
    %651 = arith.mulf %645, %649 : vector<8x32xf32>
    %652 = arith.addf %650, %651 : vector<8x32xf32>
    %653 = math.tanh %652 : vector<8x32xf32>
    %654 = arith.mulf %647, %653 : vector<8x32xf32>
    %c0_331 = arith.constant 0 : index
    %c0_332 = arith.constant 0 : index
    %655 = vector.load %arg4[%c0_331, %c0_332] : memref<32x128xbf16, #tpu.memory_space<vmem>>, vector<32x128xbf16>
    %cst_333 = arith.constant dense<0.000000e+00> : vector<8x128xf32>
    %656 = tpu.matmul %633, %655, %cst_333 {dimension_numbers = #tpu.dot_dimension_numbers<[1], [0], [0], [1], [0, 0, 1, 1], [], []>} : vector<8x32xbf16>, vector<32x128xbf16>, vector<8x128xf32> -> vector<8x128xf32>
    %c0_334 = arith.constant 0 : index
    %c0_335 = arith.constant 0 : index
    %657 = vector.load %arg6[%c0_334, %c0_335] : memref<1x128xf32, #tpu.memory_space<vmem>>, vector<1x128xf32>
    %658 = vector.broadcast %657 : vector<1x128xf32> to vector<8x128xf32>
    %659 = arith.addf %656, %658 : vector<8x128xf32>
    %c0_336 = arith.constant 0 : index
    %c0_337 = arith.constant 0 : index
    %660 = vector.load %arg5[%c0_336, %c0_337] : memref<32x128xbf16, #tpu.memory_space<vmem>>, vector<32x128xbf16>
    %cst_338 = arith.constant dense<0.000000e+00> : vector<8x128xf32>
    %661 = tpu.matmul %634, %660, %cst_338 {dimension_numbers = #tpu.dot_dimension_numbers<[1], [0], [0], [1], [0, 0, 1, 1], [], []>} : vector<8x32xbf16>, vector<32x128xbf16>, vector<8x128xf32> -> vector<8x128xf32>
    %662 = arith.addf %659, %661 : vector<8x128xf32>
    %663 = vector.extract_strided_slice %662 {offsets = [0, 0], sizes = [8, 96], strides = [1, 1]} : vector<8x128xf32> to vector<8x96xf32>
    %664 = arith.negf %663 : vector<8x96xf32>
    %665 = math.exp %664 : vector<8x96xf32>
    %cst_339 = arith.constant 1.000000e+00 : f32
    %666 = vector.broadcast %cst_339 : f32 to vector<8x96xf32>
    %667 = arith.addf %666, %665 : vector<8x96xf32>
    %668 = arith.divf %666, %667 : vector<8x96xf32>
    %669 = vector.extract_strided_slice %668 {offsets = [0, 0], sizes = [8, 32], strides = [1, 1]} : vector<8x96xf32> to vector<8x32xf32>
    %670 = vector.extract_strided_slice %668 {offsets = [0, 32], sizes = [8, 32], strides = [1, 1]} : vector<8x96xf32> to vector<8x32xf32>
    %671 = vector.extract_strided_slice %668 {offsets = [0, 64], sizes = [8, 32], strides = [1, 1]} : vector<8x96xf32> to vector<8x32xf32>
    %672 = vector.extract_strided_slice %662 {offsets = [0, 96], sizes = [8, 32], strides = [1, 1]} : vector<8x128xf32> to vector<8x32xf32>
    %673 = math.tanh %672 : vector<8x32xf32>
    %674 = arith.mulf %670, %617 : vector<8x32xf32>
    %675 = arith.mulf %669, %673 : vector<8x32xf32>
    %676 = arith.addf %674, %675 : vector<8x32xf32>
    %677 = math.tanh %676 : vector<8x32xf32>
    %678 = arith.mulf %671, %677 : vector<8x32xf32>
    %c9_i32_340 = arith.constant 9 : i32
    %c9_i32_341 = arith.constant 9 : i32
    %c9_i32_342 = arith.constant 9 : i32
    %c0_i32_343 = arith.constant 0 : i32
    %c0_i32_344 = arith.constant 0 : i32
    %679 = tpu.memref_slice %arg7[%c9_i32_340, %c0_i32_343, %c0_i32_344] : memref<11x32x2688xbf16, #tpu.memory_space<any>> -> memref<1x32x2688xbf16, #tpu.memory_space<any>>
    %680 = tpu.memref_squeeze %679 : memref<1x32x2688xbf16, #tpu.memory_space<any>> -> memref<32x2688xbf16, #tpu.memory_space<any>>
    %c0_i32_345 = arith.constant 0 : i32
    %c0_i32_346 = arith.constant 0 : i32
    %681 = tpu.memref_slice %arg12[%c9_i32_341, %c0_i32_345, %c0_i32_346] : memref<11x32x2688xbf16, #tpu.memory_space<vmem>> -> memref<1x32x2688xbf16, #tpu.memory_space<vmem>>
    %682 = tpu.memref_squeeze %681 : memref<1x32x2688xbf16, #tpu.memory_space<vmem>> -> memref<32x2688xbf16, #tpu.memory_space<vmem>>
    %683 = tpu.memref_slice %arg13[%c9_i32_342] : memref<11x!tpu.dma_semaphore, #tpu.memory_space<semaphore_mem>> -> memref<1x!tpu.dma_semaphore, #tpu.memory_space<semaphore_mem>>
    %684 = tpu.memref_squeeze %683 : memref<1x!tpu.dma_semaphore, #tpu.memory_space<semaphore_mem>> -> memref<!tpu.dma_semaphore, #tpu.memory_space<semaphore_mem>>
    tpu.wait_dma2 semaphore(%684 : memref<!tpu.dma_semaphore, #tpu.memory_space<semaphore_mem>>) src(%680 : memref<32x2688xbf16, #tpu.memory_space<any>>) dst(%682 : memref<32x2688xbf16, #tpu.memory_space<vmem>>)
    %c0_347 = arith.constant 0 : index
    %c0_348 = arith.constant 0 : index
    %685 = vector.load %arg9[%c0_347, %c0_348] : memref<8x2688xf32, #tpu.memory_space<vmem>>, vector<8x2688xf32>
    %686 = arith.truncf %678 : vector<8x32xf32> to vector<8x32xbf16>
    %c9 = arith.constant 9 : index
    %c0_349 = arith.constant 0 : index
    %c0_350 = arith.constant 0 : index
    %687 = vector.load %arg12[%c9, %c0_349, %c0_350] : memref<11x32x2688xbf16, #tpu.memory_space<vmem>>, vector<1x32x2688xbf16>
    %688 = vector.shape_cast %687 : vector<1x32x2688xbf16> to vector<32x2688xbf16>
    %cst_351 = arith.constant dense<0.000000e+00> : vector<8x2688xf32>
    %689 = tpu.matmul %686, %688, %cst_351 {dimension_numbers = #tpu.dot_dimension_numbers<[1], [0], [0], [1], [0, 0, 1, 1], [], []>} : vector<8x32xbf16>, vector<32x2688xbf16>, vector<8x2688xf32> -> vector<8x2688xf32>
    %690 = arith.addf %685, %689 : vector<8x2688xf32>
    %c0_352 = arith.constant 0 : index
    %c0_353 = arith.constant 0 : index
    %691 = vector.load %arg9[%c0_352, %c0_353] : memref<8x2688xf32, #tpu.memory_space<vmem>>, vector<8x2688xf32>
    tpu.vector_store %arg9[%c0_352, %c0_353], %690 {strides = array<i32>} : memref<8x2688xf32, #tpu.memory_space<vmem>>, vector<8x2688xf32>,
    %692 = arith.truncf %654 : vector<8x32xf32> to vector<8x32xbf16>
    %693 = arith.truncf %678 : vector<8x32xf32> to vector<8x32xbf16>
    %c0_354 = arith.constant 0 : index
    %c0_355 = arith.constant 0 : index
    %694 = vector.load %arg4[%c0_354, %c0_355] : memref<32x128xbf16, #tpu.memory_space<vmem>>, vector<32x128xbf16>
    %cst_356 = arith.constant dense<0.000000e+00> : vector<8x128xf32>
    %695 = tpu.matmul %692, %694, %cst_356 {dimension_numbers = #tpu.dot_dimension_numbers<[1], [0], [0], [1], [0, 0, 1, 1], [], []>} : vector<8x32xbf16>, vector<32x128xbf16>, vector<8x128xf32> -> vector<8x128xf32>
    %c0_357 = arith.constant 0 : index
    %c0_358 = arith.constant 0 : index
    %696 = vector.load %arg6[%c0_357, %c0_358] : memref<1x128xf32, #tpu.memory_space<vmem>>, vector<1x128xf32>
    %697 = vector.broadcast %696 : vector<1x128xf32> to vector<8x128xf32>
    %698 = arith.addf %695, %697 : vector<8x128xf32>
    %c0_359 = arith.constant 0 : index
    %c0_360 = arith.constant 0 : index
    %699 = vector.load %arg5[%c0_359, %c0_360] : memref<32x128xbf16, #tpu.memory_space<vmem>>, vector<32x128xbf16>
    %cst_361 = arith.constant dense<0.000000e+00> : vector<8x128xf32>
    %700 = tpu.matmul %693, %699, %cst_361 {dimension_numbers = #tpu.dot_dimension_numbers<[1], [0], [0], [1], [0, 0, 1, 1], [], []>} : vector<8x32xbf16>, vector<32x128xbf16>, vector<8x128xf32> -> vector<8x128xf32>
    %701 = arith.addf %698, %700 : vector<8x128xf32>
    %702 = vector.extract_strided_slice %701 {offsets = [0, 0], sizes = [8, 96], strides = [1, 1]} : vector<8x128xf32> to vector<8x96xf32>
    %703 = arith.negf %702 : vector<8x96xf32>
    %704 = math.exp %703 : vector<8x96xf32>
    %cst_362 = arith.constant 1.000000e+00 : f32
    %705 = vector.broadcast %cst_362 : f32 to vector<8x96xf32>
    %706 = arith.addf %705, %704 : vector<8x96xf32>
    %707 = arith.divf %705, %706 : vector<8x96xf32>
    %708 = vector.extract_strided_slice %707 {offsets = [0, 0], sizes = [8, 32], strides = [1, 1]} : vector<8x96xf32> to vector<8x32xf32>
    %709 = vector.extract_strided_slice %707 {offsets = [0, 32], sizes = [8, 32], strides = [1, 1]} : vector<8x96xf32> to vector<8x32xf32>
    %710 = vector.extract_strided_slice %707 {offsets = [0, 64], sizes = [8, 32], strides = [1, 1]} : vector<8x96xf32> to vector<8x32xf32>
    %711 = vector.extract_strided_slice %701 {offsets = [0, 96], sizes = [8, 32], strides = [1, 1]} : vector<8x128xf32> to vector<8x32xf32>
    %712 = math.tanh %711 : vector<8x32xf32>
    %713 = arith.mulf %709, %676 : vector<8x32xf32>
    %714 = arith.mulf %708, %712 : vector<8x32xf32>
    %715 = arith.addf %713, %714 : vector<8x32xf32>
    %716 = math.tanh %715 : vector<8x32xf32>
    %717 = arith.mulf %710, %716 : vector<8x32xf32>
    %c10_i32_363 = arith.constant 10 : i32
    %c10_i32_364 = arith.constant 10 : i32
    %c10_i32_365 = arith.constant 10 : i32
    %c0_i32_366 = arith.constant 0 : i32
    %c0_i32_367 = arith.constant 0 : i32
    %718 = tpu.memref_slice %arg7[%c10_i32_363, %c0_i32_366, %c0_i32_367] : memref<11x32x2688xbf16, #tpu.memory_space<any>> -> memref<1x32x2688xbf16, #tpu.memory_space<any>>
    %719 = tpu.memref_squeeze %718 : memref<1x32x2688xbf16, #tpu.memory_space<any>> -> memref<32x2688xbf16, #tpu.memory_space<any>>
    %c0_i32_368 = arith.constant 0 : i32
    %c0_i32_369 = arith.constant 0 : i32
    %720 = tpu.memref_slice %arg12[%c10_i32_364, %c0_i32_368, %c0_i32_369] : memref<11x32x2688xbf16, #tpu.memory_space<vmem>> -> memref<1x32x2688xbf16, #tpu.memory_space<vmem>>
    %721 = tpu.memref_squeeze %720 : memref<1x32x2688xbf16, #tpu.memory_space<vmem>> -> memref<32x2688xbf16, #tpu.memory_space<vmem>>
    %722 = tpu.memref_slice %arg13[%c10_i32_365] : memref<11x!tpu.dma_semaphore, #tpu.memory_space<semaphore_mem>> -> memref<1x!tpu.dma_semaphore, #tpu.memory_space<semaphore_mem>>
    %723 = tpu.memref_squeeze %722 : memref<1x!tpu.dma_semaphore, #tpu.memory_space<semaphore_mem>> -> memref<!tpu.dma_semaphore, #tpu.memory_space<semaphore_mem>>
    tpu.wait_dma2 semaphore(%723 : memref<!tpu.dma_semaphore, #tpu.memory_space<semaphore_mem>>) src(%719 : memref<32x2688xbf16, #tpu.memory_space<any>>) dst(%721 : memref<32x2688xbf16, #tpu.memory_space<vmem>>)
    %c0_370 = arith.constant 0 : index
    %c0_371 = arith.constant 0 : index
    %724 = vector.load %arg9[%c0_370, %c0_371] : memref<8x2688xf32, #tpu.memory_space<vmem>>, vector<8x2688xf32>
    %725 = arith.truncf %717 : vector<8x32xf32> to vector<8x32xbf16>
    %c10 = arith.constant 10 : index
    %c0_372 = arith.constant 0 : index
    %c0_373 = arith.constant 0 : index
    %726 = vector.load %arg12[%c10, %c0_372, %c0_373] : memref<11x32x2688xbf16, #tpu.memory_space<vmem>>, vector<1x32x2688xbf16>
    %727 = vector.shape_cast %726 : vector<1x32x2688xbf16> to vector<32x2688xbf16>
    %cst_374 = arith.constant dense<0.000000e+00> : vector<8x2688xf32>
    %728 = tpu.matmul %725, %727, %cst_374 {dimension_numbers = #tpu.dot_dimension_numbers<[1], [0], [0], [1], [0, 0, 1, 1], [], []>} : vector<8x32xbf16>, vector<32x2688xbf16>, vector<8x2688xf32> -> vector<8x2688xf32>
    %729 = arith.addf %724, %728 : vector<8x2688xf32>
    %c0_375 = arith.constant 0 : index
    %c0_376 = arith.constant 0 : index
    %730 = vector.load %arg9[%c0_375, %c0_376] : memref<8x2688xf32, #tpu.memory_space<vmem>>, vector<8x2688xf32>
    tpu.vector_store %arg9[%c0_375, %c0_376], %729 {strides = array<i32>} : memref<8x2688xf32, #tpu.memory_space<vmem>>, vector<8x2688xf32>,
    %c0_377 = arith.constant 0 : index
    %c0_378 = arith.constant 0 : index
    %731 = vector.load %arg10[%c0_377, %c0_378] : memref<16x32xf32, #tpu.memory_space<vmem>>, vector<8x32xf32>
    tpu.vector_store %arg10[%c0_377, %c0_378], %654 {strides = array<i32>} : memref<16x32xf32, #tpu.memory_space<vmem>>, vector<8x32xf32>,
    %c0_379 = arith.constant 0 : index
    %c0_380 = arith.constant 0 : index
    %732 = vector.load %arg11[%c0_379, %c0_380] : memref<16x32xf32, #tpu.memory_space<vmem>>, vector<8x32xf32>
    tpu.vector_store %arg11[%c0_379, %c0_380], %652 {strides = array<i32>} : memref<16x32xf32, #tpu.memory_space<vmem>>, vector<8x32xf32>,
    %c8_381 = arith.constant 8 : index
    %c0_382 = arith.constant 0 : index
    %733 = vector.load %arg10[%c8_381, %c0_382] : memref<16x32xf32, #tpu.memory_space<vmem>>, vector<8x32xf32>
    tpu.vector_store %arg10[%c8_381, %c0_382], %717 {strides = array<i32>} : memref<16x32xf32, #tpu.memory_space<vmem>>, vector<8x32xf32>,
    %c8_383 = arith.constant 8 : index
    %c0_384 = arith.constant 0 : index
    %734 = vector.load %arg11[%c8_383, %c0_384] : memref<16x32xf32, #tpu.memory_space<vmem>>, vector<8x32xf32>
    tpu.vector_store %arg11[%c8_383, %c0_384], %715 {strides = array<i32>} : memref<16x32xf32, #tpu.memory_space<vmem>>, vector<8x32xf32>,
    return
  }
}

</mosaic_0001>

<bundles_post_ra>
// kernel: patient_lstm_forward.1
= control target key start
LH: loop header
LB: loop body
LE: loop exit
PB: predicated region body
PF: predicated region fallthrough
CT: control target
= control target key end

     0   :  { %s19626_s0 = inlined_call_operand.vmem [shape: f32[88,16], index: 0, kind: input, shape index: {}]   ;;  %s19627_s1 = inlined_call_operand.vmem [shape: bf16[16,128], index: 1, kind: input, shape index: {}]   ;;  %s19628_s2 = inlined_call_operand.vmem [shape: bf16[32,128], index: 2, kind: input, shape index: {}]   ;;  %s19629_s3 = inlined_call_operand.vmem [shape: f32[1,128], index: 3, kind: input, shape index: {}]   ;;  %s19630_s4 = inlined_call_operand.vmem [shape: bf16[32,128], index: 4, kind: input, shape index: {}]   ;;  %s19631_s5 = inlined_call_operand.vmem [shape: bf16[32,128], index: 5, kind: input, shape index: {}]   ;;  %s19632_s6 = inlined_call_operand.vmem [shape: f32[1,128], index: 6, kind: input, shape index: {}]   ;;  %s19633_s7 = inlined_call_operand.vmem [shape: bf16[11,32,2688], index: 7, kind: input, shape index: {}]   ;;  %s19634_s8 = inlined_call_operand.vmem [shape: f32[1,2688], index: 8, kind: input, shape index: {}]   ;;  %s19635_s9 = inlined_call_operand.vmem [shape: f32[8,2688], index: 9, kind: output, shape index: {0}]   ;;  %s19636_s10 = inlined_call_operand.vmem [shape: f32[16,32], index: 10, kind: output, shape index: {1}]   ;;  %s19637_s11 = inlined_call_operand.vmem [shape: f32[16,32], index: 11, kind: output, shape index: {2}]  }
   0x1   :  { %v67_v0 = vld [vmem:[%s19633_s7] sm:$0xff]  ;;  %v69_v1 = vld [vmem:[%s19633_s7 + $0x8] sm:$0xff]  ;;  %v71_v2 = vld [vmem:[%s19633_s7 + $0x10] sm:$0xff] }
   0x2   :  { %68 = vst [vmem:[#allocation2] sm:$0xff] %v67_v0  ;;  %70 = vst [vmem:[#allocation2 + $0x8] sm:$0xff] %v69_v1  ;;  %v73_v3 = vld [vmem:[%s19633_s7 + $0x18] sm:$0xff]  ;;  %v75_v4 = vld [vmem:[%s19633_s7 + $0x20] sm:$0xff] }
   0x3   :  { %72 = vst [vmem:[#allocation2 + $0x10] sm:$0xff] %v71_v2  ;;  %v77_v5 = vld [vmem:[%s19633_s7 + $0x28] sm:$0xff]  ;;  %74 = vst [vmem:[#allocation2 + $0x18] sm:$0xff] %v73_v3  ;;  %v79_v6 = vld [vmem:[%s19633_s7 + $0x30] sm:$0xff] }
   0x4   :  { %76 = vst [vmem:[#allocation2 + $0x20] sm:$0xff] %v75_v4  ;;  %78 = vst [vmem:[#allocation2 + $0x28] sm:$0xff] %v77_v5  ;;  %v81_v7 = vld [vmem:[%s19633_s7 + $0x38] sm:$0xff]  ;;  %v83_v8 = vld [vmem:[%s19633_s7 + $0x40] sm:$0xff] }
   0x5   :  { %80 = vst [vmem:[#allocation2 + $0x30] sm:$0xff] %v79_v6  ;;  %82 = vst [vmem:[#allocation2 + $0x38] sm:$0xff] %v81_v7  ;;  %v85_v9 = vld [vmem:[%s19633_s7 + $0x48] sm:$0xff]  ;;  %v87_v10 = vld [vmem:[%s19633_s7 + $0x50] sm:$0xff] }
   0x6   :  { %84 = vst [vmem:[#allocation2 + $0x40] sm:$0xff] %v83_v8  ;;  %v89_v11 = vld [vmem:[%s19633_s7 + $0x58] sm:$0xff]  ;;  %86 = vst [vmem:[#allocation2 + $0x48] sm:$0xff] %v85_v9  ;;  %v91_v12 = vld [vmem:[%s19633_s7 + $0x60] sm:$0xff] }
   0x7   :  { %88 = vst [vmem:[#allocation2 + $0x50] sm:$0xff] %v87_v10  ;;  %90 = vst [vmem:[#allocation2 + $0x58] sm:$0xff] %v89_v11  ;;  %v93_v13 = vld [vmem:[%s19633_s7 + $0x68] sm:$0xff]  ;;  %v95_v14 = vld [vmem:[%s19633_s7 + $0x70] sm:$0xff] }
   0x8   :  { %92 = vst [vmem:[#allocation2 + $0x60] sm:$0xff] %v91_v12  ;;  %94 = vst [vmem:[#allocation2 + $0x68] sm:$0xff] %v93_v13  ;;  %v97_v15 = vld [vmem:[%s19633_s7 + $0x78] sm:$0xff]  ;;  %v99_v16 = vld [vmem:[%s19633_s7 + $0x80] sm:$0xff] }
   0x9   :  { %96 = vst [vmem:[#allocation2 + $0x70] sm:$0xff] %v95_v14  ;;  %v101_v17 = vld [vmem:[%s19633_s7 + $0x88] sm:$0xff]  ;;  %98 = vst [vmem:[#allocation2 + $0x78] sm:$0xff] %v97_v15  ;;  %v103_v18 = vld [vmem:[%s19633_s7 + $0x90] sm:$0xff] }
   0xa   :  { %100 = vst [vmem:[#allocation2 + $0x80] sm:$0xff] %v99_v16  ;;  %102 = vst [vmem:[#allocation2 + $0x88] sm:$0xff] %v101_v17  ;;  %v105_v19 = vld [vmem:[%s19633_s7 + $0x98] sm:$0xff]  ;;  %v107_v20 = vld [vmem:[%s19633_s7 + $0xa0] sm:$0xff] }
   0xb   :  { %104 = vst [vmem:[#allocation2 + $0x90] sm:$0xff] %v103_v18  ;;  %106 = vst [vmem:[#allocation2 + $0x98] sm:$0xff] %v105_v19  ;;  %v109_v21 = vld [vmem:[%s19633_s7 + $0xa8] sm:$0xff]  ;;  %v111_v22 = vld [vmem:[%s19633_s7 + $0xb0] sm:$0xff] }
   0xc   :  { %108 = vst [vmem:[#allocation2 + $0xa0] sm:$0xff] %v107_v20  ;;  %v113_v23 = vld [vmem:[%s19633_s7 + $0xb8] sm:$0xff]  ;;  %110 = vst [vmem:[#allocation2 + $0xa8] sm:$0xff] %v109_v21  ;;  %v115_v24 = vld [vmem:[%s19633_s7 + $0xc0] sm:$0xff] }
   0xd   :  { %112 = vst [vmem:[#allocation2 + $0xb0] sm:$0xff] %v111_v22  ;;  %114 = vst [vmem:[#allocation2 + $0xb8] sm:$0xff] %v113_v23  ;;  %v117_v25 = vld [vmem:[%s19633_s7 + $0xc8] sm:$0xff]  ;;  %v119_v26 = vld [vmem:[%s19633_s7 + $0xd0] sm:$0xff] }
   0xe   :  { %116 = vst [vmem:[#allocation2 + $0xc0] sm:$0xff] %v115_v24  ;;  %118 = vst [vmem:[#allocation2 + $0xc8] sm:$0xff] %v117_v25  ;;  %v121_v27 = vld [vmem:[%s19633_s7 + $0xd8] sm:$0xff]  ;;  %v123_v28 = vld [vmem:[%s19633_s7 + $0xe0] sm:$0xff] }
   0xf   :  { %120 = vst [vmem:[#allocation2 + $0xd0] sm:$0xff] %v119_v26  ;;  %v125_v29 = vld [vmem:[%s19633_s7 + $0xe8] sm:$0xff]  ;;  %122 = vst [vmem:[#allocation2 + $0xd8] sm:$0xff] %v121_v27  ;;  %v127_v30 = vld [vmem:[%s19633_s7 + $0xf0] sm:$0xff] }
  0x10   :  { %124 = vst [vmem:[#allocation2 + $0xe0] sm:$0xff] %v123_v28  ;;  %126 = vst [vmem:[#allocation2 + $0xe8] sm:$0xff] %v125_v29  ;;  %v129_v31 = vld [vmem:[%s19633_s7 + $0xf8] sm:$0xff]  ;;  %v131_v32 = vld [vmem:[%s19633_s7 + $0x100] sm:$0xff] }
  0x11   :  { %128 = vst [vmem:[#allocation2 + $0xf0] sm:$0xff] %v127_v30  ;;  %130 = vst [vmem:[#allocation2 + $0xf8] sm:$0xff] %v129_v31  ;;  %v133_v33 = vld [vmem:[%s19633_s7 + $0x108] sm:$0xff]  ;;  %v135_v34 = vld [vmem:[%s19633_s7 + $0x110] sm:$0xff] }
  0x12   :  { %132 = vst [vmem:[#allocation2 + $0x100] sm:$0xff] %v131_v32  ;;  %v137_v35 = vld [vmem:[%s19633_s7 + $0x118] sm:$0xff]  ;;  %134 = vst [vmem:[#allocation2 + $0x108] sm:$0xff] %v133_v33  ;;  %v139_v36 = vld [vmem:[%s19633_s7 + $0x120] sm:$0xff] }
  0x13   :  { %136 = vst [vmem:[#allocation2 + $0x110] sm:$0xff] %v135_v34  ;;  %138 = vst [vmem:[#allocation2 + $0x118] sm:$0xff] %v137_v35  ;;  %v141_v37 = vld [vmem:[%s19633_s7 + $0x128] sm:$0xff]  ;;  %v143_v38 = vld [vmem:[%s19633_s7 + $0x130] sm:$0xff] }
  0x14   :  { %140 = vst [vmem:[#allocation2 + $0x120] sm:$0xff] %v139_v36  ;;  %142 = vst [vmem:[#allocation2 + $0x128] sm:$0xff] %v141_v37  ;;  %v145_v39 = vld [vmem:[%s19633_s7 + $0x138] sm:$0xff]  ;;  %v147_v40 = vld [vmem:[%s19633_s7 + $0x140] sm:$0xff] }
  0x15   :  { %144 = vst [vmem:[#allocation2 + $0x130] sm:$0xff] %v143_v38  ;;  %v149_v41 = vld [vmem:[%s19633_s7 + $0x148] sm:$0xff]  ;;  %146 = vst [vmem:[#allocation2 + $0x138] sm:$0xff] %v145_v39 }
  0x16   :  { %148 = vst [vmem:[#allocation2 + $0x140] sm:$0xff] %v147_v40  ;;  %150 = vst [vmem:[#allocation2 + $0x148] sm:$0xff] %v149_v41 }
  0x17   :  { %158 = vsyncadd [#allocation3], 5376  ;;  %v12998_v42 = vld [vmem:[%s19633_s7 + $0x150] sm:$0xff]  ;;  %v12999_v43 = vld [vmem:[%s19633_s7 + $0x158] sm:$0xff] }
  0x18   :  { %196 = vst [vmem:[#allocation2 + $0x150] sm:$0xff] %v12998_v42  ;;  %198 = vst [vmem:[#allocation2 + $0x158] sm:$0xff] %v12999_v43  ;;  %v13000_v44 = vld [vmem:[%s19633_s7 + $0x160] sm:$0xff]  ;;  %v13001_v45 = vld [vmem:[%s19633_s7 + $0x168] sm:$0xff] }
  0x19   :  { %v13002_v46 = vld [vmem:[%s19633_s7 + $0x170] sm:$0xff]  ;;  %200 = vst [vmem:[#allocation2 + $0x160] sm:$0xff] %v13000_v44  ;;  %202 = vst [vmem:[#allocation2 + $0x168] sm:$0xff] %v13001_v45  ;;  %v13003_v47 = vld [vmem:[%s19633_s7 + $0x178] sm:$0xff] }
  0x1a   :  { %204 = vst [vmem:[#allocation2 + $0x170] sm:$0xff] %v13002_v46  ;;  %v13004_v48 = vld [vmem:[%s19633_s7 + $0x180] sm:$0xff]  ;;  %v13005_v49 = vld [vmem:[%s19633_s7 + $0x188] sm:$0xff]  ;;  %206 = vst [vmem:[#allocation2 + $0x178] sm:$0xff] %v13003_v47 }
  0x1b   :  { %208 = vst [vmem:[#allocation2 + $0x180] sm:$0xff] %v13004_v48  ;;  %210 = vst [vmem:[#allocation2 + $0x188] sm:$0xff] %v13005_v49  ;;  %v13006_v50 = vld [vmem:[%s19633_s7 + $0x190] sm:$0xff]  ;;  %v13007_v51 = vld [vmem:[%s19633_s7 + $0x198] sm:$0xff] }
  0x1c   :  { %v13008_v52 = vld [vmem:[%s19633_s7 + $0x1a0] sm:$0xff]  ;;  %212 = vst [vmem:[#allocation2 + $0x190] sm:$0xff] %v13006_v50  ;;  %214 = vst [vmem:[#allocation2 + $0x198] sm:$0xff] %v13007_v51  ;;  %v13009_v53 = vld [vmem:[%s19633_s7 + $0x1a8] sm:$0xff] }
  0x1d   :  { %216 = vst [vmem:[#allocation2 + $0x1a0] sm:$0xff] %v13008_v52  ;;  %v13010_v54 = vld [vmem:[%s19633_s7 + $0x1b0] sm:$0xff]  ;;  %v13011_v55 = vld [vmem:[%s19633_s7 + $0x1b8] sm:$0xff]  ;;  %218 = vst [vmem:[#allocation2 + $0x1a8] sm:$0xff] %v13009_v53 }
  0x1e   :  { %220 = vst [vmem:[#allocation2 + $0x1b0] sm:$0xff] %v13010_v54  ;;  %222 = vst [vmem:[#allocation2 + $0x1b8] sm:$0xff] %v13011_v55  ;;  %v13012_v56 = vld [vmem:[%s19633_s7 + $0x1c0] sm:$0xff]  ;;  %v13013_v57 = vld [vmem:[%s19633_s7 + $0x1c8] sm:$0xff] }
  0x1f   :  { %v13014_v58 = vld [vmem:[%s19633_s7 + $0x1d0] sm:$0xff]  ;;  %224 = vst [vmem:[#allocation2 + $0x1c0] sm:$0xff] %v13012_v56  ;;  %226 = vst [vmem:[#allocation2 + $0x1c8] sm:$0xff] %v13013_v57  ;;  %v13015_v59 = vld [vmem:[%s19633_s7 + $0x1d8] sm:$0xff] }
  0x20   :  { %228 = vst [vmem:[#allocation2 + $0x1d0] sm:$0xff] %v13014_v58  ;;  %v13016_v60 = vld [vmem:[%s19633_s7 + $0x1e0] sm:$0xff]  ;;  %v13017_v61 = vld [vmem:[%s19633_s7 + $0x1e8] sm:$0xff]  ;;  %230 = vst [vmem:[#allocation2 + $0x1d8] sm:$0xff] %v13015_v59 }
  0x21   :  { %232 = vst [vmem:[#allocation2 + $0x1e0] sm:$0xff] %v13016_v60  ;;  %234 = vst [vmem:[#allocation2 + $0x1e8] sm:$0xff] %v13017_v61  ;;  %v13018_v62 = vld [vmem:[%s19633_s7 + $0x1f0] sm:$0xff]  ;;  %v13019_v63 = vld [vmem:[%s19633_s7 + $0x1f8] sm:$0xff] }
  0x22   :  { %v13020_v0 = vld [vmem:[%s19633_s7 + $0x200] sm:$0xff]  ;;  %236 = vst [vmem:[#allocation2 + $0x1f0] sm:$0xff] %v13018_v62  ;;  %238 = vst [vmem:[#allocation2 + $0x1f8] sm:$0xff] %v13019_v63  ;;  %v13021_v1 = vld [vmem:[%s19633_s7 + $0x208] sm:$0xff] }
  0x23   :  { %240 = vst [vmem:[#allocation2 + $0x200] sm:$0xff] %v13020_v0  ;;  %v13022_v2 = vld [vmem:[%s19633_s7 + $0x210] sm:$0xff]  ;;  %v13023_v3 = vld [vmem:[%s19633_s7 + $0x218] sm:$0xff]  ;;  %242 = vst [vmem:[#allocation2 + $0x208] sm:$0xff] %v13021_v1 }
  0x24   :  { %244 = vst [vmem:[#allocation2 + $0x210] sm:$0xff] %v13022_v2  ;;  %246 = vst [vmem:[#allocation2 + $0x218] sm:$0xff] %v13023_v3  ;;  %v13024_v4 = vld [vmem:[%s19633_s7 + $0x220] sm:$0xff]  ;;  %v13025_v5 = vld [vmem:[%s19633_s7 + $0x228] sm:$0xff] }
  0x25   :  { %v13026_v6 = vld [vmem:[%s19633_s7 + $0x230] sm:$0xff]  ;;  %248 = vst [vmem:[#allocation2 + $0x220] sm:$0xff] %v13024_v4  ;;  %250 = vst [vmem:[#allocation2 + $0x228] sm:$0xff] %v13025_v5  ;;  %v13027_v7 = vld [vmem:[%s19633_s7 + $0x238] sm:$0xff] }
  0x26   :  { %252 = vst [vmem:[#allocation2 + $0x230] sm:$0xff] %v13026_v6  ;;  %v13028_v8 = vld [vmem:[%s19633_s7 + $0x240] sm:$0xff]  ;;  %v13029_v9 = vld [vmem:[%s19633_s7 + $0x248] sm:$0xff]  ;;  %254 = vst [vmem:[#allocation2 + $0x238] sm:$0xff] %v13027_v7 }
  0x27   :  { %256 = vst [vmem:[#allocation2 + $0x240] sm:$0xff] %v13028_v8  ;;  %258 = vst [vmem:[#allocation2 + $0x248] sm:$0xff] %v13029_v9  ;;  %v13030_v10 = vld [vmem:[%s19633_s7 + $0x250] sm:$0xff]  ;;  %v13031_v11 = vld [vmem:[%s19633_s7 + $0x258] sm:$0xff] }
  0x28   :  { %v13032_v12 = vld [vmem:[%s19633_s7 + $0x260] sm:$0xff]  ;;  %260 = vst [vmem:[#allocation2 + $0x250] sm:$0xff] %v13030_v10  ;;  %262 = vst [vmem:[#allocation2 + $0x258] sm:$0xff] %v13031_v11  ;;  %v13033_v13 = vld [vmem:[%s19633_s7 + $0x268] sm:$0xff] }
  0x29   :  { %264 = vst [vmem:[#allocation2 + $0x260] sm:$0xff] %v13032_v12  ;;  %v13034_v14 = vld [vmem:[%s19633_s7 + $0x270] sm:$0xff]  ;;  %v13035_v15 = vld [vmem:[%s19633_s7 + $0x278] sm:$0xff]  ;;  %266 = vst [vmem:[#allocation2 + $0x268] sm:$0xff] %v13033_v13 }
  0x2a   :  { %268 = vst [vmem:[#allocation2 + $0x270] sm:$0xff] %v13034_v14  ;;  %270 = vst [vmem:[#allocation2 + $0x278] sm:$0xff] %v13035_v15  ;;  %v13036_v16 = vld [vmem:[%s19633_s7 + $0x280] sm:$0xff]  ;;  %v13037_v17 = vld [vmem:[%s19633_s7 + $0x288] sm:$0xff] }
  0x2b   :  { %v13038_v18 = vld [vmem:[%s19633_s7 + $0x290] sm:$0xff]  ;;  %272 = vst [vmem:[#allocation2 + $0x280] sm:$0xff] %v13036_v16  ;;  %274 = vst [vmem:[#allocation2 + $0x288] sm:$0xff] %v13037_v17  ;;  %v13039_v19 = vld [vmem:[%s19633_s7 + $0x298] sm:$0xff] }
  0x2c   :  { %276 = vst [vmem:[#allocation2 + $0x290] sm:$0xff] %v13038_v18  ;;  %278 = vst [vmem:[#allocation2 + $0x298] sm:$0xff] %v13039_v19 }
  0x2d   :  { %286 = vsyncadd [#allocation3 + $0x1], 5376  ;;  %v13041_v20 = vld [vmem:[%s19633_s7 + $0x2a0] sm:$0xff]  ;;  %v13042_v21 = vld [vmem:[%s19633_s7 + $0x2a8] sm:$0xff] }
  0x2e   :  { %324 = vst [vmem:[#allocation2 + $0x2a0] sm:$0xff] %v13041_v20  ;;  %326 = vst [vmem:[#allocation2 + $0x2a8] sm:$0xff] %v13042_v21  ;;  %v13043_v22 = vld [vmem:[%s19633_s7 + $0x2b0] sm:$0xff]  ;;  %v13044_v23 = vld [vmem:[%s19633_s7 + $0x2b8] sm:$0xff] }
  0x2f   :  { %v13045_v24 = vld [vmem:[%s19633_s7 + $0x2c0] sm:$0xff]  ;;  %328 = vst [vmem:[#allocation2 + $0x2b0] sm:$0xff] %v13043_v22  ;;  %330 = vst [vmem:[#allocation2 + $0x2b8] sm:$0xff] %v13044_v23  ;;  %v13046_v25 = vld [vmem:[%s19633_s7 + $0x2c8] sm:$0xff] }
  0x30   :  { %332 = vst [vmem:[#allocation2 + $0x2c0] sm:$0xff] %v13045_v24  ;;  %v13047_v26 = vld [vmem:[%s19633_s7 + $0x2d0] sm:$0xff]  ;;  %v13048_v27 = vld [vmem:[%s19633_s7 + $0x2d8] sm:$0xff]  ;;  %334 = vst [vmem:[#allocation2 + $0x2c8] sm:$0xff] %v13046_v25 }
  0x31   :  { %336 = vst [vmem:[#allocation2 + $0x2d0] sm:$0xff] %v13047_v26  ;;  %338 = vst [vmem:[#allocation2 + $0x2d8] sm:$0xff] %v13048_v27  ;;  %v13049_v28 = vld [vmem:[%s19633_s7 + $0x2e0] sm:$0xff]  ;;  %v13050_v29 = vld [vmem:[%s19633_s7 + $0x2e8] sm:$0xff] }
  0x32   :  { %v13051_v30 = vld [vmem:[%s19633_s7 + $0x2f0] sm:$0xff]  ;;  %340 = vst [vmem:[#allocation2 + $0x2e0] sm:$0xff] %v13049_v28  ;;  %342 = vst [vmem:[#allocation2 + $0x2e8] sm:$0xff] %v13050_v29  ;;  %v13052_v31 = vld [vmem:[%s19633_s7 + $0x2f8] sm:$0xff] }
  0x33   :  { %344 = vst [vmem:[#allocation2 + $0x2f0] sm:$0xff] %v13051_v30  ;;  %v13053_v32 = vld [vmem:[%s19633_s7 + $0x300] sm:$0xff]  ;;  %v13054_v33 = vld [vmem:[%s19633_s7 + $0x308] sm:$0xff]  ;;  %346 = vst [vmem:[#allocation2 + $0x2f8] sm:$0xff] %v13052_v31 }
  0x34   :  { %348 = vst [vmem:[#allocation2 + $0x300] sm:$0xff] %v13053_v32  ;;  %350 = vst [vmem:[#allocation2 + $0x308] sm:$0xff] %v13054_v33  ;;  %v13055_v34 = vld [vmem:[%s19633_s7 + $0x310] sm:$0xff]  ;;  %v13056_v35 = vld [vmem:[%s19633_s7 + $0x318] sm:$0xff] }
  0x35   :  { %v13057_v36 = vld [vmem:[%s19633_s7 + $0x320] sm:$0xff]  ;;  %352 = vst [vmem:[#allocation2 + $0x310] sm:$0xff] %v13055_v34  ;;  %354 = vst [vmem:[#allocation2 + $0x318] sm:$0xff] %v13056_v35  ;;  %v13058_v37 = vld [vmem:[%s19633_s7 + $0x328] sm:$0xff] }
  0x36   :  { %356 = vst [vmem:[#allocation2 + $0x320] sm:$0xff] %v13057_v36  ;;  %v13059_v38 = vld [vmem:[%s19633_s7 + $0x330] sm:$0xff]  ;;  %v13060_v39 = vld [vmem:[%s19633_s7 + $0x338] sm:$0xff]  ;;  %358 = vst [vmem:[#allocation2 + $0x328] sm:$0xff] %v13058_v37 }
  0x37   :  { %360 = vst [vmem:[#allocation2 + $0x330] sm:$0xff] %v13059_v38  ;;  %362 = vst [vmem:[#allocation2 + $0x338] sm:$0xff] %v13060_v39  ;;  %v13061_v40 = vld [vmem:[%s19633_s7 + $0x340] sm:$0xff]  ;;  %v13062_v41 = vld [vmem:[%s19633_s7 + $0x348] sm:$0xff] }
  0x38   :  { %v13063_v42 = vld [vmem:[%s19633_s7 + $0x350] sm:$0xff]  ;;  %364 = vst [vmem:[#allocation2 + $0x340] sm:$0xff] %v13061_v40  ;;  %366 = vst [vmem:[#allocation2 + $0x348] sm:$0xff] %v13062_v41  ;;  %v13064_v43 = vld [vmem:[%s19633_s7 + $0x358] sm:$0xff] }
  0x39   :  { %368 = vst [vmem:[#allocation2 + $0x350] sm:$0xff] %v13063_v42  ;;  %v13065_v44 = vld [vmem:[%s19633_s7 + $0x360] sm:$0xff]  ;;  %v13066_v45 = vld [vmem:[%s19633_s7 + $0x368] sm:$0xff]  ;;  %370 = vst [vmem:[#allocation2 + $0x358] sm:$0xff] %v13064_v43 }
  0x3a   :  { %372 = vst [vmem:[#allocation2 + $0x360] sm:$0xff] %v13065_v44  ;;  %374 = vst [vmem:[#allocation2 + $0x368] sm:$0xff] %v13066_v45  ;;  %v13067_v46 = vld [vmem:[%s19633_s7 + $0x370] sm:$0xff]  ;;  %v13068_v47 = vld [vmem:[%s19633_s7 + $0x378] sm:$0xff] }
  0x3b   :  { %v13069_v48 = vld [vmem:[%s19633_s7 + $0x380] sm:$0xff]  ;;  %376 = vst [vmem:[#allocation2 + $0x370] sm:$0xff] %v13067_v46  ;;  %378 = vst [vmem:[#allocation2 + $0x378] sm:$0xff] %v13068_v47  ;;  %v13070_v49 = vld [vmem:[%s19633_s7 + $0x388] sm:$0xff] }
  0x3c   :  { %380 = vst [vmem:[#allocation2 + $0x380] sm:$0xff] %v13069_v48  ;;  %v13071_v50 = vld [vmem:[%s19633_s7 + $0x390] sm:$0xff]  ;;  %v13072_v51 = vld [vmem:[%s19633_s7 + $0x398] sm:$0xff]  ;;  %382 = vst [vmem:[#allocation2 + $0x388] sm:$0xff] %v13070_v49 }
  0x3d   :  { %384 = vst [vmem:[#allocation2 + $0x390] sm:$0xff] %v13071_v50  ;;  %386 = vst [vmem:[#allocation2 + $0x398] sm:$0xff] %v13072_v51  ;;  %v13073_v52 = vld [vmem:[%s19633_s7 + $0x3a0] sm:$0xff]  ;;  %v13074_v53 = vld [vmem:[%s19633_s7 + $0x3a8] sm:$0xff] }
  0x3e   :  { %v13075_v54 = vld [vmem:[%s19633_s7 + $0x3b0] sm:$0xff]  ;;  %388 = vst [vmem:[#allocation2 + $0x3a0] sm:$0xff] %v13073_v52  ;;  %390 = vst [vmem:[#allocation2 + $0x3a8] sm:$0xff] %v13074_v53  ;;  %v13076_v55 = vld [vmem:[%s19633_s7 + $0x3b8] sm:$0xff] }
  0x3f   :  { %392 = vst [vmem:[#allocation2 + $0x3b0] sm:$0xff] %v13075_v54  ;;  %v13077_v56 = vld [vmem:[%s19633_s7 + $0x3c0] sm:$0xff]  ;;  %v13078_v57 = vld [vmem:[%s19633_s7 + $0x3c8] sm:$0xff]  ;;  %394 = vst [vmem:[#allocation2 + $0x3b8] sm:$0xff] %v13076_v55 }
  0x40   :  { %396 = vst [vmem:[#allocation2 + $0x3c0] sm:$0xff] %v13077_v56  ;;  %398 = vst [vmem:[#allocation2 + $0x3c8] sm:$0xff] %v13078_v57  ;;  %v13079_v58 = vld [vmem:[%s19633_s7 + $0x3d0] sm:$0xff]  ;;  %v13080_v59 = vld [vmem:[%s19633_s7 + $0x3d8] sm:$0xff] }
  0x41   :  { %v13081_v60 = vld [vmem:[%s19633_s7 + $0x3e0] sm:$0xff]  ;;  %400 = vst [vmem:[#allocation2 + $0x3d0] sm:$0xff] %v13079_v58  ;;  %402 = vst [vmem:[#allocation2 + $0x3d8] sm:$0xff] %v13080_v59  ;;  %v13082_v61 = vld [vmem:[%s19633_s7 + $0x3e8] sm:$0xff] }
  0x42   :  { %404 = vst [vmem:[#allocation2 + $0x3e0] sm:$0xff] %v13081_v60  ;;  %406 = vst [vmem:[#allocation2 + $0x3e8] sm:$0xff] %v13082_v61 }
  0x43   :  { %414 = vsyncadd [#allocation3 + $0x2], 5376  ;;  %v13084_v62 = vld [vmem:[%s19633_s7 + $0x3f0] sm:$0xff]  ;;  %v13085_v63 = vld [vmem:[%s19633_s7 + $0x3f8] sm:$0xff] }
  0x44   :  { %452 = vst [vmem:[#allocation2 + $0x3f0] sm:$0xff] %v13084_v62  ;;  %454 = vst [vmem:[#allocation2 + $0x3f8] sm:$0xff] %v13085_v63  ;;  %v13086_v0 = vld [vmem:[%s19633_s7 + $0x400] sm:$0xff]  ;;  %v13087_v1 = vld [vmem:[%s19633_s7 + $0x408] sm:$0xff] }
  0x45   :  { %v13088_v2 = vld [vmem:[%s19633_s7 + $0x410] sm:$0xff]  ;;  %456 = vst [vmem:[#allocation2 + $0x400] sm:$0xff] %v13086_v0  ;;  %458 = vst [vmem:[#allocation2 + $0x408] sm:$0xff] %v13087_v1  ;;  %v13089_v3 = vld [vmem:[%s19633_s7 + $0x418] sm:$0xff] }
  0x46   :  { %460 = vst [vmem:[#allocation2 + $0x410] sm:$0xff] %v13088_v2  ;;  %v13090_v4 = vld [vmem:[%s19633_s7 + $0x420] sm:$0xff]  ;;  %v13091_v5 = vld [vmem:[%s19633_s7 + $0x428] sm:$0xff]  ;;  %462 = vst [vmem:[#allocation2 + $0x418] sm:$0xff] %v13089_v3 }
  0x47   :  { %464 = vst [vmem:[#allocation2 + $0x420] sm:$0xff] %v13090_v4  ;;  %466 = vst [vmem:[#allocation2 + $0x428] sm:$0xff] %v13091_v5  ;;  %v13092_v6 = vld [vmem:[%s19633_s7 + $0x430] sm:$0xff]  ;;  %v13093_v7 = vld [vmem:[%s19633_s7 + $0x438] sm:$0xff] }
  0x48   :  { %v13094_v8 = vld [vmem:[%s19633_s7 + $0x440] sm:$0xff]  ;;  %468 = vst [vmem:[#allocation2 + $0x430] sm:$0xff] %v13092_v6  ;;  %470 = vst [vmem:[#allocation2 + $0x438] sm:$0xff] %v13093_v7  ;;  %v13095_v9 = vld [vmem:[%s19633_s7 + $0x448] sm:$0xff] }
  0x49   :  { %472 = vst [vmem:[#allocation2 + $0x440] sm:$0xff] %v13094_v8  ;;  %v13096_v10 = vld [vmem:[%s19633_s7 + $0x450] sm:$0xff]  ;;  %v13097_v11 = vld [vmem:[%s19633_s7 + $0x458] sm:$0xff]  ;;  %474 = vst [vmem:[#allocation2 + $0x448] sm:$0xff] %v13095_v9 }
  0x4a   :  { %476 = vst [vmem:[#allocation2 + $0x450] sm:$0xff] %v13096_v10  ;;  %478 = vst [vmem:[#allocation2 + $0x458] sm:$0xff] %v13097_v11  ;;  %v13098_v12 = vld [vmem:[%s19633_s7 + $0x460] sm:$0xff]  ;;  %v13099_v13 = vld [vmem:[%s19633_s7 + $0x468] sm:$0xff] }
  0x4b   :  { %v13100_v14 = vld [vmem:[%s19633_s7 + $0x470] sm:$0xff]  ;;  %480 = vst [vmem:[#allocation2 + $0x460] sm:$0xff] %v13098_v12  ;;  %482 = vst [vmem:[#allocation2 + $0x468] sm:$0xff] %v13099_v13  ;;  %v13101_v15 = vld [vmem:[%s19633_s7 + $0x478] sm:$0xff] }
  0x4c   :  { %484 = vst [vmem:[#allocation2 + $0x470] sm:$0xff] %v13100_v14  ;;  %v13102_v16 = vld [vmem:[%s19633_s7 + $0x480] sm:$0xff]  ;;  %v13103_v17 = vld [vmem:[%s19633_s7 + $0x488] sm:$0xff]  ;;  %486 = vst [vmem:[#allocation2 + $0x478] sm:$0xff] %v13101_v15 }
  0x4d   :  { %488 = vst [vmem:[#allocation2 + $0x480] sm:$0xff] %v13102_v16  ;;  %490 = vst [vmem:[#allocation2 + $0x488] sm:$0xff] %v13103_v17  ;;  %v13104_v18 = vld [vmem:[%s19633_s7 + $0x490] sm:$0xff]  ;;  %v13105_v19 = vld [vmem:[%s19633_s7 + $0x498] sm:$0xff] }
  0x4e   :  { %v13106_v20 = vld [vmem:[%s19633_s7 + $0x4a0] sm:$0xff]  ;;  %492 = vst [vmem:[#allocation2 + $0x490] sm:$0xff] %v13104_v18  ;;  %494 = vst [vmem:[#allocation2 + $0x498] sm:$0xff] %v13105_v19  ;;  %v13107_v21 = vld [vmem:[%s19633_s7 + $0x4a8] sm:$0xff] }
  0x4f   :  { %496 = vst [vmem:[#allocation2 + $0x4a0] sm:$0xff] %v13106_v20  ;;  %v13108_v22 = vld [vmem:[%s19633_s7 + $0x4b0] sm:$0xff]  ;;  %v13109_v23 = vld [vmem:[%s19633_s7 + $0x4b8] sm:$0xff]  ;;  %498 = vst [vmem:[#allocation2 + $0x4a8] sm:$0xff] %v13107_v21 }
  0x50   :  { %500 = vst [vmem:[#allocation2 + $0x4b0] sm:$0xff] %v13108_v22  ;;  %502 = vst [vmem:[#allocation2 + $0x4b8] sm:$0xff] %v13109_v23  ;;  %v13110_v24 = vld [vmem:[%s19633_s7 + $0x4c0] sm:$0xff]  ;;  %v13111_v25 = vld [vmem:[%s19633_s7 + $0x4c8] sm:$0xff] }
  0x51   :  { %v13112_v26 = vld [vmem:[%s19633_s7 + $0x4d0] sm:$0xff]  ;;  %504 = vst [vmem:[#allocation2 + $0x4c0] sm:$0xff] %v13110_v24  ;;  %506 = vst [vmem:[#allocation2 + $0x4c8] sm:$0xff] %v13111_v25  ;;  %v13113_v27 = vld [vmem:[%s19633_s7 + $0x4d8] sm:$0xff] }
  0x52   :  { %508 = vst [vmem:[#allocation2 + $0x4d0] sm:$0xff] %v13112_v26  ;;  %v13114_v28 = vld [vmem:[%s19633_s7 + $0x4e0] sm:$0xff]  ;;  %v13115_v29 = vld [vmem:[%s19633_s7 + $0x4e8] sm:$0xff]  ;;  %510 = vst [vmem:[#allocation2 + $0x4d8] sm:$0xff] %v13113_v27 }
  0x53   :  { %512 = vst [vmem:[#allocation2 + $0x4e0] sm:$0xff] %v13114_v28  ;;  %514 = vst [vmem:[#allocation2 + $0x4e8] sm:$0xff] %v13115_v29  ;;  %v13116_v30 = vld [vmem:[%s19633_s7 + $0x4f0] sm:$0xff]  ;;  %v13117_v31 = vld [vmem:[%s19633_s7 + $0x4f8] sm:$0xff] }
  0x54   :  { %v13118_v32 = vld [vmem:[%s19633_s7 + $0x500] sm:$0xff]  ;;  %516 = vst [vmem:[#allocation2 + $0x4f0] sm:$0xff] %v13116_v30  ;;  %518 = vst [vmem:[#allocation2 + $0x4f8] sm:$0xff] %v13117_v31  ;;  %v13119_v33 = vld [vmem:[%s19633_s7 + $0x508] sm:$0xff] }
  0x55   :  { %520 = vst [vmem:[#allocation2 + $0x500] sm:$0xff] %v13118_v32  ;;  %v13120_v34 = vld [vmem:[%s19633_s7 + $0x510] sm:$0xff]  ;;  %v13121_v35 = vld [vmem:[%s19633_s7 + $0x518] sm:$0xff]  ;;  %522 = vst [vmem:[#allocation2 + $0x508] sm:$0xff] %v13119_v33 }
  0x56   :  { %524 = vst [vmem:[#allocation2 + $0x510] sm:$0xff] %v13120_v34  ;;  %526 = vst [vmem:[#allocation2 + $0x518] sm:$0xff] %v13121_v35  ;;  %v13122_v36 = vld [vmem:[%s19633_s7 + $0x520] sm:$0xff]  ;;  %v13123_v37 = vld [vmem:[%s19633_s7 + $0x528] sm:$0xff] }
  0x57   :  { %v13124_v38 = vld [vmem:[%s19633_s7 + $0x530] sm:$0xff]  ;;  %528 = vst [vmem:[#allocation2 + $0x520] sm:$0xff] %v13122_v36  ;;  %530 = vst [vmem:[#allocation2 + $0x528] sm:$0xff] %v13123_v37  ;;  %v13125_v39 = vld [vmem:[%s19633_s7 + $0x538] sm:$0xff] }
  0x58   :  { %532 = vst [vmem:[#allocation2 + $0x530] sm:$0xff] %v13124_v38  ;;  %534 = vst [vmem:[#allocation2 + $0x538] sm:$0xff] %v13125_v39 }
  0x59   :  { %542 = vsyncadd [#allocation3 + $0x3], 5376  ;;  %v13127_v40 = vld [vmem:[%s19633_s7 + $0x540] sm:$0xff]  ;;  %v13128_v41 = vld [vmem:[%s19633_s7 + $0x548] sm:$0xff] }
  0x5a   :  { %580 = vst [vmem:[#allocation2 + $0x540] sm:$0xff] %v13127_v40  ;;  %582 = vst [vmem:[#allocation2 + $0x548] sm:$0xff] %v13128_v41  ;;  %v13129_v42 = vld [vmem:[%s19633_s7 + $0x550] sm:$0xff]  ;;  %v13130_v43 = vld [vmem:[%s19633_s7 + $0x558] sm:$0xff] }
  0x5b   :  { %v13131_v44 = vld [vmem:[%s19633_s7 + $0x560] sm:$0xff]  ;;  %584 = vst [vmem:[#allocation2 + $0x550] sm:$0xff] %v13129_v42  ;;  %586 = vst [vmem:[#allocation2 + $0x558] sm:$0xff] %v13130_v43  ;;  %v13132_v45 = vld [vmem:[%s19633_s7 + $0x568] sm:$0xff] }
  0x5c   :  { %588 = vst [vmem:[#allocation2 + $0x560] sm:$0xff] %v13131_v44  ;;  %v13133_v46 = vld [vmem:[%s19633_s7 + $0x570] sm:$0xff]  ;;  %v13134_v47 = vld [vmem:[%s19633_s7 + $0x578] sm:$0xff]  ;;  %590 = vst [vmem:[#allocation2 + $0x568] sm:$0xff] %v13132_v45 }
  0x5d   :  { %592 = vst [vmem:[#allocation2 + $0x570] sm:$0xff] %v13133_v46  ;;  %594 = vst [vmem:[#allocation2 + $0x578] sm:$0xff] %v13134_v47  ;;  %v13135_v48 = vld [vmem:[%s19633_s7 + $0x580] sm:$0xff]  ;;  %v13136_v49 = vld [vmem:[%s19633_s7 + $0x588] sm:$0xff] }
  0x5e   :  { %v13137_v50 = vld [vmem:[%s19633_s7 + $0x590] sm:$0xff]  ;;  %596 = vst [vmem:[#allocation2 + $0x580] sm:$0xff] %v13135_v48  ;;  %598 = vst [vmem:[#allocation2 + $0x588] sm:$0xff] %v13136_v49  ;;  %v13138_v51 = vld [vmem:[%s19633_s7 + $0x598] sm:$0xff] }
  0x5f   :  { %600 = vst [vmem:[#allocation2 + $0x590] sm:$0xff] %v13137_v50  ;;  %v13139_v52 = vld [vmem:[%s19633_s7 + $0x5a0] sm:$0xff]  ;;  %v13140_v53 = vld [vmem:[%s19633_s7 + $0x5a8] sm:$0xff]  ;;  %602 = vst [vmem:[#allocation2 + $0x598] sm:$0xff] %v13138_v51 }
  0x60   :  { %604 = vst [vmem:[#allocation2 + $0x5a0] sm:$0xff] %v13139_v52  ;;  %606 = vst [vmem:[#allocation2 + $0x5a8] sm:$0xff] %v13140_v53  ;;  %v13141_v54 = vld [vmem:[%s19633_s7 + $0x5b0] sm:$0xff]  ;;  %v13142_v55 = vld [vmem:[%s19633_s7 + $0x5b8] sm:$0xff] }
  0x61   :  { %v13143_v56 = vld [vmem:[%s19633_s7 + $0x5c0] sm:$0xff]  ;;  %608 = vst [vmem:[#allocation2 + $0x5b0] sm:$0xff] %v13141_v54  ;;  %610 = vst [vmem:[#allocation2 + $0x5b8] sm:$0xff] %v13142_v55  ;;  %v13144_v57 = vld [vmem:[%s19633_s7 + $0x5c8] sm:$0xff] }
  0x62   :  { %612 = vst [vmem:[#allocation2 + $0x5c0] sm:$0xff] %v13143_v56  ;;  %v13145_v58 = vld [vmem:[%s19633_s7 + $0x5d0] sm:$0xff]  ;;  %v13146_v59 = vld [vmem:[%s19633_s7 + $0x5d8] sm:$0xff]  ;;  %614 = vst [vmem:[#allocation2 + $0x5c8] sm:$0xff] %v13144_v57 }
  0x63   :  { %616 = vst [vmem:[#allocation2 + $0x5d0] sm:$0xff] %v13145_v58  ;;  %618 = vst [vmem:[#allocation2 + $0x5d8] sm:$0xff] %v13146_v59  ;;  %v13147_v60 = vld [vmem:[%s19633_s7 + $0x5e0] sm:$0xff]  ;;  %v13148_v61 = vld [vmem:[%s19633_s7 + $0x5e8] sm:$0xff] }
  0x64   :  { %v13149_v62 = vld [vmem:[%s19633_s7 + $0x5f0] sm:$0xff]  ;;  %620 = vst [vmem:[#allocation2 + $0x5e0] sm:$0xff] %v13147_v60  ;;  %622 = vst [vmem:[#allocation2 + $0x5e8] sm:$0xff] %v13148_v61  ;;  %v13150_v63 = vld [vmem:[%s19633_s7 + $0x5f8] sm:$0xff] }
  0x65   :  { %624 = vst [vmem:[#allocation2 + $0x5f0] sm:$0xff] %v13149_v62  ;;  %v13151_v0 = vld [vmem:[%s19633_s7 + $0x600] sm:$0xff]  ;;  %v13152_v1 = vld [vmem:[%s19633_s7 + $0x608] sm:$0xff]  ;;  %626 = vst [vmem:[#allocation2 + $0x5f8] sm:$0xff] %v13150_v63 }
  0x66   :  { %628 = vst [vmem:[#allocation2 + $0x600] sm:$0xff] %v13151_v0  ;;  %630 = vst [vmem:[#allocation2 + $0x608] sm:$0xff] %v13152_v1  ;;  %v13153_v2 = vld [vmem:[%s19633_s7 + $0x610] sm:$0xff]  ;;  %v13154_v3 = vld [vmem:[%s19633_s7 + $0x618] sm:$0xff] }
  0x67   :  { %v13155_v4 = vld [vmem:[%s19633_s7 + $0x620] sm:$0xff]  ;;  %632 = vst [vmem:[#allocation2 + $0x610] sm:$0xff] %v13153_v2  ;;  %634 = vst [vmem:[#allocation2 + $0x618] sm:$0xff] %v13154_v3  ;;  %v13156_v5 = vld [vmem:[%s19633_s7 + $0x628] sm:$0xff] }
  0x68   :  { %636 = vst [vmem:[#allocation2 + $0x620] sm:$0xff] %v13155_v4  ;;  %v13157_v6 = vld [vmem:[%s19633_s7 + $0x630] sm:$0xff]  ;;  %v13158_v7 = vld [vmem:[%s19633_s7 + $0x638] sm:$0xff]  ;;  %638 = vst [vmem:[#allocation2 + $0x628] sm:$0xff] %v13156_v5 }
  0x69   :  { %640 = vst [vmem:[#allocation2 + $0x630] sm:$0xff] %v13157_v6  ;;  %642 = vst [vmem:[#allocation2 + $0x638] sm:$0xff] %v13158_v7  ;;  %v13159_v8 = vld [vmem:[%s19633_s7 + $0x640] sm:$0xff]  ;;  %v13160_v9 = vld [vmem:[%s19633_s7 + $0x648] sm:$0xff] }
  0x6a   :  { %v13161_v10 = vld [vmem:[%s19633_s7 + $0x650] sm:$0xff]  ;;  %644 = vst [vmem:[#allocation2 + $0x640] sm:$0xff] %v13159_v8  ;;  %646 = vst [vmem:[#allocation2 + $0x648] sm:$0xff] %v13160_v9  ;;  %v13162_v11 = vld [vmem:[%s19633_s7 + $0x658] sm:$0xff] }
  0x6b   :  { %648 = vst [vmem:[#allocation2 + $0x650] sm:$0xff] %v13161_v10  ;;  %v13163_v12 = vld [vmem:[%s19633_s7 + $0x660] sm:$0xff]  ;;  %v13164_v13 = vld [vmem:[%s19633_s7 + $0x668] sm:$0xff]  ;;  %650 = vst [vmem:[#allocation2 + $0x658] sm:$0xff] %v13162_v11 }
  0x6c   :  { %652 = vst [vmem:[#allocation2 + $0x660] sm:$0xff] %v13163_v12  ;;  %654 = vst [vmem:[#allocation2 + $0x668] sm:$0xff] %v13164_v13  ;;  %v13165_v14 = vld [vmem:[%s19633_s7 + $0x670] sm:$0xff]  ;;  %v13166_v15 = vld [vmem:[%s19633_s7 + $0x678] sm:$0xff] }
  0x6d   :  { %v13167_v16 = vld [vmem:[%s19633_s7 + $0x680] sm:$0xff]  ;;  %656 = vst [vmem:[#allocation2 + $0x670] sm:$0xff] %v13165_v14  ;;  %658 = vst [vmem:[#allocation2 + $0x678] sm:$0xff] %v13166_v15  ;;  %v13168_v17 = vld [vmem:[%s19633_s7 + $0x688] sm:$0xff] }
  0x6e   :  { %660 = vst [vmem:[#allocation2 + $0x680] sm:$0xff] %v13167_v16  ;;  %662 = vst [vmem:[#allocation2 + $0x688] sm:$0xff] %v13168_v17 }
  0x6f   :  { %670 = vsyncadd [#allocation3 + $0x4], 5376  ;;  %v13170_v18 = vld [vmem:[%s19633_s7 + $0x690] sm:$0xff]  ;;  %v13171_v19 = vld [vmem:[%s19633_s7 + $0x698] sm:$0xff] }
  0x70   :  { %708 = vst [vmem:[#allocation2 + $0x690] sm:$0xff] %v13170_v18  ;;  %710 = vst [vmem:[#allocation2 + $0x698] sm:$0xff] %v13171_v19  ;;  %v13172_v20 = vld [vmem:[%s19633_s7 + $0x6a0] sm:$0xff]  ;;  %v13173_v21 = vld [vmem:[%s19633_s7 + $0x6a8] sm:$0xff] }
  0x71   :  { %v13174_v22 = vld [vmem:[%s19633_s7 + $0x6b0] sm:$0xff]  ;;  %712 = vst [vmem:[#allocation2 + $0x6a0] sm:$0xff] %v13172_v20  ;;  %714 = vst [vmem:[#allocation2 + $0x6a8] sm:$0xff] %v13173_v21  ;;  %v13175_v23 = vld [vmem:[%s19633_s7 + $0x6b8] sm:$0xff] }
  0x72   :  { %716 = vst [vmem:[#allocation2 + $0x6b0] sm:$0xff] %v13174_v22  ;;  %v13176_v24 = vld [vmem:[%s19633_s7 + $0x6c0] sm:$0xff]  ;;  %v13177_v25 = vld [vmem:[%s19633_s7 + $0x6c8] sm:$0xff]  ;;  %718 = vst [vmem:[#allocation2 + $0x6b8] sm:$0xff] %v13175_v23 }
  0x73   :  { %720 = vst [vmem:[#allocation2 + $0x6c0] sm:$0xff] %v13176_v24  ;;  %722 = vst [vmem:[#allocation2 + $0x6c8] sm:$0xff] %v13177_v25  ;;  %v13178_v26 = vld [vmem:[%s19633_s7 + $0x6d0] sm:$0xff]  ;;  %v13179_v27 = vld [vmem:[%s19633_s7 + $0x6d8] sm:$0xff] }
  0x74   :  { %v13180_v28 = vld [vmem:[%s19633_s7 + $0x6e0] sm:$0xff]  ;;  %724 = vst [vmem:[#allocation2 + $0x6d0] sm:$0xff] %v13178_v26  ;;  %726 = vst [vmem:[#allocation2 + $0x6d8] sm:$0xff] %v13179_v27  ;;  %v13181_v29 = vld [vmem:[%s19633_s7 + $0x6e8] sm:$0xff] }
  0x75   :  { %728 = vst [vmem:[#allocation2 + $0x6e0] sm:$0xff] %v13180_v28  ;;  %v13182_v30 = vld [vmem:[%s19633_s7 + $0x6f0] sm:$0xff]  ;;  %v13183_v31 = vld [vmem:[%s19633_s7 + $0x6f8] sm:$0xff]  ;;  %730 = vst [vmem:[#allocation2 + $0x6e8] sm:$0xff] %v13181_v29 }
  0x76   :  { %732 = vst [vmem:[#allocation2 + $0x6f0] sm:$0xff] %v13182_v30  ;;  %734 = vst [vmem:[#allocation2 + $0x6f8] sm:$0xff] %v13183_v31  ;;  %v13184_v32 = vld [vmem:[%s19633_s7 + $0x700] sm:$0xff]  ;;  %v13185_v33 = vld [vmem:[%s19633_s7 + $0x708] sm:$0xff] }
  0x77   :  { %v13186_v34 = vld [vmem:[%s19633_s7 + $0x710] sm:$0xff]  ;;  %736 = vst [vmem:[#allocation2 + $0x700] sm:$0xff] %v13184_v32  ;;  %738 = vst [vmem:[#allocation2 + $0x708] sm:$0xff] %v13185_v33  ;;  %v13187_v35 = vld [vmem:[%s19633_s7 + $0x718] sm:$0xff] }
  0x78   :  { %740 = vst [vmem:[#allocation2 + $0x710] sm:$0xff] %v13186_v34  ;;  %v13188_v36 = vld [vmem:[%s19633_s7 + $0x720] sm:$0xff]  ;;  %v13189_v37 = vld [vmem:[%s19633_s7 + $0x728] sm:$0xff]  ;;  %742 = vst [vmem:[#allocation2 + $0x718] sm:$0xff] %v13187_v35 }
  0x79   :  { %744 = vst [vmem:[#allocation2 + $0x720] sm:$0xff] %v13188_v36  ;;  %746 = vst [vmem:[#allocation2 + $0x728] sm:$0xff] %v13189_v37  ;;  %v13190_v38 = vld [vmem:[%s19633_s7 + $0x730] sm:$0xff]  ;;  %v13191_v39 = vld [vmem:[%s19633_s7 + $0x738] sm:$0xff] }
  0x7a   :  { %v13192_v40 = vld [vmem:[%s19633_s7 + $0x740] sm:$0xff]  ;;  %748 = vst [vmem:[#allocation2 + $0x730] sm:$0xff] %v13190_v38  ;;  %750 = vst [vmem:[#allocation2 + $0x738] sm:$0xff] %v13191_v39  ;;  %v13193_v41 = vld [vmem:[%s19633_s7 + $0x748] sm:$0xff] }
  0x7b   :  { %752 = vst [vmem:[#allocation2 + $0x740] sm:$0xff] %v13192_v40  ;;  %v13194_v42 = vld [vmem:[%s19633_s7 + $0x750] sm:$0xff]  ;;  %v13195_v43 = vld [vmem:[%s19633_s7 + $0x758] sm:$0xff]  ;;  %754 = vst [vmem:[#allocation2 + $0x748] sm:$0xff] %v13193_v41 }
  0x7c   :  { %756 = vst [vmem:[#allocation2 + $0x750] sm:$0xff] %v13194_v42  ;;  %758 = vst [vmem:[#allocation2 + $0x758] sm:$0xff] %v13195_v43  ;;  %v13196_v44 = vld [vmem:[%s19633_s7 + $0x760] sm:$0xff]  ;;  %v13197_v45 = vld [vmem:[%s19633_s7 + $0x768] sm:$0xff] }
  0x7d   :  { %v13198_v46 = vld [vmem:[%s19633_s7 + $0x770] sm:$0xff]  ;;  %760 = vst [vmem:[#allocation2 + $0x760] sm:$0xff] %v13196_v44  ;;  %762 = vst [vmem:[#allocation2 + $0x768] sm:$0xff] %v13197_v45  ;;  %v13199_v47 = vld [vmem:[%s19633_s7 + $0x778] sm:$0xff] }
  0x7e   :  { %764 = vst [vmem:[#allocation2 + $0x770] sm:$0xff] %v13198_v46  ;;  %v13200_v48 = vld [vmem:[%s19633_s7 + $0x780] sm:$0xff]  ;;  %v13201_v49 = vld [vmem:[%s19633_s7 + $0x788] sm:$0xff]  ;;  %766 = vst [vmem:[#allocation2 + $0x778] sm:$0xff] %v13199_v47 }
  0x7f   :  { %768 = vst [vmem:[#allocation2 + $0x780] sm:$0xff] %v13200_v48  ;;  %770 = vst [vmem:[#allocation2 + $0x788] sm:$0xff] %v13201_v49  ;;  %v13202_v50 = vld [vmem:[%s19633_s7 + $0x790] sm:$0xff]  ;;  %v13203_v51 = vld [vmem:[%s19633_s7 + $0x798] sm:$0xff] }
  0x80   :  { %v13204_v52 = vld [vmem:[%s19633_s7 + $0x7a0] sm:$0xff]  ;;  %772 = vst [vmem:[#allocation2 + $0x790] sm:$0xff] %v13202_v50  ;;  %774 = vst [vmem:[#allocation2 + $0x798] sm:$0xff] %v13203_v51  ;;  %v13205_v53 = vld [vmem:[%s19633_s7 + $0x7a8] sm:$0xff] }
  0x81   :  { %776 = vst [vmem:[#allocation2 + $0x7a0] sm:$0xff] %v13204_v52  ;;  %v13206_v54 = vld [vmem:[%s19633_s7 + $0x7b0] sm:$0xff]  ;;  %v13207_v55 = vld [vmem:[%s19633_s7 + $0x7b8] sm:$0xff]  ;;  %778 = vst [vmem:[#allocation2 + $0x7a8] sm:$0xff] %v13205_v53 }
  0x82   :  { %780 = vst [vmem:[#allocation2 + $0x7b0] sm:$0xff] %v13206_v54  ;;  %782 = vst [vmem:[#allocation2 + $0x7b8] sm:$0xff] %v13207_v55  ;;  %v13208_v56 = vld [vmem:[%s19633_s7 + $0x7c0] sm:$0xff]  ;;  %v13209_v57 = vld [vmem:[%s19633_s7 + $0x7c8] sm:$0xff] }
  0x83   :  { %v13210_v58 = vld [vmem:[%s19633_s7 + $0x7d0] sm:$0xff]  ;;  %784 = vst [vmem:[#allocation2 + $0x7c0] sm:$0xff] %v13208_v56  ;;  %786 = vst [vmem:[#allocation2 + $0x7c8] sm:$0xff] %v13209_v57  ;;  %v13211_v59 = vld [vmem:[%s19633_s7 + $0x7d8] sm:$0xff] }
  0x84   :  { %788 = vst [vmem:[#allocation2 + $0x7d0] sm:$0xff] %v13210_v58  ;;  %790 = vst [vmem:[#allocation2 + $0x7d8] sm:$0xff] %v13211_v59 }
  0x85   :  { %798 = vsyncadd [#allocation3 + $0x5], 5376  ;;  %v13213_v60 = vld [vmem:[%s19633_s7 + $0x7e0] sm:$0xff]  ;;  %v13214_v61 = vld [vmem:[%s19633_s7 + $0x7e8] sm:$0xff] }
  0x86   :  { %836 = vst [vmem:[#allocation2 + $0x7e0] sm:$0xff] %v13213_v60  ;;  %838 = vst [vmem:[#allocation2 + $0x7e8] sm:$0xff] %v13214_v61  ;;  %v13215_v62 = vld [vmem:[%s19633_s7 + $0x7f0] sm:$0xff]  ;;  %v13216_v63 = vld [vmem:[%s19633_s7 + $0x7f8] sm:$0xff] }
  0x87   :  { %v13217_v0 = vld [vmem:[%s19633_s7 + $0x800] sm:$0xff]  ;;  %840 = vst [vmem:[#allocation2 + $0x7f0] sm:$0xff] %v13215_v62  ;;  %842 = vst [vmem:[#allocation2 + $0x7f8] sm:$0xff] %v13216_v63  ;;  %v13218_v1 = vld [vmem:[%s19633_s7 + $0x808] sm:$0xff] }
  0x88   :  { %844 = vst [vmem:[#allocation2 + $0x800] sm:$0xff] %v13217_v0  ;;  %v13219_v2 = vld [vmem:[%s19633_s7 + $0x810] sm:$0xff]  ;;  %v13220_v3 = vld [vmem:[%s19633_s7 + $0x818] sm:$0xff]  ;;  %846 = vst [vmem:[#allocation2 + $0x808] sm:$0xff] %v13218_v1 }
  0x89   :  { %848 = vst [vmem:[#allocation2 + $0x810] sm:$0xff] %v13219_v2  ;;  %850 = vst [vmem:[#allocation2 + $0x818] sm:$0xff] %v13220_v3  ;;  %v13221_v4 = vld [vmem:[%s19633_s7 + $0x820] sm:$0xff]  ;;  %v13222_v5 = vld [vmem:[%s19633_s7 + $0x828] sm:$0xff] }
  0x8a   :  { %v13223_v6 = vld [vmem:[%s19633_s7 + $0x830] sm:$0xff]  ;;  %852 = vst [vmem:[#allocation2 + $0x820] sm:$0xff] %v13221_v4  ;;  %854 = vst [vmem:[#allocation2 + $0x828] sm:$0xff] %v13222_v5  ;;  %v13224_v7 = vld [vmem:[%s19633_s7 + $0x838] sm:$0xff] }
  0x8b   :  { %856 = vst [vmem:[#allocation2 + $0x830] sm:$0xff] %v13223_v6  ;;  %v13225_v8 = vld [vmem:[%s19633_s7 + $0x840] sm:$0xff]  ;;  %v13226_v9 = vld [vmem:[%s19633_s7 + $0x848] sm:$0xff]  ;;  %858 = vst [vmem:[#allocation2 + $0x838] sm:$0xff] %v13224_v7 }
  0x8c   :  { %860 = vst [vmem:[#allocation2 + $0x840] sm:$0xff] %v13225_v8  ;;  %862 = vst [vmem:[#allocation2 + $0x848] sm:$0xff] %v13226_v9  ;;  %v13227_v10 = vld [vmem:[%s19633_s7 + $0x850] sm:$0xff]  ;;  %v13228_v11 = vld [vmem:[%s19633_s7 + $0x858] sm:$0xff] }
  0x8d   :  { %v13229_v12 = vld [vmem:[%s19633_s7 + $0x860] sm:$0xff]  ;;  %864 = vst [vmem:[#allocation2 + $0x850] sm:$0xff] %v13227_v10  ;;  %866 = vst [vmem:[#allocation2 + $0x858] sm:$0xff] %v13228_v11  ;;  %v13230_v13 = vld [vmem:[%s19633_s7 + $0x868] sm:$0xff] }
  0x8e   :  { %868 = vst [vmem:[#allocation2 + $0x860] sm:$0xff] %v13229_v12  ;;  %v13231_v14 = vld [vmem:[%s19633_s7 + $0x870] sm:$0xff]  ;;  %v13232_v15 = vld [vmem:[%s19633_s7 + $0x878] sm:$0xff]  ;;  %870 = vst [vmem:[#allocation2 + $0x868] sm:$0xff] %v13230_v13 }
  0x8f   :  { %872 = vst [vmem:[#allocation2 + $0x870] sm:$0xff] %v13231_v14  ;;  %874 = vst [vmem:[#allocation2 + $0x878] sm:$0xff] %v13232_v15  ;;  %v13233_v16 = vld [vmem:[%s19633_s7 + $0x880] sm:$0xff]  ;;  %v13234_v17 = vld [vmem:[%s19633_s7 + $0x888] sm:$0xff] }
  0x90   :  { %v13235_v18 = vld [vmem:[%s19633_s7 + $0x890] sm:$0xff]  ;;  %876 = vst [vmem:[#allocation2 + $0x880] sm:$0xff] %v13233_v16  ;;  %878 = vst [vmem:[#allocation2 + $0x888] sm:$0xff] %v13234_v17  ;;  %v13236_v19 = vld [vmem:[%s19633_s7 + $0x898] sm:$0xff] }
  0x91   :  { %880 = vst [vmem:[#allocation2 + $0x890] sm:$0xff] %v13235_v18  ;;  %v13237_v20 = vld [vmem:[%s19633_s7 + $0x8a0] sm:$0xff]  ;;  %v13238_v21 = vld [vmem:[%s19633_s7 + $0x8a8] sm:$0xff]  ;;  %882 = vst [vmem:[#allocation2 + $0x898] sm:$0xff] %v13236_v19 }
  0x92   :  { %884 = vst [vmem:[#allocation2 + $0x8a0] sm:$0xff] %v13237_v20  ;;  %886 = vst [vmem:[#allocation2 + $0x8a8] sm:$0xff] %v13238_v21  ;;  %v13239_v22 = vld [vmem:[%s19633_s7 + $0x8b0] sm:$0xff]  ;;  %v13240_v23 = vld [vmem:[%s19633_s7 + $0x8b8] sm:$0xff] }
  0x93   :  { %v13241_v24 = vld [vmem:[%s19633_s7 + $0x8c0] sm:$0xff]  ;;  %888 = vst [vmem:[#allocation2 + $0x8b0] sm:$0xff] %v13239_v22  ;;  %890 = vst [vmem:[#allocation2 + $0x8b8] sm:$0xff] %v13240_v23  ;;  %v13242_v25 = vld [vmem:[%s19633_s7 + $0x8c8] sm:$0xff] }
  0x94   :  { %892 = vst [vmem:[#allocation2 + $0x8c0] sm:$0xff] %v13241_v24  ;;  %v13243_v26 = vld [vmem:[%s19633_s7 + $0x8d0] sm:$0xff]  ;;  %v13244_v27 = vld [vmem:[%s19633_s7 + $0x8d8] sm:$0xff]  ;;  %894 = vst [vmem:[#allocation2 + $0x8c8] sm:$0xff] %v13242_v25 }
  0x95   :  { %896 = vst [vmem:[#allocation2 + $0x8d0] sm:$0xff] %v13243_v26  ;;  %898 = vst [vmem:[#allocation2 + $0x8d8] sm:$0xff] %v13244_v27  ;;  %v13245_v28 = vld [vmem:[%s19633_s7 + $0x8e0] sm:$0xff]  ;;  %v13246_v29 = vld [vmem:[%s19633_s7 + $0x8e8] sm:$0xff] }
  0x96   :  { %v13247_v30 = vld [vmem:[%s19633_s7 + $0x8f0] sm:$0xff]  ;;  %900 = vst [vmem:[#allocation2 + $0x8e0] sm:$0xff] %v13245_v28  ;;  %902 = vst [vmem:[#allocation2 + $0x8e8] sm:$0xff] %v13246_v29  ;;  %v13248_v31 = vld [vmem:[%s19633_s7 + $0x8f8] sm:$0xff] }
  0x97   :  { %904 = vst [vmem:[#allocation2 + $0x8f0] sm:$0xff] %v13247_v30  ;;  %v13249_v32 = vld [vmem:[%s19633_s7 + $0x900] sm:$0xff]  ;;  %v13250_v33 = vld [vmem:[%s19633_s7 + $0x908] sm:$0xff]  ;;  %906 = vst [vmem:[#allocation2 + $0x8f8] sm:$0xff] %v13248_v31 }
  0x98   :  { %908 = vst [vmem:[#allocation2 + $0x900] sm:$0xff] %v13249_v32  ;;  %910 = vst [vmem:[#allocation2 + $0x908] sm:$0xff] %v13250_v33  ;;  %v13251_v34 = vld [vmem:[%s19633_s7 + $0x910] sm:$0xff]  ;;  %v13252_v35 = vld [vmem:[%s19633_s7 + $0x918] sm:$0xff] }
  0x99   :  { %v13253_v36 = vld [vmem:[%s19633_s7 + $0x920] sm:$0xff]  ;;  %912 = vst [vmem:[#allocation2 + $0x910] sm:$0xff] %v13251_v34  ;;  %914 = vst [vmem:[#allocation2 + $0x918] sm:$0xff] %v13252_v35  ;;  %v13254_v37 = vld [vmem:[%s19633_s7 + $0x928] sm:$0xff] }
  0x9a   :  { %916 = vst [vmem:[#allocation2 + $0x920] sm:$0xff] %v13253_v36  ;;  %918 = vst [vmem:[#allocation2 + $0x928] sm:$0xff] %v13254_v37 }
  0x9b   :  { %926 = vsyncadd [#allocation3 + $0x6], 5376  ;;  %v13256_v38 = vld [vmem:[%s19633_s7 + $0x930] sm:$0xff]  ;;  %v13257_v39 = vld [vmem:[%s19633_s7 + $0x938] sm:$0xff] }
  0x9c   :  { %964 = vst [vmem:[#allocation2 + $0x930] sm:$0xff] %v13256_v38  ;;  %966 = vst [vmem:[#allocation2 + $0x938] sm:$0xff] %v13257_v39  ;;  %v13258_v40 = vld [vmem:[%s19633_s7 + $0x940] sm:$0xff]  ;;  %v13259_v41 = vld [vmem:[%s19633_s7 + $0x948] sm:$0xff] }
  0x9d   :  { %v13260_v42 = vld [vmem:[%s19633_s7 + $0x950] sm:$0xff]  ;;  %968 = vst [vmem:[#allocation2 + $0x940] sm:$0xff] %v13258_v40  ;;  %970 = vst [vmem:[#allocation2 + $0x948] sm:$0xff] %v13259_v41  ;;  %v13261_v43 = vld [vmem:[%s19633_s7 + $0x958] sm:$0xff] }
  0x9e   :  { %972 = vst [vmem:[#allocation2 + $0x950] sm:$0xff] %v13260_v42  ;;  %v13262_v44 = vld [vmem:[%s19633_s7 + $0x960] sm:$0xff]  ;;  %v13263_v45 = vld [vmem:[%s19633_s7 + $0x968] sm:$0xff]  ;;  %974 = vst [vmem:[#allocation2 + $0x958] sm:$0xff] %v13261_v43 }
  0x9f   :  { %976 = vst [vmem:[#allocation2 + $0x960] sm:$0xff] %v13262_v44  ;;  %978 = vst [vmem:[#allocation2 + $0x968] sm:$0xff] %v13263_v45  ;;  %v13264_v46 = vld [vmem:[%s19633_s7 + $0x970] sm:$0xff]  ;;  %v13265_v47 = vld [vmem:[%s19633_s7 + $0x978] sm:$0xff] }
  0xa0   :  { %v13266_v48 = vld [vmem:[%s19633_s7 + $0x980] sm:$0xff]  ;;  %980 = vst [vmem:[#allocation2 + $0x970] sm:$0xff] %v13264_v46  ;;  %982 = vst [vmem:[#allocation2 + $0x978] sm:$0xff] %v13265_v47  ;;  %v13267_v49 = vld [vmem:[%s19633_s7 + $0x988] sm:$0xff] }
  0xa1   :  { %984 = vst [vmem:[#allocation2 + $0x980] sm:$0xff] %v13266_v48  ;;  %v13268_v50 = vld [vmem:[%s19633_s7 + $0x990] sm:$0xff]  ;;  %v13269_v51 = vld [vmem:[%s19633_s7 + $0x998] sm:$0xff]  ;;  %986 = vst [vmem:[#allocation2 + $0x988] sm:$0xff] %v13267_v49 }
  0xa2   :  { %988 = vst [vmem:[#allocation2 + $0x990] sm:$0xff] %v13268_v50  ;;  %990 = vst [vmem:[#allocation2 + $0x998] sm:$0xff] %v13269_v51  ;;  %v13270_v52 = vld [vmem:[%s19633_s7 + $0x9a0] sm:$0xff]  ;;  %v13271_v53 = vld [vmem:[%s19633_s7 + $0x9a8] sm:$0xff] }
  0xa3   :  { %v13272_v54 = vld [vmem:[%s19633_s7 + $0x9b0] sm:$0xff]  ;;  %992 = vst [vmem:[#allocation2 + $0x9a0] sm:$0xff] %v13270_v52  ;;  %994 = vst [vmem:[#allocation2 + $0x9a8] sm:$0xff] %v13271_v53  ;;  %v13273_v55 = vld [vmem:[%s19633_s7 + $0x9b8] sm:$0xff] }
  0xa4   :  { %996 = vst [vmem:[#allocation2 + $0x9b0] sm:$0xff] %v13272_v54  ;;  %v13274_v56 = vld [vmem:[%s19633_s7 + $0x9c0] sm:$0xff]  ;;  %v13275_v57 = vld [vmem:[%s19633_s7 + $0x9c8] sm:$0xff]  ;;  %998 = vst [vmem:[#allocation2 + $0x9b8] sm:$0xff] %v13273_v55 }
  0xa5   :  { %1000 = vst [vmem:[#allocation2 + $0x9c0] sm:$0xff] %v13274_v56  ;;  %1002 = vst [vmem:[#allocation2 + $0x9c8] sm:$0xff] %v13275_v57  ;;  %v13276_v58 = vld [vmem:[%s19633_s7 + $0x9d0] sm:$0xff]  ;;  %v13277_v59 = vld [vmem:[%s19633_s7 + $0x9d8] sm:$0xff] }
  0xa6   :  { %v13278_v60 = vld [vmem:[%s19633_s7 + $0x9e0] sm:$0xff]  ;;  %1004 = vst [vmem:[#allocation2 + $0x9d0] sm:$0xff] %v13276_v58  ;;  %1006 = vst [vmem:[#allocation2 + $0x9d8] sm:$0xff] %v13277_v59  ;;  %v13279_v61 = vld [vmem:[%s19633_s7 + $0x9e8] sm:$0xff] }
  0xa7   :  { %1008 = vst [vmem:[#allocation2 + $0x9e0] sm:$0xff] %v13278_v60  ;;  %v13280_v62 = vld [vmem:[%s19633_s7 + $0x9f0] sm:$0xff]  ;;  %v13281_v63 = vld [vmem:[%s19633_s7 + $0x9f8] sm:$0xff]  ;;  %1010 = vst [vmem:[#allocation2 + $0x9e8] sm:$0xff] %v13279_v61 }
  0xa8   :  { %1012 = vst [vmem:[#allocation2 + $0x9f0] sm:$0xff] %v13280_v62  ;;  %1014 = vst [vmem:[#allocation2 + $0x9f8] sm:$0xff] %v13281_v63  ;;  %v13282_v0 = vld [vmem:[%s19633_s7 + $0xa00] sm:$0xff]  ;;  %v13283_v1 = vld [vmem:[%s19633_s7 + $0xa08] sm:$0xff] }
  0xa9   :  { %v13284_v2 = vld [vmem:[%s19633_s7 + $0xa10] sm:$0xff]  ;;  %1016 = vst [vmem:[#allocation2 + $0xa00] sm:$0xff] %v13282_v0  ;;  %1018 = vst [vmem:[#allocation2 + $0xa08] sm:$0xff] %v13283_v1  ;;  %v13285_v3 = vld [vmem:[%s19633_s7 + $0xa18] sm:$0xff] }
  0xaa   :  { %1020 = vst [vmem:[#allocation2 + $0xa10] sm:$0xff] %v13284_v2  ;;  %v13286_v4 = vld [vmem:[%s19633_s7 + $0xa20] sm:$0xff]  ;;  %v13287_v5 = vld [vmem:[%s19633_s7 + $0xa28] sm:$0xff]  ;;  %1022 = vst [vmem:[#allocation2 + $0xa18] sm:$0xff] %v13285_v3 }
  0xab   :  { %1024 = vst [vmem:[#allocation2 + $0xa20] sm:$0xff] %v13286_v4  ;;  %1026 = vst [vmem:[#allocation2 + $0xa28] sm:$0xff] %v13287_v5  ;;  %v13288_v6 = vld [vmem:[%s19633_s7 + $0xa30] sm:$0xff]  ;;  %v13289_v7 = vld [vmem:[%s19633_s7 + $0xa38] sm:$0xff] }
  0xac   :  { %v13290_v8 = vld [vmem:[%s19633_s7 + $0xa40] sm:$0xff]  ;;  %1028 = vst [vmem:[#allocation2 + $0xa30] sm:$0xff] %v13288_v6  ;;  %1030 = vst [vmem:[#allocation2 + $0xa38] sm:$0xff] %v13289_v7  ;;  %v13291_v9 = vld [vmem:[%s19633_s7 + $0xa48] sm:$0xff] }
  0xad   :  { %1032 = vst [vmem:[#allocation2 + $0xa40] sm:$0xff] %v13290_v8  ;;  %v13292_v10 = vld [vmem:[%s19633_s7 + $0xa50] sm:$0xff]  ;;  %v13293_v11 = vld [vmem:[%s19633_s7 + $0xa58] sm:$0xff]  ;;  %1034 = vst [vmem:[#allocation2 + $0xa48] sm:$0xff] %v13291_v9 }
  0xae   :  { %1036 = vst [vmem:[#allocation2 + $0xa50] sm:$0xff] %v13292_v10  ;;  %1038 = vst [vmem:[#allocation2 + $0xa58] sm:$0xff] %v13293_v11  ;;  %v13294_v12 = vld [vmem:[%s19633_s7 + $0xa60] sm:$0xff]  ;;  %v13295_v13 = vld [vmem:[%s19633_s7 + $0xa68] sm:$0xff] }
  0xaf   :  { %v13296_v14 = vld [vmem:[%s19633_s7 + $0xa70] sm:$0xff]  ;;  %1040 = vst [vmem:[#allocation2 + $0xa60] sm:$0xff] %v13294_v12  ;;  %1042 = vst [vmem:[#allocation2 + $0xa68] sm:$0xff] %v13295_v13  ;;  %v13297_v15 = vld [vmem:[%s19633_s7 + $0xa78] sm:$0xff] }
  0xb0   :  { %1044 = vst [vmem:[#allocation2 + $0xa70] sm:$0xff] %v13296_v14  ;;  %1046 = vst [vmem:[#allocation2 + $0xa78] sm:$0xff] %v13297_v15 }
  0xb1   :  { %1054 = vsyncadd [#allocation3 + $0x7], 5376  ;;  %v13299_v16 = vld [vmem:[%s19633_s7 + $0xa80] sm:$0xff]  ;;  %v13300_v17 = vld [vmem:[%s19633_s7 + $0xa88] sm:$0xff] }
  0xb2   :  { %1092 = vst [vmem:[#allocation2 + $0xa80] sm:$0xff] %v13299_v16  ;;  %1094 = vst [vmem:[#allocation2 + $0xa88] sm:$0xff] %v13300_v17  ;;  %v13301_v18 = vld [vmem:[%s19633_s7 + $0xa90] sm:$0xff]  ;;  %v13302_v19 = vld [vmem:[%s19633_s7 + $0xa98] sm:$0xff] }
  0xb3   :  { %v13303_v20 = vld [vmem:[%s19633_s7 + $0xaa0] sm:$0xff]  ;;  %1096 = vst [vmem:[#allocation2 + $0xa90] sm:$0xff] %v13301_v18  ;;  %1098 = vst [vmem:[#allocation2 + $0xa98] sm:$0xff] %v13302_v19  ;;  %v13304_v21 = vld [vmem:[%s19633_s7 + $0xaa8] sm:$0xff] }
  0xb4   :  { %1100 = vst [vmem:[#allocation2 + $0xaa0] sm:$0xff] %v13303_v20  ;;  %v13305_v22 = vld [vmem:[%s19633_s7 + $0xab0] sm:$0xff]  ;;  %v13306_v23 = vld [vmem:[%s19633_s7 + $0xab8] sm:$0xff]  ;;  %1102 = vst [vmem:[#allocation2 + $0xaa8] sm:$0xff] %v13304_v21 }
  0xb5   :  { %1104 = vst [vmem:[#allocation2 + $0xab0] sm:$0xff] %v13305_v22  ;;  %1106 = vst [vmem:[#allocation2 + $0xab8] sm:$0xff] %v13306_v23  ;;  %v13307_v24 = vld [vmem:[%s19633_s7 + $0xac0] sm:$0xff]  ;;  %v13308_v25 = vld [vmem:[%s19633_s7 + $0xac8] sm:$0xff] }
  0xb6   :  { %v13309_v26 = vld [vmem:[%s19633_s7 + $0xad0] sm:$0xff]  ;;  %1108 = vst [vmem:[#allocation2 + $0xac0] sm:$0xff] %v13307_v24  ;;  %1110 = vst [vmem:[#allocation2 + $0xac8] sm:$0xff] %v13308_v25  ;;  %v13310_v27 = vld [vmem:[%s19633_s7 + $0xad8] sm:$0xff] }
  0xb7   :  { %1112 = vst [vmem:[#allocation2 + $0xad0] sm:$0xff] %v13309_v26  ;;  %v13311_v28 = vld [vmem:[%s19633_s7 + $0xae0] sm:$0xff]  ;;  %v13312_v29 = vld [vmem:[%s19633_s7 + $0xae8] sm:$0xff]  ;;  %1114 = vst [vmem:[#allocation2 + $0xad8] sm:$0xff] %v13310_v27 }
  0xb8   :  { %1116 = vst [vmem:[#allocation2 + $0xae0] sm:$0xff] %v13311_v28  ;;  %1118 = vst [vmem:[#allocation2 + $0xae8] sm:$0xff] %v13312_v29  ;;  %v13313_v30 = vld [vmem:[%s19633_s7 + $0xaf0] sm:$0xff]  ;;  %v13314_v31 = vld [vmem:[%s19633_s7 + $0xaf8] sm:$0xff] }
  0xb9   :  { %v13315_v32 = vld [vmem:[%s19633_s7 + $0xb00] sm:$0xff]  ;;  %1120 = vst [vmem:[#allocation2 + $0xaf0] sm:$0xff] %v13313_v30  ;;  %1122 = vst [vmem:[#allocation2 + $0xaf8] sm:$0xff] %v13314_v31  ;;  %v13316_v33 = vld [vmem:[%s19633_s7 + $0xb08] sm:$0xff] }
  0xba   :  { %1124 = vst [vmem:[#allocation2 + $0xb00] sm:$0xff] %v13315_v32  ;;  %v13317_v34 = vld [vmem:[%s19633_s7 + $0xb10] sm:$0xff]  ;;  %v13318_v35 = vld [vmem:[%s19633_s7 + $0xb18] sm:$0xff]  ;;  %1126 = vst [vmem:[#allocation2 + $0xb08] sm:$0xff] %v13316_v33 }
  0xbb   :  { %1128 = vst [vmem:[#allocation2 + $0xb10] sm:$0xff] %v13317_v34  ;;  %1130 = vst [vmem:[#allocation2 + $0xb18] sm:$0xff] %v13318_v35  ;;  %v13319_v36 = vld [vmem:[%s19633_s7 + $0xb20] sm:$0xff]  ;;  %v13320_v37 = vld [vmem:[%s19633_s7 + $0xb28] sm:$0xff] }
  0xbc   :  { %v13321_v38 = vld [vmem:[%s19633_s7 + $0xb30] sm:$0xff]  ;;  %1132 = vst [vmem:[#allocation2 + $0xb20] sm:$0xff] %v13319_v36  ;;  %1134 = vst [vmem:[#allocation2 + $0xb28] sm:$0xff] %v13320_v37  ;;  %v13322_v39 = vld [vmem:[%s19633_s7 + $0xb38] sm:$0xff] }
  0xbd   :  { %1136 = vst [vmem:[#allocation2 + $0xb30] sm:$0xff] %v13321_v38  ;;  %v13323_v40 = vld [vmem:[%s19633_s7 + $0xb40] sm:$0xff]  ;;  %v13324_v41 = vld [vmem:[%s19633_s7 + $0xb48] sm:$0xff]  ;;  %1138 = vst [vmem:[#allocation2 + $0xb38] sm:$0xff] %v13322_v39 }
  0xbe   :  { %1140 = vst [vmem:[#allocation2 + $0xb40] sm:$0xff] %v13323_v40  ;;  %1142 = vst [vmem:[#allocation2 + $0xb48] sm:$0xff] %v13324_v41  ;;  %v13325_v42 = vld [vmem:[%s19633_s7 + $0xb50] sm:$0xff]  ;;  %v13326_v43 = vld [vmem:[%s19633_s7 + $0xb58] sm:$0xff] }
  0xbf   :  { %v13327_v44 = vld [vmem:[%s19633_s7 + $0xb60] sm:$0xff]  ;;  %1144 = vst [vmem:[#allocation2 + $0xb50] sm:$0xff] %v13325_v42  ;;  %1146 = vst [vmem:[#allocation2 + $0xb58] sm:$0xff] %v13326_v43  ;;  %v13328_v45 = vld [vmem:[%s19633_s7 + $0xb68] sm:$0xff] }
  0xc0   :  { %1148 = vst [vmem:[#allocation2 + $0xb60] sm:$0xff] %v13327_v44  ;;  %v13329_v46 = vld [vmem:[%s19633_s7 + $0xb70] sm:$0xff]  ;;  %v13330_v47 = vld [vmem:[%s19633_s7 + $0xb78] sm:$0xff]  ;;  %1150 = vst [vmem:[#allocation2 + $0xb68] sm:$0xff] %v13328_v45 }
  0xc1   :  { %1152 = vst [vmem:[#allocation2 + $0xb70] sm:$0xff] %v13329_v46  ;;  %1154 = vst [vmem:[#allocation2 + $0xb78] sm:$0xff] %v13330_v47  ;;  %v13331_v48 = vld [vmem:[%s19633_s7 + $0xb80] sm:$0xff]  ;;  %v13332_v49 = vld [vmem:[%s19633_s7 + $0xb88] sm:$0xff] }
  0xc2   :  { %v13333_v50 = vld [vmem:[%s19633_s7 + $0xb90] sm:$0xff]  ;;  %1156 = vst [vmem:[#allocation2 + $0xb80] sm:$0xff] %v13331_v48  ;;  %1158 = vst [vmem:[#allocation2 + $0xb88] sm:$0xff] %v13332_v49  ;;  %v13334_v51 = vld [vmem:[%s19633_s7 + $0xb98] sm:$0xff] }
  0xc3   :  { %1160 = vst [vmem:[#allocation2 + $0xb90] sm:$0xff] %v13333_v50  ;;  %v13335_v52 = vld [vmem:[%s19633_s7 + $0xba0] sm:$0xff]  ;;  %v13336_v53 = vld [vmem:[%s19633_s7 + $0xba8] sm:$0xff]  ;;  %1162 = vst [vmem:[#allocation2 + $0xb98] sm:$0xff] %v13334_v51 }
  0xc4   :  { %1164 = vst [vmem:[#allocation2 + $0xba0] sm:$0xff] %v13335_v52  ;;  %1166 = vst [vmem:[#allocation2 + $0xba8] sm:$0xff] %v13336_v53  ;;  %v13337_v54 = vld [vmem:[%s19633_s7 + $0xbb0] sm:$0xff]  ;;  %v13338_v55 = vld [vmem:[%s19633_s7 + $0xbb8] sm:$0xff] }
  0xc5   :  { %v13339_v56 = vld [vmem:[%s19633_s7 + $0xbc0] sm:$0xff]  ;;  %1168 = vst [vmem:[#allocation2 + $0xbb0] sm:$0xff] %v13337_v54  ;;  %1170 = vst [vmem:[#allocation2 + $0xbb8] sm:$0xff] %v13338_v55  ;;  %v13340_v57 = vld [vmem:[%s19633_s7 + $0xbc8] sm:$0xff] }
  0xc6   :  { %1172 = vst [vmem:[#allocation2 + $0xbc0] sm:$0xff] %v13339_v56  ;;  %1174 = vst [vmem:[#allocation2 + $0xbc8] sm:$0xff] %v13340_v57 }
  0xc7   :  { %1182 = vsyncadd [#allocation3 + $0x8], 5376  ;;  %v13342_v58 = vld [vmem:[%s19633_s7 + $0xbd0] sm:$0xff]  ;;  %v13343_v59 = vld [vmem:[%s19633_s7 + $0xbd8] sm:$0xff] }
  0xc8   :  { %1220 = vst [vmem:[#allocation2 + $0xbd0] sm:$0xff] %v13342_v58  ;;  %1222 = vst [vmem:[#allocation2 + $0xbd8] sm:$0xff] %v13343_v59  ;;  %v13344_v60 = vld [vmem:[%s19633_s7 + $0xbe0] sm:$0xff]  ;;  %v13345_v61 = vld [vmem:[%s19633_s7 + $0xbe8] sm:$0xff] }
  0xc9   :  { %v13346_v62 = vld [vmem:[%s19633_s7 + $0xbf0] sm:$0xff]  ;;  %1224 = vst [vmem:[#allocation2 + $0xbe0] sm:$0xff] %v13344_v60  ;;  %1226 = vst [vmem:[#allocation2 + $0xbe8] sm:$0xff] %v13345_v61  ;;  %v13347_v63 = vld [vmem:[%s19633_s7 + $0xbf8] sm:$0xff] }
  0xca   :  { %1228 = vst [vmem:[#allocation2 + $0xbf0] sm:$0xff] %v13346_v62  ;;  %v13348_v0 = vld [vmem:[%s19633_s7 + $0xc00] sm:$0xff]  ;;  %v13349_v1 = vld [vmem:[%s19633_s7 + $0xc08] sm:$0xff]  ;;  %1230 = vst [vmem:[#allocation2 + $0xbf8] sm:$0xff] %v13347_v63 }
  0xcb   :  { %1232 = vst [vmem:[#allocation2 + $0xc00] sm:$0xff] %v13348_v0  ;;  %1234 = vst [vmem:[#allocation2 + $0xc08] sm:$0xff] %v13349_v1  ;;  %v13350_v2 = vld [vmem:[%s19633_s7 + $0xc10] sm:$0xff]  ;;  %v13351_v3 = vld [vmem:[%s19633_s7 + $0xc18] sm:$0xff] }
  0xcc   :  { %v13352_v4 = vld [vmem:[%s19633_s7 + $0xc20] sm:$0xff]  ;;  %1236 = vst [vmem:[#allocation2 + $0xc10] sm:$0xff] %v13350_v2  ;;  %1238 = vst [vmem:[#allocation2 + $0xc18] sm:$0xff] %v13351_v3  ;;  %v13353_v5 = vld [vmem:[%s19633_s7 + $0xc28] sm:$0xff] }
  0xcd   :  { %1240 = vst [vmem:[#allocation2 + $0xc20] sm:$0xff] %v13352_v4  ;;  %v13354_v6 = vld [vmem:[%s19633_s7 + $0xc30] sm:$0xff]  ;;  %v13355_v7 = vld [vmem:[%s19633_s7 + $0xc38] sm:$0xff]  ;;  %1242 = vst [vmem:[#allocation2 + $0xc28] sm:$0xff] %v13353_v5 }
  0xce   :  { %1244 = vst [vmem:[#allocation2 + $0xc30] sm:$0xff] %v13354_v6  ;;  %1246 = vst [vmem:[#allocation2 + $0xc38] sm:$0xff] %v13355_v7  ;;  %v13356_v8 = vld [vmem:[%s19633_s7 + $0xc40] sm:$0xff]  ;;  %v13357_v9 = vld [vmem:[%s19633_s7 + $0xc48] sm:$0xff] }
  0xcf   :  { %v13358_v10 = vld [vmem:[%s19633_s7 + $0xc50] sm:$0xff]  ;;  %1248 = vst [vmem:[#allocation2 + $0xc40] sm:$0xff] %v13356_v8  ;;  %1250 = vst [vmem:[#allocation2 + $0xc48] sm:$0xff] %v13357_v9  ;;  %v13359_v11 = vld [vmem:[%s19633_s7 + $0xc58] sm:$0xff] }
  0xd0   :  { %1252 = vst [vmem:[#allocation2 + $0xc50] sm:$0xff] %v13358_v10  ;;  %v13360_v12 = vld [vmem:[%s19633_s7 + $0xc60] sm:$0xff]  ;;  %v13361_v13 = vld [vmem:[%s19633_s7 + $0xc68] sm:$0xff]  ;;  %1254 = vst [vmem:[#allocation2 + $0xc58] sm:$0xff] %v13359_v11 }
  0xd1   :  { %1256 = vst [vmem:[#allocation2 + $0xc60] sm:$0xff] %v13360_v12  ;;  %1258 = vst [vmem:[#allocation2 + $0xc68] sm:$0xff] %v13361_v13  ;;  %v13362_v14 = vld [vmem:[%s19633_s7 + $0xc70] sm:$0xff]  ;;  %v13363_v15 = vld [vmem:[%s19633_s7 + $0xc78] sm:$0xff] }
  0xd2   :  { %v13364_v16 = vld [vmem:[%s19633_s7 + $0xc80] sm:$0xff]  ;;  %1260 = vst [vmem:[#allocation2 + $0xc70] sm:$0xff] %v13362_v14  ;;  %1262 = vst [vmem:[#allocation2 + $0xc78] sm:$0xff] %v13363_v15  ;;  %v13365_v17 = vld [vmem:[%s19633_s7 + $0xc88] sm:$0xff] }
  0xd3   :  { %1264 = vst [vmem:[#allocation2 + $0xc80] sm:$0xff] %v13364_v16  ;;  %v13366_v18 = vld [vmem:[%s19633_s7 + $0xc90] sm:$0xff]  ;;  %v13367_v19 = vld [vmem:[%s19633_s7 + $0xc98] sm:$0xff]  ;;  %1266 = vst [vmem:[#allocation2 + $0xc88] sm:$0xff] %v13365_v17 }
  0xd4   :  { %1268 = vst [vmem:[#allocation2 + $0xc90] sm:$0xff] %v13366_v18  ;;  %1270 = vst [vmem:[#allocation2 + $0xc98] sm:$0xff] %v13367_v19  ;;  %v13368_v20 = vld [vmem:[%s19633_s7 + $0xca0] sm:$0xff]  ;;  %v13369_v21 = vld [vmem:[%s19633_s7 + $0xca8] sm:$0xff] }
  0xd5   :  { %v13370_v22 = vld [vmem:[%s19633_s7 + $0xcb0] sm:$0xff]  ;;  %1272 = vst [vmem:[#allocation2 + $0xca0] sm:$0xff] %v13368_v20  ;;  %1274 = vst [vmem:[#allocation2 + $0xca8] sm:$0xff] %v13369_v21  ;;  %v13371_v23 = vld [vmem:[%s19633_s7 + $0xcb8] sm:$0xff] }
  0xd6   :  { %1276 = vst [vmem:[#allocation2 + $0xcb0] sm:$0xff] %v13370_v22  ;;  %v13372_v24 = vld [vmem:[%s19633_s7 + $0xcc0] sm:$0xff]  ;;  %v13373_v25 = vld [vmem:[%s19633_s7 + $0xcc8] sm:$0xff]  ;;  %1278 = vst [vmem:[#allocation2 + $0xcb8] sm:$0xff] %v13371_v23 }
  0xd7   :  { %1280 = vst [vmem:[#allocation2 + $0xcc0] sm:$0xff] %v13372_v24  ;;  %1282 = vst [vmem:[#allocation2 + $0xcc8] sm:$0xff] %v13373_v25  ;;  %v13374_v26 = vld [vmem:[%s19633_s7 + $0xcd0] sm:$0xff]  ;;  %v13375_v27 = vld [vmem:[%s19633_s7 + $0xcd8] sm:$0xff] }
  0xd8   :  { %v13376_v28 = vld [vmem:[%s19633_s7 + $0xce0] sm:$0xff]  ;;  %1284 = vst [vmem:[#allocation2 + $0xcd0] sm:$0xff] %v13374_v26  ;;  %1286 = vst [vmem:[#allocation2 + $0xcd8] sm:$0xff] %v13375_v27  ;;  %v13377_v29 = vld [vmem:[%s19633_s7 + $0xce8] sm:$0xff] }
  0xd9   :  { %1288 = vst [vmem:[#allocation2 + $0xce0] sm:$0xff] %v13376_v28  ;;  %v13378_v30 = vld [vmem:[%s19633_s7 + $0xcf0] sm:$0xff]  ;;  %v13379_v31 = vld [vmem:[%s19633_s7 + $0xcf8] sm:$0xff]  ;;  %1290 = vst [vmem:[#allocation2 + $0xce8] sm:$0xff] %v13377_v29 }
  0xda   :  { %1292 = vst [vmem:[#allocation2 + $0xcf0] sm:$0xff] %v13378_v30  ;;  %1294 = vst [vmem:[#allocation2 + $0xcf8] sm:$0xff] %v13379_v31  ;;  %v13380_v32 = vld [vmem:[%s19633_s7 + $0xd00] sm:$0xff]  ;;  %v13381_v33 = vld [vmem:[%s19633_s7 + $0xd08] sm:$0xff] }
  0xdb   :  { %v13382_v34 = vld [vmem:[%s19633_s7 + $0xd10] sm:$0xff]  ;;  %1296 = vst [vmem:[#allocation2 + $0xd00] sm:$0xff] %v13380_v32  ;;  %1298 = vst [vmem:[#allocation2 + $0xd08] sm:$0xff] %v13381_v33  ;;  %v13383_v35 = vld [vmem:[%s19633_s7 + $0xd18] sm:$0xff] }
  0xdc   :  { %1300 = vst [vmem:[#allocation2 + $0xd10] sm:$0xff] %v13382_v34  ;;  %1302 = vst [vmem:[#allocation2 + $0xd18] sm:$0xff] %v13383_v35 }
  0xdd   :  { %1310 = vsyncadd [#allocation3 + $0x9], 5376  ;;  %v13385_v36 = vld [vmem:[%s19633_s7 + $0xd20] sm:$0xff]  ;;  %v13386_v37 = vld [vmem:[%s19633_s7 + $0xd28] sm:$0xff]  ;;  %v1576_v14 = vlaneseq  ;;  %v15614_v15 = vmov 0.0  }
  0xde   :  { %1348 = vst [vmem:[#allocation2 + $0xd20] sm:$0xff] %v13385_v36  ;;  %1350 = vst [vmem:[#allocation2 + $0xd28] sm:$0xff] %v13386_v37  ;;  %v13387_v38 = vld [vmem:[%s19633_s7 + $0xd30] sm:$0xff]  ;;  %v13388_v39 = vld [vmem:[%s19633_s7 + $0xd38] sm:$0xff]  ;;  %14311 = vmatprep.subr.bf16.mxu1 %v15614_v15 }
  0xdf   :  { %v13389_v40 = vld [vmem:[%s19633_s7 + $0xd40] sm:$0xff]  ;;  %1352 = vst [vmem:[#allocation2 + $0xd30] sm:$0xff] %v13387_v38  ;;  %1354 = vst [vmem:[#allocation2 + $0xd38] sm:$0xff] %v13388_v39  ;;  %v13390_v41 = vld [vmem:[%s19633_s7 + $0xd48] sm:$0xff] }
  0xe0   :  { %1356 = vst [vmem:[#allocation2 + $0xd40] sm:$0xff] %v13389_v40  ;;  %v13391_v42 = vld [vmem:[%s19633_s7 + $0xd50] sm:$0xff]  ;;  %v13392_v43 = vld [vmem:[%s19633_s7 + $0xd58] sm:$0xff]  ;;  %1358 = vst [vmem:[#allocation2 + $0xd48] sm:$0xff] %v13390_v41 }
  0xe1   :  { %1360 = vst [vmem:[#allocation2 + $0xd50] sm:$0xff] %v13391_v42  ;;  %1362 = vst [vmem:[#allocation2 + $0xd58] sm:$0xff] %v13392_v43  ;;  %v13393_v44 = vld [vmem:[%s19633_s7 + $0xd60] sm:$0xff]  ;;  %v13394_v45 = vld [vmem:[%s19633_s7 + $0xd68] sm:$0xff] }
  0xe2   :  { %v13395_v46 = vld [vmem:[%s19633_s7 + $0xd70] sm:$0xff]  ;;  %1364 = vst [vmem:[#allocation2 + $0xd60] sm:$0xff] %v13393_v44  ;;  %1366 = vst [vmem:[#allocation2 + $0xd68] sm:$0xff] %v13394_v45  ;;  %v13396_v47 = vld [vmem:[%s19633_s7 + $0xd78] sm:$0xff] }
  0xe3   :  { %1368 = vst [vmem:[#allocation2 + $0xd70] sm:$0xff] %v13395_v46  ;;  %v13397_v48 = vld [vmem:[%s19633_s7 + $0xd80] sm:$0xff]  ;;  %v13398_v49 = vld [vmem:[%s19633_s7 + $0xd88] sm:$0xff]  ;;  %1370 = vst [vmem:[#allocation2 + $0xd78] sm:$0xff] %v13396_v47 }
  0xe4   :  { %1372 = vst [vmem:[#allocation2 + $0xd80] sm:$0xff] %v13397_v48  ;;  %1374 = vst [vmem:[#allocation2 + $0xd88] sm:$0xff] %v13398_v49  ;;  %v13399_v50 = vld [vmem:[%s19633_s7 + $0xd90] sm:$0xff]  ;;  %v13400_v51 = vld [vmem:[%s19633_s7 + $0xd98] sm:$0xff] }
  0xe5   :  { %v13401_v52 = vld [vmem:[%s19633_s7 + $0xda0] sm:$0xff]  ;;  %1376 = vst [vmem:[#allocation2 + $0xd90] sm:$0xff] %v13399_v50  ;;  %1378 = vst [vmem:[#allocation2 + $0xd98] sm:$0xff] %v13400_v51  ;;  %v13402_v53 = vld [vmem:[%s19633_s7 + $0xda8] sm:$0xff] }
  0xe6   :  { %1380 = vst [vmem:[#allocation2 + $0xda0] sm:$0xff] %v13401_v52  ;;  %v13403_v54 = vld [vmem:[%s19633_s7 + $0xdb0] sm:$0xff]  ;;  %v13404_v55 = vld [vmem:[%s19633_s7 + $0xdb8] sm:$0xff]  ;;  %1382 = vst [vmem:[#allocation2 + $0xda8] sm:$0xff] %v13402_v53 }
  0xe7   :  { %1384 = vst [vmem:[#allocation2 + $0xdb0] sm:$0xff] %v13403_v54  ;;  %1386 = vst [vmem:[#allocation2 + $0xdb8] sm:$0xff] %v13404_v55  ;;  %v13405_v56 = vld [vmem:[%s19633_s7 + $0xdc0] sm:$0xff]  ;;  %v13406_v57 = vld [vmem:[%s19633_s7 + $0xdc8] sm:$0xff] }
  0xe8   :  { %v13407_v58 = vld [vmem:[%s19633_s7 + $0xdd0] sm:$0xff]  ;;  %1388 = vst [vmem:[#allocation2 + $0xdc0] sm:$0xff] %v13405_v56  ;;  %1390 = vst [vmem:[#allocation2 + $0xdc8] sm:$0xff] %v13406_v57  ;;  %v13408_v59 = vld [vmem:[%s19633_s7 + $0xdd8] sm:$0xff] }
  0xe9   :  { %1392 = vst [vmem:[#allocation2 + $0xdd0] sm:$0xff] %v13407_v58  ;;  %v13409_v60 = vld [vmem:[%s19633_s7 + $0xde0] sm:$0xff]  ;;  %v13410_v61 = vld [vmem:[%s19633_s7 + $0xde8] sm:$0xff]  ;;  %1394 = vst [vmem:[#allocation2 + $0xdd8] sm:$0xff] %v13408_v59 }
  0xea   :  { %1396 = vst [vmem:[#allocation2 + $0xde0] sm:$0xff] %v13409_v60  ;;  %1398 = vst [vmem:[#allocation2 + $0xde8] sm:$0xff] %v13410_v61  ;;  %v13411_v62 = vld [vmem:[%s19633_s7 + $0xdf0] sm:$0xff]  ;;  %v13412_v63 = vld [vmem:[%s19633_s7 + $0xdf8] sm:$0xff] }
  0xeb   :  { %v13413_v0 = vld [vmem:[%s19633_s7 + $0xe00] sm:$0xff]  ;;  %1400 = vst [vmem:[#allocation2 + $0xdf0] sm:$0xff] %v13411_v62  ;;  %1402 = vst [vmem:[#allocation2 + $0xdf8] sm:$0xff] %v13412_v63  ;;  %v13414_v1 = vld [vmem:[%s19633_s7 + $0xe08] sm:$0xff] }
  0xec   :  { %1404 = vst [vmem:[#allocation2 + $0xe00] sm:$0xff] %v13413_v0  ;;  %v13415_v2 = vld [vmem:[%s19633_s7 + $0xe10] sm:$0xff]  ;;  %v13416_v3 = vld [vmem:[%s19633_s7 + $0xe18] sm:$0xff]  ;;  %1406 = vst [vmem:[#allocation2 + $0xe08] sm:$0xff] %v13414_v1 }
  0xed   :  { %1408 = vst [vmem:[#allocation2 + $0xe10] sm:$0xff] %v13415_v2  ;;  %1410 = vst [vmem:[#allocation2 + $0xe18] sm:$0xff] %v13416_v3  ;;  %v13417_v4 = vld [vmem:[%s19633_s7 + $0xe20] sm:$0xff]  ;;  %v13418_v5 = vld [vmem:[%s19633_s7 + $0xe28] sm:$0xff] }
  0xee   :  { %v13419_v6 = vld [vmem:[%s19633_s7 + $0xe30] sm:$0xff]  ;;  %1412 = vst [vmem:[#allocation2 + $0xe20] sm:$0xff] %v13417_v4  ;;  %1414 = vst [vmem:[#allocation2 + $0xe28] sm:$0xff] %v13418_v5  ;;  %v13420_v7 = vld [vmem:[%s19633_s7 + $0xe38] sm:$0xff] }
  0xef   :  { %1416 = vst [vmem:[#allocation2 + $0xe30] sm:$0xff] %v13419_v6  ;;  %v13421_v8 = vld [vmem:[%s19633_s7 + $0xe40] sm:$0xff]  ;;  %v13422_v9 = vld [vmem:[%s19633_s7 + $0xe48] sm:$0xff]  ;;  %1418 = vst [vmem:[#allocation2 + $0xe38] sm:$0xff] %v13420_v7 }
  0xf0   :  { %1420 = vst [vmem:[#allocation2 + $0xe40] sm:$0xff] %v13421_v8  ;;  %1422 = vst [vmem:[#allocation2 + $0xe48] sm:$0xff] %v13422_v9  ;;  %v13423_v10 = vld [vmem:[%s19633_s7 + $0xe50] sm:$0xff]  ;;  %v13424_v11 = vld [vmem:[%s19633_s7 + $0xe58] sm:$0xff] }
  0xf1   :  { %v13425_v12 = vld [vmem:[%s19633_s7 + $0xe60] sm:$0xff]  ;;  %1424 = vst [vmem:[#allocation2 + $0xe50] sm:$0xff] %v13423_v10  ;;  %1426 = vst [vmem:[#allocation2 + $0xe58] sm:$0xff] %v13424_v11  ;;  %v13426_v13 = vld [vmem:[%s19633_s7 + $0xe68] sm:$0xff] }
  0xf2   :  { %1428 = vst [vmem:[#allocation2 + $0xe60] sm:$0xff] %v13425_v12  ;;  %1430 = vst [vmem:[#allocation2 + $0xe68] sm:$0xff] %v13426_v13 }
  0xf3   :  { %1438 = vsyncadd [#allocation3 + $0xa], 5376  ;;  %v1577_v16 = vshrl.u32 %v1576_v14, 7  ;;  %v14669_v17 = vld [vmem:[%s19627_s1] sm:$0xff]   ;;  %v17076_v19 = vld [vmem:[%s19628_s2 + $0x8] sm:$0xff]   ;;  %vm1471_vm0 = vcmask 130048  }
  0xf4   :  { %v1570_v18 = vld [vmem:[%s19634_s8] sm:$0xff]  ;;  %v1571_v20 = vld [vmem:[%s19634_s8 + $0x8] sm:$0xff]  ;;  %14297 = vmatprep.subr.bf16.mxu0 %v14669_v17  ;;  %vm15615_vm1 = vmmov 0   ;;  %v1572_v25 = vld [vmem:[%s19634_s8 + $0x10] sm:$0x1f]  ;;  %14312 = vmatpush3.bf16.msra.mxu1 %v17076_v19  ;;  %v15616_v58 = vmov 0  }
  0xf5   :  { %v1578_v21 = vsub.s32 0, %v1577_v16  ;;  %v1582_v22 = vsub.s32 1, %v1577_v16  ;;  %v1586_v23 = vsub.s32 2, %v1577_v16  ;;  %v1590_v24 = vsub.s32 3, %v1577_v16  ;;  %14315 = vmatprep.mubr.msk.bf16.mxu1 %vm15615_vm1, %v15614_v15  ;;  %14298 = vmatpush3.bf16.msra.mxu0 %v14669_v17  ;;  %v1439_v34 = vld [vmem:[%s19626_s0] sm:$0xff]  ;;  %v1440_v35 = vld [vmem:[%s19626_s0 + $0x8] sm:$0xff] }
  0xf6   :  { %v1594_v26 = vsub.s32 4, %v1577_v16  ;;  %v1598_v27 = vsub.s32 5, %v1577_v16  ;;  %v1602_v28 = vsub.s32 6, %v1577_v16  ;;  %v1606_v29 = vsub.s32 7, %v1577_v16  ;;  %14313 = vmatprep.subr.bf16.mxu1 %v15614_v15  ;;  %v1441_v36 = vld [vmem:[%s19626_s0 + $0x10] sm:$0xff]  ;;  %v1442_v37 = vld [vmem:[%s19626_s0 + $0x18] sm:$0xff]  ;;  %14335 = vmatprep.subr.bf16.mxu0 %v15614_v15 }
  0xf7   :  { %v1579_v30 = vrot.slane %v1570_v18, %v1578_v21  ;;  %v1583_v31 = vrot.slane %v1570_v18, %v1582_v22  ;;  %v1587_v32 = vrot.slane %v1570_v18, %v1586_v23  ;;  %v1591_v33 = vrot.slane %v1570_v18, %v1590_v24  ;;  %v14671_v38 = vld [vmem:[%s19628_s2] sm:$0xff]   ;;  %s15618_s23 = smov 64  }
  0xf8   :  { %v1595_v39 = vrot.slane %v1570_v18, %v1594_v26  ;;  %v1599_v40 = vrot.slane %v1570_v18, %v1598_v27  ;;  %v1603_v41 = vrot.slane %v1570_v18, %v1602_v28  ;;  %v1607_v42 = vrot.slane %v1570_v18, %v1606_v29  ;;  %14314 = vmatpush3.bf16.msra.mxu1 %v14671_v38  ;;  %v17179_v59 = vld [vmem:[%s19629_s3] ss:$0 sm:$0xff]  ;;  %s15617_s3 = smov 32   ;;  %v14672_v18 = vld [vmem:[%s19631_s5 + $0x8] sm:$0xff]  }
  0xf9   :  { %v1611_v43 = vrot.slane %v1571_v20, %v1578_v21  ;;  %v1615_v44 = vrot.slane %v1571_v20, %v1582_v22  ;;  %v1619_v45 = vrot.slane %v1571_v20, %v1586_v23  ;;  %v1623_v46 = vrot.slane %v1571_v20, %v1590_v24  ;;  %1681 = vst [vmem:[%s19635_s9] sm:$0xff] %v1579_v30 }
  0xfa   :  { %1682 = vst [vmem:[%s19635_s9 + $0x8] sm:$0xff] %v1583_v31  ;;  %1683 = vst [vmem:[%s19635_s9 + $0x10] sm:$0xff] %v1587_v32  ;;  %v1627_v47 = vrot.slane %v1571_v20, %v1594_v26  ;;  %v1631_v48 = vrot.slane %v1571_v20, %v1598_v27  ;;  %v1635_v49 = vrot.slane %v1571_v20, %v1602_v28  ;;  %14319 = vmatprep.subr.bf16.mxu1 %v15614_v15  ;;  %v14673_v27 = vld [vmem:[%s19631_s5] sm:$0xff]   ;;  %vm1718_vm2 = vcmask 261120  }
  0xfb   :  { %1684 = vst [vmem:[%s19635_s9 + $0x18] sm:$0xff] %v1591_v33  ;;  %v1639_v50 = vrot.slane %v1571_v20, %v1606_v29  ;;  %1685 = vst [vmem:[%s19635_s9 + $0x20] sm:$0xff] %v1595_v39  ;;  %v1643_v51 = vrot.slane %v1572_v25, %v1578_v21  ;;  %v1647_v52 = vrot.slane %v1572_v25, %v1582_v22  ;;  %14316 = vmatmul.mubr.bf16.vlgmr.msra.gmra.mxu1 %v15616_v58  ;;  %v1444_v20 = vld [vmem:[%s19626_s0 + $0x28] sm:$0xff]  ;;  %v1445_v22 = vld [vmem:[%s19626_s0 + $0x30] sm:$0xff] }
  0xfc   :  { %1686 = vst [vmem:[%s19635_s9 + $0x28] sm:$0xff] %v1599_v40  ;;  %1687 = vst [vmem:[%s19635_s9 + $0x30] sm:$0xff] %v1603_v41  ;;  %v1651_v53 = vrot.slane %v1572_v25, %v1586_v23  ;;  %v1655_v54 = vrot.slane %v1572_v25, %v1590_v24  ;;  %v1659_v55 = vrot.slane %v1572_v25, %v1594_v26  ;;  %14320 = vmatpush3.bf16.msra.mxu1 %v17076_v19  ;;  %v1443_v19 = vld [vmem:[%s19626_s0 + $0x20] sm:$0xff]  ;;  %v1446_v23 = vld [vmem:[%s19626_s0 + $0x38] sm:$0xff] }
  0xfd   :  { %1688 = vst [vmem:[%s19635_s9 + $0x38] sm:$0xff] %v1607_v42  ;;  %1689 = vst [vmem:[%s19635_s9 + $0x40] sm:$0xff] %v1611_v43  ;;  %v1450_v56 = vpack.c.bf16 %v1440_v35, %v1439_v34  ;;  %v1451_v57 = vpack.c.bf16 %v1442_v37, %v1441_v36  ;;  %14321 = vmatprep.subr.bf16.mxu1 %v15614_v15  ;;  %14323 = vmatprep.mubr.msk.bf16.mxu1 %vm15615_vm1, %v15614_v15  ;;  %v1447_v24 = vld [vmem:[%s19626_s0 + $0x40] sm:$0xff]  ;;  %v1448_v26 = vld [vmem:[%s19626_s0 + $0x48] sm:$0xff] }
  0xfe   :  { %1690 = vst [vmem:[%s19635_s9 + $0x48] sm:$0xff] %v1615_v44  ;;  %1691 = vst [vmem:[%s19635_s9 + $0x50] sm:$0xff] %v1619_v45  ;;  %v1452_v21 = vpack.c.bf16 %v1444_v20, %v1443_v19  ;;  %v1453_v25 = vpack.c.bf16 %v1446_v23, %v1445_v22  ;;  %v1454_v28 = vpack.c.bf16 %v1448_v26, %v1447_v24  ;;  %v1449_v29 = vld [vmem:[%s19626_s0 + $0x50] sm:$0xff] }
  0xff   :  { %1692 = vst [vmem:[%s19635_s9 + $0x58] sm:$0xff] %v1623_v46  ;;  %1693 = vst [vmem:[%s19635_s9 + $0x60] sm:$0xff] %v1627_v47  ;;  %14299 = vmatprep.mubr.msk.bf16.mxu0 %vm1471_vm0, %v1450_v56  ;;  %v1455_v31 = vpack.c.bf16 %v1449_v29, %v1449_v29 }
 0x100   :  { %1694 = vst [vmem:[%s19635_s9 + $0x68] sm:$0xff] %v1631_v48  ;;  %1695 = vst [vmem:[%s19635_s9 + $0x70] sm:$0xff] %v1635_v49  ;;  %14300 = vmatmul.mubr.msk.bf16.vlgmr.msra.gmra.mxu0 %vm1471_vm0, %v1451_v57  ;;  %14322 = vmatpush3.bf16.msra.mxu1 %v14671_v38  ;;  %v14674_v49 = vld [vmem:[%s19630_s4 + $0x8] sm:$0xff]  }
 0x101   :  { %1696 = vst [vmem:[%s19635_s9 + $0x78] sm:$0xff] %v1639_v50  ;;  %1697 = vst [vmem:[%s19635_s9 + $0x80] sm:$0xff] %v1643_v51  ;;  %14327 = vmatprep.subr.bf16.mxu1 %v15614_v15  ;;  %14336 = vmatpush3.bf16.msra.mxu0 %v14672_v18  ;;  %v14675_v51 = vld [vmem:[%s19630_s4] sm:$0xff]  }
 0x102   :  { %1698 = vst [vmem:[%s19635_s9 + $0x88] sm:$0xff] %v1647_v52  ;;  %1699 = vst [vmem:[%s19635_s9 + $0x90] sm:$0xff] %v1651_v53  ;;  %14303 = vmatprep.mubr.msk.bf16.mxu0 %vm1471_vm0, %v1452_v21  ;;  %14337 = vmatprep.subr.bf16.mxu0 %v15614_v15 }
 0x103   :  { %1700 = vst [vmem:[%s19635_s9 + $0x98] sm:$0xff] %v1655_v54  ;;  %1701 = vst [vmem:[%s19635_s9 + $0xa0] sm:$0xff] %v1659_v55 }
 0x105   :  { %14338 = vmatpush3.bf16.msra.mxu0 %v14673_v27 }
 0x108   :  { %14304 = vmatmul.mubr.msk.bf16.gmra.mxu0 %vm1471_vm0, %v1453_v25 }
 0x109   :  { %14307 = vmatprep.mubr.msk.bf16.mxu0 %vm1471_vm0, %v1454_v28 }
 0x110   :  { %14308 = vmatmul.mubr.msk.bf16.gmra.mxu0 %vm1471_vm0, %v1455_v31 }
 0x111   :  { %14339 = vmatprep.mubr.msk.bf16.mxu0 %vm15615_vm1, %v15614_v15 }
 0x118   :  { %14340 = vmatmul.mubr.bf16.vlgmr.msra.gmra.mxu0 %v15616_v58 }
 0x1bb   :  { %v1756_v60 = vpop.f32.mrf.mxu1 }
 0x1bd   :  { %v14317_v62 = vpop.f32.mrf.mxu1 }
 0x1bf   :  { %v1759_v1 = vpop.f32.mrf.mxu1 }
 0x1c0   :  { %v14301_v61 = vpop.f32.mrf.mxu0 }
 0x1c1   :  { %v17182_v63 = vadd.f32 %v14301_v61, %v17179_v59  ;;  %v14318_v4 = vpop.f32.mrf.mxu1 }
 0x1c2   :  { %v1524_v0 = vpop.f32.mrf.mxu0 }
 0x1c3   :  { %v1525_v2 = vadd.f32 %v17179_v59, %v1524_v0 }
 0x1c4   :  { %v14302_v3 = vpop.f32.mrf.mxu0 }
 0x1c5   :  { %v1762_v5 = vadd.f32 %v1756_v60, %v1525_v2  ;;  %v17186_v6 = vadd.f32 %v14302_v3, %v17179_v59  ;;  %v13441_v3 = vld [vmem:[%s19632_s6] ss:$0 sm:$0xff] }
 0x1c6   :  { %v1527_v35 = vpop.f32.mrf.mxu0 }
 0x1c7   :  { %14676 = vtanh.f32 %v1762_v5  ;;  %v13438_v8 = vmul.f32 -1.442695, %v1762_v5  ;;  %v1528_v60 = vadd.f32 %v17179_v59, %v1527_v35 }
 0x1c8   :  { %v14305_v36 = vpop.f32.mrf.mxu0 }
 0x1c9   :  { %14678 = vpow2.f32 %v13438_v8  ;;  %v17231_v37 = vadd.f32 %v14305_v36, %v17179_v59 }
 0x1ca   :  { %v1540_v38 = vpop.f32.mrf.mxu0 }
 0x1cb   :  { %v17234_v39 = vadd.f32 %v17179_v59, %v1540_v38 }
 0x1cc   :  { %v14306_v40 = vpop.f32.mrf.mxu0 }
 0x1cd   :  { %v17237_v41 = vadd.f32 %v14306_v40, %v17179_v59 }
 0x1ce   :  { %v1543_v42 = vpop.f32.mrf.mxu0 }
 0x1cf   :  { %v17240_v43 = vadd.f32 %v17179_v59, %v1543_v42 }
 0x1d0   :  { %v14309_v44 = vpop.f32.mrf.mxu0 }
 0x1d1   :  { %v17243_v45 = vadd.f32 %v14309_v44, %v17179_v59 }
 0x1d2   :  { %v1556_v46 = vpop.f32.mrf.mxu0 }
 0x1d3   :  { %v17246_v47 = vadd.f32 %v17179_v59, %v1556_v46 }
 0x1d4   :  { %v14677_v7 = vpop.eup %14676  ;;  %v14310_v48 = vpop.f32.mrf.mxu0 }
 0x1d5   :  { %1772 = vrot.lane.b32.xlu0 %v14677_v7, %s15617_s3 }
 0x1d6   :  { %v14679_v9 = vpop.eup %14678  ;;  %v1559_v52 = vpop.f32.mrf.mxu0 }
 0x1d7   :  { %v1766_v10 = vadd.f32 1.0, %v14679_v9  ;;  %v17260_v53 = vadd.f32 %v17179_v59, %v1559_v52 }
 0x1d8   :  { %v1972_v54 = vpop.f32.mrf.mxu0 }
 0x1d9   :  { %14680 = vrcp.f32 %v1766_v10 }
 0x1da   :  { %v14341_v55 = vpop.f32.mrf.mxu0 }
 0x1dc   :  { %v1975_v56 = vpop.f32.mrf.mxu0 }
 0x1de   :  { %v14342_v57 = vpop.f32.mrf.mxu0 }
 0x1e6   :  { %v14681_v11 = vpop.eup %14680 }
 0x1e7   :  { %v1770_v14 = vmul.f32 0.0, %v14681_v11 }
 0x247   :  { %v1773_v12 = vpop.permute.xlu0 %1772 }
 0x248   :  { %v1775_v13 = vmul.f32 %v14681_v11, %v1773_v12 }
 0x24a   :  { %1777 = vrot.lane.b32.xlu0 %v1775_v13, %s15617_s3 }
 0x2bc   :  { %v1778_v16 = vpop.permute.xlu0 %1777 }
 0x2bd   :  { %v17190_v17 = vadd.f32 %v1778_v16, %v1770_v14 }
 0x2bf   :  { %14682 = vtanh.f32 %v17190_v17 }
 0x2cc   :  { %v14683_v30 = vpop.eup %14682 }
 0x2cd   :  { %1783 = vrot.lane.b32.xlu1 %v14683_v30, %s15617_s3 }
 0x33f   :  { %v1784_v32 = vpop.permute.xlu1 %1783 }
 0x340   :  { %v1786_v33 = vmul.f32 %v14681_v11, %v1784_v32 }
 0x342   :  { %v1787_v34 = vpack.c.bf16 %v1786_v33, %v1786_v33 }
 0x344   :  { %1789 = vrot.lane.b32.xlu1 %v1787_v34, %s15618_s23 }
 0x3b6   :  { %v1790_v50 = vpop.permute.xlu1 %1789 }
 0x3b7   :  { %14324 = vmatmul.mubr.msk.bf16.vlgmr.msra.gmra.mxu1 %vm1718_vm2, %v1790_v50 }
 0x3b8   :  { %14328 = vmatpush3.bf16.msra.mxu1 %v14674_v49  ;;  %14331 = vmatprep.mubr.msk.bf16.mxu1 %vm15615_vm1, %v15614_v15 }
 0x3b9   :  { %14329 = vmatprep.subr.bf16.mxu1 %v15614_v15 }
 0x3bc   :  { %14330 = vmatpush3.bf16.msra.mxu1 %v14675_v51 }
 0x3bf   :  { %14332 = vmatmul.mubr.msk.bf16.vlgmr.msra.gmra.mxu1 %vm1718_vm2, %v1790_v50 }
 0x477   :  { %v1828_v61 = vpop.f32.mrf.mxu1 }
 0x478   :  { %v1834_v62 = vadd.f32 %v1828_v61, %v1528_v60 }
 0x479   :  { %v14325_v0 = vpop.f32.mrf.mxu1 }
 0x47a   :  { %14684 = vtanh.f32 %v1834_v62  ;;  %v13440_v12 = vmul.f32 -1.442695, %v1834_v62 }
 0x47b   :  { %v1831_v1 = vpop.f32.mrf.mxu1 }
 0x47d   :  { %v14326_v2 = vpop.f32.mrf.mxu1 }
 0x47f   :  { %v1916_v4 = vpop.f32.mrf.mxu1 }
 0x480   :  { %v1917_v5 = vadd.f32 %v13441_v3, %v1916_v4 }
 0x481   :  { %v14333_v7 = vpop.f32.mrf.mxu1 }
 0x482   :  { %v1978_v8 = vadd.f32 %v1972_v54, %v1917_v5 }
 0x483   :  { %v1919_v9 = vpop.f32.mrf.mxu1 }
 0x484   :  { %14686 = vtanh.f32 %v1978_v8  ;;  %v13447_v13 = vmul.f32 -1.442695, %v1978_v8 }
 0x485   :  { %v14334_v10 = vpop.f32.mrf.mxu1  ;;  %14688 = vpow2.f32 %v13440_v12 }
 0x486   :  { %14690 = vpow2.f32 %v13447_v13 }
 0x487   :  { %v14685_v11 = vpop.eup %14684 }
 0x488   :  { %1844 = vrot.lane.b32.xlu0 %v14685_v11, %s15617_s3 }
 0x491   :  { %v14687_v59 = vpop.eup %14686 }
 0x492   :  { %1988 = vrot.lane.b32.xlu1 %v14687_v59, %s15617_s3  ;;  %v14689_v14 = vpop.eup %14688 }
 0x493   :  { %v1838_v16 = vadd.f32 1.0, %v14689_v14  ;;  %v14691_v18 = vpop.eup %14690 }
 0x494   :  { %v1982_v19 = vadd.f32 1.0, %v14691_v18 }
 0x495   :  { %14692 = vrcp.f32 %v1838_v16 }
 0x496   :  { %14694 = vrcp.f32 %v1982_v19 }
 0x4a2   :  { %v14693_v20 = vpop.eup %14692 }
 0x4a3   :  { %v14695_v23 = vpop.eup %14694  ;;  %v1842_v26 = vmul.f32 %v14693_v20, %v17190_v17 }
 0x4a4   :  { %v1986_v29 = vmul.f32 0.0, %v14695_v23 }
 0x4fa   :  { %v1845_v21 = vpop.permute.xlu0 %1844 }
 0x4fb   :  { %v1847_v22 = vmul.f32 %v14693_v20, %v1845_v21 }
 0x4fd   :  { %1849 = vrot.lane.b32.xlu0 %v1847_v22, %s15617_s3 }
 0x504   :  { %v1989_v24 = vpop.permute.xlu1 %1988 }
 0x505   :  { %v1991_v25 = vmul.f32 %v14695_v23, %v1989_v24 }
 0x507   :  { %1993 = vrot.lane.b32.xlu1 %v1991_v25, %s15617_s3 }
 0x56f   :  { %v1850_v27 = vpop.permute.xlu0 %1849 }
 0x570   :  { %v17271_v28 = vadd.f32 %v1850_v27, %v1842_v26 }
 0x572   :  { %14696 = vtanh.f32 %v17271_v28 }
 0x579   :  { %v1994_v30 = vpop.permute.xlu1 %1993 }
 0x57a   :  { %v17274_v31 = vadd.f32 %v1994_v30, %v1986_v29 }
 0x57c   :  { %14698 = vtanh.f32 %v17274_v31 }
 0x57f   :  { %v14697_v32 = vpop.eup %14696 }
 0x580   :  { %1855 = vrot.lane.b32.xlu0 %v14697_v32, %s15617_s3 }
 0x589   :  { %v14699_v33 = vpop.eup %14698 }
 0x58a   :  { %1999 = vrot.lane.b32.xlu1 %v14699_v33, %s15617_s3 }
 0x5f2   :  { %v1856_v34 = vpop.permute.xlu0 %1855 }
 0x5f3   :  { %v1858_v35 = vmul.f32 %v14693_v20, %v1856_v34 }
 0x5fc   :  { %v2000_v17 = vpop.permute.xlu1 %1999 }
 0x5fd   :  { %v2002_v36 = vmul.f32 %v14695_v23, %v2000_v17 }
 0x5ff   :  { %v2028_v38 = vpack.c.bf16 %v2002_v36, %v2002_v36 }
 0x600   :  { %15592 = dma.done.wait [#allocation3], 5376 }
 0x601   :  { %15593 = vsyncadd [#allocation3], 4294961920  ;;  %2323 = vmatprep.mubr.bf16.mxu1 %v15616_v58  ;;  %2364 = vmatprep.mubr.bf16.mxu0 %v15616_v58  ;;  %v2783_v40 = vpack.c.bf16 %v1858_v35, %v1858_v35  ;;  %v14700_v42 = vld [vmem:[#allocation2 + $0xac] ss:$84 sps:$4 sm:$0xff]   ;;  %v14702_v44 = vld [vmem:[#allocation2 + $0xa8] ss:$84 sps:$4 sm:$0xff]  }
 0x602   :  { %2074 = vrot.lane.b32.xlu0 %v2028_v38, %s15618_s23  ;;  %2303 = vmatprep.subr.bf16.mxu1 %v14700_v42  ;;  %v14703_v46 = vld [vmem:[#allocation2 + $0xb4] ss:$84 sps:$4 sm:$0xff]   ;;  %v14705_v48 = vld [vmem:[#allocation2 + $0xb0] ss:$84 sps:$4 sm:$0xff]   ;;  %v14709_v51 = vld [vmem:[#allocation2 + $0xc] ss:$84 sps:$4 sm:$0xff]  }
 0x603   :  { %2304 = vmatpush1.bf16.msra.mxu1 %v14702_v44  ;;  %v14706_v49 = vld [vmem:[#allocation2 + $0x4] ss:$84 sps:$4 sm:$0xff]   ;;  %v14708_v50 = vld [vmem:[#allocation2] ss:$84 sps:$4 sm:$0xff]   ;;  %2344 = vmatprep.subr.bf16.mxu0 %v14703_v46  ;;  %v14711_v52 = vld [vmem:[#allocation2 + $0x8] ss:$84 sps:$4 sm:$0xff]  }
 0x604   :  { %2345 = vmatpush1.bf16.msra.mxu0 %v14705_v48  ;;  %2305 = vmatprep.subr.bf16.mxu1 %v14706_v49  ;;  %v14714_v54 = vld [vmem:[#allocation2 + $0xbc] ss:$84 sps:$4 sm:$0xff]   ;;  %v14717_v55 = vld [vmem:[#allocation2 + $0xc4] ss:$84 sps:$4 sm:$0xff]   ;;  %v14715_v57 = vld [vmem:[#allocation2 + $0xc0] ss:$84 sps:$4 sm:$0xff]  }
 0x605   :  { %2346 = vmatprep.subr.bf16.mxu0 %v14709_v51  ;;  %v14712_v56 = vld [vmem:[#allocation2 + $0xb8] ss:$84 sps:$4 sm:$0xff]   ;;  %v14720_v60 = vld [vmem:[#allocation2 + $0x14] ss:$84 sps:$4 sm:$0xff]   ;;  %v14723_v61 = vld [vmem:[#allocation2 + $0x1c] ss:$84 sps:$4 sm:$0xff]  }
 0x606   :  { %2789 = vrot.lane.b32.xlu0 %v2783_v40, %s15618_s23  ;;  %v14718_v0 = vld [vmem:[#allocation2 + $0x10] ss:$84 sps:$4 sm:$0xff]   ;;  %v14721_v1 = vld [vmem:[#allocation2 + $0x18] ss:$84 sps:$4 sm:$0xff]   ;;  %v14729_v3 = vld [vmem:[#allocation2 + $0xd4] ss:$84 sps:$4 sm:$0xff]  }
 0x607   :  { %2306 = vmatpush1.bf16.msra.mxu1 %v14708_v50  ;;  %v14726_v2 = vld [vmem:[#allocation2 + $0xcc] ss:$84 sps:$4 sm:$0xff]   ;;  %v14724_v4 = vld [vmem:[#allocation2 + $0xc8] ss:$84 sps:$4 sm:$0xff]   ;;  %v14727_v5 = vld [vmem:[#allocation2 + $0xd0] ss:$84 sps:$4 sm:$0xff]  }
 0x608   :  { %2385 = vmatprep.subr.bf16.mxu1 %v14714_v54  ;;  %2347 = vmatpush1.bf16.msra.mxu0 %v14711_v52  ;;  %v14732_v7 = vld [vmem:[#allocation2 + $0x24] ss:$84 sps:$4 sm:$0xff]   ;;  %v14735_v8 = vld [vmem:[#allocation2 + $0x2c] ss:$84 sps:$4 sm:$0xff]   ;;  %v14733_v10 = vld [vmem:[#allocation2 + $0x28] ss:$84 sps:$4 sm:$0xff]  }
 0x609   :  { %2426 = vmatprep.subr.bf16.mxu0 %v14717_v55  ;;  %v14730_v9 = vld [vmem:[#allocation2 + $0x20] ss:$84 sps:$4 sm:$0xff]   ;;  %v14738_v11 = vld [vmem:[#allocation2 + $0xdc] ss:$84 sps:$4 sm:$0xff]   ;;  %v14741_v59 = vld [vmem:[#allocation2 + $0xe4] ss:$84 sps:$4 sm:$0xff]  }
 0x60a   :  { %v14736_v12 = vld [vmem:[#allocation2 + $0xd8] ss:$84 sps:$4 sm:$0xff]   ;;  %v14739_v13 = vld [vmem:[#allocation2 + $0xe0] ss:$84 sps:$4 sm:$0xff]   ;;  %v14747_v16 = vld [vmem:[#allocation2 + $0x3c] ss:$84 sps:$4 sm:$0xff]  }
 0x60b   :  { %v14744_v14 = vld [vmem:[#allocation2 + $0x34] ss:$84 sps:$4 sm:$0xff]   ;;  %v14742_v18 = vld [vmem:[#allocation2 + $0x30] ss:$84 sps:$4 sm:$0xff]   ;;  %v14745_v19 = vld [vmem:[#allocation2 + $0x38] ss:$84 sps:$4 sm:$0xff]  }
 0x60c   :  { %v14750_v20 = vld [vmem:[#allocation2 + $0xec] ss:$84 sps:$4 sm:$0xff]   ;;  %v14753_v21 = vld [vmem:[#allocation2 + $0xf4] ss:$84 sps:$4 sm:$0xff]   ;;  %v14751_v23 = vld [vmem:[#allocation2 + $0xf0] ss:$84 sps:$4 sm:$0xff]  }
 0x60d   :  { %v14748_v22 = vld [vmem:[#allocation2 + $0xe8] ss:$84 sps:$4 sm:$0xff]   ;;  %v14756_v24 = vld [vmem:[#allocation2 + $0x44] ss:$84 sps:$4 sm:$0xff]   ;;  %v14759_v25 = vld [vmem:[#allocation2 + $0x4c] ss:$84 sps:$4 sm:$0xff]  }
 0x60e   :  { %v14754_v26 = vld [vmem:[#allocation2 + $0x40] ss:$84 sps:$4 sm:$0xff]   ;;  %v14757_v27 = vld [vmem:[#allocation2 + $0x48] ss:$84 sps:$4 sm:$0xff]   ;;  %v14760_v29 = vld [vmem:[#allocation2 + $0xf8] ss:$84 sps:$4 sm:$0xff]  }
 0x60f   :  { %v14761_v30 = vld [vmem:[%s19628_s2 + $0x8] sm:$0xff]   ;;  %v14762_v32 = vld [vmem:[#allocation2 + $0x50] ss:$84 sps:$4 sm:$0xff]   ;;  %v2010_v49 = vld [vmem:[%s19635_s9 + $0x18] sm:$0xff] }
 0x610   :  { %v14763_v33 = vld [vmem:[%s19628_s2] sm:$0xff]   ;;  %v14764_v35 = vld [vmem:[%s19630_s4 + $0x8] sm:$0xff]   ;;  %v2009_v42 = vld [vmem:[%s19635_s9 + $0x10] sm:$0xff] }
 0x611   :  { %v14765_v17 = vld [vmem:[%s19631_s5 + $0x8] sm:$0xff]   ;;  %v14766_v36 = vld [vmem:[%s19630_s4] sm:$0xff]  }
 0x612   :  { %v14767_v38 = vld [vmem:[%s19631_s5] sm:$0xff]   ;;  %v2008_v48 = vld [vmem:[%s19635_s9 + $0x8] sm:$0xff] }
 0x613   :  { %v2007_v40 = vld [vmem:[%s19635_s9] sm:$0xff] }
 0x674   :  { %v17283_v62 = vpop.permute.xlu0 %2074 }
 0x675   :  { %13490 = vmatmul.mubr.msk.bf16.vlgmr.msra.gmra.mxu1 %vm1718_vm2, %v17283_v62  ;;  %13491 = vmatmul.mubr.msk.bf16.vlgmr.msra.gmra.mxu0 %vm1718_vm2, %v17283_v62 }
 0x676   :  { %2386 = vmatpush1.bf16.msra.mxu1 %v14712_v56  ;;  %2427 = vmatpush1.bf16.msra.mxu0 %v14715_v57 }
 0x677   :  { %2387 = vmatprep.subr.bf16.mxu1 %v14720_v60  ;;  %2428 = vmatprep.subr.bf16.mxu0 %v14723_v61 }
 0x678   :  { %2405 = vmatprep.mubr.bf16.mxu1 %v15616_v58  ;;  %2446 = vmatprep.mubr.bf16.mxu0 %v15616_v58  ;;  %v2790_v34 = vpop.permute.xlu0 %2789 }
 0x67a   :  { %2388 = vmatpush1.bf16.msra.mxu1 %v14718_v0  ;;  %2429 = vmatpush1.bf16.msra.mxu0 %v14721_v1  ;;  %v2011_v0 = vld [vmem:[%s19635_s9 + $0x20] sm:$0xff]  ;;  %v2013_v1 = vld [vmem:[%s19635_s9 + $0x30] sm:$0xff] }
 0x67b   :  { %2467 = vmatprep.subr.bf16.mxu1 %v14726_v2  ;;  %2508 = vmatprep.subr.bf16.mxu0 %v14729_v3 }
 0x67d   :  { %13492 = vmatmul.mubr.msk.bf16.vlgmr.msra.gmra.mxu1 %vm1718_vm2, %v17283_v62  ;;  %13493 = vmatmul.mubr.msk.bf16.vlgmr.msra.gmra.mxu0 %vm1718_vm2, %v17283_v62 }
 0x67e   :  { %2468 = vmatpush1.bf16.msra.mxu1 %v14724_v4  ;;  %2509 = vmatpush1.bf16.msra.mxu0 %v14727_v5  ;;  %v2012_v4 = vld [vmem:[%s19635_s9 + $0x28] sm:$0xff]  ;;  %v2014_v5 = vld [vmem:[%s19635_s9 + $0x38] sm:$0xff] }
 0x67f   :  { %2469 = vmatprep.subr.bf16.mxu1 %v14732_v7  ;;  %2510 = vmatprep.subr.bf16.mxu0 %v14735_v8 }
 0x680   :  { %2487 = vmatprep.mubr.bf16.mxu1 %v15616_v58  ;;  %2528 = vmatprep.mubr.bf16.mxu0 %v15616_v58 }
 0x682   :  { %2470 = vmatpush1.bf16.msra.mxu1 %v14730_v9  ;;  %2511 = vmatpush1.bf16.msra.mxu0 %v14733_v10 }
 0x683   :  { %2549 = vmatprep.subr.bf16.mxu1 %v14738_v11  ;;  %2590 = vmatprep.subr.bf16.mxu0 %v14741_v59 }
 0x685   :  { %13494 = vmatmul.mubr.msk.bf16.vlgmr.msra.gmra.mxu1 %vm1718_vm2, %v17283_v62  ;;  %13495 = vmatmul.mubr.msk.bf16.vlgmr.msra.gmra.mxu0 %vm1718_vm2, %v17283_v62 }
 0x686   :  { %2550 = vmatpush1.bf16.msra.mxu1 %v14736_v12  ;;  %2591 = vmatpush1.bf16.msra.mxu0 %v14739_v13 }
 0x687   :  { %2551 = vmatprep.subr.bf16.mxu1 %v14744_v14  ;;  %2592 = vmatprep.subr.bf16.mxu0 %v14747_v16 }
 0x688   :  { %2569 = vmatprep.mubr.bf16.mxu1 %v15616_v58  ;;  %2610 = vmatprep.mubr.bf16.mxu0 %v15616_v58 }
 0x68a   :  { %2552 = vmatpush1.bf16.msra.mxu1 %v14742_v18  ;;  %2593 = vmatpush1.bf16.msra.mxu0 %v14745_v19  ;;  %v2015_v18 = vld [vmem:[%s19635_s9 + $0x40] sm:$0xff]  ;;  %v2017_v19 = vld [vmem:[%s19635_s9 + $0x50] sm:$0xff] }
 0x68b   :  { %2631 = vmatprep.subr.bf16.mxu1 %v14750_v20  ;;  %2672 = vmatprep.subr.bf16.mxu0 %v14753_v21 }
 0x68d   :  { %13496 = vmatmul.mubr.msk.bf16.vlgmr.msra.gmra.mxu1 %vm1718_vm2, %v17283_v62  ;;  %13497 = vmatmul.mubr.msk.bf16.vlgmr.msra.gmra.mxu0 %vm1718_vm2, %v17283_v62 }
 0x68e   :  { %2632 = vmatpush1.bf16.msra.mxu1 %v14748_v22  ;;  %2673 = vmatpush1.bf16.msra.mxu0 %v14751_v23  ;;  %v2016_v22 = vld [vmem:[%s19635_s9 + $0x48] sm:$0xff]  ;;  %v2018_v23 = vld [vmem:[%s19635_s9 + $0x58] sm:$0xff] }
 0x68f   :  { %2633 = vmatprep.subr.bf16.mxu1 %v14756_v24  ;;  %2674 = vmatprep.subr.bf16.mxu0 %v14759_v25 }
 0x690   :  { %2651 = vmatprep.mubr.bf16.mxu1 %v15616_v58  ;;  %2692 = vmatprep.mubr.bf16.mxu0 %v15616_v58 }
 0x692   :  { %2634 = vmatpush1.bf16.msra.mxu1 %v14754_v26  ;;  %2675 = vmatpush1.bf16.msra.mxu0 %v14757_v27 }
 0x693   :  { %14343 = vmatprep.subr.bf16.mxu1 %v15614_v15  ;;  %14351 = vmatprep.subr.bf16.mxu0 %v15614_v15 }
 0x695   :  { %13498 = vmatmul.mubr.msk.bf16.vlgmr.msra.gmra.mxu1 %vm1718_vm2, %v17283_v62  ;;  %13499 = vmatmul.mubr.msk.bf16.vlgmr.msra.gmra.mxu0 %vm1718_vm2, %v17283_v62 }
 0x696   :  { %14344 = vmatpush3.bf16.msra.mxu1 %v14760_v29  ;;  %14352 = vmatpush3.bf16.msra.mxu0 %v14761_v30 }
 0x697   :  { %14345 = vmatprep.subr.bf16.mxu1 %v15614_v15  ;;  %14353 = vmatprep.subr.bf16.mxu0 %v15614_v15 }
 0x698   :  { %14347 = vmatprep.mubr.msk.bf16.mxu1 %vm15615_vm1, %v15614_v15  ;;  %14355 = vmatprep.mubr.msk.bf16.mxu0 %vm15615_vm1, %v15614_v15 }
 0x69a   :  { %14346 = vmatpush3.bf16.msra.mxu1 %v14762_v32  ;;  %14354 = vmatpush3.bf16.msra.mxu0 %v14763_v33 }
 0x69b   :  { %14359 = vmatprep.subr.bf16.mxu1 %v15614_v15  ;;  %14367 = vmatprep.subr.bf16.mxu0 %v15614_v15 }
 0x69d   :  { %14348 = vmatmul.mubr.msk.bf16.vlgmr.msra.gmra.mxu1 %vm1718_vm2, %v17283_v62  ;;  %14356 = vmatmul.mubr.msk.bf16.vlgmr.msra.gmra.mxu0 %vm1718_vm2, %v2790_v34 }
 0x69e   :  { %14360 = vmatpush3.bf16.msra.mxu1 %v14764_v35  ;;  %14368 = vmatpush3.bf16.msra.mxu0 %v14765_v17  ;;  %v2019_v17 = vld [vmem:[%s19635_s9 + $0x60] sm:$0xff] }
 0x69f   :  { %14361 = vmatprep.subr.bf16.mxu1 %v15614_v15  ;;  %14369 = vmatprep.subr.bf16.mxu0 %v15614_v15 }
 0x6a0   :  { %14363 = vmatprep.mubr.msk.bf16.mxu1 %vm15615_vm1, %v15614_v15  ;;  %14371 = vmatprep.mubr.msk.bf16.mxu0 %vm15615_vm1, %v15614_v15 }
 0x6a2   :  { %14362 = vmatpush3.bf16.msra.mxu1 %v14766_v36  ;;  %14370 = vmatpush3.bf16.msra.mxu0 %v14767_v38  ;;  %v2021_v36 = vld [vmem:[%s19635_s9 + $0x70] sm:$0xff] }
 0x6a5   :  { %14364 = vmatmul.mubr.msk.bf16.vlgmr.msra.gmra.mxu1 %vm1718_vm2, %v2790_v34  ;;  %14372 = vmatmul.mubr.msk.bf16.vlgmr.msra.gmra.mxu0 %vm1718_vm2, %v17283_v62 }
 0x735   :  { %v2325_v44 = vpop.f32.mrf.mxu1  ;;  %v2366_v46 = vpop.f32.mrf.mxu0 }
 0x736   :  { %v2741_v50 = vadd.f32 %v2325_v44, %v2007_v40  ;;  %v2743_v51 = vadd.f32 %v2366_v46, %v2009_v42  ;;  %v2020_v42 = vld [vmem:[%s19635_s9 + $0x68] sm:$0xff]  ;;  %v2022_v44 = vld [vmem:[%s19635_s9 + $0x78] sm:$0xff] }
 0x737   :  { %v2327_v52 = vpop.f32.mrf.mxu1  ;;  %v2368_v54 = vpop.f32.mrf.mxu0 }
 0x738   :  { %2762 = vst [vmem:[%s19635_s9] sm:$0xff] %v2741_v50  ;;  %2764 = vst [vmem:[%s19635_s9 + $0x10] sm:$0xff] %v2743_v51  ;;  %v2742_v55 = vadd.f32 %v2327_v52, %v2008_v48  ;;  %v2744_v56 = vadd.f32 %v2368_v54, %v2010_v49 }
 0x739   :  { %v2329_v57 = vpop.f32.mrf.mxu1  ;;  %v2370_v60 = vpop.f32.mrf.mxu0 }
 0x73a   :  { %2763 = vst [vmem:[%s19635_s9 + $0x8] sm:$0xff] %v2742_v55  ;;  %2765 = vst [vmem:[%s19635_s9 + $0x18] sm:$0xff] %v2744_v56  ;;  %v2023_v60 = vld [vmem:[%s19635_s9 + $0x80] sm:$0xff] }
 0x73b   :  { %v2330_v61 = vpop.f32.mrf.mxu1  ;;  %v2371_v62 = vpop.f32.mrf.mxu0 }
 0x73c   :  { %v2025_v61 = vld [vmem:[%s19635_s9 + $0x90] sm:$0xff] }
 0x73d   :  { %v2407_v2 = vpop.f32.mrf.mxu1  ;;  %v2448_v3 = vpop.f32.mrf.mxu0 }
 0x73e   :  { %v2745_v7 = vadd.f32 %v2407_v2, %v2011_v0  ;;  %v2747_v8 = vadd.f32 %v2448_v3, %v2013_v1  ;;  %v2024_v1 = vld [vmem:[%s19635_s9 + $0x88] sm:$0xff]  ;;  %v2026_v2 = vld [vmem:[%s19635_s9 + $0x98] sm:$0xff] }
 0x73f   :  { %v2409_v9 = vpop.f32.mrf.mxu1  ;;  %v2450_v10 = vpop.f32.mrf.mxu0 }
 0x740   :  { %2766 = vst [vmem:[%s19635_s9 + $0x20] sm:$0xff] %v2745_v7  ;;  %2768 = vst [vmem:[%s19635_s9 + $0x30] sm:$0xff] %v2747_v8  ;;  %v2746_v11 = vadd.f32 %v2409_v9, %v2012_v4  ;;  %v2748_v59 = vadd.f32 %v2450_v10, %v2014_v5 }
 0x741   :  { %v2411_v12 = vpop.f32.mrf.mxu1  ;;  %v2452_v13 = vpop.f32.mrf.mxu0 }
 0x742   :  { %2767 = vst [vmem:[%s19635_s9 + $0x28] sm:$0xff] %v2746_v11  ;;  %2769 = vst [vmem:[%s19635_s9 + $0x38] sm:$0xff] %v2748_v59  ;;  %v2027_v13 = vld [vmem:[%s19635_s9 + $0xa0] sm:$0xff] }
 0x743   :  { %v2412_v14 = vpop.f32.mrf.mxu1  ;;  %v2453_v16 = vpop.f32.mrf.mxu0 }
 0x745   :  { %v2489_v20 = vpop.f32.mrf.mxu1  ;;  %v2530_v21 = vpop.f32.mrf.mxu0 }
 0x746   :  { %v2749_v24 = vadd.f32 %v2489_v20, %v2015_v18  ;;  %v2751_v25 = vadd.f32 %v2530_v21, %v2017_v19 }
 0x747   :  { %v2491_v26 = vpop.f32.mrf.mxu1  ;;  %v2532_v27 = vpop.f32.mrf.mxu0 }
 0x748   :  { %2770 = vst [vmem:[%s19635_s9 + $0x40] sm:$0xff] %v2749_v24  ;;  %2772 = vst [vmem:[%s19635_s9 + $0x50] sm:$0xff] %v2751_v25  ;;  %v2750_v29 = vadd.f32 %v2491_v26, %v2016_v22  ;;  %v2752_v30 = vadd.f32 %v2532_v27, %v2018_v23  ;;  %v13505_v26 = vld [vmem:[%s19632_s6] ss:$0 sm:$0xff] }
 0x749   :  { %v2493_v32 = vpop.f32.mrf.mxu1  ;;  %v2534_v33 = vpop.f32.mrf.mxu0 }
 0x74a   :  { %2771 = vst [vmem:[%s19635_s9 + $0x48] sm:$0xff] %v2750_v29  ;;  %2773 = vst [vmem:[%s19635_s9 + $0x58] sm:$0xff] %v2752_v30 }
 0x74b   :  { %v2494_v34 = vpop.f32.mrf.mxu1  ;;  %v2535_v35 = vpop.f32.mrf.mxu0 }
 0x74d   :  { %v2571_v38 = vpop.f32.mrf.mxu1  ;;  %v2612_v40 = vpop.f32.mrf.mxu0 }
 0x74e   :  { %v2753_v46 = vadd.f32 %v2571_v38, %v2019_v17  ;;  %v2755_v48 = vadd.f32 %v2612_v40, %v2021_v36 }
 0x74f   :  { %v2573_v49 = vpop.f32.mrf.mxu1  ;;  %v2614_v50 = vpop.f32.mrf.mxu0 }
 0x750   :  { %2774 = vst [vmem:[%s19635_s9 + $0x60] sm:$0xff] %v2753_v46  ;;  %2776 = vst [vmem:[%s19635_s9 + $0x70] sm:$0xff] %v2755_v48  ;;  %v2754_v51 = vadd.f32 %v2573_v49, %v2020_v42  ;;  %v2756_v52 = vadd.f32 %v2614_v50, %v2022_v44 }
 0x751   :  { %v2575_v54 = vpop.f32.mrf.mxu1  ;;  %v2616_v55 = vpop.f32.mrf.mxu0 }
 0x752   :  { %2775 = vst [vmem:[%s19635_s9 + $0x68] sm:$0xff] %v2754_v51  ;;  %2777 = vst [vmem:[%s19635_s9 + $0x78] sm:$0xff] %v2756_v52 }
 0x753   :  { %v2576_v56 = vpop.f32.mrf.mxu1  ;;  %v2617_v57 = vpop.f32.mrf.mxu0 }
 0x755   :  { %v2653_v62 = vpop.f32.mrf.mxu1  ;;  %v2694_v0 = vpop.f32.mrf.mxu0 }
 0x756   :  { %v2757_v3 = vadd.f32 %v2653_v62, %v2023_v60  ;;  %v2759_v4 = vadd.f32 %v2694_v0, %v2025_v61 }
 0x757   :  { %v2655_v5 = vpop.f32.mrf.mxu1  ;;  %v2696_v7 = vpop.f32.mrf.mxu0 }
 0x758   :  { %2778 = vst [vmem:[%s19635_s9 + $0x80] sm:$0xff] %v2757_v3  ;;  %2780 = vst [vmem:[%s19635_s9 + $0x90] sm:$0xff] %v2759_v4  ;;  %v2758_v8 = vadd.f32 %v2655_v5, %v2024_v1  ;;  %v2760_v9 = vadd.f32 %v2696_v7, %v2026_v2 }
 0x759   :  { %v2657_v10 = vpop.f32.mrf.mxu1  ;;  %v2698_v11 = vpop.f32.mrf.mxu0 }
 0x75a   :  { %2779 = vst [vmem:[%s19635_s9 + $0x88] sm:$0xff] %v2758_v8  ;;  %2781 = vst [vmem:[%s19635_s9 + $0x98] sm:$0xff] %v2760_v9 }
 0x75b   :  { %v2658_v59 = vpop.f32.mrf.mxu1  ;;  %v2699_v12 = vpop.f32.mrf.mxu0 }
 0x75d   :  { %v2735_v14 = vpop.f32.mrf.mxu1  ;;  %v2840_v16 = vpop.f32.mrf.mxu0 }
 0x75e   :  { %v2761_v18 = vadd.f32 %v2735_v14, %v2027_v13  ;;  %v2846_v19 = vadd.f32 %v2840_v16, %v17182_v63 }
 0x75f   :  { %v14349_v20 = vpop.f32.mrf.mxu1  ;;  %v14357_v21 = vpop.f32.mrf.mxu0 }
 0x760   :  { %2782 = vst [vmem:[%s19635_s9 + $0xa0] sm:$0xff] %v2761_v18  ;;  %14768 = vtanh.f32 %v2846_v19  ;;  %v13504_v42 = vmul.f32 -1.442695, %v2846_v19 }
 0x761   :  { %v2738_v22 = vpop.f32.mrf.mxu1  ;;  %v2843_v23 = vpop.f32.mrf.mxu0 }
 0x763   :  { %v14350_v24 = vpop.f32.mrf.mxu1  ;;  %v14358_v25 = vpop.f32.mrf.mxu0 }
 0x765   :  { %v2928_v27 = vpop.f32.mrf.mxu1  ;;  %v2984_v29 = vpop.f32.mrf.mxu0 }
 0x766   :  { %v2929_v30 = vadd.f32 %v13505_v26, %v2928_v27 }
 0x767   :  { %v14365_v32 = vpop.f32.mrf.mxu1  ;;  %v14373_v63 = vpop.f32.mrf.mxu0 }
 0x768   :  { %v2990_v33 = vadd.f32 %v2984_v29, %v2929_v30 }
 0x769   :  { %v2931_v34 = vpop.f32.mrf.mxu1  ;;  %v2987_v35 = vpop.f32.mrf.mxu0 }
 0x76a   :  { %14770 = vtanh.f32 %v2990_v33  ;;  %v13512_v44 = vmul.f32 -1.442695, %v2990_v33 }
 0x76b   :  { %v14366_v17 = vpop.f32.mrf.mxu1  ;;  %v14374_v36 = vpop.f32.mrf.mxu0  ;;  %14772 = vpow2.f32 %v13504_v42 }
 0x76c   :  { %14774 = vpow2.f32 %v13512_v44 }
 0x76d   :  { %v14769_v38 = vpop.eup %14768 }
 0x76e   :  { %2856 = vrot.lane.b32.xlu1 %v14769_v38, %s15617_s3 }
 0x777   :  { %v14771_v40 = vpop.eup %14770 }
 0x778   :  { %3000 = vrot.lane.b32.xlu1 %v14771_v40, %s15617_s3  ;;  %v14773_v46 = vpop.eup %14772 }
 0x779   :  { %v2850_v48 = vadd.f32 1.0, %v14773_v46  ;;  %v14775_v49 = vpop.eup %14774 }
 0x77a   :  { %v2994_v50 = vadd.f32 1.0, %v14775_v49 }
 0x77b   :  { %14776 = vrcp.f32 %v2850_v48 }
 0x77c   :  { %14778 = vrcp.f32 %v2994_v50 }
 0x788   :  { %v14777_v51 = vpop.eup %14776 }
 0x789   :  { %v14779_v55 = vpop.eup %14778  ;;  %v2854_v60 = vmul.f32 %v14777_v51, %v17271_v28 }
 0x78a   :  { %v2998_v0 = vmul.f32 %v14779_v55, %v17274_v31 }
 0x7e0   :  { %v2857_v52 = vpop.permute.xlu1 %2856 }
 0x7e1   :  { %v2859_v54 = vmul.f32 %v14777_v51, %v2857_v52 }
 0x7e3   :  { %2861 = vrot.lane.b32.xlu0 %v2859_v54, %s15617_s3 }
 0x7ea   :  { %v3001_v56 = vpop.permute.xlu1 %3000 }
 0x7eb   :  { %v3003_v57 = vmul.f32 %v14779_v55, %v3001_v56 }
 0x7ed   :  { %3005 = vrot.lane.b32.xlu1 %v3003_v57, %s15617_s3 }
 0x855   :  { %v2862_v61 = vpop.permute.xlu0 %2861 }
 0x856   :  { %v17488_v62 = vadd.f32 %v2862_v61, %v2854_v60 }
 0x858   :  { %14780 = vtanh.f32 %v17488_v62 }
 0x85f   :  { %v3006_v1 = vpop.permute.xlu1 %3005 }
 0x860   :  { %v17492_v2 = vadd.f32 %v3006_v1, %v2998_v0 }
 0x862   :  { %14782 = vtanh.f32 %v17492_v2 }
 0x865   :  { %v14781_v3 = vpop.eup %14780 }
 0x866   :  { %2867 = vrot.lane.b32.xlu0 %v14781_v3, %s15617_s3 }
 0x86f   :  { %v14783_v4 = vpop.eup %14782 }
 0x870   :  { %3011 = vrot.lane.b32.xlu1 %v14783_v4, %s15617_s3 }
 0x8d8   :  { %v2868_v5 = vpop.permute.xlu0 %2867 }
 0x8d9   :  { %v2870_v28 = vmul.f32 %v14777_v51, %v2868_v5 }
 0x8e2   :  { %v3012_v7 = vpop.permute.xlu1 %3011 }
 0x8e3   :  { %v3014_v8 = vmul.f32 %v14779_v55, %v3012_v7 }
 0x8e5   :  { %v3038_v9 = vpack.c.bf16 %v3014_v8, %v3014_v8 }
 0x8e6   :  { %15594 = dma.done.wait [#allocation3 + $0x1], 5376 }
 0x8e7   :  { %15595 = vsyncadd [#allocation3 + $0x1], 4294961920  ;;  %3333 = vmatprep.mubr.bf16.mxu1 %v15616_v58  ;;  %3374 = vmatprep.mubr.bf16.mxu0 %v15616_v58  ;;  %v3793_v31 = vpack.c.bf16 %v2870_v28, %v2870_v28  ;;  %v14784_v10 = vld [vmem:[#allocation2 + $0x1fc] ss:$84 sps:$4 sm:$0xff]   ;;  %v14786_v11 = vld [vmem:[#allocation2 + $0x1f8] ss:$84 sps:$4 sm:$0xff]  }
 0x8e8   :  { %3084 = vrot.lane.b32.xlu0 %v3038_v9, %s15618_s23  ;;  %3313 = vmatprep.subr.bf16.mxu1 %v14784_v10  ;;  %v14787_v59 = vld [vmem:[#allocation2 + $0x204] ss:$84 sps:$4 sm:$0xff]   ;;  %v14789_v12 = vld [vmem:[#allocation2 + $0x200] ss:$84 sps:$4 sm:$0xff]   ;;  %v14793_v16 = vld [vmem:[#allocation2 + $0x15c] ss:$84 sps:$4 sm:$0xff]  }
 0x8e9   :  { %3314 = vmatpush1.bf16.msra.mxu1 %v14786_v11  ;;  %v14790_v13 = vld [vmem:[#allocation2 + $0x154] ss:$84 sps:$4 sm:$0xff]   ;;  %v14792_v14 = vld [vmem:[#allocation2 + $0x150] ss:$84 sps:$4 sm:$0xff]   ;;  %3354 = vmatprep.subr.bf16.mxu0 %v14787_v59  ;;  %v14795_v18 = vld [vmem:[#allocation2 + $0x158] ss:$84 sps:$4 sm:$0xff]  }
 0x8ea   :  { %3355 = vmatpush1.bf16.msra.mxu0 %v14789_v12  ;;  %3315 = vmatprep.subr.bf16.mxu1 %v14790_v13  ;;  %v14798_v19 = vld [vmem:[#allocation2 + $0x20c] ss:$84 sps:$4 sm:$0xff]   ;;  %v14801_v20 = vld [vmem:[#allocation2 + $0x214] ss:$84 sps:$4 sm:$0xff]   ;;  %v14799_v22 = vld [vmem:[#allocation2 + $0x210] ss:$84 sps:$4 sm:$0xff]  }
 0x8eb   :  { %3356 = vmatprep.subr.bf16.mxu0 %v14793_v16  ;;  %v14796_v21 = vld [vmem:[#allocation2 + $0x208] ss:$84 sps:$4 sm:$0xff]   ;;  %v14804_v23 = vld [vmem:[#allocation2 + $0x164] ss:$84 sps:$4 sm:$0xff]   ;;  %v14807_v24 = vld [vmem:[#allocation2 + $0x16c] ss:$84 sps:$4 sm:$0xff]  }
 0x8ec   :  { %3799 = vrot.lane.b32.xlu0 %v3793_v31, %s15618_s23  ;;  %v14802_v26 = vld [vmem:[#allocation2 + $0x160] ss:$84 sps:$4 sm:$0xff]   ;;  %v14805_v27 = vld [vmem:[#allocation2 + $0x168] ss:$84 sps:$4 sm:$0xff]   ;;  %v14813_v30 = vld [vmem:[#allocation2 + $0x224] ss:$84 sps:$4 sm:$0xff]  }
 0x8ed   :  { %3316 = vmatpush1.bf16.msra.mxu1 %v14792_v14  ;;  %v14810_v29 = vld [vmem:[#allocation2 + $0x21c] ss:$84 sps:$4 sm:$0xff]   ;;  %v14808_v32 = vld [vmem:[#allocation2 + $0x218] ss:$84 sps:$4 sm:$0xff]   ;;  %v14811_v63 = vld [vmem:[#allocation2 + $0x220] ss:$84 sps:$4 sm:$0xff]  }
 0x8ee   :  { %3395 = vmatprep.subr.bf16.mxu1 %v14798_v19  ;;  %3357 = vmatpush1.bf16.msra.mxu0 %v14795_v18  ;;  %v14816_v33 = vld [vmem:[#allocation2 + $0x174] ss:$84 sps:$4 sm:$0xff]   ;;  %v14819_v34 = vld [vmem:[#allocation2 + $0x17c] ss:$84 sps:$4 sm:$0xff]   ;;  %v14817_v17 = vld [vmem:[#allocation2 + $0x178] ss:$84 sps:$4 sm:$0xff]  }
 0x8ef   :  { %3436 = vmatprep.subr.bf16.mxu0 %v14801_v20  ;;  %v14814_v35 = vld [vmem:[#allocation2 + $0x170] ss:$84 sps:$4 sm:$0xff]   ;;  %v14822_v36 = vld [vmem:[#allocation2 + $0x22c] ss:$84 sps:$4 sm:$0xff]   ;;  %v14825_v38 = vld [vmem:[#allocation2 + $0x234] ss:$84 sps:$4 sm:$0xff]  }
 0x8f0   :  { %v14820_v40 = vld [vmem:[#allocation2 + $0x228] ss:$84 sps:$4 sm:$0xff]   ;;  %v14823_v42 = vld [vmem:[#allocation2 + $0x230] ss:$84 sps:$4 sm:$0xff]   ;;  %v14831_v46 = vld [vmem:[#allocation2 + $0x18c] ss:$84 sps:$4 sm:$0xff]  }
 0x8f1   :  { %v14828_v44 = vld [vmem:[#allocation2 + $0x184] ss:$84 sps:$4 sm:$0xff]   ;;  %v14826_v48 = vld [vmem:[#allocation2 + $0x180] ss:$84 sps:$4 sm:$0xff]   ;;  %v14829_v49 = vld [vmem:[#allocation2 + $0x188] ss:$84 sps:$4 sm:$0xff]  }
 0x8f2   :  { %v14834_v50 = vld [vmem:[#allocation2 + $0x23c] ss:$84 sps:$4 sm:$0xff]   ;;  %v14837_v51 = vld [vmem:[#allocation2 + $0x244] ss:$84 sps:$4 sm:$0xff]   ;;  %v14835_v54 = vld [vmem:[#allocation2 + $0x240] ss:$84 sps:$4 sm:$0xff]  }
 0x8f3   :  { %v14832_v52 = vld [vmem:[#allocation2 + $0x238] ss:$84 sps:$4 sm:$0xff]   ;;  %v14840_v55 = vld [vmem:[#allocation2 + $0x194] ss:$84 sps:$4 sm:$0xff]   ;;  %v14843_v56 = vld [vmem:[#allocation2 + $0x19c] ss:$84 sps:$4 sm:$0xff]  }
 0x8f4   :  { %v14838_v57 = vld [vmem:[#allocation2 + $0x190] ss:$84 sps:$4 sm:$0xff]   ;;  %v14841_v60 = vld [vmem:[#allocation2 + $0x198] ss:$84 sps:$4 sm:$0xff]   ;;  %v14844_v61 = vld [vmem:[#allocation2 + $0x248] ss:$84 sps:$4 sm:$0xff]  }
 0x8f5   :  { %v14845_v0 = vld [vmem:[%s19628_s2 + $0x8] sm:$0xff]   ;;  %v14846_v1 = vld [vmem:[#allocation2 + $0x1a0] ss:$84 sps:$4 sm:$0xff]   ;;  %v3020_v12 = vld [vmem:[%s19635_s9 + $0x18] sm:$0xff] }
 0x8f6   :  { %v14847_v3 = vld [vmem:[%s19628_s2] sm:$0xff]   ;;  %v14848_v5 = vld [vmem:[%s19630_s4 + $0x8] sm:$0xff]   ;;  %v3019_v31 = vld [vmem:[%s19635_s9 + $0x10] sm:$0xff] }
 0x8f7   :  { %v14849_v28 = vld [vmem:[%s19631_s5 + $0x8] sm:$0xff]   ;;  %v14850_v7 = vld [vmem:[%s19630_s4] sm:$0xff]  }
 0x8f8   :  { %v14851_v8 = vld [vmem:[%s19631_s5] sm:$0xff]   ;;  %v3018_v59 = vld [vmem:[%s19635_s9 + $0x8] sm:$0xff] }
 0x8f9   :  { %v3017_v9 = vld [vmem:[%s19635_s9] sm:$0xff] }
 0x95a   :  { %v17501_v25 = vpop.permute.xlu0 %3084 }
 0x95b   :  { %13555 = vmatmul.mubr.msk.bf16.vlgmr.msra.gmra.mxu1 %vm1718_vm2, %v17501_v25  ;;  %13556 = vmatmul.mubr.msk.bf16.vlgmr.msra.gmra.mxu0 %vm1718_vm2, %v17501_v25 }
 0x95c   :  { %3396 = vmatpush1.bf16.msra.mxu1 %v14796_v21  ;;  %3437 = vmatpush1.bf16.msra.mxu0 %v14799_v22 }
 0x95d   :  { %3397 = vmatprep.subr.bf16.mxu1 %v14804_v23  ;;  %3438 = vmatprep.subr.bf16.mxu0 %v14807_v24 }
 0x95e   :  { %3415 = vmatprep.mubr.bf16.mxu1 %v15616_v58  ;;  %3456 = vmatprep.mubr.bf16.mxu0 %v15616_v58  ;;  %v3800_v4 = vpop.permute.xlu0 %3799 }
 0x960   :  { %3398 = vmatpush1.bf16.msra.mxu1 %v14802_v26  ;;  %3439 = vmatpush1.bf16.msra.mxu0 %v14805_v27  ;;  %v3023_v26 = vld [vmem:[%s19635_s9 + $0x30] sm:$0xff] }
 0x961   :  { %3477 = vmatprep.subr.bf16.mxu1 %v14810_v29  ;;  %3518 = vmatprep.subr.bf16.mxu0 %v14813_v30  ;;  %v3022_v30 = vld [vmem:[%s19635_s9 + $0x28] sm:$0xff] }
 0x963   :  { %13557 = vmatmul.mubr.msk.bf16.vlgmr.msra.gmra.mxu1 %vm1718_vm2, %v17501_v25  ;;  %13558 = vmatmul.mubr.msk.bf16.vlgmr.msra.gmra.mxu0 %vm1718_vm2, %v17501_v25 }
 0x964   :  { %3478 = vmatpush1.bf16.msra.mxu1 %v14808_v32  ;;  %3519 = vmatpush1.bf16.msra.mxu0 %v14811_v63  ;;  %v3024_v32 = vld [vmem:[%s19635_s9 + $0x38] sm:$0xff] }
 0x965   :  { %3479 = vmatprep.subr.bf16.mxu1 %v14816_v33  ;;  %3520 = vmatprep.subr.bf16.mxu0 %v14819_v34 }
 0x966   :  { %3497 = vmatprep.mubr.bf16.mxu1 %v15616_v58  ;;  %3538 = vmatprep.mubr.bf16.mxu0 %v15616_v58 }
 0x968   :  { %3480 = vmatpush1.bf16.msra.mxu1 %v14814_v35  ;;  %3521 = vmatpush1.bf16.msra.mxu0 %v14817_v17 }
 0x969   :  { %3559 = vmatprep.subr.bf16.mxu1 %v14822_v36  ;;  %3600 = vmatprep.subr.bf16.mxu0 %v14825_v38 }
 0x96b   :  { %13559 = vmatmul.mubr.msk.bf16.vlgmr.msra.gmra.mxu1 %vm1718_vm2, %v17501_v25  ;;  %13560 = vmatmul.mubr.msk.bf16.vlgmr.msra.gmra.mxu0 %vm1718_vm2, %v17501_v25 }
 0x96c   :  { %3560 = vmatpush1.bf16.msra.mxu1 %v14820_v40  ;;  %3601 = vmatpush1.bf16.msra.mxu0 %v14823_v42 }
 0x96d   :  { %3561 = vmatprep.subr.bf16.mxu1 %v14828_v44  ;;  %3602 = vmatprep.subr.bf16.mxu0 %v14831_v46  ;;  %v3025_v46 = vld [vmem:[%s19635_s9 + $0x40] sm:$0xff] }
 0x96e   :  { %3579 = vmatprep.mubr.bf16.mxu1 %v15616_v58  ;;  %3620 = vmatprep.mubr.bf16.mxu0 %v15616_v58 }
 0x970   :  { %3562 = vmatpush1.bf16.msra.mxu1 %v14826_v48  ;;  %3603 = vmatpush1.bf16.msra.mxu0 %v14829_v49  ;;  %v3027_v48 = vld [vmem:[%s19635_s9 + $0x50] sm:$0xff] }
 0x971   :  { %3641 = vmatprep.subr.bf16.mxu1 %v14834_v50  ;;  %3682 = vmatprep.subr.bf16.mxu0 %v14837_v51  ;;  %v3026_v51 = vld [vmem:[%s19635_s9 + $0x48] sm:$0xff] }
 0x973   :  { %13561 = vmatmul.mubr.msk.bf16.vlgmr.msra.gmra.mxu1 %vm1718_vm2, %v17501_v25  ;;  %13562 = vmatmul.mubr.msk.bf16.vlgmr.msra.gmra.mxu0 %vm1718_vm2, %v17501_v25 }
 0x974   :  { %3642 = vmatpush1.bf16.msra.mxu1 %v14832_v52  ;;  %3683 = vmatpush1.bf16.msra.mxu0 %v14835_v54  ;;  %v3028_v52 = vld [vmem:[%s19635_s9 + $0x58] sm:$0xff] }
 0x975   :  { %3643 = vmatprep.subr.bf16.mxu1 %v14840_v55  ;;  %3684 = vmatprep.subr.bf16.mxu0 %v14843_v56 }
 0x976   :  { %3661 = vmatprep.mubr.bf16.mxu1 %v15616_v58  ;;  %3702 = vmatprep.mubr.bf16.mxu0 %v15616_v58 }
 0x978   :  { %3644 = vmatpush1.bf16.msra.mxu1 %v14838_v57  ;;  %3685 = vmatpush1.bf16.msra.mxu0 %v14841_v60 }
 0x979   :  { %14375 = vmatprep.subr.bf16.mxu1 %v15614_v15  ;;  %14383 = vmatprep.subr.bf16.mxu0 %v15614_v15 }
 0x97b   :  { %13563 = vmatmul.mubr.msk.bf16.vlgmr.msra.gmra.mxu1 %vm1718_vm2, %v17501_v25  ;;  %13564 = vmatmul.mubr.msk.bf16.vlgmr.msra.gmra.mxu0 %vm1718_vm2, %v17501_v25 }
 0x97c   :  { %14376 = vmatpush3.bf16.msra.mxu1 %v14844_v61  ;;  %14384 = vmatpush3.bf16.msra.mxu0 %v14845_v0 }
 0x97d   :  { %14377 = vmatprep.subr.bf16.mxu1 %v15614_v15  ;;  %14385 = vmatprep.subr.bf16.mxu0 %v15614_v15 }
 0x97e   :  { %14379 = vmatprep.mubr.msk.bf16.mxu1 %vm15615_vm1, %v15614_v15  ;;  %14387 = vmatprep.mubr.msk.bf16.mxu0 %vm15615_vm1, %v15614_v15 }
 0x980   :  { %14378 = vmatpush3.bf16.msra.mxu1 %v14846_v1  ;;  %14386 = vmatpush3.bf16.msra.mxu0 %v14847_v3 }
 0x981   :  { %14391 = vmatprep.subr.bf16.mxu1 %v15614_v15  ;;  %14399 = vmatprep.subr.bf16.mxu0 %v15614_v15 }
 0x983   :  { %14380 = vmatmul.mubr.msk.bf16.vlgmr.msra.gmra.mxu1 %vm1718_vm2, %v17501_v25  ;;  %14388 = vmatmul.mubr.msk.bf16.vlgmr.msra.gmra.mxu0 %vm1718_vm2, %v3800_v4 }
 0x984   :  { %14392 = vmatpush3.bf16.msra.mxu1 %v14848_v5  ;;  %14400 = vmatpush3.bf16.msra.mxu0 %v14849_v28  ;;  %v3029_v5 = vld [vmem:[%s19635_s9 + $0x60] sm:$0xff]  ;;  %v3031_v28 = vld [vmem:[%s19635_s9 + $0x70] sm:$0xff] }
 0x985   :  { %14393 = vmatprep.subr.bf16.mxu1 %v15614_v15  ;;  %14401 = vmatprep.subr.bf16.mxu0 %v15614_v15 }
 0x986   :  { %14395 = vmatprep.mubr.msk.bf16.mxu1 %vm15615_vm1, %v15614_v15  ;;  %14403 = vmatprep.mubr.msk.bf16.mxu0 %vm15615_vm1, %v15614_v15 }
 0x988   :  { %14394 = vmatpush3.bf16.msra.mxu1 %v14850_v7  ;;  %14402 = vmatpush3.bf16.msra.mxu0 %v14851_v8 }
 0x98b   :  { %14396 = vmatmul.mubr.msk.bf16.vlgmr.msra.gmra.mxu1 %vm1718_vm2, %v3800_v4  ;;  %14404 = vmatmul.mubr.msk.bf16.vlgmr.msra.gmra.mxu0 %vm1718_vm2, %v17501_v25  ;;  %v3021_v25 = vld [vmem:[%s19635_s9 + $0x20] sm:$0xff] }
 0xa1b   :  { %v3335_v10 = vpop.f32.mrf.mxu1  ;;  %v3376_v11 = vpop.f32.mrf.mxu0 }
 0xa1c   :  { %v3751_v13 = vadd.f32 %v3335_v10, %v3017_v9  ;;  %v3753_v14 = vadd.f32 %v3376_v11, %v3019_v31  ;;  %v3030_v9 = vld [vmem:[%s19635_s9 + $0x68] sm:$0xff]  ;;  %v3032_v31 = vld [vmem:[%s19635_s9 + $0x78] sm:$0xff] }
 0xa1d   :  { %v3337_v16 = vpop.f32.mrf.mxu1  ;;  %v3378_v18 = vpop.f32.mrf.mxu0 }
 0xa1e   :  { %3772 = vst [vmem:[%s19635_s9] sm:$0xff] %v3751_v13  ;;  %3774 = vst [vmem:[%s19635_s9 + $0x10] sm:$0xff] %v3753_v14  ;;  %v3752_v19 = vadd.f32 %v3337_v16, %v3018_v59  ;;  %v3754_v20 = vadd.f32 %v3378_v18, %v3020_v12 }
 0xa1f   :  { %v3339_v21 = vpop.f32.mrf.mxu1  ;;  %v3380_v22 = vpop.f32.mrf.mxu0 }
 0xa20   :  { %3773 = vst [vmem:[%s19635_s9 + $0x8] sm:$0xff] %v3752_v19  ;;  %3775 = vst [vmem:[%s19635_s9 + $0x18] sm:$0xff] %v3754_v20  ;;  %v3033_v21 = vld [vmem:[%s19635_s9 + $0x80] sm:$0xff]  ;;  %v3035_v22 = vld [vmem:[%s19635_s9 + $0x90] sm:$0xff] }
 0xa21   :  { %v3340_v23 = vpop.f32.mrf.mxu1  ;;  %v3381_v24 = vpop.f32.mrf.mxu0 }
 0xa23   :  { %v3417_v27 = vpop.f32.mrf.mxu1  ;;  %v3458_v29 = vpop.f32.mrf.mxu0 }
 0xa24   :  { %v3755_v63 = vadd.f32 %v3417_v27, %v3021_v25  ;;  %v3757_v33 = vadd.f32 %v3458_v29, %v3023_v26  ;;  %v3034_v25 = vld [vmem:[%s19635_s9 + $0x88] sm:$0xff]  ;;  %v3036_v26 = vld [vmem:[%s19635_s9 + $0x98] sm:$0xff] }
 0xa25   :  { %v3419_v34 = vpop.f32.mrf.mxu1  ;;  %v3460_v35 = vpop.f32.mrf.mxu0 }
 0xa26   :  { %3776 = vst [vmem:[%s19635_s9 + $0x20] sm:$0xff] %v3755_v63  ;;  %3778 = vst [vmem:[%s19635_s9 + $0x30] sm:$0xff] %v3757_v33  ;;  %v3756_v17 = vadd.f32 %v3419_v34, %v3022_v30  ;;  %v3758_v36 = vadd.f32 %v3460_v35, %v3024_v32 }
 0xa27   :  { %v3421_v38 = vpop.f32.mrf.mxu1  ;;  %v3462_v40 = vpop.f32.mrf.mxu0 }
 0xa28   :  { %3777 = vst [vmem:[%s19635_s9 + $0x28] sm:$0xff] %v3756_v17  ;;  %3779 = vst [vmem:[%s19635_s9 + $0x38] sm:$0xff] %v3758_v36  ;;  %v3037_v38 = vld [vmem:[%s19635_s9 + $0xa0] sm:$0xff] }
 0xa29   :  { %v3422_v42 = vpop.f32.mrf.mxu1  ;;  %v3463_v44 = vpop.f32.mrf.mxu0 }
 0xa2b   :  { %v3499_v49 = vpop.f32.mrf.mxu1  ;;  %v3540_v50 = vpop.f32.mrf.mxu0 }
 0xa2c   :  { %v3759_v54 = vadd.f32 %v3499_v49, %v3025_v46  ;;  %v3761_v55 = vadd.f32 %v3540_v50, %v3027_v48 }
 0xa2d   :  { %v3501_v56 = vpop.f32.mrf.mxu1  ;;  %v3542_v57 = vpop.f32.mrf.mxu0 }
 0xa2e   :  { %3780 = vst [vmem:[%s19635_s9 + $0x40] sm:$0xff] %v3759_v54  ;;  %3782 = vst [vmem:[%s19635_s9 + $0x50] sm:$0xff] %v3761_v55  ;;  %v3760_v60 = vadd.f32 %v3501_v56, %v3026_v51  ;;  %v3762_v61 = vadd.f32 %v3542_v57, %v3028_v52  ;;  %v13570_v55 = vld [vmem:[%s19632_s6] ss:$0 sm:$0xff] }
 0xa2f   :  { %v3503_v0 = vpop.f32.mrf.mxu1  ;;  %v3544_v1 = vpop.f32.mrf.mxu0 }
 0xa30   :  { %3781 = vst [vmem:[%s19635_s9 + $0x48] sm:$0xff] %v3760_v60  ;;  %3783 = vst [vmem:[%s19635_s9 + $0x58] sm:$0xff] %v3762_v61 }
 0xa31   :  { %v3504_v3 = vpop.f32.mrf.mxu1  ;;  %v3545_v4 = vpop.f32.mrf.mxu0 }
 0xa33   :  { %v3581_v7 = vpop.f32.mrf.mxu1  ;;  %v3622_v8 = vpop.f32.mrf.mxu0 }
 0xa34   :  { %v3763_v10 = vadd.f32 %v3581_v7, %v3029_v5  ;;  %v3765_v11 = vadd.f32 %v3622_v8, %v3031_v28 }
 0xa35   :  { %v3583_v59 = vpop.f32.mrf.mxu1  ;;  %v3624_v12 = vpop.f32.mrf.mxu0 }
 0xa36   :  { %3784 = vst [vmem:[%s19635_s9 + $0x60] sm:$0xff] %v3763_v10  ;;  %3786 = vst [vmem:[%s19635_s9 + $0x70] sm:$0xff] %v3765_v11  ;;  %v3764_v13 = vadd.f32 %v3583_v59, %v3030_v9  ;;  %v3766_v14 = vadd.f32 %v3624_v12, %v3032_v31 }
 0xa37   :  { %v3585_v16 = vpop.f32.mrf.mxu1  ;;  %v3626_v18 = vpop.f32.mrf.mxu0 }
 0xa38   :  { %3785 = vst [vmem:[%s19635_s9 + $0x68] sm:$0xff] %v3764_v13  ;;  %3787 = vst [vmem:[%s19635_s9 + $0x78] sm:$0xff] %v3766_v14 }
 0xa39   :  { %v3586_v19 = vpop.f32.mrf.mxu1  ;;  %v3627_v20 = vpop.f32.mrf.mxu0 }
 0xa3b   :  { %v3663_v23 = vpop.f32.mrf.mxu1  ;;  %v3704_v24 = vpop.f32.mrf.mxu0 }
 0xa3c   :  { %v3767_v27 = vadd.f32 %v3663_v23, %v3033_v21  ;;  %v3769_v29 = vadd.f32 %v3704_v24, %v3035_v22 }
 0xa3d   :  { %v3665_v30 = vpop.f32.mrf.mxu1  ;;  %v3706_v32 = vpop.f32.mrf.mxu0 }
 0xa3e   :  { %3788 = vst [vmem:[%s19635_s9 + $0x80] sm:$0xff] %v3767_v27  ;;  %3790 = vst [vmem:[%s19635_s9 + $0x90] sm:$0xff] %v3769_v29  ;;  %v3768_v63 = vadd.f32 %v3665_v30, %v3034_v25  ;;  %v3770_v33 = vadd.f32 %v3706_v32, %v3036_v26 }
 0xa3f   :  { %v3667_v34 = vpop.f32.mrf.mxu1  ;;  %v3708_v35 = vpop.f32.mrf.mxu0 }
 0xa40   :  { %3789 = vst [vmem:[%s19635_s9 + $0x88] sm:$0xff] %v3768_v63  ;;  %3791 = vst [vmem:[%s19635_s9 + $0x98] sm:$0xff] %v3770_v33 }
 0xa41   :  { %v3668_v17 = vpop.f32.mrf.mxu1  ;;  %v3709_v36 = vpop.f32.mrf.mxu0 }
 0xa43   :  { %v3745_v40 = vpop.f32.mrf.mxu1  ;;  %v3850_v42 = vpop.f32.mrf.mxu0 }
 0xa44   :  { %v3771_v44 = vadd.f32 %v3745_v40, %v3037_v38  ;;  %v3856_v46 = vadd.f32 %v3850_v42, %v17186_v6 }
 0xa45   :  { %v14381_v48 = vpop.f32.mrf.mxu1  ;;  %v14389_v49 = vpop.f32.mrf.mxu0 }
 0xa46   :  { %3792 = vst [vmem:[%s19635_s9 + $0xa0] sm:$0xff] %v3771_v44  ;;  %14852 = vtanh.f32 %v3856_v46  ;;  %v13569_v8 = vmul.f32 -1.442695, %v3856_v46 }
 0xa47   :  { %v3748_v50 = vpop.f32.mrf.mxu1  ;;  %v3853_v51 = vpop.f32.mrf.mxu0 }
 0xa49   :  { %v14382_v52 = vpop.f32.mrf.mxu1  ;;  %v14390_v54 = vpop.f32.mrf.mxu0 }
 0xa4b   :  { %v3938_v56 = vpop.f32.mrf.mxu1  ;;  %v3994_v57 = vpop.f32.mrf.mxu0 }
 0xa4c   :  { %v3939_v60 = vadd.f32 %v13570_v55, %v3938_v56 }
 0xa4d   :  { %v14397_v61 = vpop.f32.mrf.mxu1  ;;  %v14405_v6 = vpop.f32.mrf.mxu0 }
 0xa4e   :  { %v4000_v0 = vadd.f32 %v3994_v57, %v3939_v60 }
 0xa4f   :  { %v3941_v1 = vpop.f32.mrf.mxu1  ;;  %v3997_v3 = vpop.f32.mrf.mxu0 }
 0xa50   :  { %14854 = vtanh.f32 %v4000_v0  ;;  %v13577_v9 = vmul.f32 -1.442695, %v4000_v0 }
 0xa51   :  { %v14398_v4 = vpop.f32.mrf.mxu1  ;;  %v14406_v5 = vpop.f32.mrf.mxu0  ;;  %14856 = vpow2.f32 %v13569_v8 }
 0xa52   :  { %14858 = vpow2.f32 %v13577_v9 }
 0xa53   :  { %v14853_v28 = vpop.eup %14852 }
 0xa54   :  { %3866 = vrot.lane.b32.xlu1 %v14853_v28, %s15617_s3 }
 0xa5d   :  { %v14855_v7 = vpop.eup %14854 }
 0xa5e   :  { %4010 = vrot.lane.b32.xlu1 %v14855_v7, %s15617_s3  ;;  %v14857_v31 = vpop.eup %14856 }
 0xa5f   :  { %v3860_v10 = vadd.f32 1.0, %v14857_v31  ;;  %v14859_v11 = vpop.eup %14858 }
 0xa60   :  { %v4004_v59 = vadd.f32 1.0, %v14859_v11 }
 0xa61   :  { %14860 = vrcp.f32 %v3860_v10 }
 0xa62   :  { %14862 = vrcp.f32 %v4004_v59 }
 0xa6e   :  { %v14861_v12 = vpop.eup %14860 }
 0xa6f   :  { %v14863_v16 = vpop.eup %14862  ;;  %v3864_v20 = vmul.f32 %v14861_v12, %v17488_v62 }
 0xa70   :  { %v4008_v23 = vmul.f32 %v14863_v16, %v17492_v2 }
 0xac6   :  { %v3867_v13 = vpop.permute.xlu1 %3866 }
 0xac7   :  { %v3869_v14 = vmul.f32 %v14861_v12, %v3867_v13 }
 0xac9   :  { %3871 = vrot.lane.b32.xlu0 %v3869_v14, %s15617_s3 }
 0xad0   :  { %v4011_v18 = vpop.permute.xlu1 %4010 }
 0xad1   :  { %v4013_v19 = vmul.f32 %v14863_v16, %v4011_v18 }
 0xad3   :  { %4015 = vrot.lane.b32.xlu1 %v4013_v19, %s15617_s3 }
 0xb3b   :  { %v3872_v21 = vpop.permute.xlu0 %3871 }
 0xb3c   :  { %v17706_v22 = vadd.f32 %v3872_v21, %v3864_v20 }
 0xb3e   :  { %14864 = vtanh.f32 %v17706_v22 }
 0xb45   :  { %v4016_v24 = vpop.permute.xlu1 %4015 }
 0xb46   :  { %v17710_v25 = vadd.f32 %v4016_v24, %v4008_v23 }
 0xb48   :  { %14866 = vtanh.f32 %v17710_v25 }
 0xb4b   :  { %v14865_v26 = vpop.eup %14864 }
 0xb4c   :  { %3877 = vrot.lane.b32.xlu0 %v14865_v26, %s15617_s3 }
 0xb55   :  { %v14867_v27 = vpop.eup %14866 }
 0xb56   :  { %4021 = vrot.lane.b32.xlu1 %v14867_v27, %s15617_s3 }
 0xbbe   :  { %v3878_v29 = vpop.permute.xlu0 %3877 }
 0xbbf   :  { %v3880_v62 = vmul.f32 %v14861_v12, %v3878_v29 }
 0xbc8   :  { %v4022_v30 = vpop.permute.xlu1 %4021 }
 0xbc9   :  { %v4024_v32 = vmul.f32 %v14863_v16, %v4022_v30 }
 0xbcb   :  { %v4048_v63 = vpack.c.bf16 %v4024_v32, %v4024_v32 }
 0xbcc   :  { %15596 = dma.done.wait [#allocation3 + $0x2], 5376 }
 0xbcd   :  { %15597 = vsyncadd [#allocation3 + $0x2], 4294961920  ;;  %4343 = vmatprep.mubr.bf16.mxu1 %v15616_v58  ;;  %4384 = vmatprep.mubr.bf16.mxu0 %v15616_v58  ;;  %v4803_v2 = vpack.c.bf16 %v3880_v62, %v3880_v62  ;;  %v14868_v33 = vld [vmem:[#allocation2 + $0x34c] ss:$84 sps:$4 sm:$0xff]   ;;  %v14870_v34 = vld [vmem:[#allocation2 + $0x348] ss:$84 sps:$4 sm:$0xff]  }
 0xbce   :  { %4094 = vrot.lane.b32.xlu0 %v4048_v63, %s15618_s23  ;;  %4323 = vmatprep.subr.bf16.mxu1 %v14868_v33  ;;  %v14871_v35 = vld [vmem:[#allocation2 + $0x354] ss:$84 sps:$4 sm:$0xff]   ;;  %v14873_v17 = vld [vmem:[#allocation2 + $0x350] ss:$84 sps:$4 sm:$0xff]   ;;  %v14877_v40 = vld [vmem:[#allocation2 + $0x2ac] ss:$84 sps:$4 sm:$0xff]  }
 0xbcf   :  { %4324 = vmatpush1.bf16.msra.mxu1 %v14870_v34  ;;  %v14874_v36 = vld [vmem:[#allocation2 + $0x2a4] ss:$84 sps:$4 sm:$0xff]   ;;  %v14876_v38 = vld [vmem:[#allocation2 + $0x2a0] ss:$84 sps:$4 sm:$0xff]   ;;  %4364 = vmatprep.subr.bf16.mxu0 %v14871_v35  ;;  %v14879_v42 = vld [vmem:[#allocation2 + $0x2a8] ss:$84 sps:$4 sm:$0xff]  }
 0xbd0   :  { %4365 = vmatpush1.bf16.msra.mxu0 %v14873_v17  ;;  %4325 = vmatprep.subr.bf16.mxu1 %v14874_v36  ;;  %v14882_v44 = vld [vmem:[#allocation2 + $0x35c] ss:$84 sps:$4 sm:$0xff]   ;;  %v14885_v46 = vld [vmem:[#allocation2 + $0x364] ss:$84 sps:$4 sm:$0xff]   ;;  %v14883_v49 = vld [vmem:[#allocation2 + $0x360] ss:$84 sps:$4 sm:$0xff]  }
 0xbd1   :  { %4366 = vmatprep.subr.bf16.mxu0 %v14877_v40  ;;  %v14880_v48 = vld [vmem:[#allocation2 + $0x358] ss:$84 sps:$4 sm:$0xff]   ;;  %v14888_v50 = vld [vmem:[#allocation2 + $0x2b4] ss:$84 sps:$4 sm:$0xff]   ;;  %v14891_v51 = vld [vmem:[#allocation2 + $0x2bc] ss:$84 sps:$4 sm:$0xff]  }
 0xbd2   :  { %4809 = vrot.lane.b32.xlu0 %v4803_v2, %s15618_s23  ;;  %v14886_v54 = vld [vmem:[#allocation2 + $0x2b0] ss:$84 sps:$4 sm:$0xff]   ;;  %v14889_v55 = vld [vmem:[#allocation2 + $0x2b8] ss:$84 sps:$4 sm:$0xff]   ;;  %v14897_v57 = vld [vmem:[#allocation2 + $0x374] ss:$84 sps:$4 sm:$0xff]  }
 0xbd3   :  { %4326 = vmatpush1.bf16.msra.mxu1 %v14876_v38  ;;  %v14894_v56 = vld [vmem:[#allocation2 + $0x36c] ss:$84 sps:$4 sm:$0xff]   ;;  %v14892_v60 = vld [vmem:[#allocation2 + $0x368] ss:$84 sps:$4 sm:$0xff]   ;;  %v14895_v61 = vld [vmem:[#allocation2 + $0x370] ss:$84 sps:$4 sm:$0xff]  }
 0xbd4   :  { %4405 = vmatprep.subr.bf16.mxu1 %v14882_v44  ;;  %4367 = vmatpush1.bf16.msra.mxu0 %v14879_v42  ;;  %v14900_v6 = vld [vmem:[#allocation2 + $0x2c4] ss:$84 sps:$4 sm:$0xff]   ;;  %v14903_v0 = vld [vmem:[#allocation2 + $0x2cc] ss:$84 sps:$4 sm:$0xff]   ;;  %v14901_v3 = vld [vmem:[#allocation2 + $0x2c8] ss:$84 sps:$4 sm:$0xff]  }
 0xbd5   :  { %4446 = vmatprep.subr.bf16.mxu0 %v14885_v46  ;;  %v14898_v1 = vld [vmem:[#allocation2 + $0x2c0] ss:$84 sps:$4 sm:$0xff]   ;;  %v14906_v4 = vld [vmem:[#allocation2 + $0x37c] ss:$84 sps:$4 sm:$0xff]   ;;  %v14909_v5 = vld [vmem:[#allocation2 + $0x384] ss:$84 sps:$4 sm:$0xff]  }
 0xbd6   :  { %v14904_v28 = vld [vmem:[#allocation2 + $0x378] ss:$84 sps:$4 sm:$0xff]   ;;  %v14907_v7 = vld [vmem:[#allocation2 + $0x380] ss:$84 sps:$4 sm:$0xff]   ;;  %v14915_v9 = vld [vmem:[#allocation2 + $0x2dc] ss:$84 sps:$4 sm:$0xff]  }
 0xbd7   :  { %v14912_v8 = vld [vmem:[#allocation2 + $0x2d4] ss:$84 sps:$4 sm:$0xff]   ;;  %v14910_v31 = vld [vmem:[#allocation2 + $0x2d0] ss:$84 sps:$4 sm:$0xff]   ;;  %v14913_v10 = vld [vmem:[#allocation2 + $0x2d8] ss:$84 sps:$4 sm:$0xff]  }
 0xbd8   :  { %v14918_v11 = vld [vmem:[#allocation2 + $0x38c] ss:$84 sps:$4 sm:$0xff]   ;;  %v14921_v59 = vld [vmem:[#allocation2 + $0x394] ss:$84 sps:$4 sm:$0xff]   ;;  %v14919_v13 = vld [vmem:[#allocation2 + $0x390] ss:$84 sps:$4 sm:$0xff]  }
 0xbd9   :  { %v14916_v12 = vld [vmem:[#allocation2 + $0x388] ss:$84 sps:$4 sm:$0xff]   ;;  %v14924_v14 = vld [vmem:[#allocation2 + $0x2e4] ss:$84 sps:$4 sm:$0xff]   ;;  %v14927_v16 = vld [vmem:[#allocation2 + $0x2ec] ss:$84 sps:$4 sm:$0xff]  }
 0xbda   :  { %v14922_v18 = vld [vmem:[#allocation2 + $0x2e0] ss:$84 sps:$4 sm:$0xff]   ;;  %v14925_v19 = vld [vmem:[#allocation2 + $0x2e8] ss:$84 sps:$4 sm:$0xff]   ;;  %v14928_v20 = vld [vmem:[#allocation2 + $0x398] ss:$84 sps:$4 sm:$0xff]  }
 0xbdb   :  { %v14929_v21 = vld [vmem:[%s19628_s2 + $0x8] sm:$0xff]   ;;  %v14930_v23 = vld [vmem:[#allocation2 + $0x2f0] ss:$84 sps:$4 sm:$0xff]   ;;  %v4030_v35 = vld [vmem:[%s19635_s9 + $0x18] sm:$0xff] }
 0xbdc   :  { %v14931_v24 = vld [vmem:[%s19628_s2] sm:$0xff]   ;;  %v14932_v27 = vld [vmem:[%s19630_s4 + $0x8] sm:$0xff]   ;;  %v4029_v63 = vld [vmem:[%s19635_s9 + $0x10] sm:$0xff] }
 0xbdd   :  { %v14933_v29 = vld [vmem:[%s19631_s5 + $0x8] sm:$0xff]   ;;  %v14934_v62 = vld [vmem:[%s19630_s4] sm:$0xff]  }
 0xbde   :  { %v14935_v30 = vld [vmem:[%s19631_s5] sm:$0xff]   ;;  %v4028_v34 = vld [vmem:[%s19635_s9 + $0x8] sm:$0xff] }
 0xbdf   :  { %v4027_v32 = vld [vmem:[%s19635_s9] sm:$0xff] }
 0xc40   :  { %v17719_v52 = vpop.permute.xlu0 %4094 }
 0xc41   :  { %13620 = vmatmul.mubr.msk.bf16.vlgmr.msra.gmra.mxu1 %vm1718_vm2, %v17719_v52  ;;  %13621 = vmatmul.mubr.msk.bf16.vlgmr.msra.gmra.mxu0 %vm1718_vm2, %v17719_v52 }
 0xc42   :  { %4406 = vmatpush1.bf16.msra.mxu1 %v14880_v48  ;;  %4447 = vmatpush1.bf16.msra.mxu0 %v14883_v49 }
 0xc43   :  { %4407 = vmatprep.subr.bf16.mxu1 %v14888_v50  ;;  %4448 = vmatprep.subr.bf16.mxu0 %v14891_v51  ;;  %v4031_v51 = vld [vmem:[%s19635_s9 + $0x20] sm:$0xff] }
 0xc44   :  { %4425 = vmatprep.mubr.bf16.mxu1 %v15616_v58  ;;  %4466 = vmatprep.mubr.bf16.mxu0 %v15616_v58  ;;  %v4810_v26 = vpop.permute.xlu0 %4809 }
 0xc46   :  { %4408 = vmatpush1.bf16.msra.mxu1 %v14886_v54  ;;  %4449 = vmatpush1.bf16.msra.mxu0 %v14889_v55 }
 0xc47   :  { %4487 = vmatprep.subr.bf16.mxu1 %v14894_v56  ;;  %4528 = vmatprep.subr.bf16.mxu0 %v14897_v57  ;;  %v4032_v56 = vld [vmem:[%s19635_s9 + $0x28] sm:$0xff]  ;;  %v4034_v57 = vld [vmem:[%s19635_s9 + $0x38] sm:$0xff] }
 0xc49   :  { %13622 = vmatmul.mubr.msk.bf16.vlgmr.msra.gmra.mxu1 %vm1718_vm2, %v17719_v52  ;;  %13623 = vmatmul.mubr.msk.bf16.vlgmr.msra.gmra.mxu0 %vm1718_vm2, %v17719_v52 }
 0xc4a   :  { %4488 = vmatpush1.bf16.msra.mxu1 %v14892_v60  ;;  %4529 = vmatpush1.bf16.msra.mxu0 %v14895_v61 }
 0xc4b   :  { %4489 = vmatprep.subr.bf16.mxu1 %v14900_v6  ;;  %4530 = vmatprep.subr.bf16.mxu0 %v14903_v0 }
 0xc4c   :  { %4507 = vmatprep.mubr.bf16.mxu1 %v15616_v58  ;;  %4548 = vmatprep.mubr.bf16.mxu0 %v15616_v58 }
 0xc4e   :  { %4490 = vmatpush1.bf16.msra.mxu1 %v14898_v1  ;;  %4531 = vmatpush1.bf16.msra.mxu0 %v14901_v3 }
 0xc4f   :  { %4569 = vmatprep.subr.bf16.mxu1 %v14906_v4  ;;  %4610 = vmatprep.subr.bf16.mxu0 %v14909_v5 }
 0xc51   :  { %13624 = vmatmul.mubr.msk.bf16.vlgmr.msra.gmra.mxu1 %vm1718_vm2, %v17719_v52  ;;  %13625 = vmatmul.mubr.msk.bf16.vlgmr.msra.gmra.mxu0 %vm1718_vm2, %v17719_v52 }
 0xc52   :  { %4570 = vmatpush1.bf16.msra.mxu1 %v14904_v28  ;;  %4611 = vmatpush1.bf16.msra.mxu0 %v14907_v7 }
 0xc53   :  { %4571 = vmatprep.subr.bf16.mxu1 %v14912_v8  ;;  %4612 = vmatprep.subr.bf16.mxu0 %v14915_v9  ;;  %v4035_v8 = vld [vmem:[%s19635_s9 + $0x40] sm:$0xff]  ;;  %v4037_v9 = vld [vmem:[%s19635_s9 + $0x50] sm:$0xff] }
 0xc54   :  { %4589 = vmatprep.mubr.bf16.mxu1 %v15616_v58  ;;  %4630 = vmatprep.mubr.bf16.mxu0 %v15616_v58 }
 0xc56   :  { %4572 = vmatpush1.bf16.msra.mxu1 %v14910_v31  ;;  %4613 = vmatpush1.bf16.msra.mxu0 %v14913_v10 }
 0xc57   :  { %4651 = vmatprep.subr.bf16.mxu1 %v14918_v11  ;;  %4692 = vmatprep.subr.bf16.mxu0 %v14921_v59  ;;  %v4036_v11 = vld [vmem:[%s19635_s9 + $0x48] sm:$0xff]  ;;  %v4038_v59 = vld [vmem:[%s19635_s9 + $0x58] sm:$0xff] }
 0xc59   :  { %13626 = vmatmul.mubr.msk.bf16.vlgmr.msra.gmra.mxu1 %vm1718_vm2, %v17719_v52  ;;  %13627 = vmatmul.mubr.msk.bf16.vlgmr.msra.gmra.mxu0 %vm1718_vm2, %v17719_v52 }
 0xc5a   :  { %4652 = vmatpush1.bf16.msra.mxu1 %v14916_v12  ;;  %4693 = vmatpush1.bf16.msra.mxu0 %v14919_v13 }
 0xc5b   :  { %4653 = vmatprep.subr.bf16.mxu1 %v14924_v14  ;;  %4694 = vmatprep.subr.bf16.mxu0 %v14927_v16 }
 0xc5c   :  { %4671 = vmatprep.mubr.bf16.mxu1 %v15616_v58  ;;  %4712 = vmatprep.mubr.bf16.mxu0 %v15616_v58 }
 0xc5e   :  { %4654 = vmatpush1.bf16.msra.mxu1 %v14922_v18  ;;  %4695 = vmatpush1.bf16.msra.mxu0 %v14925_v19 }
 0xc5f   :  { %14407 = vmatprep.subr.bf16.mxu1 %v15614_v15  ;;  %14415 = vmatprep.subr.bf16.mxu0 %v15614_v15 }
 0xc61   :  { %13628 = vmatmul.mubr.msk.bf16.vlgmr.msra.gmra.mxu1 %vm1718_vm2, %v17719_v52  ;;  %13629 = vmatmul.mubr.msk.bf16.vlgmr.msra.gmra.mxu0 %vm1718_vm2, %v17719_v52 }
 0xc62   :  { %14408 = vmatpush3.bf16.msra.mxu1 %v14928_v20  ;;  %14416 = vmatpush3.bf16.msra.mxu0 %v14929_v21 }
 0xc63   :  { %14409 = vmatprep.subr.bf16.mxu1 %v15614_v15  ;;  %14417 = vmatprep.subr.bf16.mxu0 %v15614_v15 }
 0xc64   :  { %14411 = vmatprep.mubr.msk.bf16.mxu1 %vm15615_vm1, %v15614_v15  ;;  %14419 = vmatprep.mubr.msk.bf16.mxu0 %vm15615_vm1, %v15614_v15 }
 0xc66   :  { %14410 = vmatpush3.bf16.msra.mxu1 %v14930_v23  ;;  %14418 = vmatpush3.bf16.msra.mxu0 %v14931_v24 }
 0xc67   :  { %14423 = vmatprep.subr.bf16.mxu1 %v15614_v15  ;;  %14431 = vmatprep.subr.bf16.mxu0 %v15614_v15 }
 0xc69   :  { %14412 = vmatmul.mubr.msk.bf16.vlgmr.msra.gmra.mxu1 %vm1718_vm2, %v17719_v52  ;;  %14420 = vmatmul.mubr.msk.bf16.vlgmr.msra.gmra.mxu0 %vm1718_vm2, %v4810_v26 }
 0xc6a   :  { %14424 = vmatpush3.bf16.msra.mxu1 %v14932_v27  ;;  %14432 = vmatpush3.bf16.msra.mxu0 %v14933_v29  ;;  %v4041_v27 = vld [vmem:[%s19635_s9 + $0x70] sm:$0xff] }
 0xc6b   :  { %14425 = vmatprep.subr.bf16.mxu1 %v15614_v15  ;;  %14433 = vmatprep.subr.bf16.mxu0 %v15614_v15 }
 0xc6c   :  { %14427 = vmatprep.mubr.msk.bf16.mxu1 %vm15615_vm1, %v15614_v15  ;;  %14435 = vmatprep.mubr.msk.bf16.mxu0 %vm15615_vm1, %v15614_v15 }
 0xc6e   :  { %14426 = vmatpush3.bf16.msra.mxu1 %v14934_v62  ;;  %14434 = vmatpush3.bf16.msra.mxu0 %v14935_v30  ;;  %v4040_v30 = vld [vmem:[%s19635_s9 + $0x68] sm:$0xff] }
 0xc71   :  { %14428 = vmatmul.mubr.msk.bf16.vlgmr.msra.gmra.mxu1 %vm1718_vm2, %v4810_v26  ;;  %14436 = vmatmul.mubr.msk.bf16.vlgmr.msra.gmra.mxu0 %vm1718_vm2, %v17719_v52  ;;  %v4033_v52 = vld [vmem:[%s19635_s9 + $0x30] sm:$0xff]  ;;  %v4039_v26 = vld [vmem:[%s19635_s9 + $0x60] sm:$0xff] }
 0xd01   :  { %v4345_v2 = vpop.f32.mrf.mxu1  ;;  %v4386_v33 = vpop.f32.mrf.mxu0 }
 0xd02   :  { %v4761_v17 = vadd.f32 %v4345_v2, %v4027_v32  ;;  %v4763_v36 = vadd.f32 %v4386_v33, %v4029_v63  ;;  %v4042_v32 = vld [vmem:[%s19635_s9 + $0x78] sm:$0xff] }
 0xd03   :  { %v4347_v38 = vpop.f32.mrf.mxu1  ;;  %v4388_v40 = vpop.f32.mrf.mxu0 }
 0xd04   :  { %4782 = vst [vmem:[%s19635_s9] sm:$0xff] %v4761_v17  ;;  %4784 = vst [vmem:[%s19635_s9 + $0x10] sm:$0xff] %v4763_v36  ;;  %v4762_v42 = vadd.f32 %v4347_v38, %v4028_v34  ;;  %v4764_v44 = vadd.f32 %v4388_v40, %v4030_v35 }
 0xd05   :  { %v4349_v46 = vpop.f32.mrf.mxu1  ;;  %v4390_v48 = vpop.f32.mrf.mxu0 }
 0xd06   :  { %4783 = vst [vmem:[%s19635_s9 + $0x8] sm:$0xff] %v4762_v42  ;;  %4785 = vst [vmem:[%s19635_s9 + $0x18] sm:$0xff] %v4764_v44  ;;  %v4043_v44 = vld [vmem:[%s19635_s9 + $0x80] sm:$0xff]  ;;  %v4045_v46 = vld [vmem:[%s19635_s9 + $0x90] sm:$0xff] }
 0xd07   :  { %v4350_v49 = vpop.f32.mrf.mxu1  ;;  %v4391_v50 = vpop.f32.mrf.mxu0 }
 0xd08   :  { %v4044_v50 = vld [vmem:[%s19635_s9 + $0x88] sm:$0xff] }
 0xd09   :  { %v4427_v54 = vpop.f32.mrf.mxu1  ;;  %v4468_v55 = vpop.f32.mrf.mxu0 }
 0xd0a   :  { %v4765_v60 = vadd.f32 %v4427_v54, %v4031_v51  ;;  %v4767_v61 = vadd.f32 %v4468_v55, %v4033_v52  ;;  %v4046_v51 = vld [vmem:[%s19635_s9 + $0x98] sm:$0xff] }
 0xd0b   :  { %v4429_v6 = vpop.f32.mrf.mxu1  ;;  %v4470_v0 = vpop.f32.mrf.mxu0 }
 0xd0c   :  { %4786 = vst [vmem:[%s19635_s9 + $0x20] sm:$0xff] %v4765_v60  ;;  %4788 = vst [vmem:[%s19635_s9 + $0x30] sm:$0xff] %v4767_v61  ;;  %v4766_v1 = vadd.f32 %v4429_v6, %v4032_v56  ;;  %v4768_v3 = vadd.f32 %v4470_v0, %v4034_v57 }
 0xd0d   :  { %v4431_v4 = vpop.f32.mrf.mxu1  ;;  %v4472_v5 = vpop.f32.mrf.mxu0 }
 0xd0e   :  { %4787 = vst [vmem:[%s19635_s9 + $0x28] sm:$0xff] %v4766_v1  ;;  %4789 = vst [vmem:[%s19635_s9 + $0x38] sm:$0xff] %v4768_v3  ;;  %v4047_v3 = vld [vmem:[%s19635_s9 + $0xa0] sm:$0xff] }
 0xd0f   :  { %v4432_v28 = vpop.f32.mrf.mxu1  ;;  %v4473_v7 = vpop.f32.mrf.mxu0 }
 0xd11   :  { %v4509_v31 = vpop.f32.mrf.mxu1  ;;  %v4550_v10 = vpop.f32.mrf.mxu0 }
 0xd12   :  { %v4769_v12 = vadd.f32 %v4509_v31, %v4035_v8  ;;  %v4771_v13 = vadd.f32 %v4550_v10, %v4037_v9 }
 0xd13   :  { %v4511_v14 = vpop.f32.mrf.mxu1  ;;  %v4552_v16 = vpop.f32.mrf.mxu0 }
 0xd14   :  { %4790 = vst [vmem:[%s19635_s9 + $0x40] sm:$0xff] %v4769_v12  ;;  %4792 = vst [vmem:[%s19635_s9 + $0x50] sm:$0xff] %v4771_v13  ;;  %v4770_v18 = vadd.f32 %v4511_v14, %v4036_v11  ;;  %v4772_v19 = vadd.f32 %v4552_v16, %v4038_v59  ;;  %v13635_v12 = vld [vmem:[%s19632_s6] ss:$0 sm:$0xff] }
 0xd15   :  { %v4513_v20 = vpop.f32.mrf.mxu1  ;;  %v4554_v21 = vpop.f32.mrf.mxu0 }
 0xd16   :  { %4791 = vst [vmem:[%s19635_s9 + $0x48] sm:$0xff] %v4770_v18  ;;  %4793 = vst [vmem:[%s19635_s9 + $0x58] sm:$0xff] %v4772_v19 }
 0xd17   :  { %v4514_v23 = vpop.f32.mrf.mxu1  ;;  %v4555_v24 = vpop.f32.mrf.mxu0 }
 0xd19   :  { %v4591_v29 = vpop.f32.mrf.mxu1  ;;  %v4632_v62 = vpop.f32.mrf.mxu0 }
 0xd1a   :  { %v4773_v63 = vadd.f32 %v4591_v29, %v4039_v26  ;;  %v4775_v2 = vadd.f32 %v4632_v62, %v4041_v27 }
 0xd1b   :  { %v4593_v33 = vpop.f32.mrf.mxu1  ;;  %v4634_v34 = vpop.f32.mrf.mxu0 }
 0xd1c   :  { %4794 = vst [vmem:[%s19635_s9 + $0x60] sm:$0xff] %v4773_v63  ;;  %4796 = vst [vmem:[%s19635_s9 + $0x70] sm:$0xff] %v4775_v2  ;;  %v4774_v35 = vadd.f32 %v4593_v33, %v4040_v30  ;;  %v4776_v17 = vadd.f32 %v4634_v34, %v4042_v32 }
 0xd1d   :  { %v4595_v36 = vpop.f32.mrf.mxu1  ;;  %v4636_v38 = vpop.f32.mrf.mxu0 }
 0xd1e   :  { %4795 = vst [vmem:[%s19635_s9 + $0x68] sm:$0xff] %v4774_v35  ;;  %4797 = vst [vmem:[%s19635_s9 + $0x78] sm:$0xff] %v4776_v17 }
 0xd1f   :  { %v4596_v40 = vpop.f32.mrf.mxu1  ;;  %v4637_v42 = vpop.f32.mrf.mxu0 }
 0xd21   :  { %v4673_v48 = vpop.f32.mrf.mxu1  ;;  %v4714_v49 = vpop.f32.mrf.mxu0 }
 0xd22   :  { %v4777_v52 = vadd.f32 %v4673_v48, %v4043_v44  ;;  %v4779_v54 = vadd.f32 %v4714_v49, %v4045_v46 }
 0xd23   :  { %v4675_v55 = vpop.f32.mrf.mxu1  ;;  %v4716_v56 = vpop.f32.mrf.mxu0 }
 0xd24   :  { %4798 = vst [vmem:[%s19635_s9 + $0x80] sm:$0xff] %v4777_v52  ;;  %4800 = vst [vmem:[%s19635_s9 + $0x90] sm:$0xff] %v4779_v54  ;;  %v4778_v57 = vadd.f32 %v4675_v55, %v4044_v50  ;;  %v4780_v60 = vadd.f32 %v4716_v56, %v4046_v51 }
 0xd25   :  { %v4677_v61 = vpop.f32.mrf.mxu1  ;;  %v4718_v6 = vpop.f32.mrf.mxu0 }
 0xd26   :  { %4799 = vst [vmem:[%s19635_s9 + $0x88] sm:$0xff] %v4778_v57  ;;  %4801 = vst [vmem:[%s19635_s9 + $0x98] sm:$0xff] %v4780_v60 }
 0xd27   :  { %v4678_v0 = vpop.f32.mrf.mxu1  ;;  %v4719_v1 = vpop.f32.mrf.mxu0 }
 0xd29   :  { %v4755_v4 = vpop.f32.mrf.mxu1  ;;  %v4860_v5 = vpop.f32.mrf.mxu0 }
 0xd2a   :  { %v4781_v28 = vadd.f32 %v4755_v4, %v4047_v3  ;;  %v4866_v7 = vadd.f32 %v4860_v5, %v17234_v39 }
 0xd2b   :  { %v14413_v8 = vpop.f32.mrf.mxu1  ;;  %v14421_v9 = vpop.f32.mrf.mxu0 }
 0xd2c   :  { %4802 = vst [vmem:[%s19635_s9 + $0xa0] sm:$0xff] %v4781_v28  ;;  %14936 = vtanh.f32 %v4866_v7  ;;  %v13634_v29 = vmul.f32 -1.442695, %v4866_v7 }
 0xd2d   :  { %v4758_v31 = vpop.f32.mrf.mxu1  ;;  %v4863_v10 = vpop.f32.mrf.mxu0 }
 0xd2f   :  { %v14414_v11 = vpop.f32.mrf.mxu1  ;;  %v14422_v59 = vpop.f32.mrf.mxu0 }
 0xd31   :  { %v4948_v13 = vpop.f32.mrf.mxu1  ;;  %v5004_v14 = vpop.f32.mrf.mxu0 }
 0xd32   :  { %v4949_v16 = vadd.f32 %v13635_v12, %v4948_v13 }
 0xd33   :  { %v14429_v18 = vpop.f32.mrf.mxu1  ;;  %v14437_v39 = vpop.f32.mrf.mxu0 }
 0xd34   :  { %v5010_v19 = vadd.f32 %v5004_v14, %v4949_v16 }
 0xd35   :  { %v4951_v20 = vpop.f32.mrf.mxu1  ;;  %v5007_v21 = vpop.f32.mrf.mxu0 }
 0xd36   :  { %14938 = vtanh.f32 %v5010_v19  ;;  %v13642_v62 = vmul.f32 -1.442695, %v5010_v19 }
 0xd37   :  { %v14430_v23 = vpop.f32.mrf.mxu1  ;;  %v14438_v24 = vpop.f32.mrf.mxu0  ;;  %14940 = vpow2.f32 %v13634_v29 }
 0xd38   :  { %14942 = vpow2.f32 %v13642_v62 }
 0xd39   :  { %v14937_v26 = vpop.eup %14936 }
 0xd3a   :  { %4876 = vrot.lane.b32.xlu1 %v14937_v26, %s15617_s3 }
 0xd43   :  { %v14939_v27 = vpop.eup %14938 }
 0xd44   :  { %5020 = vrot.lane.b32.xlu1 %v14939_v27, %s15617_s3  ;;  %v14941_v30 = vpop.eup %14940 }
 0xd45   :  { %v4870_v32 = vadd.f32 1.0, %v14941_v30  ;;  %v14943_v63 = vpop.eup %14942 }
 0xd46   :  { %v5014_v2 = vadd.f32 1.0, %v14943_v63 }
 0xd47   :  { %14944 = vrcp.f32 %v4870_v32 }
 0xd48   :  { %14946 = vrcp.f32 %v5014_v2 }
 0xd54   :  { %v14945_v33 = vpop.eup %14944 }
 0xd55   :  { %v14947_v17 = vpop.eup %14946  ;;  %v4874_v40 = vmul.f32 %v14945_v33, %v17706_v22 }
 0xd56   :  { %v5018_v46 = vmul.f32 %v14947_v17, %v17710_v25 }
 0xdac   :  { %v4877_v34 = vpop.permute.xlu1 %4876 }
 0xdad   :  { %v4879_v35 = vmul.f32 %v14945_v33, %v4877_v34 }
 0xdaf   :  { %4881 = vrot.lane.b32.xlu0 %v4879_v35, %s15617_s3 }
 0xdb6   :  { %v5021_v36 = vpop.permute.xlu1 %5020 }
 0xdb7   :  { %v5023_v38 = vmul.f32 %v14947_v17, %v5021_v36 }
 0xdb9   :  { %5025 = vrot.lane.b32.xlu1 %v5023_v38, %s15617_s3 }
 0xe21   :  { %v4882_v42 = vpop.permute.xlu0 %4881 }
 0xe22   :  { %v17924_v44 = vadd.f32 %v4882_v42, %v4874_v40 }
 0xe24   :  { %14948 = vtanh.f32 %v17924_v44 }
 0xe2b   :  { %v5026_v48 = vpop.permute.xlu1 %5025 }
 0xe2c   :  { %v17928_v49 = vadd.f32 %v5026_v48, %v5018_v46 }
 0xe2e   :  { %14950 = vtanh.f32 %v17928_v49 }
 0xe31   :  { %v14949_v50 = vpop.eup %14948 }
 0xe32   :  { %4887 = vrot.lane.b32.xlu0 %v14949_v50, %s15617_s3 }
 0xe3b   :  { %v14951_v51 = vpop.eup %14950 }
 0xe3c   :  { %5031 = vrot.lane.b32.xlu1 %v14951_v51, %s15617_s3 }
 0xea4   :  { %v4888_v52 = vpop.permute.xlu0 %4887 }
 0xea5   :  { %v4890_v22 = vmul.f32 %v14945_v33, %v4888_v52 }
 0xeae   :  { %v5032_v54 = vpop.permute.xlu1 %5031 }
 0xeaf   :  { %v5034_v55 = vmul.f32 %v14947_v17, %v5032_v54 }
 0xeb1   :  { %v5058_v56 = vpack.c.bf16 %v5034_v55, %v5034_v55 }
 0xeb2   :  { %15598 = dma.done.wait [#allocation3 + $0x3], 5376 }
 0xeb3   :  { %15599 = vsyncadd [#allocation3 + $0x3], 4294961920  ;;  %5353 = vmatprep.mubr.bf16.mxu1 %v15616_v58  ;;  %5394 = vmatprep.mubr.bf16.mxu0 %v15616_v58  ;;  %v5813_v25 = vpack.c.bf16 %v4890_v22, %v4890_v22  ;;  %v14952_v57 = vld [vmem:[#allocation2 + $0x49c] ss:$84 sps:$4 sm:$0xff]   ;;  %v14954_v60 = vld [vmem:[#allocation2 + $0x498] ss:$84 sps:$4 sm:$0xff]  }
 0xeb4   :  { %5104 = vrot.lane.b32.xlu0 %v5058_v56, %s15618_s23  ;;  %5333 = vmatprep.subr.bf16.mxu1 %v14952_v57  ;;  %v14955_v61 = vld [vmem:[#allocation2 + $0x4a4] ss:$84 sps:$4 sm:$0xff]   ;;  %v14957_v6 = vld [vmem:[#allocation2 + $0x4a0] ss:$84 sps:$4 sm:$0xff]   ;;  %v14961_v3 = vld [vmem:[#allocation2 + $0x3fc] ss:$84 sps:$4 sm:$0xff]  }
 0xeb5   :  { %5334 = vmatpush1.bf16.msra.mxu1 %v14954_v60  ;;  %v14958_v0 = vld [vmem:[#allocation2 + $0x3f4] ss:$84 sps:$4 sm:$0xff]   ;;  %v14960_v1 = vld [vmem:[#allocation2 + $0x3f0] ss:$84 sps:$4 sm:$0xff]   ;;  %5374 = vmatprep.subr.bf16.mxu0 %v14955_v61  ;;  %v14963_v4 = vld [vmem:[#allocation2 + $0x3f8] ss:$84 sps:$4 sm:$0xff]  }
 0xeb6   :  { %5375 = vmatpush1.bf16.msra.mxu0 %v14957_v6  ;;  %5335 = vmatprep.subr.bf16.mxu1 %v14958_v0  ;;  %v14966_v5 = vld [vmem:[#allocation2 + $0x4ac] ss:$84 sps:$4 sm:$0xff]   ;;  %v14969_v28 = vld [vmem:[#allocation2 + $0x4b4] ss:$84 sps:$4 sm:$0xff]   ;;  %v14967_v8 = vld [vmem:[#allocation2 + $0x4b0] ss:$84 sps:$4 sm:$0xff]  }
 0xeb7   :  { %5376 = vmatprep.subr.bf16.mxu0 %v14961_v3  ;;  %v14964_v7 = vld [vmem:[#allocation2 + $0x4a8] ss:$84 sps:$4 sm:$0xff]   ;;  %v14972_v9 = vld [vmem:[#allocation2 + $0x404] ss:$84 sps:$4 sm:$0xff]   ;;  %v14975_v31 = vld [vmem:[#allocation2 + $0x40c] ss:$84 sps:$4 sm:$0xff]  }
 0xeb8   :  { %5819 = vrot.lane.b32.xlu0 %v5813_v25, %s15618_s23  ;;  %v14970_v11 = vld [vmem:[#allocation2 + $0x400] ss:$84 sps:$4 sm:$0xff]   ;;  %v14973_v59 = vld [vmem:[#allocation2 + $0x408] ss:$84 sps:$4 sm:$0xff]   ;;  %v14981_v13 = vld [vmem:[#allocation2 + $0x4c4] ss:$84 sps:$4 sm:$0xff]  }
 0xeb9   :  { %5336 = vmatpush1.bf16.msra.mxu1 %v14960_v1  ;;  %v14978_v12 = vld [vmem:[#allocation2 + $0x4bc] ss:$84 sps:$4 sm:$0xff]   ;;  %v14976_v14 = vld [vmem:[#allocation2 + $0x4b8] ss:$84 sps:$4 sm:$0xff]   ;;  %v14979_v16 = vld [vmem:[#allocation2 + $0x4c0] ss:$84 sps:$4 sm:$0xff]  }
 0xeba   :  { %5415 = vmatprep.subr.bf16.mxu1 %v14966_v5  ;;  %5377 = vmatpush1.bf16.msra.mxu0 %v14963_v4  ;;  %v14984_v18 = vld [vmem:[#allocation2 + $0x414] ss:$84 sps:$4 sm:$0xff]   ;;  %v14987_v39 = vld [vmem:[#allocation2 + $0x41c] ss:$84 sps:$4 sm:$0xff]   ;;  %v14985_v20 = vld [vmem:[#allocation2 + $0x418] ss:$84 sps:$4 sm:$0xff]  }
 0xebb   :  { %5456 = vmatprep.subr.bf16.mxu0 %v14969_v28  ;;  %v14982_v19 = vld [vmem:[#allocation2 + $0x410] ss:$84 sps:$4 sm:$0xff]   ;;  %v14990_v21 = vld [vmem:[#allocation2 + $0x4cc] ss:$84 sps:$4 sm:$0xff]   ;;  %v14993_v23 = vld [vmem:[#allocation2 + $0x4d4] ss:$84 sps:$4 sm:$0xff]  }
 0xebc   :  { %v14988_v24 = vld [vmem:[#allocation2 + $0x4c8] ss:$84 sps:$4 sm:$0xff]   ;;  %v14991_v26 = vld [vmem:[#allocation2 + $0x4d0] ss:$84 sps:$4 sm:$0xff]   ;;  %v14999_v29 = vld [vmem:[#allocation2 + $0x42c] ss:$84 sps:$4 sm:$0xff]  }
 0xebd   :  { %v14996_v27 = vld [vmem:[#allocation2 + $0x424] ss:$84 sps:$4 sm:$0xff]   ;;  %v14994_v62 = vld [vmem:[#allocation2 + $0x420] ss:$84 sps:$4 sm:$0xff]   ;;  %v14997_v30 = vld [vmem:[#allocation2 + $0x428] ss:$84 sps:$4 sm:$0xff]  }
 0xebe   :  { %v15002_v32 = vld [vmem:[#allocation2 + $0x4dc] ss:$84 sps:$4 sm:$0xff]   ;;  %v15005_v63 = vld [vmem:[#allocation2 + $0x4e4] ss:$84 sps:$4 sm:$0xff]   ;;  %v15003_v33 = vld [vmem:[#allocation2 + $0x4e0] ss:$84 sps:$4 sm:$0xff]  }
 0xebf   :  { %v15000_v2 = vld [vmem:[#allocation2 + $0x4d8] ss:$84 sps:$4 sm:$0xff]   ;;  %v15008_v34 = vld [vmem:[#allocation2 + $0x434] ss:$84 sps:$4 sm:$0xff]   ;;  %v15011_v35 = vld [vmem:[#allocation2 + $0x43c] ss:$84 sps:$4 sm:$0xff]  }
 0xec0   :  { %v15006_v17 = vld [vmem:[#allocation2 + $0x430] ss:$84 sps:$4 sm:$0xff]   ;;  %v15009_v36 = vld [vmem:[#allocation2 + $0x438] ss:$84 sps:$4 sm:$0xff]   ;;  %v15012_v38 = vld [vmem:[#allocation2 + $0x4e8] ss:$84 sps:$4 sm:$0xff]  }
 0xec1   :  { %v15013_v40 = vld [vmem:[%s19628_s2 + $0x8] sm:$0xff]   ;;  %v15014_v42 = vld [vmem:[#allocation2 + $0x440] ss:$84 sps:$4 sm:$0xff]   ;;  %v5040_v60 = vld [vmem:[%s19635_s9 + $0x18] sm:$0xff] }
 0xec2   :  { %v15015_v46 = vld [vmem:[%s19628_s2] sm:$0xff]   ;;  %v15016_v50 = vld [vmem:[%s19630_s4 + $0x8] sm:$0xff]   ;;  %v5039_v55 = vld [vmem:[%s19635_s9 + $0x10] sm:$0xff] }
 0xec3   :  { %v15017_v51 = vld [vmem:[%s19631_s5 + $0x8] sm:$0xff]   ;;  %v15018_v52 = vld [vmem:[%s19630_s4] sm:$0xff]  }
 0xec4   :  { %v15019_v22 = vld [vmem:[%s19631_s5] sm:$0xff]   ;;  %v5038_v57 = vld [vmem:[%s19635_s9 + $0x8] sm:$0xff] }
 0xec5   :  { %v5037_v54 = vld [vmem:[%s19635_s9] sm:$0xff] }
 0xf26   :  { %v17937_v10 = vpop.permute.xlu0 %5104 }
 0xf27   :  { %13685 = vmatmul.mubr.msk.bf16.vlgmr.msra.gmra.mxu1 %vm1718_vm2, %v17937_v10  ;;  %13686 = vmatmul.mubr.msk.bf16.vlgmr.msra.gmra.mxu0 %vm1718_vm2, %v17937_v10 }
 0xf28   :  { %5416 = vmatpush1.bf16.msra.mxu1 %v14964_v7  ;;  %5457 = vmatpush1.bf16.msra.mxu0 %v14967_v8 }
 0xf29   :  { %5417 = vmatprep.subr.bf16.mxu1 %v14972_v9  ;;  %5458 = vmatprep.subr.bf16.mxu0 %v14975_v31  ;;  %v5041_v9 = vld [vmem:[%s19635_s9 + $0x20] sm:$0xff]  ;;  %v5043_v31 = vld [vmem:[%s19635_s9 + $0x30] sm:$0xff] }
 0xf2a   :  { %5435 = vmatprep.mubr.bf16.mxu1 %v15616_v58  ;;  %5476 = vmatprep.mubr.bf16.mxu0 %v15616_v58  ;;  %v5820_v48 = vpop.permute.xlu0 %5819 }
 0xf2c   :  { %5418 = vmatpush1.bf16.msra.mxu1 %v14970_v11  ;;  %5459 = vmatpush1.bf16.msra.mxu0 %v14973_v59  ;;  %v5042_v59 = vld [vmem:[%s19635_s9 + $0x28] sm:$0xff] }
 0xf2d   :  { %5497 = vmatprep.subr.bf16.mxu1 %v14978_v12  ;;  %5538 = vmatprep.subr.bf16.mxu0 %v14981_v13  ;;  %v5044_v12 = vld [vmem:[%s19635_s9 + $0x38] sm:$0xff] }
 0xf2f   :  { %13687 = vmatmul.mubr.msk.bf16.vlgmr.msra.gmra.mxu1 %vm1718_vm2, %v17937_v10  ;;  %13688 = vmatmul.mubr.msk.bf16.vlgmr.msra.gmra.mxu0 %vm1718_vm2, %v17937_v10 }
 0xf30   :  { %5498 = vmatpush1.bf16.msra.mxu1 %v14976_v14  ;;  %5539 = vmatpush1.bf16.msra.mxu0 %v14979_v16 }
 0xf31   :  { %5499 = vmatprep.subr.bf16.mxu1 %v14984_v18  ;;  %5540 = vmatprep.subr.bf16.mxu0 %v14987_v39 }
 0xf32   :  { %5517 = vmatprep.mubr.bf16.mxu1 %v15616_v58  ;;  %5558 = vmatprep.mubr.bf16.mxu0 %v15616_v58 }
 0xf34   :  { %5500 = vmatpush1.bf16.msra.mxu1 %v14982_v19  ;;  %5541 = vmatpush1.bf16.msra.mxu0 %v14985_v20 }
 0xf35   :  { %5579 = vmatprep.subr.bf16.mxu1 %v14990_v21  ;;  %5620 = vmatprep.subr.bf16.mxu0 %v14993_v23 }
 0xf37   :  { %13689 = vmatmul.mubr.msk.bf16.vlgmr.msra.gmra.mxu1 %vm1718_vm2, %v17937_v10  ;;  %13690 = vmatmul.mubr.msk.bf16.vlgmr.msra.gmra.mxu0 %vm1718_vm2, %v17937_v10 }
 0xf38   :  { %5580 = vmatpush1.bf16.msra.mxu1 %v14988_v24  ;;  %5621 = vmatpush1.bf16.msra.mxu0 %v14991_v26  ;;  %v5045_v26 = vld [vmem:[%s19635_s9 + $0x40] sm:$0xff] }
 0xf39   :  { %5581 = vmatprep.subr.bf16.mxu1 %v14996_v27  ;;  %5622 = vmatprep.subr.bf16.mxu0 %v14999_v29  ;;  %v5047_v27 = vld [vmem:[%s19635_s9 + $0x50] sm:$0xff] }
 0xf3a   :  { %5599 = vmatprep.mubr.bf16.mxu1 %v15616_v58  ;;  %5640 = vmatprep.mubr.bf16.mxu0 %v15616_v58 }
 0xf3c   :  { %5582 = vmatpush1.bf16.msra.mxu1 %v14994_v62  ;;  %5623 = vmatpush1.bf16.msra.mxu0 %v14997_v30  ;;  %v5046_v30 = vld [vmem:[%s19635_s9 + $0x48] sm:$0xff] }
 0xf3d   :  { %5661 = vmatprep.subr.bf16.mxu1 %v15002_v32  ;;  %5702 = vmatprep.subr.bf16.mxu0 %v15005_v63  ;;  %v5048_v32 = vld [vmem:[%s19635_s9 + $0x58] sm:$0xff] }
 0xf3f   :  { %13691 = vmatmul.mubr.msk.bf16.vlgmr.msra.gmra.mxu1 %vm1718_vm2, %v17937_v10  ;;  %13692 = vmatmul.mubr.msk.bf16.vlgmr.msra.gmra.mxu0 %vm1718_vm2, %v17937_v10 }
 0xf40   :  { %5662 = vmatpush1.bf16.msra.mxu1 %v15000_v2  ;;  %5703 = vmatpush1.bf16.msra.mxu0 %v15003_v33 }
 0xf41   :  { %5663 = vmatprep.subr.bf16.mxu1 %v15008_v34  ;;  %5704 = vmatprep.subr.bf16.mxu0 %v15011_v35 }
 0xf42   :  { %5681 = vmatprep.mubr.bf16.mxu1 %v15616_v58  ;;  %5722 = vmatprep.mubr.bf16.mxu0 %v15616_v58 }
 0xf44   :  { %5664 = vmatpush1.bf16.msra.mxu1 %v15006_v17  ;;  %5705 = vmatpush1.bf16.msra.mxu0 %v15009_v36 }
 0xf45   :  { %14439 = vmatprep.subr.bf16.mxu1 %v15614_v15  ;;  %14447 = vmatprep.subr.bf16.mxu0 %v15614_v15 }
 0xf47   :  { %13693 = vmatmul.mubr.msk.bf16.vlgmr.msra.gmra.mxu1 %vm1718_vm2, %v17937_v10  ;;  %13694 = vmatmul.mubr.msk.bf16.vlgmr.msra.gmra.mxu0 %vm1718_vm2, %v17937_v10 }
 0xf48   :  { %14440 = vmatpush3.bf16.msra.mxu1 %v15012_v38  ;;  %14448 = vmatpush3.bf16.msra.mxu0 %v15013_v40 }
 0xf49   :  { %14441 = vmatprep.subr.bf16.mxu1 %v15614_v15  ;;  %14449 = vmatprep.subr.bf16.mxu0 %v15614_v15 }
 0xf4a   :  { %14443 = vmatprep.mubr.msk.bf16.mxu1 %vm15615_vm1, %v15614_v15  ;;  %14451 = vmatprep.mubr.msk.bf16.mxu0 %vm15615_vm1, %v15614_v15 }
 0xf4c   :  { %14442 = vmatpush3.bf16.msra.mxu1 %v15014_v42  ;;  %14450 = vmatpush3.bf16.msra.mxu0 %v15015_v46  ;;  %v5049_v46 = vld [vmem:[%s19635_s9 + $0x60] sm:$0xff] }
 0xf4d   :  { %14455 = vmatprep.subr.bf16.mxu1 %v15614_v15  ;;  %14463 = vmatprep.subr.bf16.mxu0 %v15614_v15 }
 0xf4f   :  { %14444 = vmatmul.mubr.msk.bf16.vlgmr.msra.gmra.mxu1 %vm1718_vm2, %v17937_v10  ;;  %14452 = vmatmul.mubr.msk.bf16.vlgmr.msra.gmra.mxu0 %vm1718_vm2, %v5820_v48 }
 0xf50   :  { %14456 = vmatpush3.bf16.msra.mxu1 %v15016_v50  ;;  %14464 = vmatpush3.bf16.msra.mxu0 %v15017_v51 }
 0xf51   :  { %14457 = vmatprep.subr.bf16.mxu1 %v15614_v15  ;;  %14465 = vmatprep.subr.bf16.mxu0 %v15614_v15 }
 0xf52   :  { %14459 = vmatprep.mubr.msk.bf16.mxu1 %vm15615_vm1, %v15614_v15  ;;  %14467 = vmatprep.mubr.msk.bf16.mxu0 %vm15615_vm1, %v15614_v15 }
 0xf54   :  { %14458 = vmatpush3.bf16.msra.mxu1 %v15018_v52  ;;  %14466 = vmatpush3.bf16.msra.mxu0 %v15019_v22  ;;  %v5050_v52 = vld [vmem:[%s19635_s9 + $0x68] sm:$0xff]  ;;  %v5052_v22 = vld [vmem:[%s19635_s9 + $0x78] sm:$0xff] }
 0xf57   :  { %14460 = vmatmul.mubr.msk.bf16.vlgmr.msra.gmra.mxu1 %vm1718_vm2, %v5820_v48  ;;  %14468 = vmatmul.mubr.msk.bf16.vlgmr.msra.gmra.mxu0 %vm1718_vm2, %v17937_v10  ;;  %v5051_v48 = vld [vmem:[%s19635_s9 + $0x70] sm:$0xff] }
 0xfe7   :  { %v5355_v56 = vpop.f32.mrf.mxu1  ;;  %v5396_v25 = vpop.f32.mrf.mxu0 }
 0xfe8   :  { %v5771_v61 = vadd.f32 %v5355_v56, %v5037_v54  ;;  %v5773_v6 = vadd.f32 %v5396_v25, %v5039_v55 }
 0xfe9   :  { %v5357_v0 = vpop.f32.mrf.mxu1  ;;  %v5398_v1 = vpop.f32.mrf.mxu0 }
 0xfea   :  { %5792 = vst [vmem:[%s19635_s9] sm:$0xff] %v5771_v61  ;;  %5794 = vst [vmem:[%s19635_s9 + $0x10] sm:$0xff] %v5773_v6  ;;  %v5772_v3 = vadd.f32 %v5357_v0, %v5038_v57  ;;  %v5774_v4 = vadd.f32 %v5398_v1, %v5040_v60 }
 0xfeb   :  { %v5359_v5 = vpop.f32.mrf.mxu1  ;;  %v5400_v28 = vpop.f32.mrf.mxu0 }
 0xfec   :  { %5793 = vst [vmem:[%s19635_s9 + $0x8] sm:$0xff] %v5772_v3  ;;  %5795 = vst [vmem:[%s19635_s9 + $0x18] sm:$0xff] %v5774_v4  ;;  %v5053_v3 = vld [vmem:[%s19635_s9 + $0x80] sm:$0xff]  ;;  %v5055_v4 = vld [vmem:[%s19635_s9 + $0x90] sm:$0xff] }
 0xfed   :  { %v5360_v7 = vpop.f32.mrf.mxu1  ;;  %v5401_v8 = vpop.f32.mrf.mxu0 }
 0xfee   :  { %v5054_v7 = vld [vmem:[%s19635_s9 + $0x88] sm:$0xff]  ;;  %v5056_v8 = vld [vmem:[%s19635_s9 + $0x98] sm:$0xff] }
 0xfef   :  { %v5437_v10 = vpop.f32.mrf.mxu1  ;;  %v5478_v11 = vpop.f32.mrf.mxu0 }
 0xff0   :  { %v5775_v13 = vadd.f32 %v5437_v10, %v5041_v9  ;;  %v5777_v14 = vadd.f32 %v5478_v11, %v5043_v31 }
 0xff1   :  { %v5439_v16 = vpop.f32.mrf.mxu1  ;;  %v5480_v18 = vpop.f32.mrf.mxu0 }
 0xff2   :  { %5796 = vst [vmem:[%s19635_s9 + $0x20] sm:$0xff] %v5775_v13  ;;  %5798 = vst [vmem:[%s19635_s9 + $0x30] sm:$0xff] %v5777_v14  ;;  %v5776_v39 = vadd.f32 %v5439_v16, %v5042_v59  ;;  %v5778_v19 = vadd.f32 %v5480_v18, %v5044_v12 }
 0xff3   :  { %v5441_v20 = vpop.f32.mrf.mxu1  ;;  %v5482_v21 = vpop.f32.mrf.mxu0 }
 0xff4   :  { %5797 = vst [vmem:[%s19635_s9 + $0x28] sm:$0xff] %v5776_v39  ;;  %5799 = vst [vmem:[%s19635_s9 + $0x38] sm:$0xff] %v5778_v19  ;;  %v5057_v39 = vld [vmem:[%s19635_s9 + $0xa0] sm:$0xff] }
 0xff5   :  { %v5442_v23 = vpop.f32.mrf.mxu1  ;;  %v5483_v24 = vpop.f32.mrf.mxu0 }
 0xff7   :  { %v5519_v29 = vpop.f32.mrf.mxu1  ;;  %v5560_v62 = vpop.f32.mrf.mxu0 }
 0xff8   :  { %v5779_v63 = vadd.f32 %v5519_v29, %v5045_v26  ;;  %v5781_v2 = vadd.f32 %v5560_v62, %v5047_v27 }
 0xff9   :  { %v5521_v33 = vpop.f32.mrf.mxu1  ;;  %v5562_v34 = vpop.f32.mrf.mxu0 }
 0xffa   :  { %5800 = vst [vmem:[%s19635_s9 + $0x40] sm:$0xff] %v5779_v63  ;;  %5802 = vst [vmem:[%s19635_s9 + $0x50] sm:$0xff] %v5781_v2  ;;  %v5780_v35 = vadd.f32 %v5521_v33, %v5046_v30  ;;  %v5782_v17 = vadd.f32 %v5562_v34, %v5048_v32  ;;  %v13700_v32 = vld [vmem:[%s19632_s6] ss:$0 sm:$0xff] }
 0xffb   :  { %v5523_v36 = vpop.f32.mrf.mxu1  ;;  %v5564_v38 = vpop.f32.mrf.mxu0 }
 0xffc   :  { %5801 = vst [vmem:[%s19635_s9 + $0x48] sm:$0xff] %v5780_v35  ;;  %5803 = vst [vmem:[%s19635_s9 + $0x58] sm:$0xff] %v5782_v17 }
 0xffd   :  { %v5524_v40 = vpop.f32.mrf.mxu1  ;;  %v5565_v42 = vpop.f32.mrf.mxu0 }
 0xfff   :  { %v5601_v50 = vpop.f32.mrf.mxu1  ;;  %v5642_v51 = vpop.f32.mrf.mxu0 }
0x1000   :  { %v5783_v54 = vadd.f32 %v5601_v50, %v5049_v46  ;;  %v5785_v55 = vadd.f32 %v5642_v51, %v5051_v48 }
0x1001   :  { %v5603_v56 = vpop.f32.mrf.mxu1  ;;  %v5644_v25 = vpop.f32.mrf.mxu0 }
0x1002   :  { %5804 = vst [vmem:[%s19635_s9 + $0x60] sm:$0xff] %v5783_v54  ;;  %5806 = vst [vmem:[%s19635_s9 + $0x70] sm:$0xff] %v5785_v55  ;;  %v5784_v57 = vadd.f32 %v5603_v56, %v5050_v52  ;;  %v5786_v60 = vadd.f32 %v5644_v25, %v5052_v22 }
0x1003   :  { %v5605_v61 = vpop.f32.mrf.mxu1  ;;  %v5646_v6 = vpop.f32.mrf.mxu0 }
0x1004   :  { %5805 = vst [vmem:[%s19635_s9 + $0x68] sm:$0xff] %v5784_v57  ;;  %5807 = vst [vmem:[%s19635_s9 + $0x78] sm:$0xff] %v5786_v60 }
0x1005   :  { %v5606_v0 = vpop.f32.mrf.mxu1  ;;  %v5647_v1 = vpop.f32.mrf.mxu0 }
0x1007   :  { %v5683_v5 = vpop.f32.mrf.mxu1  ;;  %v5724_v28 = vpop.f32.mrf.mxu0 }
0x1008   :  { %v5787_v9 = vadd.f32 %v5683_v5, %v5053_v3  ;;  %v5789_v31 = vadd.f32 %v5724_v28, %v5055_v4 }
0x1009   :  { %v5685_v10 = vpop.f32.mrf.mxu1  ;;  %v5726_v11 = vpop.f32.mrf.mxu0 }
0x100a   :  { %5808 = vst [vmem:[%s19635_s9 + $0x80] sm:$0xff] %v5787_v9  ;;  %5810 = vst [vmem:[%s19635_s9 + $0x90] sm:$0xff] %v5789_v31  ;;  %v5788_v59 = vadd.f32 %v5685_v10, %v5054_v7  ;;  %v5790_v12 = vadd.f32 %v5726_v11, %v5056_v8 }
0x100b   :  { %v5687_v13 = vpop.f32.mrf.mxu1  ;;  %v5728_v14 = vpop.f32.mrf.mxu0 }
0x100c   :  { %5809 = vst [vmem:[%s19635_s9 + $0x88] sm:$0xff] %v5788_v59  ;;  %5811 = vst [vmem:[%s19635_s9 + $0x98] sm:$0xff] %v5790_v12 }
0x100d   :  { %v5688_v16 = vpop.f32.mrf.mxu1  ;;  %v5729_v18 = vpop.f32.mrf.mxu0 }
0x100f   :  { %v5765_v19 = vpop.f32.mrf.mxu1  ;;  %v5870_v20 = vpop.f32.mrf.mxu0 }
0x1010   :  { %v5791_v21 = vadd.f32 %v5765_v19, %v5057_v39  ;;  %v5876_v23 = vadd.f32 %v5870_v20, %v17240_v43 }
0x1011   :  { %v14445_v24 = vpop.f32.mrf.mxu1  ;;  %v14453_v26 = vpop.f32.mrf.mxu0 }
0x1012   :  { %5812 = vst [vmem:[%s19635_s9 + $0xa0] sm:$0xff] %v5791_v21  ;;  %15020 = vtanh.f32 %v5876_v23  ;;  %v13699_v48 = vmul.f32 -1.442695, %v5876_v23 }
0x1013   :  { %v5768_v27 = vpop.f32.mrf.mxu1  ;;  %v5873_v29 = vpop.f32.mrf.mxu0 }
0x1015   :  { %v14446_v62 = vpop.f32.mrf.mxu1  ;;  %v14454_v30 = vpop.f32.mrf.mxu0 }
0x1017   :  { %v5958_v63 = vpop.f32.mrf.mxu1  ;;  %v6014_v2 = vpop.f32.mrf.mxu0 }
0x1018   :  { %v5959_v33 = vadd.f32 %v13700_v32, %v5958_v63 }
0x1019   :  { %v14461_v34 = vpop.f32.mrf.mxu1  ;;  %v14469_v43 = vpop.f32.mrf.mxu0 }
0x101a   :  { %v6020_v35 = vadd.f32 %v6014_v2, %v5959_v33 }
0x101b   :  { %v5961_v17 = vpop.f32.mrf.mxu1  ;;  %v6017_v36 = vpop.f32.mrf.mxu0 }
0x101c   :  { %15022 = vtanh.f32 %v6020_v35  ;;  %v13707_v50 = vmul.f32 -1.442695, %v6020_v35 }
0x101d   :  { %v14462_v38 = vpop.f32.mrf.mxu1  ;;  %v14470_v40 = vpop.f32.mrf.mxu0  ;;  %15024 = vpow2.f32 %v13699_v48 }
0x101e   :  { %15026 = vpow2.f32 %v13707_v50 }
0x101f   :  { %v15021_v42 = vpop.eup %15020 }
0x1020   :  { %5886 = vrot.lane.b32.xlu1 %v15021_v42, %s15617_s3 }
0x1029   :  { %v15023_v46 = vpop.eup %15022 }
0x102a   :  { %6030 = vrot.lane.b32.xlu1 %v15023_v46, %s15617_s3  ;;  %v15025_v51 = vpop.eup %15024 }
0x102b   :  { %v5880_v52 = vadd.f32 1.0, %v15025_v51  ;;  %v15027_v22 = vpop.eup %15026 }
0x102c   :  { %v6024_v54 = vadd.f32 1.0, %v15027_v22 }
0x102d   :  { %15028 = vrcp.f32 %v5880_v52 }
0x102e   :  { %15030 = vrcp.f32 %v6024_v54 }
0x103a   :  { %v15029_v55 = vpop.eup %15028 }
0x103b   :  { %v15031_v57 = vpop.eup %15030  ;;  %v5884_v6 = vmul.f32 %v15029_v55, %v17924_v44 }
0x103c   :  { %v6028_v3 = vmul.f32 %v15031_v57, %v17928_v49 }
0x1092   :  { %v5887_v56 = vpop.permute.xlu1 %5886 }
0x1093   :  { %v5889_v25 = vmul.f32 %v15029_v55, %v5887_v56 }
0x1095   :  { %5891 = vrot.lane.b32.xlu0 %v5889_v25, %s15617_s3 }
0x109c   :  { %v6031_v60 = vpop.permute.xlu1 %6030 }
0x109d   :  { %v6033_v61 = vmul.f32 %v15031_v57, %v6031_v60 }
0x109f   :  { %6035 = vrot.lane.b32.xlu1 %v6033_v61, %s15617_s3 }
0x1107   :  { %v5892_v0 = vpop.permute.xlu0 %5891 }
0x1108   :  { %v18142_v1 = vadd.f32 %v5892_v0, %v5884_v6 }
0x110a   :  { %15032 = vtanh.f32 %v18142_v1 }
0x1111   :  { %v6036_v4 = vpop.permute.xlu1 %6035 }
0x1112   :  { %v18146_v5 = vadd.f32 %v6036_v4, %v6028_v3 }
0x1114   :  { %15034 = vtanh.f32 %v18146_v5 }
0x1117   :  { %v15033_v28 = vpop.eup %15032 }
0x1118   :  { %5897 = vrot.lane.b32.xlu0 %v15033_v28, %s15617_s3 }
0x1121   :  { %v15035_v7 = vpop.eup %15034 }
0x1122   :  { %6041 = vrot.lane.b32.xlu1 %v15035_v7, %s15617_s3 }
0x118a   :  { %v5898_v8 = vpop.permute.xlu0 %5897 }
0x118b   :  { %v5900_v44 = vmul.f32 %v15029_v55, %v5898_v8 }
0x1194   :  { %v6042_v9 = vpop.permute.xlu1 %6041 }
0x1195   :  { %v6044_v31 = vmul.f32 %v15031_v57, %v6042_v9 }
0x1197   :  { %v6068_v10 = vpack.c.bf16 %v6044_v31, %v6044_v31 }
0x1198   :  { %15600 = dma.done.wait [#allocation3 + $0x4], 5376 }
0x1199   :  { %15601 = vsyncadd [#allocation3 + $0x4], 4294961920  ;;  %6363 = vmatprep.mubr.bf16.mxu1 %v15616_v58  ;;  %6404 = vmatprep.mubr.bf16.mxu0 %v15616_v58  ;;  %v6823_v49 = vpack.c.bf16 %v5900_v44, %v5900_v44  ;;  %v15036_v11 = vld [vmem:[#allocation2 + $0x5ec] ss:$84 sps:$4 sm:$0xff]   ;;  %v15038_v59 = vld [vmem:[#allocation2 + $0x5e8] ss:$84 sps:$4 sm:$0xff]  }
0x119a   :  { %6114 = vrot.lane.b32.xlu0 %v6068_v10, %s15618_s23  ;;  %6343 = vmatprep.subr.bf16.mxu1 %v15036_v11  ;;  %v15039_v12 = vld [vmem:[#allocation2 + $0x5f4] ss:$84 sps:$4 sm:$0xff]   ;;  %v15041_v13 = vld [vmem:[#allocation2 + $0x5f0] ss:$84 sps:$4 sm:$0xff]   ;;  %v15045_v18 = vld [vmem:[#allocation2 + $0x54c] ss:$84 sps:$4 sm:$0xff]  }
0x119b   :  { %6344 = vmatpush1.bf16.msra.mxu1 %v15038_v59  ;;  %v15042_v14 = vld [vmem:[#allocation2 + $0x544] ss:$84 sps:$4 sm:$0xff]   ;;  %v15044_v16 = vld [vmem:[#allocation2 + $0x540] ss:$84 sps:$4 sm:$0xff]   ;;  %6384 = vmatprep.subr.bf16.mxu0 %v15039_v12  ;;  %v15047_v39 = vld [vmem:[#allocation2 + $0x548] ss:$84 sps:$4 sm:$0xff]  }
0x119c   :  { %6385 = vmatpush1.bf16.msra.mxu0 %v15041_v13  ;;  %6345 = vmatprep.subr.bf16.mxu1 %v15042_v14  ;;  %v15050_v19 = vld [vmem:[#allocation2 + $0x5fc] ss:$84 sps:$4 sm:$0xff]   ;;  %v15053_v20 = vld [vmem:[#allocation2 + $0x604] ss:$84 sps:$4 sm:$0xff]   ;;  %v15051_v23 = vld [vmem:[#allocation2 + $0x600] ss:$84 sps:$4 sm:$0xff]  }
0x119d   :  { %6386 = vmatprep.subr.bf16.mxu0 %v15045_v18  ;;  %v15048_v21 = vld [vmem:[#allocation2 + $0x5f8] ss:$84 sps:$4 sm:$0xff]   ;;  %v15056_v24 = vld [vmem:[#allocation2 + $0x554] ss:$84 sps:$4 sm:$0xff]   ;;  %v15059_v26 = vld [vmem:[#allocation2 + $0x55c] ss:$84 sps:$4 sm:$0xff]  }
0x119e   :  { %6829 = vrot.lane.b32.xlu0 %v6823_v49, %s15618_s23  ;;  %v15054_v29 = vld [vmem:[#allocation2 + $0x550] ss:$84 sps:$4 sm:$0xff]   ;;  %v15057_v62 = vld [vmem:[#allocation2 + $0x558] ss:$84 sps:$4 sm:$0xff]   ;;  %v15065_v32 = vld [vmem:[#allocation2 + $0x614] ss:$84 sps:$4 sm:$0xff]  }
0x119f   :  { %6346 = vmatpush1.bf16.msra.mxu1 %v15044_v16  ;;  %v15062_v30 = vld [vmem:[#allocation2 + $0x60c] ss:$84 sps:$4 sm:$0xff]   ;;  %v15060_v63 = vld [vmem:[#allocation2 + $0x608] ss:$84 sps:$4 sm:$0xff]   ;;  %v15063_v2 = vld [vmem:[#allocation2 + $0x610] ss:$84 sps:$4 sm:$0xff]  }
0x11a0   :  { %6425 = vmatprep.subr.bf16.mxu1 %v15050_v19  ;;  %6387 = vmatpush1.bf16.msra.mxu0 %v15047_v39  ;;  %v15068_v33 = vld [vmem:[#allocation2 + $0x564] ss:$84 sps:$4 sm:$0xff]   ;;  %v15071_v34 = vld [vmem:[#allocation2 + $0x56c] ss:$84 sps:$4 sm:$0xff]   ;;  %v15069_v35 = vld [vmem:[#allocation2 + $0x568] ss:$84 sps:$4 sm:$0xff]  }
0x11a1   :  { %6466 = vmatprep.subr.bf16.mxu0 %v15053_v20  ;;  %v15066_v43 = vld [vmem:[#allocation2 + $0x560] ss:$84 sps:$4 sm:$0xff]   ;;  %v15074_v17 = vld [vmem:[#allocation2 + $0x61c] ss:$84 sps:$4 sm:$0xff]   ;;  %v15077_v36 = vld [vmem:[#allocation2 + $0x624] ss:$84 sps:$4 sm:$0xff]  }
0x11a2   :  { %v15072_v38 = vld [vmem:[#allocation2 + $0x618] ss:$84 sps:$4 sm:$0xff]   ;;  %v15075_v40 = vld [vmem:[#allocation2 + $0x620] ss:$84 sps:$4 sm:$0xff]   ;;  %v15083_v46 = vld [vmem:[#allocation2 + $0x57c] ss:$84 sps:$4 sm:$0xff]  }
0x11a3   :  { %v15080_v42 = vld [vmem:[#allocation2 + $0x574] ss:$84 sps:$4 sm:$0xff]   ;;  %v15078_v48 = vld [vmem:[#allocation2 + $0x570] ss:$84 sps:$4 sm:$0xff]   ;;  %v15081_v50 = vld [vmem:[#allocation2 + $0x578] ss:$84 sps:$4 sm:$0xff]  }
0x11a4   :  { %v15086_v51 = vld [vmem:[#allocation2 + $0x62c] ss:$84 sps:$4 sm:$0xff]   ;;  %v15089_v52 = vld [vmem:[#allocation2 + $0x634] ss:$84 sps:$4 sm:$0xff]   ;;  %v15087_v54 = vld [vmem:[#allocation2 + $0x630] ss:$84 sps:$4 sm:$0xff]  }
0x11a5   :  { %v15084_v22 = vld [vmem:[#allocation2 + $0x628] ss:$84 sps:$4 sm:$0xff]   ;;  %v15092_v55 = vld [vmem:[#allocation2 + $0x584] ss:$84 sps:$4 sm:$0xff]   ;;  %v15095_v56 = vld [vmem:[#allocation2 + $0x58c] ss:$84 sps:$4 sm:$0xff]  }
0x11a6   :  { %v15090_v25 = vld [vmem:[#allocation2 + $0x580] ss:$84 sps:$4 sm:$0xff]   ;;  %v15093_v57 = vld [vmem:[#allocation2 + $0x588] ss:$84 sps:$4 sm:$0xff]   ;;  %v15096_v60 = vld [vmem:[#allocation2 + $0x638] ss:$84 sps:$4 sm:$0xff]  }
0x11a7   :  { %v15097_v61 = vld [vmem:[%s19628_s2 + $0x8] sm:$0xff]   ;;  %v15098_v6 = vld [vmem:[#allocation2 + $0x590] ss:$84 sps:$4 sm:$0xff]   ;;  %v6050_v11 = vld [vmem:[%s19635_s9 + $0x18] sm:$0xff] }
0x11a8   :  { %v15099_v0 = vld [vmem:[%s19628_s2] sm:$0xff]   ;;  %v15100_v4 = vld [vmem:[%s19630_s4 + $0x8] sm:$0xff]   ;;  %v6049_v9 = vld [vmem:[%s19635_s9 + $0x10] sm:$0xff] }
0x11a9   :  { %v15101_v28 = vld [vmem:[%s19631_s5 + $0x8] sm:$0xff]   ;;  %v15102_v7 = vld [vmem:[%s19630_s4] sm:$0xff]  }
0x11aa   :  { %v15103_v8 = vld [vmem:[%s19631_s5] sm:$0xff]   ;;  %v6048_v49 = vld [vmem:[%s19635_s9 + $0x8] sm:$0xff] }
0x11ab   :  { %v6047_v44 = vld [vmem:[%s19635_s9] sm:$0xff] }
0x120c   :  { %v18155_v27 = vpop.permute.xlu0 %6114 }
0x120d   :  { %13750 = vmatmul.mubr.msk.bf16.vlgmr.msra.gmra.mxu1 %vm1718_vm2, %v18155_v27  ;;  %13751 = vmatmul.mubr.msk.bf16.vlgmr.msra.gmra.mxu0 %vm1718_vm2, %v18155_v27 }
0x120e   :  { %6426 = vmatpush1.bf16.msra.mxu1 %v15048_v21  ;;  %6467 = vmatpush1.bf16.msra.mxu0 %v15051_v23  ;;  %v6051_v23 = vld [vmem:[%s19635_s9 + $0x20] sm:$0xff] }
0x120f   :  { %6427 = vmatprep.subr.bf16.mxu1 %v15056_v24  ;;  %6468 = vmatprep.subr.bf16.mxu0 %v15059_v26  ;;  %v6053_v24 = vld [vmem:[%s19635_s9 + $0x30] sm:$0xff] }
0x1210   :  { %6445 = vmatprep.mubr.bf16.mxu1 %v15616_v58  ;;  %6486 = vmatprep.mubr.bf16.mxu0 %v15616_v58  ;;  %v6830_v3 = vpop.permute.xlu0 %6829 }
0x1212   :  { %6428 = vmatpush1.bf16.msra.mxu1 %v15054_v29  ;;  %6469 = vmatpush1.bf16.msra.mxu0 %v15057_v62  ;;  %v6052_v29 = vld [vmem:[%s19635_s9 + $0x28] sm:$0xff]  ;;  %v6054_v62 = vld [vmem:[%s19635_s9 + $0x38] sm:$0xff] }
0x1213   :  { %6507 = vmatprep.subr.bf16.mxu1 %v15062_v30  ;;  %6548 = vmatprep.subr.bf16.mxu0 %v15065_v32 }
0x1215   :  { %13752 = vmatmul.mubr.msk.bf16.vlgmr.msra.gmra.mxu1 %vm1718_vm2, %v18155_v27  ;;  %13753 = vmatmul.mubr.msk.bf16.vlgmr.msra.gmra.mxu0 %vm1718_vm2, %v18155_v27 }
0x1216   :  { %6508 = vmatpush1.bf16.msra.mxu1 %v15060_v63  ;;  %6549 = vmatpush1.bf16.msra.mxu0 %v15063_v2 }
0x1217   :  { %6509 = vmatprep.subr.bf16.mxu1 %v15068_v33  ;;  %6550 = vmatprep.subr.bf16.mxu0 %v15071_v34 }
0x1218   :  { %6527 = vmatprep.mubr.bf16.mxu1 %v15616_v58  ;;  %6568 = vmatprep.mubr.bf16.mxu0 %v15616_v58 }
0x121a   :  { %6510 = vmatpush1.bf16.msra.mxu1 %v15066_v43  ;;  %6551 = vmatpush1.bf16.msra.mxu0 %v15069_v35 }
0x121b   :  { %6589 = vmatprep.subr.bf16.mxu1 %v15074_v17  ;;  %6630 = vmatprep.subr.bf16.mxu0 %v15077_v36 }
0x121d   :  { %13754 = vmatmul.mubr.msk.bf16.vlgmr.msra.gmra.mxu1 %vm1718_vm2, %v18155_v27  ;;  %13755 = vmatmul.mubr.msk.bf16.vlgmr.msra.gmra.mxu0 %vm1718_vm2, %v18155_v27 }
0x121e   :  { %6590 = vmatpush1.bf16.msra.mxu1 %v15072_v38  ;;  %6631 = vmatpush1.bf16.msra.mxu0 %v15075_v40  ;;  %v6055_v38 = vld [vmem:[%s19635_s9 + $0x40] sm:$0xff]  ;;  %v6057_v40 = vld [vmem:[%s19635_s9 + $0x50] sm:$0xff] }
0x121f   :  { %6591 = vmatprep.subr.bf16.mxu1 %v15080_v42  ;;  %6632 = vmatprep.subr.bf16.mxu0 %v15083_v46 }
0x1220   :  { %6609 = vmatprep.mubr.bf16.mxu1 %v15616_v58  ;;  %6650 = vmatprep.mubr.bf16.mxu0 %v15616_v58 }
0x1222   :  { %6592 = vmatpush1.bf16.msra.mxu1 %v15078_v48  ;;  %6633 = vmatpush1.bf16.msra.mxu0 %v15081_v50  ;;  %v6056_v48 = vld [vmem:[%s19635_s9 + $0x48] sm:$0xff]  ;;  %v6058_v50 = vld [vmem:[%s19635_s9 + $0x58] sm:$0xff] }
0x1223   :  { %6671 = vmatprep.subr.bf16.mxu1 %v15086_v51  ;;  %6712 = vmatprep.subr.bf16.mxu0 %v15089_v52 }
0x1225   :  { %13756 = vmatmul.mubr.msk.bf16.vlgmr.msra.gmra.mxu1 %vm1718_vm2, %v18155_v27  ;;  %13757 = vmatmul.mubr.msk.bf16.vlgmr.msra.gmra.mxu0 %vm1718_vm2, %v18155_v27 }
0x1226   :  { %6672 = vmatpush1.bf16.msra.mxu1 %v15084_v22  ;;  %6713 = vmatpush1.bf16.msra.mxu0 %v15087_v54 }
0x1227   :  { %6673 = vmatprep.subr.bf16.mxu1 %v15092_v55  ;;  %6714 = vmatprep.subr.bf16.mxu0 %v15095_v56 }
0x1228   :  { %6691 = vmatprep.mubr.bf16.mxu1 %v15616_v58  ;;  %6732 = vmatprep.mubr.bf16.mxu0 %v15616_v58 }
0x122a   :  { %6674 = vmatpush1.bf16.msra.mxu1 %v15090_v25  ;;  %6715 = vmatpush1.bf16.msra.mxu0 %v15093_v57 }
0x122b   :  { %14471 = vmatprep.subr.bf16.mxu1 %v15614_v15  ;;  %14479 = vmatprep.subr.bf16.mxu0 %v15614_v15 }
0x122d   :  { %13758 = vmatmul.mubr.msk.bf16.vlgmr.msra.gmra.mxu1 %vm1718_vm2, %v18155_v27  ;;  %13759 = vmatmul.mubr.msk.bf16.vlgmr.msra.gmra.mxu0 %vm1718_vm2, %v18155_v27 }
0x122e   :  { %14472 = vmatpush3.bf16.msra.mxu1 %v15096_v60  ;;  %14480 = vmatpush3.bf16.msra.mxu0 %v15097_v61 }
0x122f   :  { %14473 = vmatprep.subr.bf16.mxu1 %v15614_v15  ;;  %14481 = vmatprep.subr.bf16.mxu0 %v15614_v15 }
0x1230   :  { %14475 = vmatprep.mubr.msk.bf16.mxu1 %vm15615_vm1, %v15614_v15  ;;  %14483 = vmatprep.mubr.msk.bf16.mxu0 %vm15615_vm1, %v15614_v15 }
0x1232   :  { %14474 = vmatpush3.bf16.msra.mxu1 %v15098_v6  ;;  %14482 = vmatpush3.bf16.msra.mxu0 %v15099_v0  ;;  %v6059_v6 = vld [vmem:[%s19635_s9 + $0x60] sm:$0xff]  ;;  %v6061_v0 = vld [vmem:[%s19635_s9 + $0x70] sm:$0xff] }
0x1233   :  { %14487 = vmatprep.subr.bf16.mxu1 %v15614_v15  ;;  %14495 = vmatprep.subr.bf16.mxu0 %v15614_v15 }
0x1235   :  { %14476 = vmatmul.mubr.msk.bf16.vlgmr.msra.gmra.mxu1 %vm1718_vm2, %v18155_v27  ;;  %14484 = vmatmul.mubr.msk.bf16.vlgmr.msra.gmra.mxu0 %vm1718_vm2, %v6830_v3 }
0x1236   :  { %14488 = vmatpush3.bf16.msra.mxu1 %v15100_v4  ;;  %14496 = vmatpush3.bf16.msra.mxu0 %v15101_v28  ;;  %v6060_v28 = vld [vmem:[%s19635_s9 + $0x68] sm:$0xff] }
0x1237   :  { %14489 = vmatprep.subr.bf16.mxu1 %v15614_v15  ;;  %14497 = vmatprep.subr.bf16.mxu0 %v15614_v15 }
0x1238   :  { %14491 = vmatprep.mubr.msk.bf16.mxu1 %vm15615_vm1, %v15614_v15  ;;  %14499 = vmatprep.mubr.msk.bf16.mxu0 %vm15615_vm1, %v15614_v15 }
0x123a   :  { %14490 = vmatpush3.bf16.msra.mxu1 %v15102_v7  ;;  %14498 = vmatpush3.bf16.msra.mxu0 %v15103_v8  ;;  %v6062_v7 = vld [vmem:[%s19635_s9 + $0x78] sm:$0xff] }
0x123d   :  { %14492 = vmatmul.mubr.msk.bf16.vlgmr.msra.gmra.mxu1 %vm1718_vm2, %v6830_v3  ;;  %14500 = vmatmul.mubr.msk.bf16.vlgmr.msra.gmra.mxu0 %vm1718_vm2, %v18155_v27 }
0x12cd   :  { %v6365_v31 = vpop.f32.mrf.mxu1  ;;  %v6406_v10 = vpop.f32.mrf.mxu0 }
0x12ce   :  { %v6781_v59 = vadd.f32 %v6365_v31, %v6047_v44  ;;  %v6783_v12 = vadd.f32 %v6406_v10, %v6049_v9 }
0x12cf   :  { %v6367_v13 = vpop.f32.mrf.mxu1  ;;  %v6408_v14 = vpop.f32.mrf.mxu0 }
0x12d0   :  { %6802 = vst [vmem:[%s19635_s9] sm:$0xff] %v6781_v59  ;;  %6804 = vst [vmem:[%s19635_s9 + $0x10] sm:$0xff] %v6783_v12  ;;  %v6782_v16 = vadd.f32 %v6367_v13, %v6048_v49  ;;  %v6784_v18 = vadd.f32 %v6408_v14, %v6050_v11  ;;  %v6063_v14 = vld [vmem:[%s19635_s9 + $0x80] sm:$0xff] }
0x12d1   :  { %v6369_v39 = vpop.f32.mrf.mxu1  ;;  %v6410_v19 = vpop.f32.mrf.mxu0 }
0x12d2   :  { %6803 = vst [vmem:[%s19635_s9 + $0x8] sm:$0xff] %v6782_v16  ;;  %6805 = vst [vmem:[%s19635_s9 + $0x18] sm:$0xff] %v6784_v18  ;;  %v6065_v16 = vld [vmem:[%s19635_s9 + $0x90] sm:$0xff]  ;;  %v6064_v19 = vld [vmem:[%s19635_s9 + $0x88] sm:$0xff] }
0x12d3   :  { %v6370_v20 = vpop.f32.mrf.mxu1  ;;  %v6411_v21 = vpop.f32.mrf.mxu0 }
0x12d4   :  { %v6066_v20 = vld [vmem:[%s19635_s9 + $0x98] sm:$0xff] }
0x12d5   :  { %v6447_v26 = vpop.f32.mrf.mxu1  ;;  %v6488_v27 = vpop.f32.mrf.mxu0 }
0x12d6   :  { %v6785_v30 = vadd.f32 %v6447_v26, %v6051_v23  ;;  %v6787_v32 = vadd.f32 %v6488_v27, %v6053_v24 }
0x12d7   :  { %v6449_v63 = vpop.f32.mrf.mxu1  ;;  %v6490_v2 = vpop.f32.mrf.mxu0 }
0x12d8   :  { %6806 = vst [vmem:[%s19635_s9 + $0x20] sm:$0xff] %v6785_v30  ;;  %6808 = vst [vmem:[%s19635_s9 + $0x30] sm:$0xff] %v6787_v32  ;;  %v6786_v33 = vadd.f32 %v6449_v63, %v6052_v29  ;;  %v6788_v34 = vadd.f32 %v6490_v2, %v6054_v62  ;;  %v6067_v2 = vld [vmem:[%s19635_s9 + $0xa0] sm:$0xff] }
0x12d9   :  { %v6451_v43 = vpop.f32.mrf.mxu1  ;;  %v6492_v35 = vpop.f32.mrf.mxu0 }
0x12da   :  { %6807 = vst [vmem:[%s19635_s9 + $0x28] sm:$0xff] %v6786_v33  ;;  %6809 = vst [vmem:[%s19635_s9 + $0x38] sm:$0xff] %v6788_v34 }
0x12db   :  { %v6452_v17 = vpop.f32.mrf.mxu1  ;;  %v6493_v36 = vpop.f32.mrf.mxu0 }
0x12dd   :  { %v6529_v42 = vpop.f32.mrf.mxu1  ;;  %v6570_v46 = vpop.f32.mrf.mxu0 }
0x12de   :  { %v6789_v51 = vadd.f32 %v6529_v42, %v6055_v38  ;;  %v6791_v52 = vadd.f32 %v6570_v46, %v6057_v40 }
0x12df   :  { %v6531_v22 = vpop.f32.mrf.mxu1  ;;  %v6572_v54 = vpop.f32.mrf.mxu0 }
0x12e0   :  { %6810 = vst [vmem:[%s19635_s9 + $0x40] sm:$0xff] %v6789_v51  ;;  %6812 = vst [vmem:[%s19635_s9 + $0x50] sm:$0xff] %v6791_v52  ;;  %v6790_v55 = vadd.f32 %v6531_v22, %v6056_v48  ;;  %v6792_v56 = vadd.f32 %v6572_v54, %v6058_v50  ;;  %v13765_v48 = vld [vmem:[%s19632_s6] ss:$0 sm:$0xff] }
0x12e1   :  { %v6533_v25 = vpop.f32.mrf.mxu1  ;;  %v6574_v57 = vpop.f32.mrf.mxu0 }
0x12e2   :  { %6811 = vst [vmem:[%s19635_s9 + $0x48] sm:$0xff] %v6790_v55  ;;  %6813 = vst [vmem:[%s19635_s9 + $0x58] sm:$0xff] %v6792_v56 }
0x12e3   :  { %v6534_v60 = vpop.f32.mrf.mxu1  ;;  %v6575_v61 = vpop.f32.mrf.mxu0 }
0x12e5   :  { %v6611_v3 = vpop.f32.mrf.mxu1  ;;  %v6652_v4 = vpop.f32.mrf.mxu0 }
0x12e6   :  { %v6793_v8 = vadd.f32 %v6611_v3, %v6059_v6  ;;  %v6795_v44 = vadd.f32 %v6652_v4, %v6061_v0 }
0x12e7   :  { %v6613_v9 = vpop.f32.mrf.mxu1  ;;  %v6654_v31 = vpop.f32.mrf.mxu0 }
0x12e8   :  { %6814 = vst [vmem:[%s19635_s9 + $0x60] sm:$0xff] %v6793_v8  ;;  %6816 = vst [vmem:[%s19635_s9 + $0x70] sm:$0xff] %v6795_v44  ;;  %v6794_v10 = vadd.f32 %v6613_v9, %v6060_v28  ;;  %v6796_v49 = vadd.f32 %v6654_v31, %v6062_v7 }
0x12e9   :  { %v6615_v11 = vpop.f32.mrf.mxu1  ;;  %v6656_v59 = vpop.f32.mrf.mxu0 }
0x12ea   :  { %6815 = vst [vmem:[%s19635_s9 + $0x68] sm:$0xff] %v6794_v10  ;;  %6817 = vst [vmem:[%s19635_s9 + $0x78] sm:$0xff] %v6796_v49 }
0x12eb   :  { %v6616_v12 = vpop.f32.mrf.mxu1  ;;  %v6657_v13 = vpop.f32.mrf.mxu0 }
0x12ed   :  { %v6693_v18 = vpop.f32.mrf.mxu1  ;;  %v6734_v39 = vpop.f32.mrf.mxu0 }
0x12ee   :  { %v6797_v21 = vadd.f32 %v6693_v18, %v6063_v14  ;;  %v6799_v23 = vadd.f32 %v6734_v39, %v6065_v16 }
0x12ef   :  { %v6695_v24 = vpop.f32.mrf.mxu1  ;;  %v6736_v26 = vpop.f32.mrf.mxu0 }
0x12f0   :  { %6818 = vst [vmem:[%s19635_s9 + $0x80] sm:$0xff] %v6797_v21  ;;  %6820 = vst [vmem:[%s19635_s9 + $0x90] sm:$0xff] %v6799_v23  ;;  %v6798_v27 = vadd.f32 %v6695_v24, %v6064_v19  ;;  %v6800_v29 = vadd.f32 %v6736_v26, %v6066_v20 }
0x12f1   :  { %v6697_v62 = vpop.f32.mrf.mxu1  ;;  %v6738_v30 = vpop.f32.mrf.mxu0 }
0x12f2   :  { %6819 = vst [vmem:[%s19635_s9 + $0x88] sm:$0xff] %v6798_v27  ;;  %6821 = vst [vmem:[%s19635_s9 + $0x98] sm:$0xff] %v6800_v29 }
0x12f3   :  { %v6698_v32 = vpop.f32.mrf.mxu1  ;;  %v6739_v63 = vpop.f32.mrf.mxu0 }
0x12f5   :  { %v6775_v33 = vpop.f32.mrf.mxu1  ;;  %v6880_v34 = vpop.f32.mrf.mxu0 }
0x12f6   :  { %v6801_v43 = vadd.f32 %v6775_v33, %v6067_v2  ;;  %v6886_v35 = vadd.f32 %v6880_v34, %v17231_v37 }
0x12f7   :  { %v14477_v17 = vpop.f32.mrf.mxu1  ;;  %v14485_v36 = vpop.f32.mrf.mxu0 }
0x12f8   :  { %6822 = vst [vmem:[%s19635_s9 + $0xa0] sm:$0xff] %v6801_v43  ;;  %15104 = vtanh.f32 %v6886_v35  ;;  %v13764_v6 = vmul.f32 -1.442695, %v6886_v35 }
0x12f9   :  { %v6778_v38 = vpop.f32.mrf.mxu1  ;;  %v6883_v40 = vpop.f32.mrf.mxu0 }
0x12fb   :  { %v14478_v42 = vpop.f32.mrf.mxu1  ;;  %v14486_v46 = vpop.f32.mrf.mxu0 }
0x12fd   :  { %v6968_v50 = vpop.f32.mrf.mxu1  ;;  %v7024_v51 = vpop.f32.mrf.mxu0 }
0x12fe   :  { %v6969_v52 = vadd.f32 %v13765_v48, %v6968_v50 }
0x12ff   :  { %v14493_v22 = vpop.f32.mrf.mxu1  ;;  %v14501_v37 = vpop.f32.mrf.mxu0 }
0x1300   :  { %v7030_v54 = vadd.f32 %v7024_v51, %v6969_v52 }
0x1301   :  { %v6971_v55 = vpop.f32.mrf.mxu1  ;;  %v7027_v56 = vpop.f32.mrf.mxu0 }
0x1302   :  { %15106 = vtanh.f32 %v7030_v54  ;;  %v13772_v0 = vmul.f32 -1.442695, %v7030_v54 }
0x1303   :  { %v14494_v25 = vpop.f32.mrf.mxu1  ;;  %v14502_v57 = vpop.f32.mrf.mxu0  ;;  %15108 = vpow2.f32 %v13764_v6 }
0x1304   :  { %15110 = vpow2.f32 %v13772_v0 }
0x1305   :  { %v15105_v60 = vpop.eup %15104 }
0x1306   :  { %6896 = vrot.lane.b32.xlu1 %v15105_v60, %s15617_s3 }
0x130f   :  { %v15107_v61 = vpop.eup %15106 }
0x1310   :  { %7040 = vrot.lane.b32.xlu1 %v15107_v61, %s15617_s3  ;;  %v15109_v3 = vpop.eup %15108 }
0x1311   :  { %v6890_v4 = vadd.f32 1.0, %v15109_v3  ;;  %v15111_v28 = vpop.eup %15110 }
0x1312   :  { %v7034_v7 = vadd.f32 1.0, %v15111_v28 }
0x1313   :  { %15112 = vrcp.f32 %v6890_v4 }
0x1314   :  { %15114 = vrcp.f32 %v7034_v7 }
0x1320   :  { %v15113_v8 = vpop.eup %15112 }
0x1321   :  { %v15115_v31 = vpop.eup %15114  ;;  %v6894_v11 = vmul.f32 %v15113_v8, %v18142_v1 }
0x1322   :  { %v7038_v13 = vmul.f32 %v15115_v31, %v18146_v5 }
0x1378   :  { %v6897_v44 = vpop.permute.xlu1 %6896 }
0x1379   :  { %v6899_v9 = vmul.f32 %v15113_v8, %v6897_v44 }
0x137b   :  { %6901 = vrot.lane.b32.xlu0 %v6899_v9, %s15617_s3 }
0x1382   :  { %v7041_v10 = vpop.permute.xlu1 %7040 }
0x1383   :  { %v7043_v49 = vmul.f32 %v15115_v31, %v7041_v10 }
0x1385   :  { %7045 = vrot.lane.b32.xlu1 %v7043_v49, %s15617_s3 }
0x13ed   :  { %v6902_v59 = vpop.permute.xlu0 %6901 }
0x13ee   :  { %v18360_v12 = vadd.f32 %v6902_v59, %v6894_v11 }
0x13f0   :  { %15116 = vtanh.f32 %v18360_v12 }
0x13f7   :  { %v7046_v14 = vpop.permute.xlu1 %7045 }
0x13f8   :  { %v18364_v16 = vadd.f32 %v7046_v14, %v7038_v13 }
0x13fa   :  { %15118 = vtanh.f32 %v18364_v16 }
0x13fd   :  { %v15117_v18 = vpop.eup %15116 }
0x13fe   :  { %6907 = vrot.lane.b32.xlu0 %v15117_v18, %s15617_s3 }
0x1407   :  { %v15119_v39 = vpop.eup %15118 }
0x1408   :  { %7051 = vrot.lane.b32.xlu1 %v15119_v39, %s15617_s3 }
0x1470   :  { %v6908_v19 = vpop.permute.xlu0 %6907 }
0x1471   :  { %v6910_v1 = vmul.f32 %v15113_v8, %v6908_v19 }
0x147a   :  { %v7052_v20 = vpop.permute.xlu1 %7051 }
0x147b   :  { %v7054_v21 = vmul.f32 %v15115_v31, %v7052_v20 }
0x147d   :  { %v7078_v23 = vpack.c.bf16 %v7054_v21, %v7054_v21 }
0x147e   :  { %15602 = dma.done.wait [#allocation3 + $0x5], 5376 }
0x147f   :  { %15603 = vsyncadd [#allocation3 + $0x5], 4294961920  ;;  %7373 = vmatprep.mubr.bf16.mxu1 %v15616_v58  ;;  %7414 = vmatprep.mubr.bf16.mxu0 %v15616_v58  ;;  %v7833_v5 = vpack.c.bf16 %v6910_v1, %v6910_v1  ;;  %v15120_v24 = vld [vmem:[#allocation2 + $0x73c] ss:$84 sps:$4 sm:$0xff]   ;;  %v15122_v26 = vld [vmem:[#allocation2 + $0x738] ss:$84 sps:$4 sm:$0xff]  }
0x1480   :  { %7124 = vrot.lane.b32.xlu0 %v7078_v23, %s15618_s23  ;;  %7353 = vmatprep.subr.bf16.mxu1 %v15120_v24  ;;  %v15123_v27 = vld [vmem:[#allocation2 + $0x744] ss:$84 sps:$4 sm:$0xff]   ;;  %v15125_v29 = vld [vmem:[#allocation2 + $0x740] ss:$84 sps:$4 sm:$0xff]   ;;  %v15129_v32 = vld [vmem:[#allocation2 + $0x69c] ss:$84 sps:$4 sm:$0xff]  }
0x1481   :  { %7354 = vmatpush1.bf16.msra.mxu1 %v15122_v26  ;;  %v15126_v62 = vld [vmem:[#allocation2 + $0x694] ss:$84 sps:$4 sm:$0xff]   ;;  %v15128_v30 = vld [vmem:[#allocation2 + $0x690] ss:$84 sps:$4 sm:$0xff]   ;;  %7394 = vmatprep.subr.bf16.mxu0 %v15123_v27  ;;  %v15131_v63 = vld [vmem:[#allocation2 + $0x698] ss:$84 sps:$4 sm:$0xff]  }
0x1482   :  { %7395 = vmatpush1.bf16.msra.mxu0 %v15125_v29  ;;  %7355 = vmatprep.subr.bf16.mxu1 %v15126_v62  ;;  %v15134_v2 = vld [vmem:[#allocation2 + $0x74c] ss:$84 sps:$4 sm:$0xff]   ;;  %v15137_v33 = vld [vmem:[#allocation2 + $0x754] ss:$84 sps:$4 sm:$0xff]   ;;  %v15135_v43 = vld [vmem:[#allocation2 + $0x750] ss:$84 sps:$4 sm:$0xff]  }
0x1483   :  { %7396 = vmatprep.subr.bf16.mxu0 %v15129_v32  ;;  %v15132_v34 = vld [vmem:[#allocation2 + $0x748] ss:$84 sps:$4 sm:$0xff]   ;;  %v15140_v35 = vld [vmem:[#allocation2 + $0x6a4] ss:$84 sps:$4 sm:$0xff]   ;;  %v15143_v17 = vld [vmem:[#allocation2 + $0x6ac] ss:$84 sps:$4 sm:$0xff]  }
0x1484   :  { %7839 = vrot.lane.b32.xlu0 %v7833_v5, %s15618_s23  ;;  %v15138_v38 = vld [vmem:[#allocation2 + $0x6a0] ss:$84 sps:$4 sm:$0xff]   ;;  %v15141_v40 = vld [vmem:[#allocation2 + $0x6a8] ss:$84 sps:$4 sm:$0xff]   ;;  %v15149_v46 = vld [vmem:[#allocation2 + $0x764] ss:$84 sps:$4 sm:$0xff]  }
0x1485   :  { %7356 = vmatpush1.bf16.msra.mxu1 %v15128_v30  ;;  %v15146_v42 = vld [vmem:[#allocation2 + $0x75c] ss:$84 sps:$4 sm:$0xff]   ;;  %v15144_v48 = vld [vmem:[#allocation2 + $0x758] ss:$84 sps:$4 sm:$0xff]   ;;  %v15147_v50 = vld [vmem:[#allocation2 + $0x760] ss:$84 sps:$4 sm:$0xff]  }
0x1486   :  { %7435 = vmatprep.subr.bf16.mxu1 %v15134_v2  ;;  %7397 = vmatpush1.bf16.msra.mxu0 %v15131_v63  ;;  %v15152_v51 = vld [vmem:[#allocation2 + $0x6b4] ss:$84 sps:$4 sm:$0xff]   ;;  %v15155_v52 = vld [vmem:[#allocation2 + $0x6bc] ss:$84 sps:$4 sm:$0xff]   ;;  %v15153_v37 = vld [vmem:[#allocation2 + $0x6b8] ss:$84 sps:$4 sm:$0xff]  }
0x1487   :  { %7476 = vmatprep.subr.bf16.mxu0 %v15137_v33  ;;  %v15150_v22 = vld [vmem:[#allocation2 + $0x6b0] ss:$84 sps:$4 sm:$0xff]   ;;  %v15158_v54 = vld [vmem:[#allocation2 + $0x76c] ss:$84 sps:$4 sm:$0xff]   ;;  %v15161_v55 = vld [vmem:[#allocation2 + $0x774] ss:$84 sps:$4 sm:$0xff]  }
0x1488   :  { %v15156_v56 = vld [vmem:[#allocation2 + $0x768] ss:$84 sps:$4 sm:$0xff]   ;;  %v15159_v25 = vld [vmem:[#allocation2 + $0x770] ss:$84 sps:$4 sm:$0xff]   ;;  %v15167_v60 = vld [vmem:[#allocation2 + $0x6cc] ss:$84 sps:$4 sm:$0xff]  }
0x1489   :  { %v15164_v57 = vld [vmem:[#allocation2 + $0x6c4] ss:$84 sps:$4 sm:$0xff]   ;;  %v15162_v61 = vld [vmem:[#allocation2 + $0x6c0] ss:$84 sps:$4 sm:$0xff]   ;;  %v15165_v6 = vld [vmem:[#allocation2 + $0x6c8] ss:$84 sps:$4 sm:$0xff]  }
0x148a   :  { %v15170_v0 = vld [vmem:[#allocation2 + $0x77c] ss:$84 sps:$4 sm:$0xff]   ;;  %v15173_v3 = vld [vmem:[#allocation2 + $0x784] ss:$84 sps:$4 sm:$0xff]   ;;  %v15171_v28 = vld [vmem:[#allocation2 + $0x780] ss:$84 sps:$4 sm:$0xff]  }
0x148b   :  { %v15168_v4 = vld [vmem:[#allocation2 + $0x778] ss:$84 sps:$4 sm:$0xff]   ;;  %v15176_v7 = vld [vmem:[#allocation2 + $0x6d4] ss:$84 sps:$4 sm:$0xff]   ;;  %v15179_v8 = vld [vmem:[#allocation2 + $0x6dc] ss:$84 sps:$4 sm:$0xff]  }
0x148c   :  { %v15174_v44 = vld [vmem:[#allocation2 + $0x6d0] ss:$84 sps:$4 sm:$0xff]   ;;  %v15177_v9 = vld [vmem:[#allocation2 + $0x6d8] ss:$84 sps:$4 sm:$0xff]   ;;  %v15180_v31 = vld [vmem:[#allocation2 + $0x788] ss:$84 sps:$4 sm:$0xff]  }
0x148d   :  { %v15181_v10 = vld [vmem:[%s19628_s2 + $0x8] sm:$0xff]   ;;  %v15182_v49 = vld [vmem:[#allocation2 + $0x6e0] ss:$84 sps:$4 sm:$0xff]   ;;  %v7060_v5 = vld [vmem:[%s19635_s9 + $0x18] sm:$0xff] }
0x148e   :  { %v15183_v11 = vld [vmem:[%s19628_s2] sm:$0xff]   ;;  %v15184_v13 = vld [vmem:[%s19630_s4 + $0x8] sm:$0xff]   ;;  %v7059_v1 = vld [vmem:[%s19635_s9 + $0x10] sm:$0xff] }
0x148f   :  { %v15185_v14 = vld [vmem:[%s19631_s5 + $0x8] sm:$0xff]   ;;  %v15186_v18 = vld [vmem:[%s19630_s4] sm:$0xff]  }
0x1490   :  { %v15187_v39 = vld [vmem:[%s19631_s5] sm:$0xff]   ;;  %v7058_v23 = vld [vmem:[%s19635_s9 + $0x8] sm:$0xff] }
0x1491   :  { %v7057_v19 = vld [vmem:[%s19635_s9] sm:$0xff] }
0x14f2   :  { %v18373_v36 = vpop.permute.xlu0 %7124 }
0x14f3   :  { %13815 = vmatmul.mubr.msk.bf16.vlgmr.msra.gmra.mxu1 %vm1718_vm2, %v18373_v36  ;;  %13816 = vmatmul.mubr.msk.bf16.vlgmr.msra.gmra.mxu0 %vm1718_vm2, %v18373_v36 }
0x14f4   :  { %7436 = vmatpush1.bf16.msra.mxu1 %v15132_v34  ;;  %7477 = vmatpush1.bf16.msra.mxu0 %v15135_v43  ;;  %v7061_v34 = vld [vmem:[%s19635_s9 + $0x20] sm:$0xff]  ;;  %v7063_v43 = vld [vmem:[%s19635_s9 + $0x30] sm:$0xff] }
0x14f5   :  { %7437 = vmatprep.subr.bf16.mxu1 %v15140_v35  ;;  %7478 = vmatprep.subr.bf16.mxu0 %v15143_v17 }
0x14f6   :  { %7455 = vmatprep.mubr.bf16.mxu1 %v15616_v58  ;;  %7496 = vmatprep.mubr.bf16.mxu0 %v15616_v58  ;;  %v7840_v59 = vpop.permute.xlu0 %7839 }
0x14f8   :  { %7438 = vmatpush1.bf16.msra.mxu1 %v15138_v38  ;;  %7479 = vmatpush1.bf16.msra.mxu0 %v15141_v40  ;;  %v7064_v38 = vld [vmem:[%s19635_s9 + $0x38] sm:$0xff] }
0x14f9   :  { %7517 = vmatprep.subr.bf16.mxu1 %v15146_v42  ;;  %7558 = vmatprep.subr.bf16.mxu0 %v15149_v46 }
0x14fb   :  { %13817 = vmatmul.mubr.msk.bf16.vlgmr.msra.gmra.mxu1 %vm1718_vm2, %v18373_v36  ;;  %13818 = vmatmul.mubr.msk.bf16.vlgmr.msra.gmra.mxu0 %vm1718_vm2, %v18373_v36 }
0x14fc   :  { %7518 = vmatpush1.bf16.msra.mxu1 %v15144_v48  ;;  %7559 = vmatpush1.bf16.msra.mxu0 %v15147_v50 }
0x14fd   :  { %7519 = vmatprep.subr.bf16.mxu1 %v15152_v51  ;;  %7560 = vmatprep.subr.bf16.mxu0 %v15155_v52 }
0x14fe   :  { %7537 = vmatprep.mubr.bf16.mxu1 %v15616_v58  ;;  %7578 = vmatprep.mubr.bf16.mxu0 %v15616_v58 }
0x1500   :  { %7520 = vmatpush1.bf16.msra.mxu1 %v15150_v22  ;;  %7561 = vmatpush1.bf16.msra.mxu0 %v15153_v37 }
0x1501   :  { %7599 = vmatprep.subr.bf16.mxu1 %v15158_v54  ;;  %7640 = vmatprep.subr.bf16.mxu0 %v15161_v55  ;;  %v7065_v55 = vld [vmem:[%s19635_s9 + $0x40] sm:$0xff] }
0x1503   :  { %13819 = vmatmul.mubr.msk.bf16.vlgmr.msra.gmra.mxu1 %vm1718_vm2, %v18373_v36  ;;  %13820 = vmatmul.mubr.msk.bf16.vlgmr.msra.gmra.mxu0 %vm1718_vm2, %v18373_v36 }
0x1504   :  { %7600 = vmatpush1.bf16.msra.mxu1 %v15156_v56  ;;  %7641 = vmatpush1.bf16.msra.mxu0 %v15159_v25  ;;  %v7067_v56 = vld [vmem:[%s19635_s9 + $0x50] sm:$0xff] }
0x1505   :  { %7601 = vmatprep.subr.bf16.mxu1 %v15164_v57  ;;  %7642 = vmatprep.subr.bf16.mxu0 %v15167_v60  ;;  %v7066_v60 = vld [vmem:[%s19635_s9 + $0x48] sm:$0xff] }
0x1506   :  { %7619 = vmatprep.mubr.bf16.mxu1 %v15616_v58  ;;  %7660 = vmatprep.mubr.bf16.mxu0 %v15616_v58 }
0x1508   :  { %7602 = vmatpush1.bf16.msra.mxu1 %v15162_v61  ;;  %7643 = vmatpush1.bf16.msra.mxu0 %v15165_v6  ;;  %v7068_v61 = vld [vmem:[%s19635_s9 + $0x58] sm:$0xff] }
0x1509   :  { %7681 = vmatprep.subr.bf16.mxu1 %v15170_v0  ;;  %7722 = vmatprep.subr.bf16.mxu0 %v15173_v3 }
0x150b   :  { %13821 = vmatmul.mubr.msk.bf16.vlgmr.msra.gmra.mxu1 %vm1718_vm2, %v18373_v36  ;;  %13822 = vmatmul.mubr.msk.bf16.vlgmr.msra.gmra.mxu0 %vm1718_vm2, %v18373_v36 }
0x150c   :  { %7682 = vmatpush1.bf16.msra.mxu1 %v15168_v4  ;;  %7723 = vmatpush1.bf16.msra.mxu0 %v15171_v28 }
0x150d   :  { %7683 = vmatprep.subr.bf16.mxu1 %v15176_v7  ;;  %7724 = vmatprep.subr.bf16.mxu0 %v15179_v8 }
0x150e   :  { %7701 = vmatprep.mubr.bf16.mxu1 %v15616_v58  ;;  %7742 = vmatprep.mubr.bf16.mxu0 %v15616_v58 }
0x1510   :  { %7684 = vmatpush1.bf16.msra.mxu1 %v15174_v44  ;;  %7725 = vmatpush1.bf16.msra.mxu0 %v15177_v9 }
0x1511   :  { %14503 = vmatprep.subr.bf16.mxu1 %v15614_v15  ;;  %14511 = vmatprep.subr.bf16.mxu0 %v15614_v15 }
0x1513   :  { %13823 = vmatmul.mubr.msk.bf16.vlgmr.msra.gmra.mxu1 %vm1718_vm2, %v18373_v36  ;;  %13824 = vmatmul.mubr.msk.bf16.vlgmr.msra.gmra.mxu0 %vm1718_vm2, %v18373_v36 }
0x1514   :  { %14504 = vmatpush3.bf16.msra.mxu1 %v15180_v31  ;;  %14512 = vmatpush3.bf16.msra.mxu0 %v15181_v10  ;;  %v7069_v10 = vld [vmem:[%s19635_s9 + $0x60] sm:$0xff] }
0x1515   :  { %14505 = vmatprep.subr.bf16.mxu1 %v15614_v15  ;;  %14513 = vmatprep.subr.bf16.mxu0 %v15614_v15 }
0x1516   :  { %14507 = vmatprep.mubr.msk.bf16.mxu1 %vm15615_vm1, %v15614_v15  ;;  %14515 = vmatprep.mubr.msk.bf16.mxu0 %vm15615_vm1, %v15614_v15 }
0x1518   :  { %14506 = vmatpush3.bf16.msra.mxu1 %v15182_v49  ;;  %14514 = vmatpush3.bf16.msra.mxu0 %v15183_v11  ;;  %v7071_v49 = vld [vmem:[%s19635_s9 + $0x70] sm:$0xff] }
0x1519   :  { %14519 = vmatprep.subr.bf16.mxu1 %v15614_v15  ;;  %14527 = vmatprep.subr.bf16.mxu0 %v15614_v15 }
0x151b   :  { %14508 = vmatmul.mubr.msk.bf16.vlgmr.msra.gmra.mxu1 %vm1718_vm2, %v18373_v36  ;;  %14516 = vmatmul.mubr.msk.bf16.vlgmr.msra.gmra.mxu0 %vm1718_vm2, %v7840_v59 }
0x151c   :  { %14520 = vmatpush3.bf16.msra.mxu1 %v15184_v13  ;;  %14528 = vmatpush3.bf16.msra.mxu0 %v15185_v14  ;;  %v7070_v13 = vld [vmem:[%s19635_s9 + $0x68] sm:$0xff]  ;;  %v7072_v14 = vld [vmem:[%s19635_s9 + $0x78] sm:$0xff] }
0x151d   :  { %14521 = vmatprep.subr.bf16.mxu1 %v15614_v15  ;;  %14529 = vmatprep.subr.bf16.mxu0 %v15614_v15 }
0x151e   :  { %14523 = vmatprep.mubr.msk.bf16.mxu1 %vm15615_vm1, %v15614_v15  ;;  %14531 = vmatprep.mubr.msk.bf16.mxu0 %vm15615_vm1, %v15614_v15 }
0x1520   :  { %14522 = vmatpush3.bf16.msra.mxu1 %v15186_v18  ;;  %14530 = vmatpush3.bf16.msra.mxu0 %v15187_v39 }
0x1523   :  { %14524 = vmatmul.mubr.msk.bf16.vlgmr.msra.gmra.mxu1 %vm1718_vm2, %v7840_v59  ;;  %14532 = vmatmul.mubr.msk.bf16.vlgmr.msra.gmra.mxu0 %vm1718_vm2, %v18373_v36  ;;  %v7062_v36 = vld [vmem:[%s19635_s9 + $0x28] sm:$0xff] }
0x15b3   :  { %v7375_v20 = vpop.f32.mrf.mxu1  ;;  %v7416_v21 = vpop.f32.mrf.mxu0 }
0x15b4   :  { %v7791_v24 = vadd.f32 %v7375_v20, %v7057_v19  ;;  %v7793_v26 = vadd.f32 %v7416_v21, %v7059_v1 }
0x15b5   :  { %v7377_v27 = vpop.f32.mrf.mxu1  ;;  %v7418_v29 = vpop.f32.mrf.mxu0 }
0x15b6   :  { %7812 = vst [vmem:[%s19635_s9] sm:$0xff] %v7791_v24  ;;  %7814 = vst [vmem:[%s19635_s9 + $0x10] sm:$0xff] %v7793_v26  ;;  %v7792_v62 = vadd.f32 %v7377_v27, %v7058_v23  ;;  %v7794_v30 = vadd.f32 %v7418_v29, %v7060_v5  ;;  %v7073_v27 = vld [vmem:[%s19635_s9 + $0x80] sm:$0xff]  ;;  %v7075_v29 = vld [vmem:[%s19635_s9 + $0x90] sm:$0xff] }
0x15b7   :  { %v7379_v32 = vpop.f32.mrf.mxu1  ;;  %v7420_v63 = vpop.f32.mrf.mxu0 }
0x15b8   :  { %7813 = vst [vmem:[%s19635_s9 + $0x8] sm:$0xff] %v7792_v62  ;;  %7815 = vst [vmem:[%s19635_s9 + $0x18] sm:$0xff] %v7794_v30  ;;  %v7074_v32 = vld [vmem:[%s19635_s9 + $0x88] sm:$0xff]  ;;  %v7076_v63 = vld [vmem:[%s19635_s9 + $0x98] sm:$0xff] }
0x15b9   :  { %v7380_v2 = vpop.f32.mrf.mxu1  ;;  %v7421_v33 = vpop.f32.mrf.mxu0 }
0x15bb   :  { %v7457_v35 = vpop.f32.mrf.mxu1  ;;  %v7498_v17 = vpop.f32.mrf.mxu0 }
0x15bc   :  { %v7795_v40 = vadd.f32 %v7457_v35, %v7061_v34  ;;  %v7797_v42 = vadd.f32 %v7498_v17, %v7063_v43 }
0x15bd   :  { %v7459_v46 = vpop.f32.mrf.mxu1  ;;  %v7500_v48 = vpop.f32.mrf.mxu0 }
0x15be   :  { %7816 = vst [vmem:[%s19635_s9 + $0x20] sm:$0xff] %v7795_v40  ;;  %7818 = vst [vmem:[%s19635_s9 + $0x30] sm:$0xff] %v7797_v42  ;;  %v7796_v50 = vadd.f32 %v7459_v46, %v7062_v36  ;;  %v7798_v51 = vadd.f32 %v7500_v48, %v7064_v38  ;;  %v7077_v46 = vld [vmem:[%s19635_s9 + $0xa0] sm:$0xff] }
0x15bf   :  { %v7461_v52 = vpop.f32.mrf.mxu1  ;;  %v7502_v22 = vpop.f32.mrf.mxu0 }
0x15c0   :  { %7817 = vst [vmem:[%s19635_s9 + $0x28] sm:$0xff] %v7796_v50  ;;  %7819 = vst [vmem:[%s19635_s9 + $0x38] sm:$0xff] %v7798_v51 }
0x15c1   :  { %v7462_v37 = vpop.f32.mrf.mxu1  ;;  %v7503_v54 = vpop.f32.mrf.mxu0 }
0x15c3   :  { %v7539_v25 = vpop.f32.mrf.mxu1  ;;  %v7580_v57 = vpop.f32.mrf.mxu0 }
0x15c4   :  { %v7799_v6 = vadd.f32 %v7539_v25, %v7065_v55  ;;  %v7801_v0 = vadd.f32 %v7580_v57, %v7067_v56  ;;  %v13830_v57 = vld [vmem:[%s19632_s6] ss:$0 sm:$0xff] }
0x15c5   :  { %v7541_v3 = vpop.f32.mrf.mxu1  ;;  %v7582_v4 = vpop.f32.mrf.mxu0 }
0x15c6   :  { %7820 = vst [vmem:[%s19635_s9 + $0x40] sm:$0xff] %v7799_v6  ;;  %7822 = vst [vmem:[%s19635_s9 + $0x50] sm:$0xff] %v7801_v0  ;;  %v7800_v28 = vadd.f32 %v7541_v3, %v7066_v60  ;;  %v7802_v7 = vadd.f32 %v7582_v4, %v7068_v61 }
0x15c7   :  { %v7543_v8 = vpop.f32.mrf.mxu1  ;;  %v7584_v44 = vpop.f32.mrf.mxu0 }
0x15c8   :  { %7821 = vst [vmem:[%s19635_s9 + $0x48] sm:$0xff] %v7800_v28  ;;  %7823 = vst [vmem:[%s19635_s9 + $0x58] sm:$0xff] %v7802_v7 }
0x15c9   :  { %v7544_v9 = vpop.f32.mrf.mxu1  ;;  %v7585_v31 = vpop.f32.mrf.mxu0 }
0x15cb   :  { %v7621_v11 = vpop.f32.mrf.mxu1  ;;  %v7662_v59 = vpop.f32.mrf.mxu0 }
0x15cc   :  { %v7803_v18 = vadd.f32 %v7621_v11, %v7069_v10  ;;  %v7805_v39 = vadd.f32 %v7662_v59, %v7071_v49 }
0x15cd   :  { %v7623_v19 = vpop.f32.mrf.mxu1  ;;  %v7664_v1 = vpop.f32.mrf.mxu0 }
0x15ce   :  { %7824 = vst [vmem:[%s19635_s9 + $0x60] sm:$0xff] %v7803_v18  ;;  %7826 = vst [vmem:[%s19635_s9 + $0x70] sm:$0xff] %v7805_v39  ;;  %v7804_v20 = vadd.f32 %v7623_v19, %v7070_v13  ;;  %v7806_v21 = vadd.f32 %v7664_v1, %v7072_v14 }
0x15cf   :  { %v7625_v23 = vpop.f32.mrf.mxu1  ;;  %v7666_v5 = vpop.f32.mrf.mxu0 }
0x15d0   :  { %7825 = vst [vmem:[%s19635_s9 + $0x68] sm:$0xff] %v7804_v20  ;;  %7827 = vst [vmem:[%s19635_s9 + $0x78] sm:$0xff] %v7806_v21 }
0x15d1   :  { %v7626_v24 = vpop.f32.mrf.mxu1  ;;  %v7667_v26 = vpop.f32.mrf.mxu0 }
0x15d3   :  { %v7703_v62 = vpop.f32.mrf.mxu1  ;;  %v7744_v30 = vpop.f32.mrf.mxu0 }
0x15d4   :  { %v7807_v2 = vadd.f32 %v7703_v62, %v7073_v27  ;;  %v7809_v33 = vadd.f32 %v7744_v30, %v7075_v29 }
0x15d5   :  { %v7705_v34 = vpop.f32.mrf.mxu1  ;;  %v7746_v43 = vpop.f32.mrf.mxu0 }
0x15d6   :  { %7828 = vst [vmem:[%s19635_s9 + $0x80] sm:$0xff] %v7807_v2  ;;  %7830 = vst [vmem:[%s19635_s9 + $0x90] sm:$0xff] %v7809_v33  ;;  %v7808_v35 = vadd.f32 %v7705_v34, %v7074_v32  ;;  %v7810_v17 = vadd.f32 %v7746_v43, %v7076_v63 }
0x15d7   :  { %v7707_v36 = vpop.f32.mrf.mxu1  ;;  %v7748_v38 = vpop.f32.mrf.mxu0 }
0x15d8   :  { %7829 = vst [vmem:[%s19635_s9 + $0x88] sm:$0xff] %v7808_v35  ;;  %7831 = vst [vmem:[%s19635_s9 + $0x98] sm:$0xff] %v7810_v17 }
0x15d9   :  { %v7708_v40 = vpop.f32.mrf.mxu1  ;;  %v7749_v42 = vpop.f32.mrf.mxu0 }
0x15db   :  { %v7785_v48 = vpop.f32.mrf.mxu1  ;;  %v7890_v50 = vpop.f32.mrf.mxu0 }
0x15dc   :  { %v7811_v51 = vadd.f32 %v7785_v48, %v7077_v46  ;;  %v7896_v52 = vadd.f32 %v7890_v50, %v17237_v41 }
0x15dd   :  { %v14509_v22 = vpop.f32.mrf.mxu1  ;;  %v14517_v37 = vpop.f32.mrf.mxu0 }
0x15de   :  { %7832 = vst [vmem:[%s19635_s9 + $0xa0] sm:$0xff] %v7811_v51  ;;  %15188 = vtanh.f32 %v7896_v52  ;;  %v13829_v31 = vmul.f32 -1.442695, %v7896_v52 }
0x15df   :  { %v7788_v54 = vpop.f32.mrf.mxu1  ;;  %v7893_v55 = vpop.f32.mrf.mxu0 }
0x15e1   :  { %v14510_v56 = vpop.f32.mrf.mxu1  ;;  %v14518_v25 = vpop.f32.mrf.mxu0 }
0x15e3   :  { %v7978_v60 = vpop.f32.mrf.mxu1  ;;  %v8034_v61 = vpop.f32.mrf.mxu0 }
0x15e4   :  { %v7979_v6 = vadd.f32 %v13830_v57, %v7978_v60 }
0x15e5   :  { %v14525_v0 = vpop.f32.mrf.mxu1  ;;  %v14533_v41 = vpop.f32.mrf.mxu0 }
0x15e6   :  { %v8040_v3 = vadd.f32 %v8034_v61, %v7979_v6 }
0x15e7   :  { %v7981_v4 = vpop.f32.mrf.mxu1  ;;  %v8037_v28 = vpop.f32.mrf.mxu0 }
0x15e8   :  { %15190 = vtanh.f32 %v8040_v3  ;;  %v13837_v10 = vmul.f32 -1.442695, %v8040_v3 }
0x15e9   :  { %v14526_v7 = vpop.f32.mrf.mxu1  ;;  %v14534_v8 = vpop.f32.mrf.mxu0  ;;  %15192 = vpow2.f32 %v13829_v31 }
0x15ea   :  { %15194 = vpow2.f32 %v13837_v10 }
0x15eb   :  { %v15189_v44 = vpop.eup %15188 }
0x15ec   :  { %7906 = vrot.lane.b32.xlu1 %v15189_v44, %s15617_s3 }
0x15f5   :  { %v15191_v9 = vpop.eup %15190 }
0x15f6   :  { %8050 = vrot.lane.b32.xlu1 %v15191_v9, %s15617_s3  ;;  %v15193_v49 = vpop.eup %15192 }
0x15f7   :  { %v7900_v11 = vadd.f32 1.0, %v15193_v49  ;;  %v15195_v59 = vpop.eup %15194 }
0x15f8   :  { %v8044_v13 = vadd.f32 1.0, %v15195_v59 }
0x15f9   :  { %15196 = vrcp.f32 %v7900_v11 }
0x15fa   :  { %15198 = vrcp.f32 %v8044_v13 }
0x1606   :  { %v15197_v14 = vpop.eup %15196 }
0x1607   :  { %v15199_v19 = vpop.eup %15198  ;;  %v7904_v21 = vmul.f32 %v15197_v14, %v18360_v12 }
0x1608   :  { %v8048_v24 = vmul.f32 %v15199_v19, %v18364_v16 }
0x165e   :  { %v7907_v18 = vpop.permute.xlu1 %7906 }
0x165f   :  { %v7909_v39 = vmul.f32 %v15197_v14, %v7907_v18 }
0x1661   :  { %7911 = vrot.lane.b32.xlu0 %v7909_v39, %s15617_s3 }
0x1668   :  { %v8051_v1 = vpop.permute.xlu1 %8050 }
0x1669   :  { %v8053_v20 = vmul.f32 %v15199_v19, %v8051_v1 }
0x166b   :  { %8055 = vrot.lane.b32.xlu1 %v8053_v20, %s15617_s3 }
0x16d3   :  { %v7912_v23 = vpop.permute.xlu0 %7911 }
0x16d4   :  { %v18578_v5 = vadd.f32 %v7912_v23, %v7904_v21 }
0x16d6   :  { %15200 = vtanh.f32 %v18578_v5 }
0x16dd   :  { %v8056_v26 = vpop.permute.xlu1 %8055 }
0x16de   :  { %v18582_v27 = vadd.f32 %v8056_v26, %v8048_v24 }
0x16e0   :  { %15202 = vtanh.f32 %v18582_v27 }
0x16e3   :  { %v15201_v29 = vpop.eup %15200 }
0x16e4   :  { %7917 = vrot.lane.b32.xlu0 %v15201_v29, %s15617_s3 }
0x16ed   :  { %v15203_v62 = vpop.eup %15202 }
0x16ee   :  { %8061 = vrot.lane.b32.xlu1 %v15203_v62, %s15617_s3 }
0x1756   :  { %v7918_v30 = vpop.permute.xlu0 %7917 }
0x1757   :  { %v7920_v12 = vmul.f32 %v15197_v14, %v7918_v30 }
0x1760   :  { %v8062_v32 = vpop.permute.xlu1 %8061 }
0x1761   :  { %v8064_v63 = vmul.f32 %v15199_v19, %v8062_v32 }
0x1763   :  { %v8088_v2 = vpack.c.bf16 %v8064_v63, %v8064_v63 }
0x1764   :  { %15604 = dma.done.wait [#allocation3 + $0x6], 5376 }
0x1765   :  { %15605 = vsyncadd [#allocation3 + $0x6], 4294961920  ;;  %8383 = vmatprep.mubr.bf16.mxu1 %v15616_v58  ;;  %8424 = vmatprep.mubr.bf16.mxu0 %v15616_v58  ;;  %v8843_v16 = vpack.c.bf16 %v7920_v12, %v7920_v12  ;;  %v15204_v33 = vld [vmem:[#allocation2 + $0x88c] ss:$84 sps:$4 sm:$0xff]   ;;  %v15206_v34 = vld [vmem:[#allocation2 + $0x888] ss:$84 sps:$4 sm:$0xff]  }
0x1766   :  { %8134 = vrot.lane.b32.xlu0 %v8088_v2, %s15618_s23  ;;  %8363 = vmatprep.subr.bf16.mxu1 %v15204_v33  ;;  %v15207_v43 = vld [vmem:[#allocation2 + $0x894] ss:$84 sps:$4 sm:$0xff]   ;;  %v15209_v35 = vld [vmem:[#allocation2 + $0x890] ss:$84 sps:$4 sm:$0xff]   ;;  %v15213_v38 = vld [vmem:[#allocation2 + $0x7ec] ss:$84 sps:$4 sm:$0xff]  }
0x1767   :  { %8364 = vmatpush1.bf16.msra.mxu1 %v15206_v34  ;;  %v15210_v17 = vld [vmem:[#allocation2 + $0x7e4] ss:$84 sps:$4 sm:$0xff]   ;;  %v15212_v36 = vld [vmem:[#allocation2 + $0x7e0] ss:$84 sps:$4 sm:$0xff]   ;;  %8404 = vmatprep.subr.bf16.mxu0 %v15207_v43  ;;  %v15215_v40 = vld [vmem:[#allocation2 + $0x7e8] ss:$84 sps:$4 sm:$0xff]  }
0x1768   :  { %8405 = vmatpush1.bf16.msra.mxu0 %v15209_v35  ;;  %8365 = vmatprep.subr.bf16.mxu1 %v15210_v17  ;;  %v15218_v42 = vld [vmem:[#allocation2 + $0x89c] ss:$84 sps:$4 sm:$0xff]   ;;  %v15221_v46 = vld [vmem:[#allocation2 + $0x8a4] ss:$84 sps:$4 sm:$0xff]   ;;  %v15219_v50 = vld [vmem:[#allocation2 + $0x8a0] ss:$84 sps:$4 sm:$0xff]  }
0x1769   :  { %8406 = vmatprep.subr.bf16.mxu0 %v15213_v38  ;;  %v15216_v48 = vld [vmem:[#allocation2 + $0x898] ss:$84 sps:$4 sm:$0xff]   ;;  %v15224_v51 = vld [vmem:[#allocation2 + $0x7f4] ss:$84 sps:$4 sm:$0xff]   ;;  %v15227_v52 = vld [vmem:[#allocation2 + $0x7fc] ss:$84 sps:$4 sm:$0xff]  }
0x176a   :  { %8849 = vrot.lane.b32.xlu0 %v8843_v16, %s15618_s23  ;;  %v15222_v37 = vld [vmem:[#allocation2 + $0x7f0] ss:$84 sps:$4 sm:$0xff]   ;;  %v15225_v54 = vld [vmem:[#allocation2 + $0x7f8] ss:$84 sps:$4 sm:$0xff]   ;;  %v15233_v56 = vld [vmem:[#allocation2 + $0x8b4] ss:$84 sps:$4 sm:$0xff]  }
0x176b   :  { %8366 = vmatpush1.bf16.msra.mxu1 %v15212_v36  ;;  %v15230_v55 = vld [vmem:[#allocation2 + $0x8ac] ss:$84 sps:$4 sm:$0xff]   ;;  %v15228_v25 = vld [vmem:[#allocation2 + $0x8a8] ss:$84 sps:$4 sm:$0xff]   ;;  %v15231_v57 = vld [vmem:[#allocation2 + $0x8b0] ss:$84 sps:$4 sm:$0xff]  }
0x176c   :  { %8445 = vmatprep.subr.bf16.mxu1 %v15218_v42  ;;  %8407 = vmatpush1.bf16.msra.mxu0 %v15215_v40  ;;  %v15236_v60 = vld [vmem:[#allocation2 + $0x804] ss:$84 sps:$4 sm:$0xff]   ;;  %v15239_v61 = vld [vmem:[#allocation2 + $0x80c] ss:$84 sps:$4 sm:$0xff]   ;;  %v15237_v0 = vld [vmem:[#allocation2 + $0x808] ss:$84 sps:$4 sm:$0xff]  }
0x176d   :  { %8486 = vmatprep.subr.bf16.mxu0 %v15221_v46  ;;  %v15234_v6 = vld [vmem:[#allocation2 + $0x800] ss:$84 sps:$4 sm:$0xff]   ;;  %v15242_v41 = vld [vmem:[#allocation2 + $0x8bc] ss:$84 sps:$4 sm:$0xff]   ;;  %v15245_v3 = vld [vmem:[#allocation2 + $0x8c4] ss:$84 sps:$4 sm:$0xff]  }
0x176e   :  { %v15240_v4 = vld [vmem:[#allocation2 + $0x8b8] ss:$84 sps:$4 sm:$0xff]   ;;  %v15243_v28 = vld [vmem:[#allocation2 + $0x8c0] ss:$84 sps:$4 sm:$0xff]   ;;  %v15251_v8 = vld [vmem:[#allocation2 + $0x81c] ss:$84 sps:$4 sm:$0xff]  }
0x176f   :  { %v15248_v7 = vld [vmem:[#allocation2 + $0x814] ss:$84 sps:$4 sm:$0xff]   ;;  %v15246_v44 = vld [vmem:[#allocation2 + $0x810] ss:$84 sps:$4 sm:$0xff]   ;;  %v15249_v9 = vld [vmem:[#allocation2 + $0x818] ss:$84 sps:$4 sm:$0xff]  }
0x1770   :  { %v15254_v31 = vld [vmem:[#allocation2 + $0x8cc] ss:$84 sps:$4 sm:$0xff]   ;;  %v15257_v10 = vld [vmem:[#allocation2 + $0x8d4] ss:$84 sps:$4 sm:$0xff]   ;;  %v15255_v11 = vld [vmem:[#allocation2 + $0x8d0] ss:$84 sps:$4 sm:$0xff]  }
0x1771   :  { %v15252_v49 = vld [vmem:[#allocation2 + $0x8c8] ss:$84 sps:$4 sm:$0xff]   ;;  %v15260_v59 = vld [vmem:[#allocation2 + $0x824] ss:$84 sps:$4 sm:$0xff]   ;;  %v15263_v13 = vld [vmem:[#allocation2 + $0x82c] ss:$84 sps:$4 sm:$0xff]  }
0x1772   :  { %v15258_v14 = vld [vmem:[#allocation2 + $0x820] ss:$84 sps:$4 sm:$0xff]   ;;  %v15261_v18 = vld [vmem:[#allocation2 + $0x828] ss:$84 sps:$4 sm:$0xff]   ;;  %v15264_v39 = vld [vmem:[#allocation2 + $0x8d8] ss:$84 sps:$4 sm:$0xff]  }
0x1773   :  { %v15265_v19 = vld [vmem:[%s19628_s2 + $0x8] sm:$0xff]   ;;  %v15266_v1 = vld [vmem:[#allocation2 + $0x830] ss:$84 sps:$4 sm:$0xff]   ;;  %v8070_v2 = vld [vmem:[%s19635_s9 + $0x18] sm:$0xff] }
0x1774   :  { %v15267_v20 = vld [vmem:[%s19628_s2] sm:$0xff]   ;;  %v15268_v23 = vld [vmem:[%s19630_s4 + $0x8] sm:$0xff]   ;;  %v8069_v30 = vld [vmem:[%s19635_s9 + $0x10] sm:$0xff] }
0x1775   :  { %v15269_v24 = vld [vmem:[%s19631_s5 + $0x8] sm:$0xff]   ;;  %v15270_v26 = vld [vmem:[%s19630_s4] sm:$0xff]  }
0x1776   :  { %v15271_v29 = vld [vmem:[%s19631_s5] sm:$0xff]   ;;  %v8068_v63 = vld [vmem:[%s19635_s9 + $0x8] sm:$0xff] }
0x1777   :  { %v8067_v62 = vld [vmem:[%s19635_s9] sm:$0xff] }
0x1778   :  { %v8071_v46 = vld [vmem:[%s19635_s9 + $0x20] sm:$0xff] }
0x17d8   :  { %v18591_v22 = vpop.permute.xlu0 %8134 }
0x17d9   :  { %13880 = vmatmul.mubr.msk.bf16.vlgmr.msra.gmra.mxu1 %vm1718_vm2, %v18591_v22  ;;  %13881 = vmatmul.mubr.msk.bf16.vlgmr.msra.gmra.mxu0 %vm1718_vm2, %v18591_v22 }
0x17da   :  { %8446 = vmatpush1.bf16.msra.mxu1 %v15216_v48  ;;  %8487 = vmatpush1.bf16.msra.mxu0 %v15219_v50  ;;  %v8073_v48 = vld [vmem:[%s19635_s9 + $0x30] sm:$0xff] }
0x17db   :  { %8447 = vmatprep.subr.bf16.mxu1 %v15224_v51  ;;  %8488 = vmatprep.subr.bf16.mxu0 %v15227_v52  ;;  %v8072_v52 = vld [vmem:[%s19635_s9 + $0x28] sm:$0xff] }
0x17dc   :  { %8465 = vmatprep.mubr.bf16.mxu1 %v15616_v58  ;;  %8506 = vmatprep.mubr.bf16.mxu0 %v15616_v58  ;;  %v8850_v21 = vpop.permute.xlu0 %8849 }
0x17de   :  { %8448 = vmatpush1.bf16.msra.mxu1 %v15222_v37  ;;  %8489 = vmatpush1.bf16.msra.mxu0 %v15225_v54 }
0x17df   :  { %8527 = vmatprep.subr.bf16.mxu1 %v15230_v55  ;;  %8568 = vmatprep.subr.bf16.mxu0 %v15233_v56 }
0x17e1   :  { %13882 = vmatmul.mubr.msk.bf16.vlgmr.msra.gmra.mxu1 %vm1718_vm2, %v18591_v22  ;;  %13883 = vmatmul.mubr.msk.bf16.vlgmr.msra.gmra.mxu0 %vm1718_vm2, %v18591_v22 }
0x17e2   :  { %8528 = vmatpush1.bf16.msra.mxu1 %v15228_v25  ;;  %8569 = vmatpush1.bf16.msra.mxu0 %v15231_v57 }
0x17e3   :  { %8529 = vmatprep.subr.bf16.mxu1 %v15236_v60  ;;  %8570 = vmatprep.subr.bf16.mxu0 %v15239_v61 }
0x17e4   :  { %8547 = vmatprep.mubr.bf16.mxu1 %v15616_v58  ;;  %8588 = vmatprep.mubr.bf16.mxu0 %v15616_v58 }
0x17e6   :  { %8530 = vmatpush1.bf16.msra.mxu1 %v15234_v6  ;;  %8571 = vmatpush1.bf16.msra.mxu0 %v15237_v0 }
0x17e7   :  { %8609 = vmatprep.subr.bf16.mxu1 %v15242_v41  ;;  %8650 = vmatprep.subr.bf16.mxu0 %v15245_v3  ;;  %v8075_v41 = vld [vmem:[%s19635_s9 + $0x40] sm:$0xff]  ;;  %v8077_v3 = vld [vmem:[%s19635_s9 + $0x50] sm:$0xff] }
0x17e9   :  { %13884 = vmatmul.mubr.msk.bf16.vlgmr.msra.gmra.mxu1 %vm1718_vm2, %v18591_v22  ;;  %13885 = vmatmul.mubr.msk.bf16.vlgmr.msra.gmra.mxu0 %vm1718_vm2, %v18591_v22 }
0x17ea   :  { %8610 = vmatpush1.bf16.msra.mxu1 %v15240_v4  ;;  %8651 = vmatpush1.bf16.msra.mxu0 %v15243_v28 }
0x17eb   :  { %8611 = vmatprep.subr.bf16.mxu1 %v15248_v7  ;;  %8652 = vmatprep.subr.bf16.mxu0 %v15251_v8  ;;  %v8076_v7 = vld [vmem:[%s19635_s9 + $0x48] sm:$0xff]  ;;  %v8078_v8 = vld [vmem:[%s19635_s9 + $0x58] sm:$0xff] }
0x17ec   :  { %8629 = vmatprep.mubr.bf16.mxu1 %v15616_v58  ;;  %8670 = vmatprep.mubr.bf16.mxu0 %v15616_v58 }
0x17ee   :  { %8612 = vmatpush1.bf16.msra.mxu1 %v15246_v44  ;;  %8653 = vmatpush1.bf16.msra.mxu0 %v15249_v9 }
0x17ef   :  { %8691 = vmatprep.subr.bf16.mxu1 %v15254_v31  ;;  %8732 = vmatprep.subr.bf16.mxu0 %v15257_v10 }
0x17f1   :  { %13886 = vmatmul.mubr.msk.bf16.vlgmr.msra.gmra.mxu1 %vm1718_vm2, %v18591_v22  ;;  %13887 = vmatmul.mubr.msk.bf16.vlgmr.msra.gmra.mxu0 %vm1718_vm2, %v18591_v22 }
0x17f2   :  { %8692 = vmatpush1.bf16.msra.mxu1 %v15252_v49  ;;  %8733 = vmatpush1.bf16.msra.mxu0 %v15255_v11 }
0x17f3   :  { %8693 = vmatprep.subr.bf16.mxu1 %v15260_v59  ;;  %8734 = vmatprep.subr.bf16.mxu0 %v15263_v13 }
0x17f4   :  { %8711 = vmatprep.mubr.bf16.mxu1 %v15616_v58  ;;  %8752 = vmatprep.mubr.bf16.mxu0 %v15616_v58 }
0x17f6   :  { %8694 = vmatpush1.bf16.msra.mxu1 %v15258_v14  ;;  %8735 = vmatpush1.bf16.msra.mxu0 %v15261_v18 }
0x17f7   :  { %14535 = vmatprep.subr.bf16.mxu1 %v15614_v15  ;;  %14543 = vmatprep.subr.bf16.mxu0 %v15614_v15 }
0x17f9   :  { %13888 = vmatmul.mubr.msk.bf16.vlgmr.msra.gmra.mxu1 %vm1718_vm2, %v18591_v22  ;;  %13889 = vmatmul.mubr.msk.bf16.vlgmr.msra.gmra.mxu0 %vm1718_vm2, %v18591_v22 }
0x17fa   :  { %14536 = vmatpush3.bf16.msra.mxu1 %v15264_v39  ;;  %14544 = vmatpush3.bf16.msra.mxu0 %v15265_v19  ;;  %v8079_v39 = vld [vmem:[%s19635_s9 + $0x60] sm:$0xff]  ;;  %v8081_v19 = vld [vmem:[%s19635_s9 + $0x70] sm:$0xff] }
0x17fb   :  { %14537 = vmatprep.subr.bf16.mxu1 %v15614_v15  ;;  %14545 = vmatprep.subr.bf16.mxu0 %v15614_v15 }
0x17fc   :  { %14539 = vmatprep.mubr.msk.bf16.mxu1 %vm15615_vm1, %v15614_v15  ;;  %14547 = vmatprep.mubr.msk.bf16.mxu0 %vm15615_vm1, %v15614_v15 }
0x17fe   :  { %14538 = vmatpush3.bf16.msra.mxu1 %v15266_v1  ;;  %14546 = vmatpush3.bf16.msra.mxu0 %v15267_v20 }
0x17ff   :  { %14551 = vmatprep.subr.bf16.mxu1 %v15614_v15  ;;  %14559 = vmatprep.subr.bf16.mxu0 %v15614_v15 }
0x1801   :  { %14540 = vmatmul.mubr.msk.bf16.vlgmr.msra.gmra.mxu1 %vm1718_vm2, %v18591_v22  ;;  %14548 = vmatmul.mubr.msk.bf16.vlgmr.msra.gmra.mxu0 %vm1718_vm2, %v8850_v21 }
0x1802   :  { %14552 = vmatpush3.bf16.msra.mxu1 %v15268_v23  ;;  %14560 = vmatpush3.bf16.msra.mxu0 %v15269_v24  ;;  %v8082_v23 = vld [vmem:[%s19635_s9 + $0x78] sm:$0xff] }
0x1803   :  { %14553 = vmatprep.subr.bf16.mxu1 %v15614_v15  ;;  %14561 = vmatprep.subr.bf16.mxu0 %v15614_v15 }
0x1804   :  { %14555 = vmatprep.mubr.msk.bf16.mxu1 %vm15615_vm1, %v15614_v15  ;;  %14563 = vmatprep.mubr.msk.bf16.mxu0 %vm15615_vm1, %v15614_v15 }
0x1806   :  { %14554 = vmatpush3.bf16.msra.mxu1 %v15270_v26  ;;  %14562 = vmatpush3.bf16.msra.mxu0 %v15271_v29 }
0x1809   :  { %14556 = vmatmul.mubr.msk.bf16.vlgmr.msra.gmra.mxu1 %vm1718_vm2, %v8850_v21  ;;  %14564 = vmatmul.mubr.msk.bf16.vlgmr.msra.gmra.mxu0 %vm1718_vm2, %v18591_v22  ;;  %v8074_v22 = vld [vmem:[%s19635_s9 + $0x38] sm:$0xff]  ;;  %v8080_v21 = vld [vmem:[%s19635_s9 + $0x68] sm:$0xff] }
0x1899   :  { %v8385_v12 = vpop.f32.mrf.mxu1  ;;  %v8426_v32 = vpop.f32.mrf.mxu0 }
0x189a   :  { %v8801_v16 = vadd.f32 %v8385_v12, %v8067_v62  ;;  %v8803_v33 = vadd.f32 %v8426_v32, %v8069_v30 }
0x189b   :  { %v8387_v34 = vpop.f32.mrf.mxu1  ;;  %v8428_v43 = vpop.f32.mrf.mxu0 }
0x189c   :  { %8822 = vst [vmem:[%s19635_s9] sm:$0xff] %v8801_v16  ;;  %8824 = vst [vmem:[%s19635_s9 + $0x10] sm:$0xff] %v8803_v33  ;;  %v8802_v35 = vadd.f32 %v8387_v34, %v8068_v63  ;;  %v8804_v17 = vadd.f32 %v8428_v43, %v8070_v2  ;;  %v8083_v33 = vld [vmem:[%s19635_s9 + $0x80] sm:$0xff]  ;;  %v8085_v34 = vld [vmem:[%s19635_s9 + $0x90] sm:$0xff] }
0x189d   :  { %v8389_v36 = vpop.f32.mrf.mxu1  ;;  %v8430_v38 = vpop.f32.mrf.mxu0 }
0x189e   :  { %8823 = vst [vmem:[%s19635_s9 + $0x8] sm:$0xff] %v8802_v35  ;;  %8825 = vst [vmem:[%s19635_s9 + $0x18] sm:$0xff] %v8804_v17  ;;  %v8084_v17 = vld [vmem:[%s19635_s9 + $0x88] sm:$0xff]  ;;  %v8086_v36 = vld [vmem:[%s19635_s9 + $0x98] sm:$0xff] }
0x189f   :  { %v8390_v40 = vpop.f32.mrf.mxu1  ;;  %v8431_v42 = vpop.f32.mrf.mxu0 }
0x18a1   :  { %v8467_v50 = vpop.f32.mrf.mxu1  ;;  %v8508_v51 = vpop.f32.mrf.mxu0 }
0x18a2   :  { %v8805_v37 = vadd.f32 %v8467_v50, %v8071_v46  ;;  %v8807_v54 = vadd.f32 %v8508_v51, %v8073_v48 }
0x18a3   :  { %v8469_v55 = vpop.f32.mrf.mxu1  ;;  %v8510_v56 = vpop.f32.mrf.mxu0 }
0x18a4   :  { %8826 = vst [vmem:[%s19635_s9 + $0x20] sm:$0xff] %v8805_v37  ;;  %8828 = vst [vmem:[%s19635_s9 + $0x30] sm:$0xff] %v8807_v54  ;;  %v8806_v25 = vadd.f32 %v8469_v55, %v8072_v52  ;;  %v8808_v57 = vadd.f32 %v8510_v56, %v8074_v22  ;;  %v8087_v54 = vld [vmem:[%s19635_s9 + $0xa0] sm:$0xff] }
0x18a5   :  { %v8471_v60 = vpop.f32.mrf.mxu1  ;;  %v8512_v61 = vpop.f32.mrf.mxu0 }
0x18a6   :  { %8827 = vst [vmem:[%s19635_s9 + $0x28] sm:$0xff] %v8806_v25  ;;  %8829 = vst [vmem:[%s19635_s9 + $0x38] sm:$0xff] %v8808_v57 }
0x18a7   :  { %v8472_v6 = vpop.f32.mrf.mxu1  ;;  %v8513_v0 = vpop.f32.mrf.mxu0 }
0x18a9   :  { %v8549_v4 = vpop.f32.mrf.mxu1  ;;  %v8590_v28 = vpop.f32.mrf.mxu0 }
0x18aa   :  { %v8809_v44 = vadd.f32 %v8549_v4, %v8075_v41  ;;  %v8811_v9 = vadd.f32 %v8590_v28, %v8077_v3  ;;  %v13895_v4 = vld [vmem:[%s19632_s6] ss:$0 sm:$0xff] }
0x18ab   :  { %v8551_v31 = vpop.f32.mrf.mxu1  ;;  %v8592_v10 = vpop.f32.mrf.mxu0 }
0x18ac   :  { %8830 = vst [vmem:[%s19635_s9 + $0x40] sm:$0xff] %v8809_v44  ;;  %8832 = vst [vmem:[%s19635_s9 + $0x50] sm:$0xff] %v8811_v9  ;;  %v8810_v49 = vadd.f32 %v8551_v31, %v8076_v7  ;;  %v8812_v11 = vadd.f32 %v8592_v10, %v8078_v8 }
0x18ad   :  { %v8553_v59 = vpop.f32.mrf.mxu1  ;;  %v8594_v13 = vpop.f32.mrf.mxu0 }
0x18ae   :  { %8831 = vst [vmem:[%s19635_s9 + $0x48] sm:$0xff] %v8810_v49  ;;  %8833 = vst [vmem:[%s19635_s9 + $0x58] sm:$0xff] %v8812_v11 }
0x18af   :  { %v8554_v14 = vpop.f32.mrf.mxu1  ;;  %v8595_v18 = vpop.f32.mrf.mxu0 }
0x18b1   :  { %v8631_v1 = vpop.f32.mrf.mxu1  ;;  %v8672_v20 = vpop.f32.mrf.mxu0 }
0x18b2   :  { %v8813_v24 = vadd.f32 %v8631_v1, %v8079_v39  ;;  %v8815_v26 = vadd.f32 %v8672_v20, %v8081_v19 }
0x18b3   :  { %v8633_v29 = vpop.f32.mrf.mxu1  ;;  %v8674_v62 = vpop.f32.mrf.mxu0 }
0x18b4   :  { %8834 = vst [vmem:[%s19635_s9 + $0x60] sm:$0xff] %v8813_v24  ;;  %8836 = vst [vmem:[%s19635_s9 + $0x70] sm:$0xff] %v8815_v26  ;;  %v8814_v30 = vadd.f32 %v8633_v29, %v8080_v21  ;;  %v8816_v12 = vadd.f32 %v8674_v62, %v8082_v23 }
0x18b5   :  { %v8635_v32 = vpop.f32.mrf.mxu1  ;;  %v8676_v63 = vpop.f32.mrf.mxu0 }
0x18b6   :  { %8835 = vst [vmem:[%s19635_s9 + $0x68] sm:$0xff] %v8814_v30  ;;  %8837 = vst [vmem:[%s19635_s9 + $0x78] sm:$0xff] %v8816_v12 }
0x18b7   :  { %v8636_v2 = vpop.f32.mrf.mxu1  ;;  %v8677_v16 = vpop.f32.mrf.mxu0 }
0x18b9   :  { %v8713_v43 = vpop.f32.mrf.mxu1  ;;  %v8754_v35 = vpop.f32.mrf.mxu0 }
0x18ba   :  { %v8817_v38 = vadd.f32 %v8713_v43, %v8083_v33  ;;  %v8819_v40 = vadd.f32 %v8754_v35, %v8085_v34 }
0x18bb   :  { %v8715_v42 = vpop.f32.mrf.mxu1  ;;  %v8756_v46 = vpop.f32.mrf.mxu0 }
0x18bc   :  { %8838 = vst [vmem:[%s19635_s9 + $0x80] sm:$0xff] %v8817_v38  ;;  %8840 = vst [vmem:[%s19635_s9 + $0x90] sm:$0xff] %v8819_v40  ;;  %v8818_v48 = vadd.f32 %v8715_v42, %v8084_v17  ;;  %v8820_v50 = vadd.f32 %v8756_v46, %v8086_v36 }
0x18bd   :  { %v8717_v51 = vpop.f32.mrf.mxu1  ;;  %v8758_v52 = vpop.f32.mrf.mxu0 }
0x18be   :  { %8839 = vst [vmem:[%s19635_s9 + $0x88] sm:$0xff] %v8818_v48  ;;  %8841 = vst [vmem:[%s19635_s9 + $0x98] sm:$0xff] %v8820_v50 }
0x18bf   :  { %v8718_v22 = vpop.f32.mrf.mxu1  ;;  %v8759_v37 = vpop.f32.mrf.mxu0 }
0x18c1   :  { %v8795_v55 = vpop.f32.mrf.mxu1  ;;  %v8900_v56 = vpop.f32.mrf.mxu0 }
0x18c2   :  { %v8821_v25 = vadd.f32 %v8795_v55, %v8087_v54  ;;  %v8906_v57 = vadd.f32 %v8900_v56, %v17246_v47 }
0x18c3   :  { %v14541_v60 = vpop.f32.mrf.mxu1  ;;  %v14549_v61 = vpop.f32.mrf.mxu0 }
0x18c4   :  { %8842 = vst [vmem:[%s19635_s9 + $0xa0] sm:$0xff] %v8821_v25  ;;  %15272 = vtanh.f32 %v8906_v57  ;;  %v13894_v14 = vmul.f32 -1.442695, %v8906_v57 }
0x18c5   :  { %v8798_v6 = vpop.f32.mrf.mxu1  ;;  %v8903_v0 = vpop.f32.mrf.mxu0 }
0x18c7   :  { %v14542_v41 = vpop.f32.mrf.mxu1  ;;  %v14550_v3 = vpop.f32.mrf.mxu0 }
0x18c9   :  { %v8988_v28 = vpop.f32.mrf.mxu1  ;;  %v9044_v7 = vpop.f32.mrf.mxu0 }
0x18ca   :  { %v8989_v8 = vadd.f32 %v13895_v4, %v8988_v28 }
0x18cb   :  { %v14557_v44 = vpop.f32.mrf.mxu1  ;;  %v14565_v47 = vpop.f32.mrf.mxu0 }
0x18cc   :  { %v9050_v9 = vadd.f32 %v9044_v7, %v8989_v8 }
0x18cd   :  { %v8991_v31 = vpop.f32.mrf.mxu1  ;;  %v9047_v10 = vpop.f32.mrf.mxu0 }
0x18ce   :  { %15274 = vtanh.f32 %v9050_v9  ;;  %v13902_v18 = vmul.f32 -1.442695, %v9050_v9 }
0x18cf   :  { %v14558_v49 = vpop.f32.mrf.mxu1  ;;  %v14566_v11 = vpop.f32.mrf.mxu0  ;;  %15276 = vpow2.f32 %v13894_v14 }
0x18d0   :  { %15278 = vpow2.f32 %v13902_v18 }
0x18d1   :  { %v15273_v59 = vpop.eup %15272 }
0x18d2   :  { %8916 = vrot.lane.b32.xlu1 %v15273_v59, %s15617_s3 }
0x18db   :  { %v15275_v13 = vpop.eup %15274 }
0x18dc   :  { %9060 = vrot.lane.b32.xlu1 %v15275_v13, %s15617_s3  ;;  %v15277_v39 = vpop.eup %15276 }
0x18dd   :  { %v8910_v19 = vadd.f32 1.0, %v15277_v39  ;;  %v15279_v1 = vpop.eup %15278 }
0x18de   :  { %v9054_v20 = vadd.f32 1.0, %v15279_v1 }
0x18df   :  { %15280 = vrcp.f32 %v8910_v19 }
0x18e0   :  { %15282 = vrcp.f32 %v9054_v20 }
0x18ec   :  { %v15281_v21 = vpop.eup %15280 }
0x18ed   :  { %v15283_v26 = vpop.eup %15282  ;;  %v8914_v30 = vmul.f32 %v15281_v21, %v18578_v5 }
0x18ee   :  { %v9058_v63 = vmul.f32 %v15283_v26, %v18582_v27 }
0x1944   :  { %v8917_v23 = vpop.permute.xlu1 %8916 }
0x1945   :  { %v8919_v24 = vmul.f32 %v15281_v21, %v8917_v23 }
0x1947   :  { %8921 = vrot.lane.b32.xlu0 %v8919_v24, %s15617_s3 }
0x194e   :  { %v9061_v29 = vpop.permute.xlu1 %9060 }
0x194f   :  { %v9063_v62 = vmul.f32 %v15283_v26, %v9061_v29 }
0x1951   :  { %9065 = vrot.lane.b32.xlu1 %v9063_v62, %s15617_s3 }
0x19b9   :  { %v8922_v12 = vpop.permute.xlu0 %8921 }
0x19ba   :  { %v18796_v32 = vadd.f32 %v8922_v12, %v8914_v30 }
0x19bc   :  { %15284 = vtanh.f32 %v18796_v32 }
0x19c3   :  { %v9066_v2 = vpop.permute.xlu1 %9065 }
0x19c4   :  { %v18800_v16 = vadd.f32 %v9066_v2, %v9058_v63 }
0x19c6   :  { %15286 = vtanh.f32 %v18800_v16 }
0x19c9   :  { %v15285_v33 = vpop.eup %15284 }
0x19ca   :  { %8927 = vrot.lane.b32.xlu0 %v15285_v33, %s15617_s3 }
0x19d3   :  { %v15287_v34 = vpop.eup %15286 }
0x19d4   :  { %9071 = vrot.lane.b32.xlu1 %v15287_v34, %s15617_s3 }
0x1a3c   :  { %v8928_v43 = vpop.permute.xlu0 %8927 }
0x1a3d   :  { %v8930_v5 = vmul.f32 %v15281_v21, %v8928_v43 }
0x1a46   :  { %v9072_v35 = vpop.permute.xlu1 %9071 }
0x1a47   :  { %v9074_v17 = vmul.f32 %v15283_v26, %v9072_v35 }
0x1a49   :  { %v9098_v36 = vpack.c.bf16 %v9074_v17, %v9074_v17 }
0x1a4a   :  { %15606 = dma.done.wait [#allocation3 + $0x7], 5376 }
0x1a4b   :  { %15607 = vsyncadd [#allocation3 + $0x7], 4294961920  ;;  %9393 = vmatprep.mubr.bf16.mxu1 %v15616_v58  ;;  %9434 = vmatprep.mubr.bf16.mxu0 %v15616_v58  ;;  %v9853_v27 = vpack.c.bf16 %v8930_v5, %v8930_v5  ;;  %v15288_v38 = vld [vmem:[#allocation2 + $0x9dc] ss:$84 sps:$4 sm:$0xff]   ;;  %v15290_v40 = vld [vmem:[#allocation2 + $0x9d8] ss:$84 sps:$4 sm:$0xff]  }
0x1a4c   :  { %9144 = vrot.lane.b32.xlu0 %v9098_v36, %s15618_s23  ;;  %9373 = vmatprep.subr.bf16.mxu1 %v15288_v38  ;;  %v15291_v42 = vld [vmem:[#allocation2 + $0x9e4] ss:$84 sps:$4 sm:$0xff]   ;;  %v15293_v46 = vld [vmem:[#allocation2 + $0x9e0] ss:$84 sps:$4 sm:$0xff]   ;;  %v15297_v51 = vld [vmem:[#allocation2 + $0x93c] ss:$84 sps:$4 sm:$0xff]  }
0x1a4d   :  { %9374 = vmatpush1.bf16.msra.mxu1 %v15290_v40  ;;  %v15294_v48 = vld [vmem:[#allocation2 + $0x934] ss:$84 sps:$4 sm:$0xff]   ;;  %v15296_v50 = vld [vmem:[#allocation2 + $0x930] ss:$84 sps:$4 sm:$0xff]   ;;  %9414 = vmatprep.subr.bf16.mxu0 %v15291_v42  ;;  %v15299_v52 = vld [vmem:[#allocation2 + $0x938] ss:$84 sps:$4 sm:$0xff]  }
0x1a4e   :  { %9415 = vmatpush1.bf16.msra.mxu0 %v15293_v46  ;;  %9375 = vmatprep.subr.bf16.mxu1 %v15294_v48  ;;  %v15302_v22 = vld [vmem:[#allocation2 + $0x9ec] ss:$84 sps:$4 sm:$0xff]   ;;  %v15305_v37 = vld [vmem:[#allocation2 + $0x9f4] ss:$84 sps:$4 sm:$0xff]   ;;  %v15303_v55 = vld [vmem:[#allocation2 + $0x9f0] ss:$84 sps:$4 sm:$0xff]  }
0x1a4f   :  { %9416 = vmatprep.subr.bf16.mxu0 %v15297_v51  ;;  %v15300_v54 = vld [vmem:[#allocation2 + $0x9e8] ss:$84 sps:$4 sm:$0xff]   ;;  %v15308_v56 = vld [vmem:[#allocation2 + $0x944] ss:$84 sps:$4 sm:$0xff]   ;;  %v15311_v25 = vld [vmem:[#allocation2 + $0x94c] ss:$84 sps:$4 sm:$0xff]  }
0x1a50   :  { %9859 = vrot.lane.b32.xlu0 %v9853_v27, %s15618_s23  ;;  %v15306_v60 = vld [vmem:[#allocation2 + $0x940] ss:$84 sps:$4 sm:$0xff]   ;;  %v15309_v61 = vld [vmem:[#allocation2 + $0x948] ss:$84 sps:$4 sm:$0xff]   ;;  %v15317_v0 = vld [vmem:[#allocation2 + $0xa04] ss:$84 sps:$4 sm:$0xff]  }
0x1a51   :  { %9376 = vmatpush1.bf16.msra.mxu1 %v15296_v50  ;;  %v15314_v6 = vld [vmem:[#allocation2 + $0x9fc] ss:$84 sps:$4 sm:$0xff]   ;;  %v15312_v41 = vld [vmem:[#allocation2 + $0x9f8] ss:$84 sps:$4 sm:$0xff]   ;;  %v15315_v3 = vld [vmem:[#allocation2 + $0xa00] ss:$84 sps:$4 sm:$0xff]  }
0x1a52   :  { %9455 = vmatprep.subr.bf16.mxu1 %v15302_v22  ;;  %9417 = vmatpush1.bf16.msra.mxu0 %v15299_v52  ;;  %v15320_v4 = vld [vmem:[#allocation2 + $0x954] ss:$84 sps:$4 sm:$0xff]   ;;  %v15323_v28 = vld [vmem:[#allocation2 + $0x95c] ss:$84 sps:$4 sm:$0xff]   ;;  %v15321_v8 = vld [vmem:[#allocation2 + $0x958] ss:$84 sps:$4 sm:$0xff]  }
0x1a53   :  { %9496 = vmatprep.subr.bf16.mxu0 %v15305_v37  ;;  %v15318_v7 = vld [vmem:[#allocation2 + $0x950] ss:$84 sps:$4 sm:$0xff]   ;;  %v15326_v44 = vld [vmem:[#allocation2 + $0xa0c] ss:$84 sps:$4 sm:$0xff]   ;;  %v15329_v47 = vld [vmem:[#allocation2 + $0xa14] ss:$84 sps:$4 sm:$0xff]  }
0x1a54   :  { %v15324_v9 = vld [vmem:[#allocation2 + $0xa08] ss:$84 sps:$4 sm:$0xff]   ;;  %v15327_v31 = vld [vmem:[#allocation2 + $0xa10] ss:$84 sps:$4 sm:$0xff]   ;;  %v15335_v49 = vld [vmem:[#allocation2 + $0x96c] ss:$84 sps:$4 sm:$0xff]  }
0x1a55   :  { %v15332_v10 = vld [vmem:[#allocation2 + $0x964] ss:$84 sps:$4 sm:$0xff]   ;;  %v15330_v11 = vld [vmem:[#allocation2 + $0x960] ss:$84 sps:$4 sm:$0xff]   ;;  %v15333_v59 = vld [vmem:[#allocation2 + $0x968] ss:$84 sps:$4 sm:$0xff]  }
0x1a56   :  { %v15338_v13 = vld [vmem:[#allocation2 + $0xa1c] ss:$84 sps:$4 sm:$0xff]   ;;  %v15341_v14 = vld [vmem:[#allocation2 + $0xa24] ss:$84 sps:$4 sm:$0xff]   ;;  %v15339_v39 = vld [vmem:[#allocation2 + $0xa20] ss:$84 sps:$4 sm:$0xff]  }
0x1a57   :  { %v15336_v18 = vld [vmem:[#allocation2 + $0xa18] ss:$84 sps:$4 sm:$0xff]   ;;  %v15344_v19 = vld [vmem:[#allocation2 + $0x974] ss:$84 sps:$4 sm:$0xff]   ;;  %v15347_v1 = vld [vmem:[#allocation2 + $0x97c] ss:$84 sps:$4 sm:$0xff]  }
0x1a58   :  { %v15342_v20 = vld [vmem:[#allocation2 + $0x970] ss:$84 sps:$4 sm:$0xff]   ;;  %v15345_v21 = vld [vmem:[#allocation2 + $0x978] ss:$84 sps:$4 sm:$0xff]   ;;  %v15348_v23 = vld [vmem:[#allocation2 + $0xa28] ss:$84 sps:$4 sm:$0xff]  }
0x1a59   :  { %v15349_v24 = vld [vmem:[%s19628_s2 + $0x8] sm:$0xff]   ;;  %v15350_v26 = vld [vmem:[#allocation2 + $0x980] ss:$84 sps:$4 sm:$0xff]   ;;  %v9080_v17 = vld [vmem:[%s19635_s9 + $0x18] sm:$0xff] }
0x1a5a   :  { %v15351_v29 = vld [vmem:[%s19628_s2] sm:$0xff]   ;;  %v15352_v30 = vld [vmem:[%s19630_s4 + $0x8] sm:$0xff]   ;;  %v9079_v34 = vld [vmem:[%s19635_s9 + $0x10] sm:$0xff] }
0x1a5b   :  { %v15353_v12 = vld [vmem:[%s19631_s5 + $0x8] sm:$0xff]   ;;  %v15354_v63 = vld [vmem:[%s19630_s4] sm:$0xff]   ;;  %v9083_v37 = vld [vmem:[%s19635_s9 + $0x30] sm:$0xff] }
0x1a5c   :  { %v15355_v2 = vld [vmem:[%s19631_s5] sm:$0xff]   ;;  %v9078_v35 = vld [vmem:[%s19635_s9 + $0x8] sm:$0xff] }
0x1a5d   :  { %v9077_v33 = vld [vmem:[%s19635_s9] sm:$0xff] }
0x1a5e   :  { %v9081_v22 = vld [vmem:[%s19635_s9 + $0x20] sm:$0xff] }
0x1abe   :  { %v18809_v57 = vpop.permute.xlu0 %9144 }
0x1abf   :  { %13945 = vmatmul.mubr.msk.bf16.vlgmr.msra.gmra.mxu1 %vm1718_vm2, %v18809_v57  ;;  %13946 = vmatmul.mubr.msk.bf16.vlgmr.msra.gmra.mxu0 %vm1718_vm2, %v18809_v57 }
0x1ac0   :  { %9456 = vmatpush1.bf16.msra.mxu1 %v15300_v54  ;;  %9497 = vmatpush1.bf16.msra.mxu0 %v15303_v55 }
0x1ac1   :  { %9457 = vmatprep.subr.bf16.mxu1 %v15308_v56  ;;  %9498 = vmatprep.subr.bf16.mxu0 %v15311_v25  ;;  %v9082_v56 = vld [vmem:[%s19635_s9 + $0x28] sm:$0xff]  ;;  %v9084_v25 = vld [vmem:[%s19635_s9 + $0x38] sm:$0xff] }
0x1ac2   :  { %9475 = vmatprep.mubr.bf16.mxu1 %v15616_v58  ;;  %9516 = vmatprep.mubr.bf16.mxu0 %v15616_v58  ;;  %v9860_v62 = vpop.permute.xlu0 %9859 }
0x1ac4   :  { %9458 = vmatpush1.bf16.msra.mxu1 %v15306_v60  ;;  %9499 = vmatpush1.bf16.msra.mxu0 %v15309_v61 }
0x1ac5   :  { %9537 = vmatprep.subr.bf16.mxu1 %v15314_v6  ;;  %9578 = vmatprep.subr.bf16.mxu0 %v15317_v0 }
0x1ac7   :  { %13947 = vmatmul.mubr.msk.bf16.vlgmr.msra.gmra.mxu1 %vm1718_vm2, %v18809_v57  ;;  %13948 = vmatmul.mubr.msk.bf16.vlgmr.msra.gmra.mxu0 %vm1718_vm2, %v18809_v57 }
0x1ac8   :  { %9538 = vmatpush1.bf16.msra.mxu1 %v15312_v41  ;;  %9579 = vmatpush1.bf16.msra.mxu0 %v15315_v3 }
0x1ac9   :  { %9539 = vmatprep.subr.bf16.mxu1 %v15320_v4  ;;  %9580 = vmatprep.subr.bf16.mxu0 %v15323_v28 }
0x1aca   :  { %9557 = vmatprep.mubr.bf16.mxu1 %v15616_v58  ;;  %9598 = vmatprep.mubr.bf16.mxu0 %v15616_v58 }
0x1acc   :  { %9540 = vmatpush1.bf16.msra.mxu1 %v15318_v7  ;;  %9581 = vmatpush1.bf16.msra.mxu0 %v15321_v8  ;;  %v9085_v8 = vld [vmem:[%s19635_s9 + $0x40] sm:$0xff] }
0x1acd   :  { %9619 = vmatprep.subr.bf16.mxu1 %v15326_v44  ;;  %9660 = vmatprep.subr.bf16.mxu0 %v15329_v47  ;;  %v9087_v44 = vld [vmem:[%s19635_s9 + $0x50] sm:$0xff] }
0x1acf   :  { %13949 = vmatmul.mubr.msk.bf16.vlgmr.msra.gmra.mxu1 %vm1718_vm2, %v18809_v57  ;;  %13950 = vmatmul.mubr.msk.bf16.vlgmr.msra.gmra.mxu0 %vm1718_vm2, %v18809_v57 }
0x1ad0   :  { %9620 = vmatpush1.bf16.msra.mxu1 %v15324_v9  ;;  %9661 = vmatpush1.bf16.msra.mxu0 %v15327_v31  ;;  %v9086_v31 = vld [vmem:[%s19635_s9 + $0x48] sm:$0xff] }
0x1ad1   :  { %9621 = vmatprep.subr.bf16.mxu1 %v15332_v10  ;;  %9662 = vmatprep.subr.bf16.mxu0 %v15335_v49  ;;  %v9088_v10 = vld [vmem:[%s19635_s9 + $0x58] sm:$0xff] }
0x1ad2   :  { %9639 = vmatprep.mubr.bf16.mxu1 %v15616_v58  ;;  %9680 = vmatprep.mubr.bf16.mxu0 %v15616_v58 }
0x1ad4   :  { %9622 = vmatpush1.bf16.msra.mxu1 %v15330_v11  ;;  %9663 = vmatpush1.bf16.msra.mxu0 %v15333_v59 }
0x1ad5   :  { %9701 = vmatprep.subr.bf16.mxu1 %v15338_v13  ;;  %9742 = vmatprep.subr.bf16.mxu0 %v15341_v14 }
0x1ad7   :  { %13951 = vmatmul.mubr.msk.bf16.vlgmr.msra.gmra.mxu1 %vm1718_vm2, %v18809_v57  ;;  %13952 = vmatmul.mubr.msk.bf16.vlgmr.msra.gmra.mxu0 %vm1718_vm2, %v18809_v57 }
0x1ad8   :  { %9702 = vmatpush1.bf16.msra.mxu1 %v15336_v18  ;;  %9743 = vmatpush1.bf16.msra.mxu0 %v15339_v39 }
0x1ad9   :  { %9703 = vmatprep.subr.bf16.mxu1 %v15344_v19  ;;  %9744 = vmatprep.subr.bf16.mxu0 %v15347_v1 }
0x1ada   :  { %9721 = vmatprep.mubr.bf16.mxu1 %v15616_v58  ;;  %9762 = vmatprep.mubr.bf16.mxu0 %v15616_v58 }
0x1adc   :  { %9704 = vmatpush1.bf16.msra.mxu1 %v15342_v20  ;;  %9745 = vmatpush1.bf16.msra.mxu0 %v15345_v21  ;;  %v9089_v21 = vld [vmem:[%s19635_s9 + $0x60] sm:$0xff] }
0x1add   :  { %14567 = vmatprep.subr.bf16.mxu1 %v15614_v15  ;;  %14575 = vmatprep.subr.bf16.mxu0 %v15614_v15 }
0x1adf   :  { %13953 = vmatmul.mubr.msk.bf16.vlgmr.msra.gmra.mxu1 %vm1718_vm2, %v18809_v57  ;;  %13954 = vmatmul.mubr.msk.bf16.vlgmr.msra.gmra.mxu0 %vm1718_vm2, %v18809_v57 }
0x1ae0   :  { %14568 = vmatpush3.bf16.msra.mxu1 %v15348_v23  ;;  %14576 = vmatpush3.bf16.msra.mxu0 %v15349_v24  ;;  %v9091_v23 = vld [vmem:[%s19635_s9 + $0x70] sm:$0xff] }
0x1ae1   :  { %14569 = vmatprep.subr.bf16.mxu1 %v15614_v15  ;;  %14577 = vmatprep.subr.bf16.mxu0 %v15614_v15 }
0x1ae2   :  { %14571 = vmatprep.mubr.msk.bf16.mxu1 %vm15615_vm1, %v15614_v15  ;;  %14579 = vmatprep.mubr.msk.bf16.mxu0 %vm15615_vm1, %v15614_v15 }
0x1ae4   :  { %14570 = vmatpush3.bf16.msra.mxu1 %v15350_v26  ;;  %14578 = vmatpush3.bf16.msra.mxu0 %v15351_v29  ;;  %v9090_v29 = vld [vmem:[%s19635_s9 + $0x68] sm:$0xff] }
0x1ae5   :  { %14583 = vmatprep.subr.bf16.mxu1 %v15614_v15  ;;  %14591 = vmatprep.subr.bf16.mxu0 %v15614_v15 }
0x1ae7   :  { %14572 = vmatmul.mubr.msk.bf16.vlgmr.msra.gmra.mxu1 %vm1718_vm2, %v18809_v57  ;;  %14580 = vmatmul.mubr.msk.bf16.vlgmr.msra.gmra.mxu0 %vm1718_vm2, %v9860_v62 }
0x1ae8   :  { %14584 = vmatpush3.bf16.msra.mxu1 %v15352_v30  ;;  %14592 = vmatpush3.bf16.msra.mxu0 %v15353_v12 }
0x1ae9   :  { %14585 = vmatprep.subr.bf16.mxu1 %v15614_v15  ;;  %14593 = vmatprep.subr.bf16.mxu0 %v15614_v15 }
0x1aea   :  { %14587 = vmatprep.mubr.msk.bf16.mxu1 %vm15615_vm1, %v15614_v15  ;;  %14595 = vmatprep.mubr.msk.bf16.mxu0 %vm15615_vm1, %v15614_v15 }
0x1aec   :  { %14586 = vmatpush3.bf16.msra.mxu1 %v15354_v63  ;;  %14594 = vmatpush3.bf16.msra.mxu0 %v15355_v2 }
0x1aef   :  { %14588 = vmatmul.mubr.msk.bf16.vlgmr.msra.gmra.mxu1 %vm1718_vm2, %v9860_v62  ;;  %14596 = vmatmul.mubr.msk.bf16.vlgmr.msra.gmra.mxu0 %vm1718_vm2, %v18809_v57  ;;  %v9092_v62 = vld [vmem:[%s19635_s9 + $0x78] sm:$0xff] }
0x1b7f   :  { %v9395_v43 = vpop.f32.mrf.mxu1  ;;  %v9436_v5 = vpop.f32.mrf.mxu0 }
0x1b80   :  { %v9811_v36 = vadd.f32 %v9395_v43, %v9077_v33  ;;  %v9813_v27 = vadd.f32 %v9436_v5, %v9079_v34 }
0x1b81   :  { %v9397_v38 = vpop.f32.mrf.mxu1  ;;  %v9438_v40 = vpop.f32.mrf.mxu0 }
0x1b82   :  { %9832 = vst [vmem:[%s19635_s9] sm:$0xff] %v9811_v36  ;;  %9834 = vst [vmem:[%s19635_s9 + $0x10] sm:$0xff] %v9813_v27  ;;  %v9812_v42 = vadd.f32 %v9397_v38, %v9078_v35  ;;  %v9814_v46 = vadd.f32 %v9438_v40, %v9080_v17  ;;  %v9093_v36 = vld [vmem:[%s19635_s9 + $0x80] sm:$0xff]  ;;  %v9095_v27 = vld [vmem:[%s19635_s9 + $0x90] sm:$0xff] }
0x1b83   :  { %v9399_v48 = vpop.f32.mrf.mxu1  ;;  %v9440_v50 = vpop.f32.mrf.mxu0 }
0x1b84   :  { %9833 = vst [vmem:[%s19635_s9 + $0x8] sm:$0xff] %v9812_v42  ;;  %9835 = vst [vmem:[%s19635_s9 + $0x18] sm:$0xff] %v9814_v46  ;;  %v9094_v42 = vld [vmem:[%s19635_s9 + $0x88] sm:$0xff]  ;;  %v9096_v46 = vld [vmem:[%s19635_s9 + $0x98] sm:$0xff] }
0x1b85   :  { %v9400_v51 = vpop.f32.mrf.mxu1  ;;  %v9441_v52 = vpop.f32.mrf.mxu0 }
0x1b87   :  { %v9477_v54 = vpop.f32.mrf.mxu1  ;;  %v9518_v55 = vpop.f32.mrf.mxu0 }
0x1b88   :  { %v9815_v57 = vadd.f32 %v9477_v54, %v9081_v22  ;;  %v9817_v60 = vadd.f32 %v9518_v55, %v9083_v37 }
0x1b89   :  { %v9479_v61 = vpop.f32.mrf.mxu1  ;;  %v9520_v6 = vpop.f32.mrf.mxu0 }
0x1b8a   :  { %9836 = vst [vmem:[%s19635_s9 + $0x20] sm:$0xff] %v9815_v57  ;;  %9838 = vst [vmem:[%s19635_s9 + $0x30] sm:$0xff] %v9817_v60  ;;  %v9816_v0 = vadd.f32 %v9479_v61, %v9082_v56  ;;  %v9818_v41 = vadd.f32 %v9520_v6, %v9084_v25  ;;  %v9097_v57 = vld [vmem:[%s19635_s9 + $0xa0] sm:$0xff] }
0x1b8b   :  { %v9481_v3 = vpop.f32.mrf.mxu1  ;;  %v9522_v4 = vpop.f32.mrf.mxu0 }
0x1b8c   :  { %9837 = vst [vmem:[%s19635_s9 + $0x28] sm:$0xff] %v9816_v0  ;;  %9839 = vst [vmem:[%s19635_s9 + $0x38] sm:$0xff] %v9818_v41 }
0x1b8d   :  { %v9482_v28 = vpop.f32.mrf.mxu1  ;;  %v9523_v7 = vpop.f32.mrf.mxu0 }
0x1b8f   :  { %v9559_v47 = vpop.f32.mrf.mxu1  ;;  %v9600_v9 = vpop.f32.mrf.mxu0 }
0x1b90   :  { %v9819_v49 = vadd.f32 %v9559_v47, %v9085_v8  ;;  %v9821_v11 = vadd.f32 %v9600_v9, %v9087_v44  ;;  %v13960_v44 = vld [vmem:[%s19632_s6] ss:$0 sm:$0xff] }
0x1b91   :  { %v9561_v59 = vpop.f32.mrf.mxu1  ;;  %v9602_v13 = vpop.f32.mrf.mxu0 }
0x1b92   :  { %9840 = vst [vmem:[%s19635_s9 + $0x40] sm:$0xff] %v9819_v49  ;;  %9842 = vst [vmem:[%s19635_s9 + $0x50] sm:$0xff] %v9821_v11  ;;  %v9820_v14 = vadd.f32 %v9561_v59, %v9086_v31  ;;  %v9822_v18 = vadd.f32 %v9602_v13, %v9088_v10 }
0x1b93   :  { %v9563_v39 = vpop.f32.mrf.mxu1  ;;  %v9604_v19 = vpop.f32.mrf.mxu0 }
0x1b94   :  { %9841 = vst [vmem:[%s19635_s9 + $0x48] sm:$0xff] %v9820_v14  ;;  %9843 = vst [vmem:[%s19635_s9 + $0x58] sm:$0xff] %v9822_v18 }
0x1b95   :  { %v9564_v1 = vpop.f32.mrf.mxu1  ;;  %v9605_v20 = vpop.f32.mrf.mxu0 }
0x1b97   :  { %v9641_v24 = vpop.f32.mrf.mxu1  ;;  %v9682_v26 = vpop.f32.mrf.mxu0 }
0x1b98   :  { %v9823_v30 = vadd.f32 %v9641_v24, %v9089_v21  ;;  %v9825_v12 = vadd.f32 %v9682_v26, %v9091_v23 }
0x1b99   :  { %v9643_v63 = vpop.f32.mrf.mxu1  ;;  %v9684_v2 = vpop.f32.mrf.mxu0 }
0x1b9a   :  { %9844 = vst [vmem:[%s19635_s9 + $0x60] sm:$0xff] %v9823_v30  ;;  %9846 = vst [vmem:[%s19635_s9 + $0x70] sm:$0xff] %v9825_v12  ;;  %v9824_v33 = vadd.f32 %v9643_v63, %v9090_v29  ;;  %v9826_v34 = vadd.f32 %v9684_v2, %v9092_v62 }
0x1b9b   :  { %v9645_v43 = vpop.f32.mrf.mxu1  ;;  %v9686_v5 = vpop.f32.mrf.mxu0 }
0x1b9c   :  { %9845 = vst [vmem:[%s19635_s9 + $0x68] sm:$0xff] %v9824_v33  ;;  %9847 = vst [vmem:[%s19635_s9 + $0x78] sm:$0xff] %v9826_v34 }
0x1b9d   :  { %v9646_v35 = vpop.f32.mrf.mxu1  ;;  %v9687_v17 = vpop.f32.mrf.mxu0 }
0x1b9f   :  { %v9723_v38 = vpop.f32.mrf.mxu1  ;;  %v9764_v40 = vpop.f32.mrf.mxu0 }
0x1ba0   :  { %v9827_v48 = vadd.f32 %v9723_v38, %v9093_v36  ;;  %v9829_v50 = vadd.f32 %v9764_v40, %v9095_v27 }
0x1ba1   :  { %v9725_v51 = vpop.f32.mrf.mxu1  ;;  %v9766_v52 = vpop.f32.mrf.mxu0 }
0x1ba2   :  { %9848 = vst [vmem:[%s19635_s9 + $0x80] sm:$0xff] %v9827_v48  ;;  %9850 = vst [vmem:[%s19635_s9 + $0x90] sm:$0xff] %v9829_v50  ;;  %v9828_v22 = vadd.f32 %v9725_v51, %v9094_v42  ;;  %v9830_v37 = vadd.f32 %v9766_v52, %v9096_v46 }
0x1ba3   :  { %v9727_v54 = vpop.f32.mrf.mxu1  ;;  %v9768_v55 = vpop.f32.mrf.mxu0 }
0x1ba4   :  { %9849 = vst [vmem:[%s19635_s9 + $0x88] sm:$0xff] %v9828_v22  ;;  %9851 = vst [vmem:[%s19635_s9 + $0x98] sm:$0xff] %v9830_v37 }
0x1ba5   :  { %v9728_v56 = vpop.f32.mrf.mxu1  ;;  %v9769_v25 = vpop.f32.mrf.mxu0 }
0x1ba7   :  { %v9805_v60 = vpop.f32.mrf.mxu1  ;;  %v9910_v61 = vpop.f32.mrf.mxu0 }
0x1ba8   :  { %v9831_v6 = vadd.f32 %v9805_v60, %v9097_v57  ;;  %v9916_v0 = vadd.f32 %v9910_v61, %v17260_v53 }
0x1ba9   :  { %v14573_v41 = vpop.f32.mrf.mxu1  ;;  %v14581_v3 = vpop.f32.mrf.mxu0 }
0x1baa   :  { %9852 = vst [vmem:[%s19635_s9 + $0xa0] sm:$0xff] %v9831_v6  ;;  %15356 = vtanh.f32 %v9916_v0  ;;  %v13959_v19 = vmul.f32 -1.442695, %v9916_v0 }
0x1bab   :  { %v9808_v4 = vpop.f32.mrf.mxu1  ;;  %v9913_v28 = vpop.f32.mrf.mxu0 }
0x1bad   :  { %v14574_v7 = vpop.f32.mrf.mxu1  ;;  %v14582_v8 = vpop.f32.mrf.mxu0 }
0x1baf   :  { %v9998_v47 = vpop.f32.mrf.mxu1  ;;  %v10054_v9 = vpop.f32.mrf.mxu0 }
0x1bb0   :  { %v9999_v31 = vadd.f32 %v13960_v44, %v9998_v47 }
0x1bb1   :  { %v14589_v10 = vpop.f32.mrf.mxu1  ;;  %v14597_v53 = vpop.f32.mrf.mxu0 }
0x1bb2   :  { %v10060_v49 = vadd.f32 %v10054_v9, %v9999_v31 }
0x1bb3   :  { %v10001_v11 = vpop.f32.mrf.mxu1  ;;  %v10057_v59 = vpop.f32.mrf.mxu0 }
0x1bb4   :  { %15358 = vtanh.f32 %v10060_v49  ;;  %v13967_v1 = vmul.f32 -1.442695, %v10060_v49 }
0x1bb5   :  { %v14590_v13 = vpop.f32.mrf.mxu1  ;;  %v14598_v14 = vpop.f32.mrf.mxu0  ;;  %15360 = vpow2.f32 %v13959_v19 }
0x1bb6   :  { %15362 = vpow2.f32 %v13967_v1 }
0x1bb7   :  { %v15357_v18 = vpop.eup %15356 }
0x1bb8   :  { %9926 = vrot.lane.b32.xlu1 %v15357_v18, %s15617_s3 }
0x1bc1   :  { %v15359_v39 = vpop.eup %15358 }
0x1bc2   :  { %10070 = vrot.lane.b32.xlu1 %v15359_v39, %s15617_s3  ;;  %v15361_v20 = vpop.eup %15360 }
0x1bc3   :  { %v9920_v21 = vadd.f32 1.0, %v15361_v20  ;;  %v15363_v23 = vpop.eup %15362 }
0x1bc4   :  { %v10064_v24 = vadd.f32 1.0, %v15363_v23 }
0x1bc5   :  { %15364 = vrcp.f32 %v9920_v21 }
0x1bc6   :  { %15366 = vrcp.f32 %v10064_v24 }
0x1bd2   :  { %v15365_v26 = vpop.eup %15364 }
0x1bd3   :  { %v15367_v30 = vpop.eup %15366  ;;  %v9924_v2 = vmul.f32 %v15365_v26, %v18796_v32 }
0x1bd4   :  { %v10068_v43 = vmul.f32 %v15367_v30, %v18800_v16 }
0x1c2a   :  { %v9927_v29 = vpop.permute.xlu1 %9926 }
0x1c2b   :  { %v9929_v62 = vmul.f32 %v15365_v26, %v9927_v29 }
0x1c2d   :  { %9931 = vrot.lane.b32.xlu0 %v9929_v62, %s15617_s3 }
0x1c34   :  { %v10071_v12 = vpop.permute.xlu1 %10070 }
0x1c35   :  { %v10073_v63 = vmul.f32 %v15367_v30, %v10071_v12 }
0x1c37   :  { %10075 = vrot.lane.b32.xlu1 %v10073_v63, %s15617_s3 }
0x1c9f   :  { %v9932_v33 = vpop.permute.xlu0 %9931 }
0x1ca0   :  { %v19014_v34 = vadd.f32 %v9932_v33, %v9924_v2 }
0x1ca2   :  { %15368 = vtanh.f32 %v19014_v34 }
0x1ca9   :  { %v10076_v5 = vpop.permute.xlu1 %10075 }
0x1caa   :  { %v19018_v35 = vadd.f32 %v10076_v5, %v10068_v43 }
0x1cac   :  { %15370 = vtanh.f32 %v19018_v35 }
0x1caf   :  { %v15369_v17 = vpop.eup %15368 }
0x1cb0   :  { %9937 = vrot.lane.b32.xlu0 %v15369_v17, %s15617_s3 }
0x1cb9   :  { %v15371_v36 = vpop.eup %15370 }
0x1cba   :  { %10081 = vrot.lane.b32.xlu1 %v15371_v36, %s15617_s3 }
0x1d22   :  { %v9938_v27 = vpop.permute.xlu0 %9937 }
0x1d23   :  { %v9940_v32 = vmul.f32 %v15365_v26, %v9938_v27 }
0x1d2c   :  { %v10082_v38 = vpop.permute.xlu1 %10081 }
0x1d2d   :  { %v10084_v40 = vmul.f32 %v15367_v30, %v10082_v38 }
0x1d2f   :  { %v10108_v42 = vpack.c.bf16 %v10084_v40, %v10084_v40 }
0x1d30   :  { %15608 = dma.done.wait [#allocation3 + $0x8], 5376 }
0x1d31   :  { %15609 = vsyncadd [#allocation3 + $0x8], 4294961920  ;;  %10403 = vmatprep.mubr.bf16.mxu1 %v15616_v58  ;;  %10444 = vmatprep.mubr.bf16.mxu0 %v15616_v58  ;;  %v10863_v16 = vpack.c.bf16 %v9940_v32, %v9940_v32  ;;  %v15372_v46 = vld [vmem:[#allocation2 + $0xb2c] ss:$84 sps:$4 sm:$0xff]   ;;  %v15374_v48 = vld [vmem:[#allocation2 + $0xb28] ss:$84 sps:$4 sm:$0xff]  }
0x1d32   :  { %10154 = vrot.lane.b32.xlu0 %v10108_v42, %s15618_s23  ;;  %10383 = vmatprep.subr.bf16.mxu1 %v15372_v46  ;;  %v15375_v50 = vld [vmem:[#allocation2 + $0xb34] ss:$84 sps:$4 sm:$0xff]   ;;  %v15377_v51 = vld [vmem:[#allocation2 + $0xb30] ss:$84 sps:$4 sm:$0xff]   ;;  %v15381_v37 = vld [vmem:[#allocation2 + $0xa8c] ss:$84 sps:$4 sm:$0xff]  }
0x1d33   :  { %10384 = vmatpush1.bf16.msra.mxu1 %v15374_v48  ;;  %v15378_v52 = vld [vmem:[#allocation2 + $0xa84] ss:$84 sps:$4 sm:$0xff]   ;;  %v15380_v22 = vld [vmem:[#allocation2 + $0xa80] ss:$84 sps:$4 sm:$0xff]   ;;  %10424 = vmatprep.subr.bf16.mxu0 %v15375_v50  ;;  %v15383_v54 = vld [vmem:[#allocation2 + $0xa88] ss:$84 sps:$4 sm:$0xff]  }
0x1d34   :  { %10425 = vmatpush1.bf16.msra.mxu0 %v15377_v51  ;;  %10385 = vmatprep.subr.bf16.mxu1 %v15378_v52  ;;  %v15386_v55 = vld [vmem:[#allocation2 + $0xb3c] ss:$84 sps:$4 sm:$0xff]   ;;  %v15389_v56 = vld [vmem:[#allocation2 + $0xb44] ss:$84 sps:$4 sm:$0xff]   ;;  %v15387_v57 = vld [vmem:[#allocation2 + $0xb40] ss:$84 sps:$4 sm:$0xff]  }
0x1d35   :  { %10426 = vmatprep.subr.bf16.mxu0 %v15381_v37  ;;  %v15384_v25 = vld [vmem:[#allocation2 + $0xb38] ss:$84 sps:$4 sm:$0xff]   ;;  %v15392_v60 = vld [vmem:[#allocation2 + $0xa94] ss:$84 sps:$4 sm:$0xff]   ;;  %v15395_v61 = vld [vmem:[#allocation2 + $0xa9c] ss:$84 sps:$4 sm:$0xff]  }
0x1d36   :  { %10869 = vrot.lane.b32.xlu0 %v10863_v16, %s15618_s23  ;;  %v15390_v0 = vld [vmem:[#allocation2 + $0xa90] ss:$84 sps:$4 sm:$0xff]   ;;  %v15393_v41 = vld [vmem:[#allocation2 + $0xa98] ss:$84 sps:$4 sm:$0xff]   ;;  %v15401_v4 = vld [vmem:[#allocation2 + $0xb54] ss:$84 sps:$4 sm:$0xff]  }
0x1d37   :  { %10386 = vmatpush1.bf16.msra.mxu1 %v15380_v22  ;;  %v15398_v3 = vld [vmem:[#allocation2 + $0xb4c] ss:$84 sps:$4 sm:$0xff]   ;;  %v15396_v28 = vld [vmem:[#allocation2 + $0xb48] ss:$84 sps:$4 sm:$0xff]   ;;  %v15399_v7 = vld [vmem:[#allocation2 + $0xb50] ss:$84 sps:$4 sm:$0xff]  }
0x1d38   :  { %10465 = vmatprep.subr.bf16.mxu1 %v15386_v55  ;;  %10427 = vmatpush1.bf16.msra.mxu0 %v15383_v54  ;;  %v15404_v8 = vld [vmem:[#allocation2 + $0xaa4] ss:$84 sps:$4 sm:$0xff]   ;;  %v15407_v44 = vld [vmem:[#allocation2 + $0xaac] ss:$84 sps:$4 sm:$0xff]   ;;  %v15405_v9 = vld [vmem:[#allocation2 + $0xaa8] ss:$84 sps:$4 sm:$0xff]  }
0x1d39   :  { %10506 = vmatprep.subr.bf16.mxu0 %v15389_v56  ;;  %v15402_v47 = vld [vmem:[#allocation2 + $0xaa0] ss:$84 sps:$4 sm:$0xff]   ;;  %v15410_v31 = vld [vmem:[#allocation2 + $0xb5c] ss:$84 sps:$4 sm:$0xff]   ;;  %v15413_v10 = vld [vmem:[#allocation2 + $0xb64] ss:$84 sps:$4 sm:$0xff]  }
0x1d3a   :  { %v15408_v53 = vld [vmem:[#allocation2 + $0xb58] ss:$84 sps:$4 sm:$0xff]   ;;  %v15411_v49 = vld [vmem:[#allocation2 + $0xb60] ss:$84 sps:$4 sm:$0xff]   ;;  %v15419_v59 = vld [vmem:[#allocation2 + $0xabc] ss:$84 sps:$4 sm:$0xff]  }
0x1d3b   :  { %v15416_v11 = vld [vmem:[#allocation2 + $0xab4] ss:$84 sps:$4 sm:$0xff]   ;;  %v15414_v13 = vld [vmem:[#allocation2 + $0xab0] ss:$84 sps:$4 sm:$0xff]   ;;  %v15417_v14 = vld [vmem:[#allocation2 + $0xab8] ss:$84 sps:$4 sm:$0xff]  }
0x1d3c   :  { %v15422_v18 = vld [vmem:[#allocation2 + $0xb6c] ss:$84 sps:$4 sm:$0xff]   ;;  %v15425_v39 = vld [vmem:[#allocation2 + $0xb74] ss:$84 sps:$4 sm:$0xff]   ;;  %v15423_v1 = vld [vmem:[#allocation2 + $0xb70] ss:$84 sps:$4 sm:$0xff]  }
0x1d3d   :  { %v15420_v19 = vld [vmem:[#allocation2 + $0xb68] ss:$84 sps:$4 sm:$0xff]   ;;  %v15428_v20 = vld [vmem:[#allocation2 + $0xac4] ss:$84 sps:$4 sm:$0xff]   ;;  %v15431_v21 = vld [vmem:[#allocation2 + $0xacc] ss:$84 sps:$4 sm:$0xff]  }
0x1d3e   :  { %v15426_v23 = vld [vmem:[#allocation2 + $0xac0] ss:$84 sps:$4 sm:$0xff]   ;;  %v15429_v24 = vld [vmem:[#allocation2 + $0xac8] ss:$84 sps:$4 sm:$0xff]   ;;  %v15432_v26 = vld [vmem:[#allocation2 + $0xb78] ss:$84 sps:$4 sm:$0xff]  }
0x1d3f   :  { %v15433_v29 = vld [vmem:[%s19628_s2 + $0x8] sm:$0xff]   ;;  %v15434_v62 = vld [vmem:[#allocation2 + $0xad0] ss:$84 sps:$4 sm:$0xff]   ;;  %v10090_v38 = vld [vmem:[%s19635_s9 + $0x18] sm:$0xff] }
0x1d40   :  { %v15435_v30 = vld [vmem:[%s19628_s2] sm:$0xff]   ;;  %v15436_v63 = vld [vmem:[%s19630_s4 + $0x8] sm:$0xff]   ;;  %v10089_v17 = vld [vmem:[%s19635_s9 + $0x10] sm:$0xff] }
0x1d41   :  { %v15437_v2 = vld [vmem:[%s19631_s5 + $0x8] sm:$0xff]   ;;  %v15438_v33 = vld [vmem:[%s19630_s4] sm:$0xff]   ;;  %v10093_v55 = vld [vmem:[%s19635_s9 + $0x30] sm:$0xff] }
0x1d42   :  { %v15439_v43 = vld [vmem:[%s19631_s5] sm:$0xff]   ;;  %v10088_v32 = vld [vmem:[%s19635_s9 + $0x8] sm:$0xff] }
0x1d43   :  { %v10087_v5 = vld [vmem:[%s19635_s9] sm:$0xff] }
0x1d44   :  { %v10091_v54 = vld [vmem:[%s19635_s9 + $0x20] sm:$0xff] }
0x1da4   :  { %v19027_v6 = vpop.permute.xlu0 %10154 }
0x1da5   :  { %14010 = vmatmul.mubr.msk.bf16.vlgmr.msra.gmra.mxu1 %vm1718_vm2, %v19027_v6  ;;  %14011 = vmatmul.mubr.msk.bf16.vlgmr.msra.gmra.mxu0 %vm1718_vm2, %v19027_v6 }
0x1da6   :  { %10466 = vmatpush1.bf16.msra.mxu1 %v15384_v25  ;;  %10507 = vmatpush1.bf16.msra.mxu0 %v15387_v57  ;;  %v10092_v57 = vld [vmem:[%s19635_s9 + $0x28] sm:$0xff] }
0x1da7   :  { %10467 = vmatprep.subr.bf16.mxu1 %v15392_v60  ;;  %10508 = vmatprep.subr.bf16.mxu0 %v15395_v61  ;;  %v10094_v60 = vld [vmem:[%s19635_s9 + $0x38] sm:$0xff] }
0x1da8   :  { %10485 = vmatprep.mubr.bf16.mxu1 %v15616_v58  ;;  %10526 = vmatprep.mubr.bf16.mxu0 %v15616_v58  ;;  %v10870_v12 = vpop.permute.xlu0 %10869 }
0x1daa   :  { %10468 = vmatpush1.bf16.msra.mxu1 %v15390_v0  ;;  %10509 = vmatpush1.bf16.msra.mxu0 %v15393_v41 }
0x1dab   :  { %10547 = vmatprep.subr.bf16.mxu1 %v15398_v3  ;;  %10588 = vmatprep.subr.bf16.mxu0 %v15401_v4 }
0x1dad   :  { %14012 = vmatmul.mubr.msk.bf16.vlgmr.msra.gmra.mxu1 %vm1718_vm2, %v19027_v6  ;;  %14013 = vmatmul.mubr.msk.bf16.vlgmr.msra.gmra.mxu0 %vm1718_vm2, %v19027_v6 }
0x1dae   :  { %10548 = vmatpush1.bf16.msra.mxu1 %v15396_v28  ;;  %10589 = vmatpush1.bf16.msra.mxu0 %v15399_v7 }
0x1daf   :  { %10549 = vmatprep.subr.bf16.mxu1 %v15404_v8  ;;  %10590 = vmatprep.subr.bf16.mxu0 %v15407_v44 }
0x1db0   :  { %10567 = vmatprep.mubr.bf16.mxu1 %v15616_v58  ;;  %10608 = vmatprep.mubr.bf16.mxu0 %v15616_v58 }
0x1db2   :  { %10550 = vmatpush1.bf16.msra.mxu1 %v15402_v47  ;;  %10591 = vmatpush1.bf16.msra.mxu0 %v15405_v9  ;;  %v10095_v47 = vld [vmem:[%s19635_s9 + $0x40] sm:$0xff]  ;;  %v10097_v9 = vld [vmem:[%s19635_s9 + $0x50] sm:$0xff] }
0x1db3   :  { %10629 = vmatprep.subr.bf16.mxu1 %v15410_v31  ;;  %10670 = vmatprep.subr.bf16.mxu0 %v15413_v10 }
0x1db5   :  { %14014 = vmatmul.mubr.msk.bf16.vlgmr.msra.gmra.mxu1 %vm1718_vm2, %v19027_v6  ;;  %14015 = vmatmul.mubr.msk.bf16.vlgmr.msra.gmra.mxu0 %vm1718_vm2, %v19027_v6 }
0x1db6   :  { %10630 = vmatpush1.bf16.msra.mxu1 %v15408_v53  ;;  %10671 = vmatpush1.bf16.msra.mxu0 %v15411_v49  ;;  %v10096_v53 = vld [vmem:[%s19635_s9 + $0x48] sm:$0xff]  ;;  %v10098_v49 = vld [vmem:[%s19635_s9 + $0x58] sm:$0xff] }
0x1db7   :  { %10631 = vmatprep.subr.bf16.mxu1 %v15416_v11  ;;  %10672 = vmatprep.subr.bf16.mxu0 %v15419_v59 }
0x1db8   :  { %10649 = vmatprep.mubr.bf16.mxu1 %v15616_v58  ;;  %10690 = vmatprep.mubr.bf16.mxu0 %v15616_v58 }
0x1dba   :  { %10632 = vmatpush1.bf16.msra.mxu1 %v15414_v13  ;;  %10673 = vmatpush1.bf16.msra.mxu0 %v15417_v14 }
0x1dbb   :  { %10711 = vmatprep.subr.bf16.mxu1 %v15422_v18  ;;  %10752 = vmatprep.subr.bf16.mxu0 %v15425_v39 }
0x1dbd   :  { %14016 = vmatmul.mubr.msk.bf16.vlgmr.msra.gmra.mxu1 %vm1718_vm2, %v19027_v6  ;;  %14017 = vmatmul.mubr.msk.bf16.vlgmr.msra.gmra.mxu0 %vm1718_vm2, %v19027_v6 }
0x1dbe   :  { %10712 = vmatpush1.bf16.msra.mxu1 %v15420_v19  ;;  %10753 = vmatpush1.bf16.msra.mxu0 %v15423_v1 }
0x1dbf   :  { %10713 = vmatprep.subr.bf16.mxu1 %v15428_v20  ;;  %10754 = vmatprep.subr.bf16.mxu0 %v15431_v21 }
0x1dc0   :  { %10731 = vmatprep.mubr.bf16.mxu1 %v15616_v58  ;;  %10772 = vmatprep.mubr.bf16.mxu0 %v15616_v58 }
0x1dc2   :  { %10714 = vmatpush1.bf16.msra.mxu1 %v15426_v23  ;;  %10755 = vmatpush1.bf16.msra.mxu0 %v15429_v24  ;;  %v10099_v23 = vld [vmem:[%s19635_s9 + $0x60] sm:$0xff]  ;;  %v10101_v24 = vld [vmem:[%s19635_s9 + $0x70] sm:$0xff] }
0x1dc3   :  { %14599 = vmatprep.subr.bf16.mxu1 %v15614_v15  ;;  %14607 = vmatprep.subr.bf16.mxu0 %v15614_v15 }
0x1dc5   :  { %14018 = vmatmul.mubr.msk.bf16.vlgmr.msra.gmra.mxu1 %vm1718_vm2, %v19027_v6  ;;  %14019 = vmatmul.mubr.msk.bf16.vlgmr.msra.gmra.mxu0 %vm1718_vm2, %v19027_v6 }
0x1dc6   :  { %14600 = vmatpush3.bf16.msra.mxu1 %v15432_v26  ;;  %14608 = vmatpush3.bf16.msra.mxu0 %v15433_v29 }
0x1dc7   :  { %14601 = vmatprep.subr.bf16.mxu1 %v15614_v15  ;;  %14609 = vmatprep.subr.bf16.mxu0 %v15614_v15 }
0x1dc8   :  { %14603 = vmatprep.mubr.msk.bf16.mxu1 %vm15615_vm1, %v15614_v15  ;;  %14611 = vmatprep.mubr.msk.bf16.mxu0 %vm15615_vm1, %v15614_v15 }
0x1dca   :  { %14602 = vmatpush3.bf16.msra.mxu1 %v15434_v62  ;;  %14610 = vmatpush3.bf16.msra.mxu0 %v15435_v30  ;;  %v10100_v62 = vld [vmem:[%s19635_s9 + $0x68] sm:$0xff]  ;;  %v10102_v30 = vld [vmem:[%s19635_s9 + $0x78] sm:$0xff] }
0x1dcb   :  { %14615 = vmatprep.subr.bf16.mxu1 %v15614_v15  ;;  %14623 = vmatprep.subr.bf16.mxu0 %v15614_v15 }
0x1dcd   :  { %14604 = vmatmul.mubr.msk.bf16.vlgmr.msra.gmra.mxu1 %vm1718_vm2, %v19027_v6  ;;  %14612 = vmatmul.mubr.msk.bf16.vlgmr.msra.gmra.mxu0 %vm1718_vm2, %v10870_v12 }
0x1dce   :  { %14616 = vmatpush3.bf16.msra.mxu1 %v15436_v63  ;;  %14624 = vmatpush3.bf16.msra.mxu0 %v15437_v2 }
0x1dcf   :  { %14617 = vmatprep.subr.bf16.mxu1 %v15614_v15  ;;  %14625 = vmatprep.subr.bf16.mxu0 %v15614_v15 }
0x1dd0   :  { %14619 = vmatprep.mubr.msk.bf16.mxu1 %vm15615_vm1, %v15614_v15  ;;  %14627 = vmatprep.mubr.msk.bf16.mxu0 %vm15615_vm1, %v15614_v15 }
0x1dd2   :  { %14618 = vmatpush3.bf16.msra.mxu1 %v15438_v33  ;;  %14626 = vmatpush3.bf16.msra.mxu0 %v15439_v43 }
0x1dd5   :  { %14620 = vmatmul.mubr.msk.bf16.vlgmr.msra.gmra.mxu1 %vm1718_vm2, %v10870_v12  ;;  %14628 = vmatmul.mubr.msk.bf16.vlgmr.msra.gmra.mxu0 %vm1718_vm2, %v19027_v6 }
0x1e65   :  { %v10405_v36 = vpop.f32.mrf.mxu1  ;;  %v10446_v27 = vpop.f32.mrf.mxu0 }
0x1e66   :  { %v10821_v40 = vadd.f32 %v10405_v36, %v10087_v5  ;;  %v10823_v42 = vadd.f32 %v10446_v27, %v10089_v17 }
0x1e67   :  { %v10407_v16 = vpop.f32.mrf.mxu1  ;;  %v10448_v46 = vpop.f32.mrf.mxu0 }
0x1e68   :  { %10842 = vst [vmem:[%s19635_s9] sm:$0xff] %v10821_v40  ;;  %10844 = vst [vmem:[%s19635_s9 + $0x10] sm:$0xff] %v10823_v42  ;;  %v10822_v48 = vadd.f32 %v10407_v16, %v10088_v32  ;;  %v10824_v50 = vadd.f32 %v10448_v46, %v10090_v38  ;;  %v10103_v38 = vld [vmem:[%s19635_s9 + $0x80] sm:$0xff]  ;;  %v10105_v40 = vld [vmem:[%s19635_s9 + $0x90] sm:$0xff] }
0x1e69   :  { %v10409_v51 = vpop.f32.mrf.mxu1  ;;  %v10450_v52 = vpop.f32.mrf.mxu0  ;;  %v10104_v46 = vld [vmem:[%s19635_s9 + $0x88] sm:$0xff] }
0x1e6a   :  { %10843 = vst [vmem:[%s19635_s9 + $0x8] sm:$0xff] %v10822_v48  ;;  %10845 = vst [vmem:[%s19635_s9 + $0x18] sm:$0xff] %v10824_v50  ;;  %v10106_v48 = vld [vmem:[%s19635_s9 + $0x98] sm:$0xff] }
0x1e6b   :  { %v10410_v22 = vpop.f32.mrf.mxu1  ;;  %v10451_v37 = vpop.f32.mrf.mxu0 }
0x1e6d   :  { %v10487_v56 = vpop.f32.mrf.mxu1  ;;  %v10528_v25 = vpop.f32.mrf.mxu0 }
0x1e6e   :  { %v10825_v61 = vadd.f32 %v10487_v56, %v10091_v54  ;;  %v10827_v6 = vadd.f32 %v10528_v25, %v10093_v55 }
0x1e6f   :  { %v10489_v0 = vpop.f32.mrf.mxu1  ;;  %v10530_v41 = vpop.f32.mrf.mxu0 }
0x1e70   :  { %10846 = vst [vmem:[%s19635_s9 + $0x20] sm:$0xff] %v10825_v61  ;;  %10848 = vst [vmem:[%s19635_s9 + $0x30] sm:$0xff] %v10827_v6  ;;  %v10826_v3 = vadd.f32 %v10489_v0, %v10092_v57  ;;  %v10828_v4 = vadd.f32 %v10530_v41, %v10094_v60  ;;  %v10107_v60 = vld [vmem:[%s19635_s9 + $0xa0] sm:$0xff] }
0x1e71   :  { %v10491_v28 = vpop.f32.mrf.mxu1  ;;  %v10532_v7 = vpop.f32.mrf.mxu0 }
0x1e72   :  { %10847 = vst [vmem:[%s19635_s9 + $0x28] sm:$0xff] %v10826_v3  ;;  %10849 = vst [vmem:[%s19635_s9 + $0x38] sm:$0xff] %v10828_v4 }
0x1e73   :  { %v10492_v8 = vpop.f32.mrf.mxu1  ;;  %v10533_v44 = vpop.f32.mrf.mxu0 }
0x1e75   :  { %v10569_v31 = vpop.f32.mrf.mxu1  ;;  %v10610_v10 = vpop.f32.mrf.mxu0 }
0x1e76   :  { %v10829_v11 = vadd.f32 %v10569_v31, %v10095_v47  ;;  %v10831_v59 = vadd.f32 %v10610_v10, %v10097_v9  ;;  %v14025_v47 = vld [vmem:[%s19632_s6] ss:$0 sm:$0xff] }
0x1e77   :  { %v10571_v13 = vpop.f32.mrf.mxu1  ;;  %v10612_v14 = vpop.f32.mrf.mxu0 }
0x1e78   :  { %10850 = vst [vmem:[%s19635_s9 + $0x40] sm:$0xff] %v10829_v11  ;;  %10852 = vst [vmem:[%s19635_s9 + $0x50] sm:$0xff] %v10831_v59  ;;  %v10830_v18 = vadd.f32 %v10571_v13, %v10096_v53  ;;  %v10832_v39 = vadd.f32 %v10612_v14, %v10098_v49 }
0x1e79   :  { %v10573_v19 = vpop.f32.mrf.mxu1  ;;  %v10614_v1 = vpop.f32.mrf.mxu0 }
0x1e7a   :  { %10851 = vst [vmem:[%s19635_s9 + $0x48] sm:$0xff] %v10830_v18  ;;  %10853 = vst [vmem:[%s19635_s9 + $0x58] sm:$0xff] %v10832_v39 }
0x1e7b   :  { %v10574_v20 = vpop.f32.mrf.mxu1  ;;  %v10615_v21 = vpop.f32.mrf.mxu0 }
0x1e7d   :  { %v10651_v26 = vpop.f32.mrf.mxu1  ;;  %v10692_v29 = vpop.f32.mrf.mxu0 }
0x1e7e   :  { %v10833_v12 = vadd.f32 %v10651_v26, %v10099_v23  ;;  %v10835_v63 = vadd.f32 %v10692_v29, %v10101_v24 }
0x1e7f   :  { %v10653_v2 = vpop.f32.mrf.mxu1  ;;  %v10694_v33 = vpop.f32.mrf.mxu0 }
0x1e80   :  { %10854 = vst [vmem:[%s19635_s9 + $0x60] sm:$0xff] %v10833_v12  ;;  %10856 = vst [vmem:[%s19635_s9 + $0x70] sm:$0xff] %v10835_v63  ;;  %v10834_v43 = vadd.f32 %v10653_v2, %v10100_v62  ;;  %v10836_v5 = vadd.f32 %v10694_v33, %v10102_v30 }
0x1e81   :  { %v10655_v17 = vpop.f32.mrf.mxu1  ;;  %v10696_v36 = vpop.f32.mrf.mxu0 }
0x1e82   :  { %10855 = vst [vmem:[%s19635_s9 + $0x68] sm:$0xff] %v10834_v43  ;;  %10857 = vst [vmem:[%s19635_s9 + $0x78] sm:$0xff] %v10836_v5 }
0x1e83   :  { %v10656_v27 = vpop.f32.mrf.mxu1  ;;  %v10697_v32 = vpop.f32.mrf.mxu0 }
0x1e85   :  { %v10733_v42 = vpop.f32.mrf.mxu1  ;;  %v10774_v16 = vpop.f32.mrf.mxu0 }
0x1e86   :  { %v10837_v50 = vadd.f32 %v10733_v42, %v10103_v38  ;;  %v10839_v51 = vadd.f32 %v10774_v16, %v10105_v40 }
0x1e87   :  { %v10735_v52 = vpop.f32.mrf.mxu1  ;;  %v10776_v22 = vpop.f32.mrf.mxu0 }
0x1e88   :  { %10858 = vst [vmem:[%s19635_s9 + $0x80] sm:$0xff] %v10837_v50  ;;  %10860 = vst [vmem:[%s19635_s9 + $0x90] sm:$0xff] %v10839_v51  ;;  %v10838_v37 = vadd.f32 %v10735_v52, %v10104_v46  ;;  %v10840_v54 = vadd.f32 %v10776_v22, %v10106_v48 }
0x1e89   :  { %v10737_v55 = vpop.f32.mrf.mxu1  ;;  %v10778_v56 = vpop.f32.mrf.mxu0 }
0x1e8a   :  { %10859 = vst [vmem:[%s19635_s9 + $0x88] sm:$0xff] %v10838_v37  ;;  %10861 = vst [vmem:[%s19635_s9 + $0x98] sm:$0xff] %v10840_v54 }
0x1e8b   :  { %v10738_v25 = vpop.f32.mrf.mxu1  ;;  %v10779_v57 = vpop.f32.mrf.mxu0 }
0x1e8d   :  { %v10815_v61 = vpop.f32.mrf.mxu1  ;;  %v10920_v6 = vpop.f32.mrf.mxu0 }
0x1e8e   :  { %v10841_v0 = vadd.f32 %v10815_v61, %v10107_v60  ;;  %v10926_v41 = vadd.f32 %v10920_v6, %v17243_v45 }
0x1e8f   :  { %v14605_v3 = vpop.f32.mrf.mxu1  ;;  %v14613_v4 = vpop.f32.mrf.mxu0 }
0x1e90   :  { %10862 = vst [vmem:[%s19635_s9 + $0xa0] sm:$0xff] %v10841_v0  ;;  %15440 = vtanh.f32 %v10926_v41  ;;  %v14024_v19 = vmul.f32 -1.442695, %v10926_v41 }
0x1e91   :  { %v10818_v28 = vpop.f32.mrf.mxu1  ;;  %v10923_v7 = vpop.f32.mrf.mxu0 }
0x1e93   :  { %v14606_v8 = vpop.f32.mrf.mxu1  ;;  %v14614_v44 = vpop.f32.mrf.mxu0 }
0x1e95   :  { %v11008_v9 = vpop.f32.mrf.mxu1  ;;  %v11064_v31 = vpop.f32.mrf.mxu0 }
0x1e96   :  { %v11009_v10 = vadd.f32 %v14025_v47, %v11008_v9 }
0x1e97   :  { %v14621_v53 = vpop.f32.mrf.mxu1  ;;  %v14629_v45 = vpop.f32.mrf.mxu0 }
0x1e98   :  { %v11070_v49 = vadd.f32 %v11064_v31, %v11009_v10 }
0x1e99   :  { %v11011_v11 = vpop.f32.mrf.mxu1  ;;  %v11067_v59 = vpop.f32.mrf.mxu0 }
0x1e9a   :  { %15442 = vtanh.f32 %v11070_v49  ;;  %v14032_v1 = vmul.f32 -1.442695, %v11070_v49 }
0x1e9b   :  { %v14622_v13 = vpop.f32.mrf.mxu1  ;;  %v14630_v14 = vpop.f32.mrf.mxu0  ;;  %15444 = vpow2.f32 %v14024_v19 }
0x1e9c   :  { %15446 = vpow2.f32 %v14032_v1 }
0x1e9d   :  { %v15441_v18 = vpop.eup %15440 }
0x1e9e   :  { %10936 = vrot.lane.b32.xlu1 %v15441_v18, %s15617_s3 }
0x1ea7   :  { %v15443_v39 = vpop.eup %15442 }
0x1ea8   :  { %11080 = vrot.lane.b32.xlu1 %v15443_v39, %s15617_s3  ;;  %v15445_v20 = vpop.eup %15444 }
0x1ea9   :  { %v10930_v21 = vadd.f32 1.0, %v15445_v20  ;;  %v15447_v23 = vpop.eup %15446 }
0x1eaa   :  { %v11074_v24 = vadd.f32 1.0, %v15447_v23 }
0x1eab   :  { %15448 = vrcp.f32 %v10930_v21 }
0x1eac   :  { %15450 = vrcp.f32 %v11074_v24 }
0x1eb8   :  { %v15449_v26 = vpop.eup %15448 }
0x1eb9   :  { %v15451_v30 = vpop.eup %15450  ;;  %v10934_v2 = vmul.f32 %v15449_v26, %v19014_v34 }
0x1eba   :  { %v11078_v5 = vmul.f32 %v15451_v30, %v19018_v35 }
0x1f10   :  { %v10937_v29 = vpop.permute.xlu1 %10936 }
0x1f11   :  { %v10939_v62 = vmul.f32 %v15449_v26, %v10937_v29 }
0x1f13   :  { %10941 = vrot.lane.b32.xlu0 %v10939_v62, %s15617_s3 }
0x1f1a   :  { %v11081_v12 = vpop.permute.xlu1 %11080 }
0x1f1b   :  { %v11083_v63 = vmul.f32 %v15451_v30, %v11081_v12 }
0x1f1d   :  { %11085 = vrot.lane.b32.xlu1 %v11083_v63, %s15617_s3 }
0x1f85   :  { %v10942_v33 = vpop.permute.xlu0 %10941 }
0x1f86   :  { %v19232_v43 = vadd.f32 %v10942_v33, %v10934_v2 }
0x1f88   :  { %15452 = vtanh.f32 %v19232_v43 }
0x1f8f   :  { %v11086_v17 = vpop.permute.xlu1 %11085 }
0x1f90   :  { %v19236_v36 = vadd.f32 %v11086_v17, %v11078_v5 }
0x1f92   :  { %15454 = vtanh.f32 %v19236_v36 }
0x1f95   :  { %v15453_v27 = vpop.eup %15452 }
0x1f96   :  { %10947 = vrot.lane.b32.xlu0 %v15453_v27, %s15617_s3 }
0x1f9f   :  { %v15455_v32 = vpop.eup %15454 }
0x1fa0   :  { %11091 = vrot.lane.b32.xlu1 %v15455_v32, %s15617_s3 }
0x2008   :  { %v10948_v38 = vpop.permute.xlu0 %10947 }
0x2009   :  { %v19241_v34 = vmul.f32 %v15449_v26, %v10948_v38 }
0x2012   :  { %v11092_v40 = vpop.permute.xlu1 %11091 }
0x2013   :  { %v11094_v42 = vmul.f32 %v15451_v30, %v11092_v40 }
0x2015   :  { %v11118_v16 = vpack.c.bf16 %v11094_v42, %v11094_v42 }
0x2016   :  { %15610 = dma.done.wait [#allocation3 + $0x9], 5376 }
0x2017   :  { %15611 = vsyncadd [#allocation3 + $0x9], 4294961920  ;;  %11413 = vmatprep.mubr.bf16.mxu1 %v15616_v58  ;;  %11454 = vmatprep.mubr.bf16.mxu0 %v15616_v58  ;;  %v11873_v35 = vpack.c.bf16 %v19241_v34, %v19241_v34  ;;  %v15456_v46 = vld [vmem:[#allocation2 + $0xc7c] ss:$84 sps:$4 sm:$0xff]   ;;  %v15458_v48 = vld [vmem:[#allocation2 + $0xc78] ss:$84 sps:$4 sm:$0xff]  }
0x2018   :  { %11164 = vrot.lane.b32.xlu0 %v11118_v16, %s15618_s23  ;;  %11393 = vmatprep.subr.bf16.mxu1 %v15456_v46  ;;  %v15459_v50 = vld [vmem:[#allocation2 + $0xc84] ss:$84 sps:$4 sm:$0xff]   ;;  %v15461_v51 = vld [vmem:[#allocation2 + $0xc80] ss:$84 sps:$4 sm:$0xff]   ;;  %v15465_v37 = vld [vmem:[#allocation2 + $0xbdc] ss:$84 sps:$4 sm:$0xff]  }
0x2019   :  { %11394 = vmatpush1.bf16.msra.mxu1 %v15458_v48  ;;  %v15462_v52 = vld [vmem:[#allocation2 + $0xbd4] ss:$84 sps:$4 sm:$0xff]   ;;  %v15464_v22 = vld [vmem:[#allocation2 + $0xbd0] ss:$84 sps:$4 sm:$0xff]   ;;  %11434 = vmatprep.subr.bf16.mxu0 %v15459_v50  ;;  %v15467_v54 = vld [vmem:[#allocation2 + $0xbd8] ss:$84 sps:$4 sm:$0xff]  }
0x201a   :  { %11435 = vmatpush1.bf16.msra.mxu0 %v15461_v51  ;;  %11395 = vmatprep.subr.bf16.mxu1 %v15462_v52  ;;  %v15470_v55 = vld [vmem:[#allocation2 + $0xc8c] ss:$84 sps:$4 sm:$0xff]   ;;  %v15473_v56 = vld [vmem:[#allocation2 + $0xc94] ss:$84 sps:$4 sm:$0xff]   ;;  %v15471_v57 = vld [vmem:[#allocation2 + $0xc90] ss:$84 sps:$4 sm:$0xff]  }
0x201b   :  { %11436 = vmatprep.subr.bf16.mxu0 %v15465_v37  ;;  %v15468_v25 = vld [vmem:[#allocation2 + $0xc88] ss:$84 sps:$4 sm:$0xff]   ;;  %v15476_v60 = vld [vmem:[#allocation2 + $0xbe4] ss:$84 sps:$4 sm:$0xff]   ;;  %v15479_v61 = vld [vmem:[#allocation2 + $0xbec] ss:$84 sps:$4 sm:$0xff]  }
0x201c   :  { %11886 = vrot.lane.b32.xlu0 %v11873_v35, %s15618_s23  ;;  %v15474_v0 = vld [vmem:[#allocation2 + $0xbe0] ss:$84 sps:$4 sm:$0xff]   ;;  %v15477_v41 = vld [vmem:[#allocation2 + $0xbe8] ss:$84 sps:$4 sm:$0xff]   ;;  %v15485_v4 = vld [vmem:[#allocation2 + $0xca4] ss:$84 sps:$4 sm:$0xff]  }
0x201d   :  { %11396 = vmatpush1.bf16.msra.mxu1 %v15464_v22  ;;  %v15482_v3 = vld [vmem:[#allocation2 + $0xc9c] ss:$84 sps:$4 sm:$0xff]   ;;  %v15480_v28 = vld [vmem:[#allocation2 + $0xc98] ss:$84 sps:$4 sm:$0xff]   ;;  %v15483_v7 = vld [vmem:[#allocation2 + $0xca0] ss:$84 sps:$4 sm:$0xff]  }
0x201e   :  { %11475 = vmatprep.subr.bf16.mxu1 %v15470_v55  ;;  %11437 = vmatpush1.bf16.msra.mxu0 %v15467_v54  ;;  %v15488_v8 = vld [vmem:[#allocation2 + $0xbf4] ss:$84 sps:$4 sm:$0xff]   ;;  %v15491_v44 = vld [vmem:[#allocation2 + $0xbfc] ss:$84 sps:$4 sm:$0xff]   ;;  %v15489_v9 = vld [vmem:[#allocation2 + $0xbf8] ss:$84 sps:$4 sm:$0xff]  }
0x201f   :  { %11516 = vmatprep.subr.bf16.mxu0 %v15473_v56  ;;  %v15486_v47 = vld [vmem:[#allocation2 + $0xbf0] ss:$84 sps:$4 sm:$0xff]   ;;  %v15494_v31 = vld [vmem:[#allocation2 + $0xcac] ss:$84 sps:$4 sm:$0xff]   ;;  %v15497_v10 = vld [vmem:[#allocation2 + $0xcb4] ss:$84 sps:$4 sm:$0xff]  }
0x2020   :  { %v15492_v53 = vld [vmem:[#allocation2 + $0xca8] ss:$84 sps:$4 sm:$0xff]   ;;  %v15495_v45 = vld [vmem:[#allocation2 + $0xcb0] ss:$84 sps:$4 sm:$0xff]   ;;  %v15503_v11 = vld [vmem:[#allocation2 + $0xc0c] ss:$84 sps:$4 sm:$0xff]  }
0x2021   :  { %v15500_v49 = vld [vmem:[#allocation2 + $0xc04] ss:$84 sps:$4 sm:$0xff]   ;;  %v15498_v59 = vld [vmem:[#allocation2 + $0xc00] ss:$84 sps:$4 sm:$0xff]   ;;  %v15501_v13 = vld [vmem:[#allocation2 + $0xc08] ss:$84 sps:$4 sm:$0xff]  }
0x2022   :  { %v15506_v14 = vld [vmem:[#allocation2 + $0xcbc] ss:$84 sps:$4 sm:$0xff]   ;;  %v15509_v18 = vld [vmem:[#allocation2 + $0xcc4] ss:$84 sps:$4 sm:$0xff]   ;;  %v15507_v19 = vld [vmem:[#allocation2 + $0xcc0] ss:$84 sps:$4 sm:$0xff]  }
0x2023   :  { %v15504_v39 = vld [vmem:[#allocation2 + $0xcb8] ss:$84 sps:$4 sm:$0xff]   ;;  %v15512_v1 = vld [vmem:[#allocation2 + $0xc14] ss:$84 sps:$4 sm:$0xff]   ;;  %v15515_v20 = vld [vmem:[#allocation2 + $0xc1c] ss:$84 sps:$4 sm:$0xff]  }
0x2024   :  { %v15510_v21 = vld [vmem:[#allocation2 + $0xc10] ss:$84 sps:$4 sm:$0xff]   ;;  %v15513_v23 = vld [vmem:[#allocation2 + $0xc18] ss:$84 sps:$4 sm:$0xff]   ;;  %v15516_v24 = vld [vmem:[#allocation2 + $0xcc8] ss:$84 sps:$4 sm:$0xff]  }
0x2025   :  { %v15517_v26 = vld [vmem:[%s19630_s4 + $0x8] sm:$0xff]   ;;  %v15518_v29 = vld [vmem:[#allocation2 + $0xc20] ss:$84 sps:$4 sm:$0xff]   ;;  %v11100_v32 = vld [vmem:[%s19635_s9 + $0x18] sm:$0xff] }
0x2026   :  { %v15519_v62 = vld [vmem:[%s19630_s4] sm:$0xff]   ;;  %v15520_v12 = vld [vmem:[%s19631_s5 + $0x8] sm:$0xff]   ;;  %v11099_v33 = vld [vmem:[%s19635_s9 + $0x10] sm:$0xff] }
0x2027   :  { %v15521_v63 = vld [vmem:[%s19631_s5] sm:$0xff]   ;;  %v11098_v27 = vld [vmem:[%s19635_s9 + $0x8] sm:$0xff]  ;;  %v11103_v37 = vld [vmem:[%s19635_s9 + $0x30] sm:$0xff] }
0x2028   :  { %v11097_v2 = vld [vmem:[%s19635_s9] sm:$0xff]  ;;  %v11102_v56 = vld [vmem:[%s19635_s9 + $0x28] sm:$0xff] }
0x2029   :  { %v11101_v22 = vld [vmem:[%s19635_s9 + $0x20] sm:$0xff] }
0x208a   :  { %v19249_v6 = vpop.permute.xlu0 %11164 }
0x208b   :  { %14075 = vmatmul.mubr.msk.bf16.vlgmr.msra.gmra.mxu1 %vm1718_vm2, %v19249_v6  ;;  %14076 = vmatmul.mubr.msk.bf16.vlgmr.msra.gmra.mxu0 %vm1718_vm2, %v19249_v6 }
0x208c   :  { %11476 = vmatpush1.bf16.msra.mxu1 %v15468_v25  ;;  %11517 = vmatpush1.bf16.msra.mxu0 %v15471_v57  ;;  %v11104_v25 = vld [vmem:[%s19635_s9 + $0x38] sm:$0xff] }
0x208d   :  { %11477 = vmatprep.subr.bf16.mxu1 %v15476_v60  ;;  %11518 = vmatprep.subr.bf16.mxu0 %v15479_v61 }
0x208e   :  { %11495 = vmatprep.mubr.bf16.mxu1 %v15616_v58  ;;  %11536 = vmatprep.mubr.bf16.mxu0 %v15616_v58  ;;  %v11887_v30 = vpop.permute.xlu0 %11886 }
0x2090   :  { %11478 = vmatpush1.bf16.msra.mxu1 %v15474_v0  ;;  %11519 = vmatpush1.bf16.msra.mxu0 %v15477_v41 }
0x2091   :  { %11557 = vmatprep.subr.bf16.mxu1 %v15482_v3  ;;  %11598 = vmatprep.subr.bf16.mxu0 %v15485_v4 }
0x2093   :  { %14077 = vmatmul.mubr.msk.bf16.vlgmr.msra.gmra.mxu1 %vm1718_vm2, %v19249_v6  ;;  %14078 = vmatmul.mubr.msk.bf16.vlgmr.msra.gmra.mxu0 %vm1718_vm2, %v19249_v6 }
0x2094   :  { %11558 = vmatpush1.bf16.msra.mxu1 %v15480_v28  ;;  %11599 = vmatpush1.bf16.msra.mxu0 %v15483_v7 }
0x2095   :  { %11559 = vmatprep.subr.bf16.mxu1 %v15488_v8  ;;  %11600 = vmatprep.subr.bf16.mxu0 %v15491_v44  ;;  %v11105_v8 = vld [vmem:[%s19635_s9 + $0x40] sm:$0xff]  ;;  %v11107_v44 = vld [vmem:[%s19635_s9 + $0x50] sm:$0xff] }
0x2096   :  { %11577 = vmatprep.mubr.bf16.mxu1 %v15616_v58  ;;  %11618 = vmatprep.mubr.bf16.mxu0 %v15616_v58 }
0x2098   :  { %11560 = vmatpush1.bf16.msra.mxu1 %v15486_v47  ;;  %11601 = vmatpush1.bf16.msra.mxu0 %v15489_v9 }
0x2099   :  { %11639 = vmatprep.subr.bf16.mxu1 %v15494_v31  ;;  %11680 = vmatprep.subr.bf16.mxu0 %v15497_v10  ;;  %v11106_v31 = vld [vmem:[%s19635_s9 + $0x48] sm:$0xff]  ;;  %v11108_v10 = vld [vmem:[%s19635_s9 + $0x58] sm:$0xff] }
0x209b   :  { %14079 = vmatmul.mubr.msk.bf16.vlgmr.msra.gmra.mxu1 %vm1718_vm2, %v19249_v6  ;;  %14080 = vmatmul.mubr.msk.bf16.vlgmr.msra.gmra.mxu0 %vm1718_vm2, %v19249_v6 }
0x209c   :  { %11640 = vmatpush1.bf16.msra.mxu1 %v15492_v53  ;;  %11681 = vmatpush1.bf16.msra.mxu0 %v15495_v45 }
0x209d   :  { %11641 = vmatprep.subr.bf16.mxu1 %v15500_v49  ;;  %11682 = vmatprep.subr.bf16.mxu0 %v15503_v11 }
0x209e   :  { %11659 = vmatprep.mubr.bf16.mxu1 %v15616_v58  ;;  %11700 = vmatprep.mubr.bf16.mxu0 %v15616_v58 }
0x20a0   :  { %11642 = vmatpush1.bf16.msra.mxu1 %v15498_v59  ;;  %11683 = vmatpush1.bf16.msra.mxu0 %v15501_v13 }
0x20a1   :  { %11721 = vmatprep.subr.bf16.mxu1 %v15506_v14  ;;  %11762 = vmatprep.subr.bf16.mxu0 %v15509_v18 }
0x20a3   :  { %14081 = vmatmul.mubr.msk.bf16.vlgmr.msra.gmra.mxu1 %vm1718_vm2, %v19249_v6  ;;  %14082 = vmatmul.mubr.msk.bf16.vlgmr.msra.gmra.mxu0 %vm1718_vm2, %v19249_v6 }
0x20a4   :  { %11722 = vmatpush1.bf16.msra.mxu1 %v15504_v39  ;;  %11763 = vmatpush1.bf16.msra.mxu0 %v15507_v19 }
0x20a5   :  { %11723 = vmatprep.subr.bf16.mxu1 %v15512_v1  ;;  %11764 = vmatprep.subr.bf16.mxu0 %v15515_v20  ;;  %v11109_v1 = vld [vmem:[%s19635_s9 + $0x60] sm:$0xff]  ;;  %v11111_v20 = vld [vmem:[%s19635_s9 + $0x70] sm:$0xff] }
0x20a6   :  { %11741 = vmatprep.mubr.bf16.mxu1 %v15616_v58  ;;  %11782 = vmatprep.mubr.bf16.mxu0 %v15616_v58 }
0x20a8   :  { %11724 = vmatpush1.bf16.msra.mxu1 %v15510_v21  ;;  %11765 = vmatpush1.bf16.msra.mxu0 %v15513_v23 }
0x20a9   :  { %14631 = vmatprep.subr.bf16.mxu1 %v15614_v15  ;;  %14639 = vmatprep.subr.bf16.mxu0 %v15614_v15 }
0x20ab   :  { %14083 = vmatmul.mubr.msk.bf16.vlgmr.msra.gmra.mxu1 %vm1718_vm2, %v19249_v6  ;;  %14084 = vmatmul.mubr.msk.bf16.vlgmr.msra.gmra.mxu0 %vm1718_vm2, %v19249_v6 }
0x20ac   :  { %14632 = vmatpush3.bf16.msra.mxu1 %v15516_v24  ;;  %14640 = vmatpush3.bf16.msra.mxu0 %v15517_v26  ;;  %v11110_v24 = vld [vmem:[%s19635_s9 + $0x68] sm:$0xff]  ;;  %v11112_v26 = vld [vmem:[%s19635_s9 + $0x78] sm:$0xff] }
0x20ad   :  { %14633 = vmatprep.subr.bf16.mxu1 %v15614_v15  ;;  %14641 = vmatprep.subr.bf16.mxu0 %v15614_v15 }
0x20ae   :  { %14635 = vmatprep.mubr.msk.bf16.mxu1 %vm15615_vm1, %v15614_v15  ;;  %14643 = vmatprep.mubr.msk.bf16.mxu0 %vm15615_vm1, %v15614_v15 }
0x20b0   :  { %14634 = vmatpush3.bf16.msra.mxu1 %v15518_v29  ;;  %14642 = vmatpush3.bf16.msra.mxu0 %v15519_v62 }
0x20b1   :  { %14647 = vmatprep.subr.bf16.mxu1 %v15614_v15 }
0x20b3   :  { %14636 = vmatmul.mubr.msk.bf16.vlgmr.msra.gmra.mxu1 %vm1718_vm2, %v19249_v6  ;;  %14644 = vmatmul.mubr.msk.bf16.vlgmr.msra.gmra.mxu0 %vm1718_vm2, %v11887_v30 }
0x20b4   :  { %14648 = vmatpush3.bf16.msra.mxu1 %v15520_v12  ;;  %14651 = vmatprep.mubr.msk.bf16.mxu1 %vm15615_vm1, %v15614_v15 }
0x20b5   :  { %14649 = vmatprep.subr.bf16.mxu1 %v15614_v15 }
0x20b8   :  { %14650 = vmatpush3.bf16.msra.mxu1 %v15521_v63 }
0x20bb   :  { %14652 = vmatmul.mubr.msk.bf16.vlgmr.msra.gmra.mxu1 %vm1718_vm2, %v19249_v6 }
0x214b   :  { %v11415_v5 = vpop.f32.mrf.mxu1  ;;  %v11456_v17 = vpop.f32.mrf.mxu0 }
0x214c   :  { %v11831_v38 = vadd.f32 %v11415_v5, %v11097_v2  ;;  %v11833_v40 = vadd.f32 %v11456_v17, %v11099_v33 }
0x214d   :  { %v11417_v42 = vpop.f32.mrf.mxu1  ;;  %v11458_v16 = vpop.f32.mrf.mxu0 }
0x214e   :  { %11852 = vst [vmem:[%s19635_s9] sm:$0xff] %v11831_v38  ;;  %11854 = vst [vmem:[%s19635_s9 + $0x10] sm:$0xff] %v11833_v40  ;;  %v11832_v35 = vadd.f32 %v11417_v42, %v11098_v27  ;;  %v11834_v46 = vadd.f32 %v11458_v16, %v11100_v32  ;;  %v11113_v32 = vld [vmem:[%s19635_s9 + $0x80] sm:$0xff]  ;;  %v11115_v38 = vld [vmem:[%s19635_s9 + $0x90] sm:$0xff] }
0x214f   :  { %v11419_v48 = vpop.f32.mrf.mxu1  ;;  %v11460_v50 = vpop.f32.mrf.mxu0  ;;  %v11114_v16 = vld [vmem:[%s19635_s9 + $0x88] sm:$0xff] }
0x2150   :  { %11853 = vst [vmem:[%s19635_s9 + $0x8] sm:$0xff] %v11832_v35  ;;  %11855 = vst [vmem:[%s19635_s9 + $0x18] sm:$0xff] %v11834_v46  ;;  %v11116_v35 = vld [vmem:[%s19635_s9 + $0x98] sm:$0xff] }
0x2151   :  { %v11420_v51 = vpop.f32.mrf.mxu1  ;;  %v11461_v52 = vpop.f32.mrf.mxu0 }
0x2153   :  { %v11497_v54 = vpop.f32.mrf.mxu1  ;;  %v11538_v55 = vpop.f32.mrf.mxu0 }
0x2154   :  { %v11835_v57 = vadd.f32 %v11497_v54, %v11101_v22  ;;  %v11837_v60 = vadd.f32 %v11538_v55, %v11103_v37 }
0x2155   :  { %v11499_v61 = vpop.f32.mrf.mxu1  ;;  %v11540_v6 = vpop.f32.mrf.mxu0 }
0x2156   :  { %11856 = vst [vmem:[%s19635_s9 + $0x20] sm:$0xff] %v11835_v57  ;;  %11858 = vst [vmem:[%s19635_s9 + $0x30] sm:$0xff] %v11837_v60  ;;  %v11836_v0 = vadd.f32 %v11499_v61, %v11102_v56  ;;  %v11838_v41 = vadd.f32 %v11540_v6, %v11104_v25  ;;  %v11117_v25 = vld [vmem:[%s19635_s9 + $0xa0] sm:$0xff] }
0x2157   :  { %v11501_v3 = vpop.f32.mrf.mxu1  ;;  %v11542_v4 = vpop.f32.mrf.mxu0  ;;  %v14086_v6 = vld [vmem:[%s19632_s6] ss:$0 sm:$0xff] }
0x2158   :  { %11857 = vst [vmem:[%s19635_s9 + $0x28] sm:$0xff] %v11836_v0  ;;  %11859 = vst [vmem:[%s19635_s9 + $0x38] sm:$0xff] %v11838_v41 }
0x2159   :  { %v11502_v28 = vpop.f32.mrf.mxu1  ;;  %v11543_v7 = vpop.f32.mrf.mxu0 }
0x215b   :  { %v11579_v47 = vpop.f32.mrf.mxu1  ;;  %v11620_v9 = vpop.f32.mrf.mxu0 }
0x215c   :  { %v11839_v53 = vadd.f32 %v11579_v47, %v11105_v8  ;;  %v11841_v45 = vadd.f32 %v11620_v9, %v11107_v44 }
0x215d   :  { %v11581_v49 = vpop.f32.mrf.mxu1  ;;  %v11622_v11 = vpop.f32.mrf.mxu0 }
0x215e   :  { %11860 = vst [vmem:[%s19635_s9 + $0x40] sm:$0xff] %v11839_v53  ;;  %11862 = vst [vmem:[%s19635_s9 + $0x50] sm:$0xff] %v11841_v45  ;;  %v11840_v59 = vadd.f32 %v11581_v49, %v11106_v31  ;;  %v11842_v13 = vadd.f32 %v11622_v11, %v11108_v10 }
0x215f   :  { %v11583_v14 = vpop.f32.mrf.mxu1  ;;  %v11624_v18 = vpop.f32.mrf.mxu0 }
0x2160   :  { %11861 = vst [vmem:[%s19635_s9 + $0x48] sm:$0xff] %v11840_v59  ;;  %11863 = vst [vmem:[%s19635_s9 + $0x58] sm:$0xff] %v11842_v13 }
0x2161   :  { %v11584_v39 = vpop.f32.mrf.mxu1  ;;  %v11625_v19 = vpop.f32.mrf.mxu0 }
0x2163   :  { %v11661_v21 = vpop.f32.mrf.mxu1  ;;  %v11702_v23 = vpop.f32.mrf.mxu0 }
0x2164   :  { %v11843_v29 = vadd.f32 %v11661_v21, %v11109_v1  ;;  %v11845_v62 = vadd.f32 %v11702_v23, %v11111_v20 }
0x2165   :  { %v11663_v30 = vpop.f32.mrf.mxu1  ;;  %v11704_v12 = vpop.f32.mrf.mxu0 }
0x2166   :  { %11864 = vst [vmem:[%s19635_s9 + $0x60] sm:$0xff] %v11843_v29  ;;  %11866 = vst [vmem:[%s19635_s9 + $0x70] sm:$0xff] %v11845_v62  ;;  %v11844_v63 = vadd.f32 %v11663_v30, %v11110_v24  ;;  %v11846_v2 = vadd.f32 %v11704_v12, %v11112_v26 }
0x2167   :  { %v11665_v33 = vpop.f32.mrf.mxu1  ;;  %v11706_v5 = vpop.f32.mrf.mxu0 }
0x2168   :  { %11865 = vst [vmem:[%s19635_s9 + $0x68] sm:$0xff] %v11844_v63  ;;  %11867 = vst [vmem:[%s19635_s9 + $0x78] sm:$0xff] %v11846_v2 }
0x2169   :  { %v11666_v17 = vpop.f32.mrf.mxu1  ;;  %v11707_v27 = vpop.f32.mrf.mxu0 }
0x216b   :  { %v11743_v40 = vpop.f32.mrf.mxu1  ;;  %v11784_v42 = vpop.f32.mrf.mxu0 }
0x216c   :  { %v11847_v46 = vadd.f32 %v11743_v40, %v11113_v32  ;;  %v11849_v48 = vadd.f32 %v11784_v42, %v11115_v38 }
0x216d   :  { %v11745_v50 = vpop.f32.mrf.mxu1  ;;  %v11786_v51 = vpop.f32.mrf.mxu0 }
0x216e   :  { %11868 = vst [vmem:[%s19635_s9 + $0x80] sm:$0xff] %v11847_v46  ;;  %11870 = vst [vmem:[%s19635_s9 + $0x90] sm:$0xff] %v11849_v48  ;;  %v11848_v52 = vadd.f32 %v11745_v50, %v11114_v16  ;;  %v11850_v22 = vadd.f32 %v11786_v51, %v11116_v35 }
0x216f   :  { %v11747_v37 = vpop.f32.mrf.mxu1  ;;  %v11788_v54 = vpop.f32.mrf.mxu0 }
0x2170   :  { %11869 = vst [vmem:[%s19635_s9 + $0x88] sm:$0xff] %v11848_v52  ;;  %11871 = vst [vmem:[%s19635_s9 + $0x98] sm:$0xff] %v11850_v22 }
0x2171   :  { %v11748_v55 = vpop.f32.mrf.mxu1  ;;  %v11789_v56 = vpop.f32.mrf.mxu0 }
0x2173   :  { %v11825_v57 = vpop.f32.mrf.mxu1  ;;  %v11937_v60 = vpop.f32.mrf.mxu0 }
0x2174   :  { %v11851_v61 = vadd.f32 %v11825_v57, %v11117_v25  ;;  %v11938_v28 = vadd.f32 %v14086_v6, %v11937_v60 }
0x2175   :  { %v14637_v0 = vpop.f32.mrf.mxu1  ;;  %v14645_v41 = vpop.f32.mrf.mxu0 }
0x2176   :  { %11872 = vst [vmem:[%s19635_s9 + $0xa0] sm:$0xff] %v11851_v61 }
0x2177   :  { %v11828_v3 = vpop.f32.mrf.mxu1  ;;  %v11940_v4 = vpop.f32.mrf.mxu0 }
0x2179   :  { %v14638_v7 = vpop.f32.mrf.mxu1  ;;  %v14646_v8 = vpop.f32.mrf.mxu0 }
0x217b   :  { %v11993_v44 = vpop.f32.mrf.mxu1 }
0x217c   :  { %v11999_v47 = vadd.f32 %v11993_v44, %v11938_v28 }
0x217d   :  { %v14653_v9 = vpop.f32.mrf.mxu1 }
0x217e   :  { %15522 = vtanh.f32 %v11999_v47  ;;  %v14093_v45 = vmul.f32 -1.442695, %v11999_v47 }
0x217f   :  { %v11996_v31 = vpop.f32.mrf.mxu1 }
0x2180   :  { %15524 = vpow2.f32 %v14093_v45 }
0x2181   :  { %v14654_v10 = vpop.f32.mrf.mxu1 }
0x218b   :  { %v15523_v53 = vpop.eup %15522 }
0x218c   :  { %12009 = vrot.lane.b32.xlu1 %v15523_v53, %s15617_s3 }
0x218d   :  { %v15525_v49 = vpop.eup %15524 }
0x218e   :  { %v12003_v11 = vadd.f32 1.0, %v15525_v49 }
0x2190   :  { %15526 = vrcp.f32 %v12003_v11 }
0x219d   :  { %v15527_v59 = vpop.eup %15526 }
0x219e   :  { %v12007_v18 = vmul.f32 %v15527_v59, %v19236_v36 }
0x21fe   :  { %v12010_v13 = vpop.permute.xlu1 %12009 }
0x21ff   :  { %v12012_v14 = vmul.f32 %v15527_v59, %v12010_v13 }
0x2201   :  { %12014 = vrot.lane.b32.xlu1 %v12012_v14, %s15617_s3 }
0x2273   :  { %v12015_v39 = vpop.permute.xlu1 %12014 }
0x2274   :  { %v12017_v19 = vadd.f32 %v12015_v39, %v12007_v18 }
0x2276   :  { %15528 = vtanh.f32 %v12017_v19 }
0x2283   :  { %v15529_v1 = vpop.eup %15528 }
0x2284   :  { %12020 = vrot.lane.b32.xlu0 %v15529_v1, %s15617_s3 }
0x22f6   :  { %v12021_v20 = vpop.permute.xlu0 %12020 }
0x22f7   :  { %v12023_v21 = vmul.f32 %v15527_v59, %v12021_v20 }
0x22f9   :  { %v12047_v23 = vpack.c.bf16 %v12023_v21, %v12023_v21 }
0x22fa   :  { %15612 = dma.done.wait [#allocation3 + $0xa], 5376 }
0x22fb   :  { %15613 = vsyncadd [#allocation3 + $0xa], 4294961920  ;;  %12342 = vmatprep.mubr.bf16.mxu0 %v15616_v58  ;;  %12383 = vmatprep.mubr.bf16.mxu1 %v15616_v58  ;;  %v15530_v36 = vld [vmem:[#allocation2 + $0xdcc] ss:$84 sps:$4 sm:$0xff]   ;;  %v15532_v24 = vld [vmem:[#allocation2 + $0xdc8] ss:$84 sps:$4 sm:$0xff]  }
0x22fc   :  { %12093 = vrot.lane.b32.xlu0 %v12047_v23, %s15618_s23  ;;  %12322 = vmatprep.subr.bf16.mxu0 %v15530_v36  ;;  %v15533_v26 = vld [vmem:[#allocation2 + $0xdd4] ss:$84 sps:$4 sm:$0xff]   ;;  %v15535_v29 = vld [vmem:[#allocation2 + $0xdd0] ss:$84 sps:$4 sm:$0xff]   ;;  %v15539_v12 = vld [vmem:[#allocation2 + $0xd2c] ss:$84 sps:$4 sm:$0xff]  }
0x22fd   :  { %12323 = vmatpush1.bf16.msra.mxu0 %v15532_v24  ;;  %v15536_v62 = vld [vmem:[#allocation2 + $0xd24] ss:$84 sps:$4 sm:$0xff]   ;;  %v15538_v30 = vld [vmem:[#allocation2 + $0xd20] ss:$84 sps:$4 sm:$0xff]   ;;  %12363 = vmatprep.subr.bf16.mxu1 %v15533_v26  ;;  %v15541_v63 = vld [vmem:[#allocation2 + $0xd28] ss:$84 sps:$4 sm:$0xff]  }
0x22fe   :  { %12364 = vmatpush1.bf16.msra.mxu1 %v15535_v29  ;;  %12324 = vmatprep.subr.bf16.mxu0 %v15536_v62  ;;  %v15544_v2 = vld [vmem:[#allocation2 + $0xddc] ss:$84 sps:$4 sm:$0xff]   ;;  %v15547_v33 = vld [vmem:[#allocation2 + $0xde4] ss:$84 sps:$4 sm:$0xff]   ;;  %s15619_s6 = smov 96   ;;  %v12027_v45 = vld [vmem:[%s19635_s9 + $0x8] sm:$0xff] }
0x22ff   :  { %12365 = vmatprep.subr.bf16.mxu1 %v15539_v12  ;;  %12808 = vrot.lane.b32.xlu1 %v19232_v43, %s15619_s6  ;;  %v15545_v5 = vld [vmem:[#allocation2 + $0xde0] ss:$84 sps:$4 sm:$0xff]   ;;  %v15553_v27 = vld [vmem:[#allocation2 + $0xd3c] ss:$84 sps:$4 sm:$0xff]   ;;  %v15551_v40 = vld [vmem:[#allocation2 + $0xd38] ss:$84 sps:$4 sm:$0xff]  }
0x2300   :  { %12803 = vrot.lane.b32.xlu0 %v19241_v34, %s15618_s23  ;;  %v15542_v34 = vld [vmem:[#allocation2 + $0xdd8] ss:$84 sps:$4 sm:$0xff]   ;;  %v15550_v17 = vld [vmem:[#allocation2 + $0xd34] ss:$84 sps:$4 sm:$0xff]   ;;  %v15548_v38 = vld [vmem:[#allocation2 + $0xd30] ss:$84 sps:$4 sm:$0xff]  }
0x2301   :  { %12325 = vmatpush1.bf16.msra.mxu0 %v15538_v30  ;;  %v15556_v43 = vld [vmem:[#allocation2 + $0xdec] ss:$84 sps:$4 sm:$0xff]   ;;  %v15559_v42 = vld [vmem:[#allocation2 + $0xdf4] ss:$84 sps:$4 sm:$0xff]   ;;  %v15557_v35 = vld [vmem:[#allocation2 + $0xdf0] ss:$84 sps:$4 sm:$0xff]  }
0x2302   :  { %12404 = vmatprep.subr.bf16.mxu0 %v15544_v2  ;;  %12366 = vmatpush1.bf16.msra.mxu1 %v15541_v63  ;;  %v15554_v16 = vld [vmem:[#allocation2 + $0xde8] ss:$84 sps:$4 sm:$0xff]   ;;  %v15562_v46 = vld [vmem:[#allocation2 + $0xd44] ss:$84 sps:$4 sm:$0xff]   ;;  %v15565_v48 = vld [vmem:[#allocation2 + $0xd4c] ss:$84 sps:$4 sm:$0xff]  }
0x2303   :  { %12445 = vmatprep.subr.bf16.mxu1 %v15547_v33  ;;  %12813 = vrot.lane.b32.xlu1 %v12023_v21, %s15618_s23  ;;  %v15560_v50 = vld [vmem:[#allocation2 + $0xd40] ss:$84 sps:$4 sm:$0xff]   ;;  %v15563_v51 = vld [vmem:[#allocation2 + $0xd48] ss:$84 sps:$4 sm:$0xff]   ;;  %v15571_v22 = vld [vmem:[#allocation2 + $0xe04] ss:$84 sps:$4 sm:$0xff]  }
0x2304   :  { %12818 = vrot.lane.b32.xlu0 %v12017_v19, %s15619_s6  ;;  %v15568_v52 = vld [vmem:[#allocation2 + $0xdfc] ss:$84 sps:$4 sm:$0xff]   ;;  %v15566_v37 = vld [vmem:[#allocation2 + $0xdf8] ss:$84 sps:$4 sm:$0xff]   ;;  %v15569_v54 = vld [vmem:[#allocation2 + $0xe00] ss:$84 sps:$4 sm:$0xff]  }
0x2305   :  { %v15574_v55 = vld [vmem:[#allocation2 + $0xd54] ss:$84 sps:$4 sm:$0xff]   ;;  %v15577_v56 = vld [vmem:[#allocation2 + $0xd5c] ss:$84 sps:$4 sm:$0xff]   ;;  %v15575_v57 = vld [vmem:[#allocation2 + $0xd58] ss:$84 sps:$4 sm:$0xff]  }
0x2306   :  { %v15572_v25 = vld [vmem:[#allocation2 + $0xd50] ss:$84 sps:$4 sm:$0xff]   ;;  %v15580_v60 = vld [vmem:[#allocation2 + $0xe0c] ss:$84 sps:$4 sm:$0xff]   ;;  %v15583_v61 = vld [vmem:[#allocation2 + $0xe14] ss:$84 sps:$4 sm:$0xff]  }
0x2307   :  { %v15578_v6 = vld [vmem:[#allocation2 + $0xe08] ss:$84 sps:$4 sm:$0xff]   ;;  %v15581_v0 = vld [vmem:[#allocation2 + $0xe10] ss:$84 sps:$4 sm:$0xff]   ;;  %v15589_v3 = vld [vmem:[#allocation2 + $0xd6c] ss:$84 sps:$4 sm:$0xff]  }
0x2308   :  { %v15586_v41 = vld [vmem:[#allocation2 + $0xd64] ss:$84 sps:$4 sm:$0xff]   ;;  %v15584_v4 = vld [vmem:[#allocation2 + $0xd60] ss:$84 sps:$4 sm:$0xff]   ;;  %v15587_v28 = vld [vmem:[#allocation2 + $0xd68] ss:$84 sps:$4 sm:$0xff]  }
0x2309   :  { %v15590_v7 = vld [vmem:[#allocation2 + $0xe18] ss:$84 sps:$4 sm:$0xff]   ;;  %v15591_v8 = vld [vmem:[#allocation2 + $0xd70] ss:$84 sps:$4 sm:$0xff]  }
0x230a   :  { %v12028_v31 = vld [vmem:[%s19635_s9 + $0x10] sm:$0xff]  ;;  %v12029_v49 = vld [vmem:[%s19635_s9 + $0x18] sm:$0xff]  ;;  %v12030_v23 = vld [vmem:[%s19635_s9 + $0x20] sm:$0xff] }
0x230b   :  { %v12032_v36 = vld [vmem:[%s19635_s9 + $0x30] sm:$0xff]  ;;  %v12031_v29 = vld [vmem:[%s19635_s9 + $0x28] sm:$0xff]  ;;  %v12033_v62 = vld [vmem:[%s19635_s9 + $0x38] sm:$0xff] }
0x236e   :  { %v19448_v32 = vpop.permute.xlu0 %12093 }
0x236f   :  { %14136 = vmatmul.mubr.msk.bf16.vlgmr.msra.gmra.mxu0 %vm1718_vm2, %v19448_v32  ;;  %14137 = vmatmul.mubr.msk.bf16.vlgmr.msra.gmra.mxu1 %vm1718_vm2, %v19448_v32 }
0x2370   :  { %12405 = vmatpush1.bf16.msra.mxu0 %v15542_v34  ;;  %12446 = vmatpush1.bf16.msra.mxu1 %v15545_v5 }
0x2371   :  { %12406 = vmatprep.subr.bf16.mxu0 %v15550_v17  ;;  %12447 = vmatprep.subr.bf16.mxu1 %v15553_v27 }
0x2372   :  { %12424 = vmatprep.mubr.bf16.mxu0 %v15616_v58  ;;  %12465 = vmatprep.mubr.bf16.mxu1 %v15616_v58  ;;  %v12804_v44 = vpop.permute.xlu0 %12803 }
0x2373   :  { %12806 = vst.msk [vmem:[%s19636_s10] sm:$0xff] %vm1718_vm2, %v12804_v44 }
0x2374   :  { %12407 = vmatpush1.bf16.msra.mxu0 %v15548_v38  ;;  %12448 = vmatpush1.bf16.msra.mxu1 %v15551_v40  ;;  %v12034_v38 = vld [vmem:[%s19635_s9 + $0x40] sm:$0xff]  ;;  %v12036_v40 = vld [vmem:[%s19635_s9 + $0x50] sm:$0xff] }
0x2375   :  { %12486 = vmatprep.subr.bf16.mxu0 %v15556_v43  ;;  %12527 = vmatprep.subr.bf16.mxu1 %v15559_v42 }
0x2376   :  { %v12819_v9 = vpop.permute.xlu0 %12818 }
0x2377   :  { %14138 = vmatmul.mubr.msk.bf16.vlgmr.msra.gmra.mxu0 %vm1718_vm2, %v19448_v32  ;;  %14139 = vmatmul.mubr.msk.bf16.vlgmr.msra.gmra.mxu1 %vm1718_vm2, %v19448_v32  ;;  %12821 = vst.msk [vmem:[%s19637_s11 + $0x8] sm:$0xff] %vm1718_vm2, %v12819_v9 }
0x2378   :  { %12487 = vmatpush1.bf16.msra.mxu0 %v15554_v16  ;;  %12528 = vmatpush1.bf16.msra.mxu1 %v15557_v35  ;;  %v12035_v16 = vld [vmem:[%s19635_s9 + $0x48] sm:$0xff]  ;;  %v12037_v35 = vld [vmem:[%s19635_s9 + $0x58] sm:$0xff] }
0x2379   :  { %12488 = vmatprep.subr.bf16.mxu0 %v15562_v46  ;;  %12529 = vmatprep.subr.bf16.mxu1 %v15565_v48 }
0x237a   :  { %12506 = vmatprep.mubr.bf16.mxu0 %v15616_v58  ;;  %12547 = vmatprep.mubr.bf16.mxu1 %v15616_v58 }
0x237c   :  { %12489 = vmatpush1.bf16.msra.mxu0 %v15560_v50  ;;  %12530 = vmatpush1.bf16.msra.mxu1 %v15563_v51 }
0x237d   :  { %12568 = vmatprep.subr.bf16.mxu0 %v15568_v52  ;;  %12609 = vmatprep.subr.bf16.mxu1 %v15571_v22 }
0x237f   :  { %14140 = vmatmul.mubr.msk.bf16.vlgmr.msra.gmra.mxu0 %vm1718_vm2, %v19448_v32  ;;  %14141 = vmatmul.mubr.msk.bf16.vlgmr.msra.gmra.mxu1 %vm1718_vm2, %v19448_v32 }
0x2380   :  { %12569 = vmatpush1.bf16.msra.mxu0 %v15566_v37  ;;  %12610 = vmatpush1.bf16.msra.mxu1 %v15569_v54 }
0x2381   :  { %12570 = vmatprep.subr.bf16.mxu0 %v15574_v55  ;;  %12611 = vmatprep.subr.bf16.mxu1 %v15577_v56 }
0x2382   :  { %12588 = vmatprep.mubr.bf16.mxu0 %v15616_v58  ;;  %12629 = vmatprep.mubr.bf16.mxu1 %v15616_v58 }
0x2384   :  { %12571 = vmatpush1.bf16.msra.mxu0 %v15572_v25  ;;  %12612 = vmatpush1.bf16.msra.mxu1 %v15575_v57  ;;  %v12038_v25 = vld [vmem:[%s19635_s9 + $0x60] sm:$0xff]  ;;  %v12040_v57 = vld [vmem:[%s19635_s9 + $0x70] sm:$0xff] }
0x2385   :  { %12650 = vmatprep.subr.bf16.mxu0 %v15580_v60  ;;  %12691 = vmatprep.subr.bf16.mxu1 %v15583_v61 }
0x2387   :  { %14142 = vmatmul.mubr.msk.bf16.vlgmr.msra.gmra.mxu0 %vm1718_vm2, %v19448_v32  ;;  %14143 = vmatmul.mubr.msk.bf16.vlgmr.msra.gmra.mxu1 %vm1718_vm2, %v19448_v32 }
0x2388   :  { %12651 = vmatpush1.bf16.msra.mxu0 %v15578_v6  ;;  %12692 = vmatpush1.bf16.msra.mxu1 %v15581_v0  ;;  %v12039_v6 = vld [vmem:[%s19635_s9 + $0x68] sm:$0xff]  ;;  %v12041_v0 = vld [vmem:[%s19635_s9 + $0x78] sm:$0xff] }
0x2389   :  { %12652 = vmatprep.subr.bf16.mxu0 %v15586_v41  ;;  %12693 = vmatprep.subr.bf16.mxu1 %v15589_v3 }
0x238a   :  { %12670 = vmatprep.mubr.bf16.mxu0 %v15616_v58  ;;  %12711 = vmatprep.mubr.bf16.mxu1 %v15616_v58  ;;  %v12809_v58 = vpop.permute.xlu1 %12808 }
0x238b   :  { %12811 = vst.msk [vmem:[%s19637_s11] sm:$0xff] %vm1718_vm2, %v12809_v58 }
0x238c   :  { %12653 = vmatpush1.bf16.msra.mxu0 %v15584_v4  ;;  %12694 = vmatpush1.bf16.msra.mxu1 %v15587_v28 }
0x238d   :  { %14655 = vmatprep.subr.bf16.mxu0 %v15614_v15 }
0x238e   :  { %v12814_v47 = vpop.permute.xlu1 %12813 }
0x238f   :  { %14144 = vmatmul.mubr.msk.bf16.vlgmr.msra.gmra.mxu0 %vm1718_vm2, %v19448_v32  ;;  %14145 = vmatmul.mubr.msk.bf16.vlgmr.msra.gmra.mxu1 %vm1718_vm2, %v19448_v32  ;;  %12816 = vst.msk [vmem:[%s19636_s10 + $0x8] sm:$0xff] %vm1718_vm2, %v12814_v47 }
0x2390   :  { %14656 = vmatpush3.bf16.msra.mxu0 %v15590_v7  ;;  %14659 = vmatprep.mubr.msk.bf16.mxu0 %vm15615_vm1, %v15614_v15 }
0x2391   :  { %14657 = vmatprep.subr.bf16.mxu0 %v15614_v15  ;;  %v12026_v15 = vld [vmem:[%s19635_s9] sm:$0xff] }
0x2394   :  { %14658 = vmatpush3.bf16.msra.mxu0 %v15591_v8 }
0x2397   :  { %14660 = vmatmul.mubr.msk.bf16.vlgmr.msra.gmra.mxu0 %vm1718_vm2, %v19448_v32 }
0x242f   :  { %v12344_v10 = vpop.f32.mrf.mxu0  ;;  %v12385_v53 = vpop.f32.mrf.mxu1 }
0x2430   :  { %v12760_v11 = vadd.f32 %v12344_v10, %v12026_v15  ;;  %v12762_v59 = vadd.f32 %v12385_v53, %v12028_v31  ;;  %v12042_v15 = vld [vmem:[%s19635_s9 + $0x80] sm:$0xff]  ;;  %v12044_v31 = vld [vmem:[%s19635_s9 + $0x90] sm:$0xff] }
0x2431   :  { %v12346_v13 = vpop.f32.mrf.mxu0  ;;  %v12387_v14 = vpop.f32.mrf.mxu1 }
0x2432   :  { %12781 = vst [vmem:[%s19635_s9] sm:$0xff] %v12760_v11  ;;  %12783 = vst [vmem:[%s19635_s9 + $0x10] sm:$0xff] %v12762_v59  ;;  %v12761_v18 = vadd.f32 %v12346_v13, %v12027_v45  ;;  %v12763_v39 = vadd.f32 %v12387_v14, %v12029_v49  ;;  %v12043_v45 = vld [vmem:[%s19635_s9 + $0x88] sm:$0xff]  ;;  %v12045_v49 = vld [vmem:[%s19635_s9 + $0x98] sm:$0xff] }
0x2433   :  { %v12348_v19 = vpop.f32.mrf.mxu0  ;;  %v12389_v1 = vpop.f32.mrf.mxu1 }
0x2434   :  { %12782 = vst [vmem:[%s19635_s9 + $0x8] sm:$0xff] %v12761_v18  ;;  %12784 = vst [vmem:[%s19635_s9 + $0x18] sm:$0xff] %v12763_v39 }
0x2435   :  { %v12349_v20 = vpop.f32.mrf.mxu0  ;;  %v12390_v21 = vpop.f32.mrf.mxu1 }
0x2437   :  { %v12426_v24 = vpop.f32.mrf.mxu0  ;;  %v12467_v26 = vpop.f32.mrf.mxu1 }
0x2438   :  { %v12764_v30 = vadd.f32 %v12426_v24, %v12030_v23  ;;  %v12766_v12 = vadd.f32 %v12467_v26, %v12032_v36  ;;  %v12046_v23 = vld [vmem:[%s19635_s9 + $0xa0] sm:$0xff] }
0x2439   :  { %v12428_v63 = vpop.f32.mrf.mxu0  ;;  %v12469_v2 = vpop.f32.mrf.mxu1 }
0x243a   :  { %12785 = vst [vmem:[%s19635_s9 + $0x20] sm:$0xff] %v12764_v30  ;;  %12787 = vst [vmem:[%s19635_s9 + $0x30] sm:$0xff] %v12766_v12  ;;  %v12765_v33 = vadd.f32 %v12428_v63, %v12031_v29  ;;  %v12767_v34 = vadd.f32 %v12469_v2, %v12033_v62 }
0x243b   :  { %v12430_v5 = vpop.f32.mrf.mxu0  ;;  %v12471_v17 = vpop.f32.mrf.mxu1 }
0x243c   :  { %12786 = vst [vmem:[%s19635_s9 + $0x28] sm:$0xff] %v12765_v33  ;;  %12788 = vst [vmem:[%s19635_s9 + $0x38] sm:$0xff] %v12767_v34 }
0x243d   :  { %v12431_v27 = vpop.f32.mrf.mxu0  ;;  %v12472_v32 = vpop.f32.mrf.mxu1 }
0x243f   :  { %v12508_v43 = vpop.f32.mrf.mxu0  ;;  %v12549_v42 = vpop.f32.mrf.mxu1 }
0x2440   :  { %v12768_v46 = vadd.f32 %v12508_v43, %v12034_v38  ;;  %v12770_v48 = vadd.f32 %v12549_v42, %v12036_v40 }
0x2441   :  { %v12510_v50 = vpop.f32.mrf.mxu0  ;;  %v12551_v51 = vpop.f32.mrf.mxu1 }
0x2442   :  { %12789 = vst [vmem:[%s19635_s9 + $0x40] sm:$0xff] %v12768_v46  ;;  %12791 = vst [vmem:[%s19635_s9 + $0x50] sm:$0xff] %v12770_v48  ;;  %v12769_v52 = vadd.f32 %v12510_v50, %v12035_v16  ;;  %v12771_v22 = vadd.f32 %v12551_v51, %v12037_v35 }
0x2443   :  { %v12512_v37 = vpop.f32.mrf.mxu0  ;;  %v12553_v54 = vpop.f32.mrf.mxu1 }
0x2444   :  { %12790 = vst [vmem:[%s19635_s9 + $0x48] sm:$0xff] %v12769_v52  ;;  %12792 = vst [vmem:[%s19635_s9 + $0x58] sm:$0xff] %v12771_v22 }
0x2445   :  { %v12513_v55 = vpop.f32.mrf.mxu0  ;;  %v12554_v56 = vpop.f32.mrf.mxu1 }
0x2447   :  { %v12590_v60 = vpop.f32.mrf.mxu0  ;;  %v12631_v61 = vpop.f32.mrf.mxu1 }
0x2448   :  { %v12772_v41 = vadd.f32 %v12590_v60, %v12038_v25  ;;  %v12774_v3 = vadd.f32 %v12631_v61, %v12040_v57 }
0x2449   :  { %v12592_v4 = vpop.f32.mrf.mxu0  ;;  %v12633_v28 = vpop.f32.mrf.mxu1 }
0x244a   :  { %12793 = vst [vmem:[%s19635_s9 + $0x60] sm:$0xff] %v12772_v41  ;;  %12795 = vst [vmem:[%s19635_s9 + $0x70] sm:$0xff] %v12774_v3  ;;  %v12773_v7 = vadd.f32 %v12592_v4, %v12039_v6  ;;  %v12775_v8 = vadd.f32 %v12633_v28, %v12041_v0 }
0x244b   :  { %v12594_v58 = vpop.f32.mrf.mxu0  ;;  %v12635_v44 = vpop.f32.mrf.mxu1 }
0x244c   :  { %12794 = vst [vmem:[%s19635_s9 + $0x68] sm:$0xff] %v12773_v7  ;;  %12796 = vst [vmem:[%s19635_s9 + $0x78] sm:$0xff] %v12775_v8 }
0x244d   :  { %v12595_v47 = vpop.f32.mrf.mxu0  ;;  %v12636_v9 = vpop.f32.mrf.mxu1 }
0x244f   :  { %v12672_v10 = vpop.f32.mrf.mxu0  ;;  %v12713_v53 = vpop.f32.mrf.mxu1 }
0x2450   :  { %v12776_v11 = vadd.f32 %v12672_v10, %v12042_v15  ;;  %v12778_v59 = vadd.f32 %v12713_v53, %v12044_v31 }
0x2451   :  { %v12674_v13 = vpop.f32.mrf.mxu0  ;;  %v12715_v14 = vpop.f32.mrf.mxu1 }
0x2452   :  { %12797 = vst [vmem:[%s19635_s9 + $0x80] sm:$0xff] %v12776_v11  ;;  %12799 = vst [vmem:[%s19635_s9 + $0x90] sm:$0xff] %v12778_v59  ;;  %v12777_v18 = vadd.f32 %v12674_v13, %v12043_v45  ;;  %v12779_v39 = vadd.f32 %v12715_v14, %v12045_v49 }
0x2453   :  { %v12676_v19 = vpop.f32.mrf.mxu0  ;;  %v12717_v1 = vpop.f32.mrf.mxu1 }
0x2454   :  { %12798 = vst [vmem:[%s19635_s9 + $0x88] sm:$0xff] %v12777_v18  ;;  %12800 = vst [vmem:[%s19635_s9 + $0x98] sm:$0xff] %v12779_v39 }
0x2455   :  { %v12677_v20 = vpop.f32.mrf.mxu0  ;;  %v12718_v21 = vpop.f32.mrf.mxu1 }
0x2457   :  { %v12754_v36 = vpop.f32.mrf.mxu0 }
0x2458   :  { %v12780_v24 = vadd.f32 %v12754_v36, %v12046_v23 }
0x2459   :  { %v14661_v26 = vpop.f32.mrf.mxu0 }
0x245a   :  { %12801 = vst [vmem:[%s19635_s9 + $0xa0] sm:$0xff] %v12780_v24 }
0x245b   :  { %v12757_v29 = vpop.f32.mrf.mxu0 }
0x245d   :  { %v14662_v62 = vpop.f32.mrf.mxu0 }
0x245e   :  { %12834 = vsyncmov [#allocation3] }
0x2461   :  { %s12835_s8 = vpop.sfrf %12834 }
0x2462   :  { %p14147_p0 = scmp.ne.s32.totalorder %s12835_s8, 0 }
0x2464   :  { %12839 = shalt.err (%p14147_p0)  }
0x2465   :  { %12841 = vsyncmov [#allocation3 + $0x1] }
0x2468   :  { %s12842_s22 = vpop.sfrf %12841 }
0x2469   :  { %p14148_p1 = scmp.ne.s32.totalorder %s12842_s22, 0 }
0x246b   :  { %12846 = shalt.err (%p14148_p1)  }
0x246c   :  { %12848 = vsyncmov [#allocation3 + $0x2] }
0x246f   :  { %s12849_s0 = vpop.sfrf %12848 }
0x2470   :  { %p14149_p2 = scmp.ne.s32.totalorder %s12849_s0, 0 }
0x2472   :  { %12853 = shalt.err (%p14149_p2)  }
0x2473   :  { %12855 = vsyncmov [#allocation3 + $0x3] }
0x2476   :  { %s12856_s24 = vpop.sfrf %12855 }
0x2477   :  { %p14150_p3 = scmp.ne.s32.totalorder %s12856_s24, 0 }
0x2479   :  { %12860 = shalt.err (%p14150_p3)  }
0x247a   :  { %12862 = vsyncmov [#allocation3 + $0x4] }
0x247d   :  { %s12863_s9 = vpop.sfrf %12862 }
0x247e   :  { %p14151_p4 = scmp.ne.s32.totalorder %s12863_s9, 0 }
0x2480   :  { %12867 = shalt.err (%p14151_p4)  }
0x2481   :  { %12869 = vsyncmov [#allocation3 + $0x5] }
0x2484   :  { %s12870_s25 = vpop.sfrf %12869 }
0x2485   :  { %p14152_p5 = scmp.ne.s32.totalorder %s12870_s25, 0 }
0x2487   :  { %12874 = shalt.err (%p14152_p5)  }
0x2488   :  { %12876 = vsyncmov [#allocation3 + $0x6] }
0x248b   :  { %s12877_s26 = vpop.sfrf %12876 }
0x248c   :  { %p14153_p6 = scmp.ne.s32.totalorder %s12877_s26, 0 }
0x248e   :  { %12881 = shalt.err (%p14153_p6)  }
0x248f   :  { %12883 = vsyncmov [#allocation3 + $0x7] }
0x2492   :  { %s12884_s27 = vpop.sfrf %12883 }
0x2493   :  { %p14154_p7 = scmp.ne.s32.totalorder %s12884_s27, 0 }
0x2495   :  { %12888 = shalt.err (%p14154_p7)  }
0x2496   :  { %12890 = vsyncmov [#allocation3 + $0x8] }
0x2499   :  { %s12891_s28 = vpop.sfrf %12890 }
0x249a   :  { %p14155_p8 = scmp.ne.s32.totalorder %s12891_s28, 0 }
0x249c   :  { %12895 = shalt.err (%p14155_p8)  }
0x249d   :  { %12897 = vsyncmov [#allocation3 + $0x9] }
0x24a0   :  { %s12898_s2 = vpop.sfrf %12897 }
0x24a1   :  { %p14156_p9 = scmp.ne.s32.totalorder %s12898_s2, 0 }
0x24a3   :  { %12902 = shalt.err (%p14156_p9)  }
0x24a4   :  { %12904 = vsyncmov [#allocation3 + $0xa] }
0x24a7   :  { %s12905_s29 = vpop.sfrf %12904 }
0x24a8   :  { %p14157_p10 = scmp.ne.s32.totalorder %s12905_s29, 0 }
0x24aa   :  { %12909 = shalt.err (%p14157_p10)  }

</bundles_post_ra>
